<compile_context>
chip_gen: v6e
topology: v6e:2x2x1
jax: 0.10.0
libtpu: 0.0.40
codegen_flags: <defaults>
</compile_context>

<pallas_src>
import jax
import jax.numpy as jnp
from jax.experimental import pallas as pl
from jax.experimental.pallas import tpu as pltpu

LEAKY_SLOPE = 0.01          # PyTorch F.leaky_relu default
KSZ = 8                     # Feature_extractor_1DCNN kernel size (module __init__)
CONV_PAD = KSZ // 2         # TODO(synk): Model_Base conv padding unavailable; pad=4 assumed
VMEM_LIMIT = 48 * 1024 * 1024   # explicit scoped-VMEM budget: > v5e 16MiB default, < v7x 64MiB


def _leaky_relu(x):
    return jnp.where(x > 0, x, LEAKY_SLOPE * x)


def _softmax_last(x):
    # exact normalization (review: approx reciprocal error compounds through S^T A S)
    m = jnp.max(x, axis=-1, keepdims=True)
    e = jnp.exp(x - m)
    return e / jnp.sum(e, axis=-1, keepdims=True)


def _pick_batch_tile(b, target):
    t = max(1, min(target, b))
    while b % t:
        t -= 1
    return t


# ----------------------------------------------------------------------------
# Kernel 1: fused 3-block 1D-CNN (conv(im2col matmul) + BN(folded) + ReLU + maxpool) x 3
#           channel-last activations [TB, L, C]; all intermediates live in VMEM scratch.
# ----------------------------------------------------------------------------
def _make_cnn3_kernel(ksz, pad, n_nodes, emb):
    def kernel(xp_ref, w1_ref, b1_ref, w2_ref, b2_ref, w3_ref, b3_ref, o_ref,
               col1, t1, h1, col2, t2, h2, col3, t3):

        def conv_pool(x_ref, w_ref, b_ref, col_ref, t_ref):
            # x_ref: [TB, Lp, Cin] (bf16), already zero-padded along time for this conv.
            tb, lp, cin = x_ref.shape
            lout = lp - ksz + 1
            cout = w_ref.shape[1]
            p = t_ref.shape[1] // 2
            # Conv1d(k=8,s=1) as ONE matmul over an in-VMEM im2col tile (K folded into the
            # contraction depth -> much better MXU fill than 8 shallow shift-matmuls).
            for k in range(ksz):                                    # static lane-offset stores
                col_ref[:, :, k * cin:(k + 1) * cin] = x_ref[:, k:k + lout, :]
            acc = jnp.dot(col_ref[...].reshape(tb * lout, ksz * cin), w_ref[...],
                          preferred_element_type=jnp.float32)
            y = jnp.maximum(acc + b_ref[...], 0.0)                  # BN(eval, folded) + ReLU
            # MaxPool1d(k=2,s=2,pad=1): stage y at row offset 1 (rows 0 / tail stay zero --
            # a valid "-inf" pad because y >= 0 post-ReLU), then pairwise max of two
            # stride-2 sublane loads.  O(L*C) instead of the old O(L^2*C) selector matmuls.
            t_ref[:, 0:1, :] = jnp.zeros((tb, 1, cout), jnp.float32)
            if 2 * p > lout + 1:
                t_ref[:, lout + 1:, :] = jnp.zeros((tb, 2 * p - lout - 1, cout), jnp.float32)
            t_ref[:, 1:lout + 1, :] = y.reshape(tb, lout, cout)
            left = t_ref[:, pl.ds(0, p, stride=2), :]
            right = t_ref[:, pl.ds(1, p, stride=2), :]
            return jnp.maximum(left, right)                         # [TB, P, Cout] f32

        def to_padded(pool, h_ref):
            # pooled output (bf16) -> next conv's zero-padded input buffer
            tb, p, c = pool.shape
            h_ref[:, :pad, :] = jnp.zeros((tb, pad, c), h_ref.dtype)
            h_ref[:, pad + p:, :] = jnp.zeros((tb, pad, c), h_ref.dtype)
            h_ref[:, pad:pad + p, :] = pool.astype(h_ref.dtype)

        to_padded(conv_pool(xp_ref, w1_ref, b1_ref, col1, t1), h1)
        to_padded(conv_pool(h1, w2_ref, b2_ref, col2, t2), h2)
        pool3 = conv_pool(h2, w3_ref, b3_ref, col3, t3)             # [TB, T', emb*N] f32
        # Fold the [B,T',N*emb] -> [B,N,T',emb] relayout into the output write so the graph
        # kernel consumes a *free* reshape of this output (no XLA relayout between kernels).
        for n in range(n_nodes):
            o_ref[:, n, :, :] = pool3[:, :, n * emb:(n + 1) * emb].astype(o_ref.dtype)

    return kernel


def _fold_conv_bn(w, gamma, beta):
    # TODO(synk): BN running statistics unavailable; eval mode mean=0/var=1 assumed, so gamma
    #             folds into the conv weight and beta becomes the bias.
    wf = jnp.transpose(w, (2, 1, 0)).astype(jnp.float32)            # [K, Cin, Cout]
    wf = wf * gamma.astype(jnp.float32).reshape(1, 1, -1)
    k, cin, cout = wf.shape
    return (wf.reshape(k * cin, cout).astype(jnp.bfloat16),         # bf16 MXU operand
            beta.astype(jnp.float32).reshape(1, -1))


def feature_extractor_1dcnn(x, fe_params, num_node, batch_tile=4):
    # x: [B, L, Cin] channel-last -> [B, N, T', emb] (bf16); one fused, batch-tiled pallas_call.
    bs, length, cin = x.shape
    w1, b1 = _fold_conv_bn(*fe_params["b1"])
    w2, b2 = _fold_conv_bn(*fe_params["b2"])
    w3, b3 = _fold_conv_bn(*fe_params["b3"])
    chid, chid2, cout = w1.shape[1], w2.shape[1], w3.shape[1]
    emb = cout // num_node
    pad = CONV_PAD

    l1 = length + 2 * pad
    lout1 = l1 - KSZ + 1; p1 = lout1 // 2 + 1
    l2 = p1 + 2 * pad
    lout2 = l2 - KSZ + 1; p2 = lout2 // 2 + 1
    l3 = p2 + 2 * pad
    lout3 = l3 - KSZ + 1; p3 = lout3 // 2 + 1

    xp = jnp.pad(x, ((0, 0), (pad, pad), (0, 0))).astype(jnp.bfloat16)

    tb = _pick_batch_tile(bs, batch_tile)    # lower batch_tile on v7x (64 MiB) / v5e if needed
    grid = (bs // tb,)

    flops = 2 * bs * (lout1 * KSZ * cin * chid + lout2 * KSZ * chid * chid2
                      + lout3 * KSZ * chid2 * cout)
    bytes_accessed = 2 * (bs * l1 * cin + bs * num_node * p3 * emb
                          + int(w1.size) + int(w2.size) + int(w3.size)) \
                     + 4 * (int(b1.size) + int(b2.size) + int(b3.size))

    const2 = lambda i: (0, 0)
    return pl.pallas_call(
        _make_cnn3_kernel(KSZ, pad, num_node, emb),
        grid=grid,
        in_specs=[pl.BlockSpec((tb, l1, cin), lambda i: (i, 0, 0)),
                  pl.BlockSpec(w1.shape, const2), pl.BlockSpec(b1.shape, const2),
                  pl.BlockSpec(w2.shape, const2), pl.BlockSpec(b2.shape, const2),
                  pl.BlockSpec(w3.shape, const2), pl.BlockSpec(b3.shape, const2)],
        out_specs=pl.BlockSpec((tb, num_node, p3, emb), lambda i: (i, 0, 0, 0)),
        out_shape=jax.ShapeDtypeStruct((bs, num_node, p3, emb), jnp.bfloat16),
        scratch_shapes=[pltpu.VMEM((tb, lout1, KSZ * cin), jnp.bfloat16),   # im2col blk1
                        pltpu.VMEM((tb, 2 * p1, chid), jnp.float32),        # pre-pool blk1
                        pltpu.VMEM((tb, l2, chid), jnp.bfloat16),           # padded in blk2
                        pltpu.VMEM((tb, lout2, KSZ * chid), jnp.bfloat16),  # im2col blk2
                        pltpu.VMEM((tb, 2 * p2, chid2), jnp.float32),       # pre-pool blk2
                        pltpu.VMEM((tb, l3, chid2), jnp.bfloat16),          # padded in blk3
                        pltpu.VMEM((tb, lout3, KSZ * chid2), jnp.bfloat16), # im2col blk3
                        pltpu.VMEM((tb, 2 * p3, cout), jnp.float32)],       # pre-pool blk3
        compiler_params=pltpu.CompilerParams(dimension_semantics=("parallel",),
                                             vmem_limit_bytes=VMEM_LIMIT),
        cost_estimate=pl.CostEstimate(flops=int(flops), transcendentals=0,
                                      bytes_accessed=int(bytes_accessed)),
    )(xp, w1, b1, w2, b2, w3, b3)


# ----------------------------------------------------------------------------
# Kernel 2: fused graph path (dot_graph_construction + all blocks + fc head), batch-tiled.
#   A = softmax(leaky_relu(X X^T - 1e8 I), -1) + I
#   per layer:  AX = A X ; S = softmax(AX Wp + bp) ; Z = leaky_relu(AX We + be)
#               Xn = S^T Z ; An = S^T A S
#   head:       leaky_relu(fc_1(leaky_relu(fc_0(flatten(Xn)))))
# ----------------------------------------------------------------------------
def _make_graph_kernel(n_layers, n_last):
    def kernel(*refs):
        eye_ref, x_ref = refs[0], refs[1]
        lrefs = refs[2:2 + 4 * n_layers]
        w0_ref, b0_ref, w1_ref, b1_ref, o_ref = refs[2 + 4 * n_layers:]

        eye = eye_ref[...]                                          # [N, N] f32
        x = x_ref[...]                                              # [TB, N, D] bf16

        # dot_graph_construction (bf16 MXU operands, f32 accumulate / elementwise)
        s = jnp.einsum('bnd,bmd->bnm', x, x, preferred_element_type=jnp.float32)
        a = _softmax_last(_leaky_relu(s - 1e8 * eye)) + eye         # [TB, N, N] f32

        for l in range(n_layers):
            wp_ref, bp_ref, we_ref, be_ref = lrefs[4 * l:4 * l + 4]
            tb, n_in, d_in = x.shape
            n_out = wp_ref.shape[1]
            d_out = we_ref.shape[1]
            a16 = a.astype(jnp.bfloat16)
            x16 = x.astype(jnp.bfloat16)
            ax = jnp.einsum('bnm,bmd->bnd', a16, x16,
                            preferred_element_type=jnp.float32)                 # A X
            ax16 = ax.astype(jnp.bfloat16).reshape(tb * n_in, d_in)             # batched dots
            s2 = _softmax_last(jnp.dot(ax16, wp_ref[...],
                                       preferred_element_type=jnp.float32) + bp_ref[...])
            z2 = _leaky_relu(jnp.dot(ax16, we_ref[...],
                                     preferred_element_type=jnp.float32) + be_ref[...])
            s3 = s2.reshape(tb, n_in, n_out)
            z3 = z2.reshape(tb, n_in, d_out).astype(jnp.bfloat16)
            # S/A are [TB, #nodes, #nodes] with tiny node counts -> explicit XLU transpose is
            # negligible and keeps dot dimension_numbers canonical for robust lowering.
            st = jnp.transpose(s3, (0, 2, 1)).astype(jnp.bfloat16)              # S^T
            s16 = s3.astype(jnp.bfloat16)
            x = jnp.einsum('bkn,bne->bke', st, z3,
                           preferred_element_type=jnp.float32)                  # Xn = S^T Z
            a_s = jnp.einsum('bnm,bmk->bnk', a16, s16,
                             preferred_element_type=jnp.float32)                # A S
            a = jnp.einsum('bkn,bnm->bkm', st, a_s.astype(jnp.bfloat16),
                           preferred_element_type=jnp.float32)                  # S^T A S

        # head: fc_0 over flatten(Xn) as n_last per-node dots (n_last is tiny, each dot keeps
        # the full d_last contraction depth), then fc_1; both with leaky_relu.
        x16 = x.astype(jnp.bfloat16)
        h = b0_ref[...]                                             # [1, H] f32
        for n in range(n_last):
            h = h + jnp.dot(x16[:, n, :], w0_ref[n], preferred_element_type=jnp.float32)
        h = _leaky_relu(h)
        out = _leaky_relu(jnp.dot(h.astype(jnp.bfloat16), w1_ref[...],
                                  preferred_element_type=jnp.float32) + b1_ref[...])
        o_ref[:, 0, :] = out.astype(o_ref.dtype)
    return kernel


def graph_path(gc_in, gc_params, fc_params, n_last, batch_tile=4):
    bs, num_node, d1 = gc_in.shape
    n_layers = len(gc_params)
    w0, b0, w1, b1 = fc_params
    d_last = gc_params[-1][2].shape[1]                              # Dout of last graph block
    hdim = w0.shape[1]
    ncls = w1.shape[1]
    w0r = w0.reshape(n_last, d_last, hdim).astype(jnp.bfloat16)     # torch row-major flatten
    w1b = w1.astype(jnp.bfloat16)
    eye = jnp.eye(num_node, dtype=jnp.float32)

    tb = _pick_batch_tile(bs, batch_tile)
    grid = (bs // tb,)

    layer_args, layer_specs = [], []
    const2 = lambda i: (0, 0)
    flops = 2 * bs * num_node * num_node * d1
    trans = bs * num_node * num_node
    n_in = num_node
    for (wp, bp, we, be) in gc_params:
        wp16, we16 = wp.astype(jnp.bfloat16), we.astype(jnp.bfloat16)
        bp2 = bp.reshape(1, -1).astype(jnp.float32)
        be2 = be.reshape(1, -1).astype(jnp.float32)
        layer_args += [wp16, bp2, we16, be2]
        layer_specs += [pl.BlockSpec(wp16.shape, const2), pl.BlockSpec(bp2.shape, const2),
                        pl.BlockSpec(we16.shape, const2), pl.BlockSpec(be2.shape, const2)]
        din, n_out = wp.shape
        d_out = we.shape[1]
        flops += 2 * bs * (n_in * n_in * din + n_in * din * (n_out + d_out)
                           + n_out * n_in * d_out + n_in * n_in * n_out + n_out * n_in * n_out)
        trans += bs * n_in * n_out
        n_in = n_out
    flops += 2 * bs * (n_last * d_last * hdim + hdim * ncls)
    bytes_accessed = 2 * (int(gc_in.size) + sum(int(a.size) for a in layer_args[::2])
                          + int(w0r.size) + int(w1b.size)) + 4 * bs * ncls

    out = pl.pallas_call(
        _make_graph_kernel(n_layers, n_last),
        grid=grid,
        in_specs=[pl.BlockSpec((num_node, num_node), const2),
                  pl.BlockSpec((tb, num_node, d1), lambda i: (i, 0, 0))]
                 + layer_specs
                 + [pl.BlockSpec(w0r.shape, lambda i: (0, 0, 0)),
                    pl.BlockSpec((1, hdim), const2),
                    pl.BlockSpec(w1b.shape, const2),
                    pl.BlockSpec((1, ncls), const2)],
        out_specs=pl.BlockSpec((tb, 1, ncls), lambda i: (i, 0, 0)),
        out_shape=jax.ShapeDtypeStruct((bs, 1, ncls), jnp.float32),
        compiler_params=pltpu.CompilerParams(dimension_semantics=("parallel",),
                                             vmem_limit_bytes=VMEM_LIMIT),
        cost_estimate=pl.CostEstimate(flops=int(flops), transcendentals=int(trans),
                                      bytes_accessed=int(bytes_accessed)),
    )(eye, gc_in, *layer_args,
      w0r, b0.reshape(1, -1).astype(jnp.float32), w1b, b1.reshape(1, -1).astype(jnp.float32))
    return out.reshape(bs, ncls)


# ----------------------------------------------------------------------------
# Full model forward: glue reshapes in plain JAX (all free / contiguous), compute in 2 fused,
# batch-tiled Pallas kernels.
# ----------------------------------------------------------------------------
def graph_classification_forward(X, params, args, batch_tile=4):
    bs, tlen, num_node, dimension = X.shape
    x = X.reshape(bs, tlen, dimension * num_node)                   # channel-last conv input
    td = feature_extractor_1dcnn(x, params["fe"], num_node, batch_tile)   # [B, N, T', emb]
    tprime, emb = td.shape[2], td.shape[3]
    assert tprime == args.convo_time_length, (tprime, args.convo_time_length)
    gc_in = td.reshape(bs, num_node, tprime * emb)                  # free contiguous reshape
    return graph_path(gc_in, params["gc"], params["fc"], args.num_sensor_last, batch_tile)


# ----------------------------------------------------------------------------
# Deterministic parameter initialization (shapes follow the module __init__)
# ----------------------------------------------------------------------------
def _w(key, shape, fan_in):
    return (fan_in ** -0.5) * jax.random.normal(key, shape, jnp.float32)


def init_params(key, args, input_dimension, hidden_dimension, embedding_dimension):
    N = args.num_nodes
    cin = input_dimension * N
    chid = hidden_dimension * N
    cout = embedding_dimension * N
    T = args.convo_time_length
    emb = embedding_dimension
    keys = jax.random.split(key, 16)

    fe = {
        "b1": (_w(keys[0], (chid, cin, 8), cin * 8), jnp.ones((chid,)), jnp.zeros((chid,))),
        "b2": (_w(keys[1], (chid, chid, 8), chid * 8), jnp.ones((chid,)), jnp.zeros((chid,))),
        "b3": (_w(keys[2], (cout, chid, 8), chid * 8), jnp.ones((cout,)), jnp.zeros((cout,))),
    }

    d1 = emb * T

    def gc_block(kp, ke, din, dout, nout):
        return (_w(kp, (din, nout), din), jnp.zeros((1, nout)),
                _w(ke, (din, dout), din), jnp.zeros((1, dout)))

    if args.layers == 1:
        gcs = [gc_block(keys[3], keys[4], d1, d1 * 3, args.num_sensor_last)]
    elif args.layers == 2:
        gcs = [gc_block(keys[3], keys[4], d1, d1 * 2, args.hidden_node1),
               gc_block(keys[5], keys[6], d1 * 2, d1 * 3, args.num_sensor_last)]
    elif args.layers == 3:
        gcs = [gc_block(keys[3], keys[4], d1, d1 * 2, args.hidden_node1),
               gc_block(keys[5], keys[6], d1 * 2, d1 * 3, args.hidden_node2),
               gc_block(keys[7], keys[8], d1 * 3, d1 * 3, args.num_sensor_last)]
    else:
        raise ValueError("args.layers must be 1, 2 or 3")

    fin = T * args.num_sensor_last * emb * 3
    fc = (_w(keys[9], (fin, emb * 3), fin), jnp.zeros((emb * 3,)),
          _w(keys[10], (emb * 3, args.num_class), emb * 3), jnp.zeros((args.num_class,)))

    return {"fe": fe, "gc": gcs, "fc": fc}


# ----------------------------------------------------------------------------
if __name__ == "__main__":
    class Args:
        pass

    args = Args()
    args.num_nodes = 4
    args.embedding_dimension = 4
    args.convo_time_length = 4      # = output time length of the 1D CNN for tlen=16
    args.layers = 2
    args.hidden_node1 = 3
    args.num_sensor_last = 2
    args.num_class = 3

    input_dimension = 2
    hidden_dimension = 4
    embedding_dimension = 4
    bs, tlen = 8, 16                # batch_tile=4 -> both kernels run a 2-step parallel grid

    key = jax.random.PRNGKey(0)
    k_x, k_p = jax.random.split(key)
    X = jax.random.normal(k_x, (bs, tlen, args.num_nodes, input_dimension), jnp.float32)
    params = init_params(k_p, args, input_dimension, hidden_dimension, embedding_dimension)

    fwd = jax.jit(lambda xx: graph_classification_forward(xx, params, args, batch_tile=4))
    out = jax.block_until_ready(fwd(X))
    assert out.shape == (bs, args.num_class), out.shape
    assert bool(jnp.all(jnp.isfinite(out)))
    print("KERNEL_OK")
</pallas_src>

<mosaic_0001>
module attributes {stable_mosaic.version = 11 : i64} {
  func.func @kernel(%arg0: i32, %arg1: memref<4x24x8xbf16, #tpu.memory_space<vmem>>, %arg2: memref<64x16xbf16, #tpu.memory_space<vmem>>, %arg3: memref<1x16xf32, #tpu.memory_space<vmem>>, %arg4: memref<128x16xbf16, #tpu.memory_space<vmem>>, %arg5: memref<1x16xf32, #tpu.memory_space<vmem>>, %arg6: memref<128x16xbf16, #tpu.memory_space<vmem>>, %arg7: memref<1x16xf32, #tpu.memory_space<vmem>>, %arg8: memref<4x4x4x4xbf16, #tpu.memory_space<vmem>>, %arg9: memref<4x17x64xbf16, #tpu.memory_space<vmem>>, %arg10: memref<4x18x16xf32, #tpu.memory_space<vmem>>, %arg11: memref<4x17x16xbf16, #tpu.memory_space<vmem>>, %arg12: memref<4x10x128xbf16, #tpu.memory_space<vmem>>, %arg13: memref<4x12x16xf32, #tpu.memory_space<vmem>>, %arg14: memref<4x14x16xbf16, #tpu.memory_space<vmem>>, %arg15: memref<4x7x128xbf16, #tpu.memory_space<vmem>>, %arg16: memref<4x8x16xf32, #tpu.memory_space<vmem>>) attributes {dimension_semantics = [#tpu.dimension_semantics<parallel>], iteration_bounds = array<i64: 2>, scalar_prefetch = 0 : i64, scratch_operands = 8 : i64, tpu.core_type = #tpu.core_type<tc>, window_params = [{transform_indices = @transform_0, window_bounds = array<i64: 4, 24, 8>}, {pipeline_mode = #tpu.pipeline_mode<synchronous>, transform_indices = @transform_1, window_bounds = array<i64: 64, 16>}, {pipeline_mode = #tpu.pipeline_mode<synchronous>, transform_indices = @transform_2, window_bounds = array<i64: 1, 16>}, {pipeline_mode = #tpu.pipeline_mode<synchronous>, transform_indices = @transform_3, window_bounds = array<i64: 128, 16>}, {pipeline_mode = #tpu.pipeline_mode<synchronous>, transform_indices = @transform_4, window_bounds = array<i64: 1, 16>}, {pipeline_mode = #tpu.pipeline_mode<synchronous>, transform_indices = @transform_5, window_bounds = array<i64: 128, 16>}, {pipeline_mode = #tpu.pipeline_mode<synchronous>, transform_indices = @transform_6, window_bounds = array<i64: 1, 16>}, {transform_indices = @transform_7, window_bounds = array<i64: 4, 4, 4, 4>}]} {
    %c0 = arith.constant 0 : index
    %c0_0 = arith.constant 0 : index
    %c0_1 = arith.constant 0 : index
    %0 = vector.load %arg1[%c0, %c0_0, %c0_1] : memref<4x24x8xbf16, #tpu.memory_space<vmem>>, vector<4x17x8xbf16>
    %c0_2 = arith.constant 0 : index
    %c0_3 = arith.constant 0 : index
    %c0_4 = arith.constant 0 : index
    %1 = vector.load %arg9[%c0_2, %c0_3, %c0_4] : memref<4x17x64xbf16, #tpu.memory_space<vmem>>, vector<4x17x8xbf16>
    tpu.vector_store %arg9[%c0_2, %c0_3, %c0_4], %0 {strides = array<i32>} : memref<4x17x64xbf16, #tpu.memory_space<vmem>>, vector<4x17x8xbf16>,
    %c0_5 = arith.constant 0 : index
    %c1 = arith.constant 1 : index
    %c0_6 = arith.constant 0 : index
    %2 = vector.load %arg1[%c0_5, %c1, %c0_6] : memref<4x24x8xbf16, #tpu.memory_space<vmem>>, vector<4x17x8xbf16>
    %c0_7 = arith.constant 0 : index
    %c0_8 = arith.constant 0 : index
    %c8 = arith.constant 8 : index
    %3 = vector.load %arg9[%c0_7, %c0_8, %c8] : memref<4x17x64xbf16, #tpu.memory_space<vmem>>, vector<4x17x8xbf16>
    tpu.vector_store %arg9[%c0_7, %c0_8, %c8], %2 {strides = array<i32>} : memref<4x17x64xbf16, #tpu.memory_space<vmem>>, vector<4x17x8xbf16>,
    %c0_9 = arith.constant 0 : index
    %c2 = arith.constant 2 : index
    %c0_10 = arith.constant 0 : index
    %4 = vector.load %arg1[%c0_9, %c2, %c0_10] : memref<4x24x8xbf16, #tpu.memory_space<vmem>>, vector<4x17x8xbf16>
    %c0_11 = arith.constant 0 : index
    %c0_12 = arith.constant 0 : index
    %c16 = arith.constant 16 : index
    %5 = vector.load %arg9[%c0_11, %c0_12, %c16] : memref<4x17x64xbf16, #tpu.memory_space<vmem>>, vector<4x17x8xbf16>
    tpu.vector_store %arg9[%c0_11, %c0_12, %c16], %4 {strides = array<i32>} : memref<4x17x64xbf16, #tpu.memory_space<vmem>>, vector<4x17x8xbf16>,
    %c0_13 = arith.constant 0 : index
    %c3 = arith.constant 3 : index
    %c0_14 = arith.constant 0 : index
    %6 = vector.load %arg1[%c0_13, %c3, %c0_14] : memref<4x24x8xbf16, #tpu.memory_space<vmem>>, vector<4x17x8xbf16>
    %c0_15 = arith.constant 0 : index
    %c0_16 = arith.constant 0 : index
    %c24 = arith.constant 24 : index
    %7 = vector.load %arg9[%c0_15, %c0_16, %c24] : memref<4x17x64xbf16, #tpu.memory_space<vmem>>, vector<4x17x8xbf16>
    tpu.vector_store %arg9[%c0_15, %c0_16, %c24], %6 {strides = array<i32>} : memref<4x17x64xbf16, #tpu.memory_space<vmem>>, vector<4x17x8xbf16>,
    %c0_17 = arith.constant 0 : index
    %c4 = arith.constant 4 : index
    %c0_18 = arith.constant 0 : index
    %8 = vector.load %arg1[%c0_17, %c4, %c0_18] : memref<4x24x8xbf16, #tpu.memory_space<vmem>>, vector<4x17x8xbf16>
    %c0_19 = arith.constant 0 : index
    %c0_20 = arith.constant 0 : index
    %c32 = arith.constant 32 : index
    %9 = vector.load %arg9[%c0_19, %c0_20, %c32] : memref<4x17x64xbf16, #tpu.memory_space<vmem>>, vector<4x17x8xbf16>
    tpu.vector_store %arg9[%c0_19, %c0_20, %c32], %8 {strides = array<i32>} : memref<4x17x64xbf16, #tpu.memory_space<vmem>>, vector<4x17x8xbf16>,
    %c0_21 = arith.constant 0 : index
    %c5 = arith.constant 5 : index
    %c0_22 = arith.constant 0 : index
    %10 = vector.load %arg1[%c0_21, %c5, %c0_22] : memref<4x24x8xbf16, #tpu.memory_space<vmem>>, vector<4x17x8xbf16>
    %c0_23 = arith.constant 0 : index
    %c0_24 = arith.constant 0 : index
    %c40 = arith.constant 40 : index
    %11 = vector.load %arg9[%c0_23, %c0_24, %c40] : memref<4x17x64xbf16, #tpu.memory_space<vmem>>, vector<4x17x8xbf16>
    tpu.vector_store %arg9[%c0_23, %c0_24, %c40], %10 {strides = array<i32>} : memref<4x17x64xbf16, #tpu.memory_space<vmem>>, vector<4x17x8xbf16>,
    %c0_25 = arith.constant 0 : index
    %c6 = arith.constant 6 : index
    %c0_26 = arith.constant 0 : index
    %12 = vector.load %arg1[%c0_25, %c6, %c0_26] : memref<4x24x8xbf16, #tpu.memory_space<vmem>>, vector<4x17x8xbf16>
    %c0_27 = arith.constant 0 : index
    %c0_28 = arith.constant 0 : index
    %c48 = arith.constant 48 : index
    %13 = vector.load %arg9[%c0_27, %c0_28, %c48] : memref<4x17x64xbf16, #tpu.memory_space<vmem>>, vector<4x17x8xbf16>
    tpu.vector_store %arg9[%c0_27, %c0_28, %c48], %12 {strides = array<i32>} : memref<4x17x64xbf16, #tpu.memory_space<vmem>>, vector<4x17x8xbf16>,
    %c0_29 = arith.constant 0 : index
    %c7 = arith.constant 7 : index
    %c0_30 = arith.constant 0 : index
    %14 = vector.load %arg1[%c0_29, %c7, %c0_30] : memref<4x24x8xbf16, #tpu.memory_space<vmem>>, vector<4x17x8xbf16>
    %c0_31 = arith.constant 0 : index
    %c0_32 = arith.constant 0 : index
    %c56 = arith.constant 56 : index
    %15 = vector.load %arg9[%c0_31, %c0_32, %c56] : memref<4x17x64xbf16, #tpu.memory_space<vmem>>, vector<4x17x8xbf16>
    tpu.vector_store %arg9[%c0_31, %c0_32, %c56], %14 {strides = array<i32>} : memref<4x17x64xbf16, #tpu.memory_space<vmem>>, vector<4x17x8xbf16>,
    %c0_33 = arith.constant 0 : index
    %c0_34 = arith.constant 0 : index
    %c0_35 = arith.constant 0 : index
    %16 = vector.load %arg9[%c0_33, %c0_34, %c0_35] : memref<4x17x64xbf16, #tpu.memory_space<vmem>>, vector<4x17x64xbf16>
    %17 = vector.shape_cast %16 : vector<4x17x64xbf16> to vector<68x64xbf16>
    %c0_36 = arith.constant 0 : index
    %c0_37 = arith.constant 0 : index
    %18 = vector.load %arg2[%c0_36, %c0_37] : memref<64x16xbf16, #tpu.memory_space<vmem>>, vector<64x16xbf16>
    %cst = arith.constant dense<0.000000e+00> : vector<68x16xf32>
    %19 = tpu.matmul %17, %18, %cst {dimension_numbers = #tpu.dot_dimension_numbers<[1], [0], [0], [1], [0, 0, 1, 1], [], []>} : vector<68x64xbf16>, vector<64x16xbf16>, vector<68x16xf32> -> vector<68x16xf32>
    %c0_38 = arith.constant 0 : index
    %c0_39 = arith.constant 0 : index
    %20 = vector.load %arg3[%c0_38, %c0_39] : memref<1x16xf32, #tpu.memory_space<vmem>>, vector<1x16xf32>
    %21 = vector.broadcast %20 : vector<1x16xf32> to vector<68x16xf32>
    %22 = arith.addf %19, %21 : vector<68x16xf32>
    %cst_40 = arith.constant 0.000000e+00 : f32
    %23 = vector.broadcast %cst_40 : f32 to vector<68x16xf32>
    %24 = arith.maximumf %22, %23 : vector<68x16xf32>
    %cst_41 = arith.constant 0.000000e+00 : f32
    %25 = vector.broadcast %cst_41 : f32 to vector<4x1x16xf32>
    %c0_42 = arith.constant 0 : index
    %c0_43 = arith.constant 0 : index
    %c0_44 = arith.constant 0 : index
    %26 = vector.load %arg10[%c0_42, %c0_43, %c0_44] : memref<4x18x16xf32, #tpu.memory_space<vmem>>, vector<4x1x16xf32>
    tpu.vector_store %arg10[%c0_42, %c0_43, %c0_44], %25 {strides = array<i32>} : memref<4x18x16xf32, #tpu.memory_space<vmem>>, vector<4x1x16xf32>,
    %27 = vector.shape_cast %24 : vector<68x16xf32> to vector<4x17x16xf32>
    %c0_45 = arith.constant 0 : index
    %c1_46 = arith.constant 1 : index
    %c0_47 = arith.constant 0 : index
    %28 = vector.load %arg10[%c0_45, %c1_46, %c0_47] : memref<4x18x16xf32, #tpu.memory_space<vmem>>, vector<4x17x16xf32>
    tpu.vector_store %arg10[%c0_45, %c1_46, %c0_47], %27 {strides = array<i32>} : memref<4x18x16xf32, #tpu.memory_space<vmem>>, vector<4x17x16xf32>,
    %c0_48 = arith.constant 0 : index
    %c0_49 = arith.constant 0 : index
    %c0_50 = arith.constant 0 : index
    %29 = tpu.strided_load %arg10[%c0_48, %c0_49, %c0_50] {strides = array<i32: 1, 2, 1>} : memref<4x18x16xf32, #tpu.memory_space<vmem>>, vector<4x9x16xf32>
    %c0_51 = arith.constant 0 : index
    %c1_52 = arith.constant 1 : index
    %c0_53 = arith.constant 0 : index
    %30 = tpu.strided_load %arg10[%c0_51, %c1_52, %c0_53] {strides = array<i32: 1, 2, 1>} : memref<4x18x16xf32, #tpu.memory_space<vmem>>, vector<4x9x16xf32>
    %31 = arith.maximumf %29, %30 : vector<4x9x16xf32>
    %cst_54 = arith.constant 0.000000e+00 : bf16
    %32 = vector.broadcast %cst_54 : bf16 to vector<4x4x16xbf16>
    %c0_55 = arith.constant 0 : index
    %c0_56 = arith.constant 0 : index
    %c0_57 = arith.constant 0 : index
    %33 = vector.load %arg11[%c0_55, %c0_56, %c0_57] : memref<4x17x16xbf16, #tpu.memory_space<vmem>>, vector<4x4x16xbf16>
    tpu.vector_store %arg11[%c0_55, %c0_56, %c0_57], %32 {strides = array<i32>} : memref<4x17x16xbf16, #tpu.memory_space<vmem>>, vector<4x4x16xbf16>,
    %cst_58 = arith.constant 0.000000e+00 : bf16
    %34 = vector.broadcast %cst_58 : bf16 to vector<4x4x16xbf16>
    %c0_59 = arith.constant 0 : index
    %c13 = arith.constant 13 : index
    %c0_60 = arith.constant 0 : index
    %35 = vector.load %arg11[%c0_59, %c13, %c0_60] : memref<4x17x16xbf16, #tpu.memory_space<vmem>>, vector<4x4x16xbf16>
    tpu.vector_store %arg11[%c0_59, %c13, %c0_60], %34 {strides = array<i32>} : memref<4x17x16xbf16, #tpu.memory_space<vmem>>, vector<4x4x16xbf16>,
    %36 = arith.truncf %31 : vector<4x9x16xf32> to vector<4x9x16xbf16>
    %c0_61 = arith.constant 0 : index
    %c4_62 = arith.constant 4 : index
    %c0_63 = arith.constant 0 : index
    %37 = vector.load %arg11[%c0_61, %c4_62, %c0_63] : memref<4x17x16xbf16, #tpu.memory_space<vmem>>, vector<4x9x16xbf16>
    tpu.vector_store %arg11[%c0_61, %c4_62, %c0_63], %36 {strides = array<i32>} : memref<4x17x16xbf16, #tpu.memory_space<vmem>>, vector<4x9x16xbf16>,
    %c0_64 = arith.constant 0 : index
    %c0_65 = arith.constant 0 : index
    %c0_66 = arith.constant 0 : index
    %38 = vector.load %arg11[%c0_64, %c0_65, %c0_66] : memref<4x17x16xbf16, #tpu.memory_space<vmem>>, vector<4x10x16xbf16>
    %c0_67 = arith.constant 0 : index
    %c0_68 = arith.constant 0 : index
    %c0_69 = arith.constant 0 : index
    %39 = vector.load %arg12[%c0_67, %c0_68, %c0_69] : memref<4x10x128xbf16, #tpu.memory_space<vmem>>, vector<4x10x16xbf16>
    tpu.vector_store %arg12[%c0_67, %c0_68, %c0_69], %38 {strides = array<i32>} : memref<4x10x128xbf16, #tpu.memory_space<vmem>>, vector<4x10x16xbf16>,
    %c0_70 = arith.constant 0 : index
    %c1_71 = arith.constant 1 : index
    %c0_72 = arith.constant 0 : index
    %40 = vector.load %arg11[%c0_70, %c1_71, %c0_72] : memref<4x17x16xbf16, #tpu.memory_space<vmem>>, vector<4x10x16xbf16>
    %c0_73 = arith.constant 0 : index
    %c0_74 = arith.constant 0 : index
    %c16_75 = arith.constant 16 : index
    %41 = vector.load %arg12[%c0_73, %c0_74, %c16_75] : memref<4x10x128xbf16, #tpu.memory_space<vmem>>, vector<4x10x16xbf16>
    tpu.vector_store %arg12[%c0_73, %c0_74, %c16_75], %40 {strides = array<i32>} : memref<4x10x128xbf16, #tpu.memory_space<vmem>>, vector<4x10x16xbf16>,
    %c0_76 = arith.constant 0 : index
    %c2_77 = arith.constant 2 : index
    %c0_78 = arith.constant 0 : index
    %42 = vector.load %arg11[%c0_76, %c2_77, %c0_78] : memref<4x17x16xbf16, #tpu.memory_space<vmem>>, vector<4x10x16xbf16>
    %c0_79 = arith.constant 0 : index
    %c0_80 = arith.constant 0 : index
    %c32_81 = arith.constant 32 : index
    %43 = vector.load %arg12[%c0_79, %c0_80, %c32_81] : memref<4x10x128xbf16, #tpu.memory_space<vmem>>, vector<4x10x16xbf16>
    tpu.vector_store %arg12[%c0_79, %c0_80, %c32_81], %42 {strides = array<i32>} : memref<4x10x128xbf16, #tpu.memory_space<vmem>>, vector<4x10x16xbf16>,
    %c0_82 = arith.constant 0 : index
    %c3_83 = arith.constant 3 : index
    %c0_84 = arith.constant 0 : index
    %44 = vector.load %arg11[%c0_82, %c3_83, %c0_84] : memref<4x17x16xbf16, #tpu.memory_space<vmem>>, vector<4x10x16xbf16>
    %c0_85 = arith.constant 0 : index
    %c0_86 = arith.constant 0 : index
    %c48_87 = arith.constant 48 : index
    %45 = vector.load %arg12[%c0_85, %c0_86, %c48_87] : memref<4x10x128xbf16, #tpu.memory_space<vmem>>, vector<4x10x16xbf16>
    tpu.vector_store %arg12[%c0_85, %c0_86, %c48_87], %44 {strides = array<i32>} : memref<4x10x128xbf16, #tpu.memory_space<vmem>>, vector<4x10x16xbf16>,
    %c0_88 = arith.constant 0 : index
    %c4_89 = arith.constant 4 : index
    %c0_90 = arith.constant 0 : index
    %46 = vector.load %arg11[%c0_88, %c4_89, %c0_90] : memref<4x17x16xbf16, #tpu.memory_space<vmem>>, vector<4x10x16xbf16>
    %c0_91 = arith.constant 0 : index
    %c0_92 = arith.constant 0 : index
    %c64 = arith.constant 64 : index
    %47 = vector.load %arg12[%c0_91, %c0_92, %c64] : memref<4x10x128xbf16, #tpu.memory_space<vmem>>, vector<4x10x16xbf16>
    tpu.vector_store %arg12[%c0_91, %c0_92, %c64], %46 {strides = array<i32>} : memref<4x10x128xbf16, #tpu.memory_space<vmem>>, vector<4x10x16xbf16>,
    %c0_93 = arith.constant 0 : index
    %c5_94 = arith.constant 5 : index
    %c0_95 = arith.constant 0 : index
    %48 = vector.load %arg11[%c0_93, %c5_94, %c0_95] : memref<4x17x16xbf16, #tpu.memory_space<vmem>>, vector<4x10x16xbf16>
    %c0_96 = arith.constant 0 : index
    %c0_97 = arith.constant 0 : index
    %c80 = arith.constant 80 : index
    %49 = vector.load %arg12[%c0_96, %c0_97, %c80] : memref<4x10x128xbf16, #tpu.memory_space<vmem>>, vector<4x10x16xbf16>
    tpu.vector_store %arg12[%c0_96, %c0_97, %c80], %48 {strides = array<i32>} : memref<4x10x128xbf16, #tpu.memory_space<vmem>>, vector<4x10x16xbf16>,
    %c0_98 = arith.constant 0 : index
    %c6_99 = arith.constant 6 : index
    %c0_100 = arith.constant 0 : index
    %50 = vector.load %arg11[%c0_98, %c6_99, %c0_100] : memref<4x17x16xbf16, #tpu.memory_space<vmem>>, vector<4x10x16xbf16>
    %c0_101 = arith.constant 0 : index
    %c0_102 = arith.constant 0 : index
    %c96 = arith.constant 96 : index
    %51 = vector.load %arg12[%c0_101, %c0_102, %c96] : memref<4x10x128xbf16, #tpu.memory_space<vmem>>, vector<4x10x16xbf16>
    tpu.vector_store %arg12[%c0_101, %c0_102, %c96], %50 {strides = array<i32>} : memref<4x10x128xbf16, #tpu.memory_space<vmem>>, vector<4x10x16xbf16>,
    %c0_103 = arith.constant 0 : index
    %c7_104 = arith.constant 7 : index
    %c0_105 = arith.constant 0 : index
    %52 = vector.load %arg11[%c0_103, %c7_104, %c0_105] : memref<4x17x16xbf16, #tpu.memory_space<vmem>>, vector<4x10x16xbf16>
    %c0_106 = arith.constant 0 : index
    %c0_107 = arith.constant 0 : index
    %c112 = arith.constant 112 : index
    %53 = vector.load %arg12[%c0_106, %c0_107, %c112] : memref<4x10x128xbf16, #tpu.memory_space<vmem>>, vector<4x10x16xbf16>
    tpu.vector_store %arg12[%c0_106, %c0_107, %c112], %52 {strides = array<i32>} : memref<4x10x128xbf16, #tpu.memory_space<vmem>>, vector<4x10x16xbf16>,
    %c0_108 = arith.constant 0 : index
    %c0_109 = arith.constant 0 : index
    %c0_110 = arith.constant 0 : index
    %54 = vector.load %arg12[%c0_108, %c0_109, %c0_110] : memref<4x10x128xbf16, #tpu.memory_space<vmem>>, vector<4x10x128xbf16>
    %55 = vector.shape_cast %54 : vector<4x10x128xbf16> to vector<40x128xbf16>
    %c0_111 = arith.constant 0 : index
    %c0_112 = arith.constant 0 : index
    %56 = vector.load %arg4[%c0_111, %c0_112] : memref<128x16xbf16, #tpu.memory_space<vmem>>, vector<128x16xbf16>
    %cst_113 = arith.constant dense<0.000000e+00> : vector<40x16xf32>
    %57 = tpu.matmul %55, %56, %cst_113 {dimension_numbers = #tpu.dot_dimension_numbers<[1], [0], [0], [1], [0, 0, 1, 1], [], []>} : vector<40x128xbf16>, vector<128x16xbf16>, vector<40x16xf32> -> vector<40x16xf32>
    %c0_114 = arith.constant 0 : index
    %c0_115 = arith.constant 0 : index
    %58 = vector.load %arg5[%c0_114, %c0_115] : memref<1x16xf32, #tpu.memory_space<vmem>>, vector<1x16xf32>
    %59 = vector.broadcast %58 : vector<1x16xf32> to vector<40x16xf32>
    %60 = arith.addf %57, %59 : vector<40x16xf32>
    %cst_116 = arith.constant 0.000000e+00 : f32
    %61 = vector.broadcast %cst_116 : f32 to vector<40x16xf32>
    %62 = arith.maximumf %60, %61 : vector<40x16xf32>
    %cst_117 = arith.constant 0.000000e+00 : f32
    %63 = vector.broadcast %cst_117 : f32 to vector<4x1x16xf32>
    %c0_118 = arith.constant 0 : index
    %c0_119 = arith.constant 0 : index
    %c0_120 = arith.constant 0 : index
    %64 = vector.load %arg13[%c0_118, %c0_119, %c0_120] : memref<4x12x16xf32, #tpu.memory_space<vmem>>, vector<4x1x16xf32>
    tpu.vector_store %arg13[%c0_118, %c0_119, %c0_120], %63 {strides = array<i32>} : memref<4x12x16xf32, #tpu.memory_space<vmem>>, vector<4x1x16xf32>,
    %cst_121 = arith.constant 0.000000e+00 : f32
    %65 = vector.broadcast %cst_121 : f32 to vector<4x1x16xf32>
    %c0_122 = arith.constant 0 : index
    %c11 = arith.constant 11 : index
    %c0_123 = arith.constant 0 : index
    %66 = vector.load %arg13[%c0_122, %c11, %c0_123] : memref<4x12x16xf32, #tpu.memory_space<vmem>>, vector<4x1x16xf32>
    tpu.vector_store %arg13[%c0_122, %c11, %c0_123], %65 {strides = array<i32>} : memref<4x12x16xf32, #tpu.memory_space<vmem>>, vector<4x1x16xf32>,
    %67 = vector.shape_cast %62 : vector<40x16xf32> to vector<4x10x16xf32>
    %c0_124 = arith.constant 0 : index
    %c1_125 = arith.constant 1 : index
    %c0_126 = arith.constant 0 : index
    %68 = vector.load %arg13[%c0_124, %c1_125, %c0_126] : memref<4x12x16xf32, #tpu.memory_space<vmem>>, vector<4x10x16xf32>
    tpu.vector_store %arg13[%c0_124, %c1_125, %c0_126], %67 {strides = array<i32>} : memref<4x12x16xf32, #tpu.memory_space<vmem>>, vector<4x10x16xf32>,
    %c0_127 = arith.constant 0 : index
    %c0_128 = arith.constant 0 : index
    %c0_129 = arith.constant 0 : index
    %69 = tpu.strided_load %arg13[%c0_127, %c0_128, %c0_129] {strides = array<i32: 1, 2, 1>} : memref<4x12x16xf32, #tpu.memory_space<vmem>>, vector<4x6x16xf32>
    %c0_130 = arith.constant 0 : index
    %c1_131 = arith.constant 1 : index
    %c0_132 = arith.constant 0 : index
    %70 = tpu.strided_load %arg13[%c0_130, %c1_131, %c0_132] {strides = array<i32: 1, 2, 1>} : memref<4x12x16xf32, #tpu.memory_space<vmem>>, vector<4x6x16xf32>
    %71 = arith.maximumf %69, %70 : vector<4x6x16xf32>
    %cst_133 = arith.constant 0.000000e+00 : bf16
    %72 = vector.broadcast %cst_133 : bf16 to vector<4x4x16xbf16>
    %c0_134 = arith.constant 0 : index
    %c0_135 = arith.constant 0 : index
    %c0_136 = arith.constant 0 : index
    %73 = vector.load %arg14[%c0_134, %c0_135, %c0_136] : memref<4x14x16xbf16, #tpu.memory_space<vmem>>, vector<4x4x16xbf16>
    tpu.vector_store %arg14[%c0_134, %c0_135, %c0_136], %72 {strides = array<i32>} : memref<4x14x16xbf16, #tpu.memory_space<vmem>>, vector<4x4x16xbf16>,
    %cst_137 = arith.constant 0.000000e+00 : bf16
    %74 = vector.broadcast %cst_137 : bf16 to vector<4x4x16xbf16>
    %c0_138 = arith.constant 0 : index
    %c10 = arith.constant 10 : index
    %c0_139 = arith.constant 0 : index
    %75 = vector.load %arg14[%c0_138, %c10, %c0_139] : memref<4x14x16xbf16, #tpu.memory_space<vmem>>, vector<4x4x16xbf16>
    tpu.vector_store %arg14[%c0_138, %c10, %c0_139], %74 {strides = array<i32>} : memref<4x14x16xbf16, #tpu.memory_space<vmem>>, vector<4x4x16xbf16>,
    %76 = arith.truncf %71 : vector<4x6x16xf32> to vector<4x6x16xbf16>
    %c0_140 = arith.constant 0 : index
    %c4_141 = arith.constant 4 : index
    %c0_142 = arith.constant 0 : index
    %77 = vector.load %arg14[%c0_140, %c4_141, %c0_142] : memref<4x14x16xbf16, #tpu.memory_space<vmem>>, vector<4x6x16xbf16>
    tpu.vector_store %arg14[%c0_140, %c4_141, %c0_142], %76 {strides = array<i32>} : memref<4x14x16xbf16, #tpu.memory_space<vmem>>, vector<4x6x16xbf16>,
    %c0_143 = arith.constant 0 : index
    %c0_144 = arith.constant 0 : index
    %c0_145 = arith.constant 0 : index
    %78 = vector.load %arg14[%c0_143, %c0_144, %c0_145] : memref<4x14x16xbf16, #tpu.memory_space<vmem>>, vector<4x7x16xbf16>
    %c0_146 = arith.constant 0 : index
    %c0_147 = arith.constant 0 : index
    %c0_148 = arith.constant 0 : index
    %79 = vector.load %arg15[%c0_146, %c0_147, %c0_148] : memref<4x7x128xbf16, #tpu.memory_space<vmem>>, vector<4x7x16xbf16>
    tpu.vector_store %arg15[%c0_146, %c0_147, %c0_148], %78 {strides = array<i32>} : memref<4x7x128xbf16, #tpu.memory_space<vmem>>, vector<4x7x16xbf16>,
    %c0_149 = arith.constant 0 : index
    %c1_150 = arith.constant 1 : index
    %c0_151 = arith.constant 0 : index
    %80 = vector.load %arg14[%c0_149, %c1_150, %c0_151] : memref<4x14x16xbf16, #tpu.memory_space<vmem>>, vector<4x7x16xbf16>
    %c0_152 = arith.constant 0 : index
    %c0_153 = arith.constant 0 : index
    %c16_154 = arith.constant 16 : index
    %81 = vector.load %arg15[%c0_152, %c0_153, %c16_154] : memref<4x7x128xbf16, #tpu.memory_space<vmem>>, vector<4x7x16xbf16>
    tpu.vector_store %arg15[%c0_152, %c0_153, %c16_154], %80 {strides = array<i32>} : memref<4x7x128xbf16, #tpu.memory_space<vmem>>, vector<4x7x16xbf16>,
    %c0_155 = arith.constant 0 : index
    %c2_156 = arith.constant 2 : index
    %c0_157 = arith.constant 0 : index
    %82 = vector.load %arg14[%c0_155, %c2_156, %c0_157] : memref<4x14x16xbf16, #tpu.memory_space<vmem>>, vector<4x7x16xbf16>
    %c0_158 = arith.constant 0 : index
    %c0_159 = arith.constant 0 : index
    %c32_160 = arith.constant 32 : index
    %83 = vector.load %arg15[%c0_158, %c0_159, %c32_160] : memref<4x7x128xbf16, #tpu.memory_space<vmem>>, vector<4x7x16xbf16>
    tpu.vector_store %arg15[%c0_158, %c0_159, %c32_160], %82 {strides = array<i32>} : memref<4x7x128xbf16, #tpu.memory_space<vmem>>, vector<4x7x16xbf16>,
    %c0_161 = arith.constant 0 : index
    %c3_162 = arith.constant 3 : index
    %c0_163 = arith.constant 0 : index
    %84 = vector.load %arg14[%c0_161, %c3_162, %c0_163] : memref<4x14x16xbf16, #tpu.memory_space<vmem>>, vector<4x7x16xbf16>
    %c0_164 = arith.constant 0 : index
    %c0_165 = arith.constant 0 : index
    %c48_166 = arith.constant 48 : index
    %85 = vector.load %arg15[%c0_164, %c0_165, %c48_166] : memref<4x7x128xbf16, #tpu.memory_space<vmem>>, vector<4x7x16xbf16>
    tpu.vector_store %arg15[%c0_164, %c0_165, %c48_166], %84 {strides = array<i32>} : memref<4x7x128xbf16, #tpu.memory_space<vmem>>, vector<4x7x16xbf16>,
    %c0_167 = arith.constant 0 : index
    %c4_168 = arith.constant 4 : index
    %c0_169 = arith.constant 0 : index
    %86 = vector.load %arg14[%c0_167, %c4_168, %c0_169] : memref<4x14x16xbf16, #tpu.memory_space<vmem>>, vector<4x7x16xbf16>
    %c0_170 = arith.constant 0 : index
    %c0_171 = arith.constant 0 : index
    %c64_172 = arith.constant 64 : index
    %87 = vector.load %arg15[%c0_170, %c0_171, %c64_172] : memref<4x7x128xbf16, #tpu.memory_space<vmem>>, vector<4x7x16xbf16>
    tpu.vector_store %arg15[%c0_170, %c0_171, %c64_172], %86 {strides = array<i32>} : memref<4x7x128xbf16, #tpu.memory_space<vmem>>, vector<4x7x16xbf16>,
    %c0_173 = arith.constant 0 : index
    %c5_174 = arith.constant 5 : index
    %c0_175 = arith.constant 0 : index
    %88 = vector.load %arg14[%c0_173, %c5_174, %c0_175] : memref<4x14x16xbf16, #tpu.memory_space<vmem>>, vector<4x7x16xbf16>
    %c0_176 = arith.constant 0 : index
    %c0_177 = arith.constant 0 : index
    %c80_178 = arith.constant 80 : index
    %89 = vector.load %arg15[%c0_176, %c0_177, %c80_178] : memref<4x7x128xbf16, #tpu.memory_space<vmem>>, vector<4x7x16xbf16>
    tpu.vector_store %arg15[%c0_176, %c0_177, %c80_178], %88 {strides = array<i32>} : memref<4x7x128xbf16, #tpu.memory_space<vmem>>, vector<4x7x16xbf16>,
    %c0_179 = arith.constant 0 : index
    %c6_180 = arith.constant 6 : index
    %c0_181 = arith.constant 0 : index
    %90 = vector.load %arg14[%c0_179, %c6_180, %c0_181] : memref<4x14x16xbf16, #tpu.memory_space<vmem>>, vector<4x7x16xbf16>
    %c0_182 = arith.constant 0 : index
    %c0_183 = arith.constant 0 : index
    %c96_184 = arith.constant 96 : index
    %91 = vector.load %arg15[%c0_182, %c0_183, %c96_184] : memref<4x7x128xbf16, #tpu.memory_space<vmem>>, vector<4x7x16xbf16>
    tpu.vector_store %arg15[%c0_182, %c0_183, %c96_184], %90 {strides = array<i32>} : memref<4x7x128xbf16, #tpu.memory_space<vmem>>, vector<4x7x16xbf16>,
    %c0_185 = arith.constant 0 : index
    %c7_186 = arith.constant 7 : index
    %c0_187 = arith.constant 0 : index
    %92 = vector.load %arg14[%c0_185, %c7_186, %c0_187] : memref<4x14x16xbf16, #tpu.memory_space<vmem>>, vector<4x7x16xbf16>
    %c0_188 = arith.constant 0 : index
    %c0_189 = arith.constant 0 : index
    %c112_190 = arith.constant 112 : index
    %93 = vector.load %arg15[%c0_188, %c0_189, %c112_190] : memref<4x7x128xbf16, #tpu.memory_space<vmem>>, vector<4x7x16xbf16>
    tpu.vector_store %arg15[%c0_188, %c0_189, %c112_190], %92 {strides = array<i32>} : memref<4x7x128xbf16, #tpu.memory_space<vmem>>, vector<4x7x16xbf16>,
    %c0_191 = arith.constant 0 : index
    %c0_192 = arith.constant 0 : index
    %c0_193 = arith.constant 0 : index
    %94 = vector.load %arg15[%c0_191, %c0_192, %c0_193] : memref<4x7x128xbf16, #tpu.memory_space<vmem>>, vector<4x7x128xbf16>
    %95 = vector.shape_cast %94 : vector<4x7x128xbf16> to vector<28x128xbf16>
    %c0_194 = arith.constant 0 : index
    %c0_195 = arith.constant 0 : index
    %96 = vector.load %arg6[%c0_194, %c0_195] : memref<128x16xbf16, #tpu.memory_space<vmem>>, vector<128x16xbf16>
    %cst_196 = arith.constant dense<0.000000e+00> : vector<28x16xf32>
    %97 = tpu.matmul %95, %96, %cst_196 {dimension_numbers = #tpu.dot_dimension_numbers<[1], [0], [0], [1], [0, 0, 1, 1], [], []>} : vector<28x128xbf16>, vector<128x16xbf16>, vector<28x16xf32> -> vector<28x16xf32>
    %c0_197 = arith.constant 0 : index
    %c0_198 = arith.constant 0 : index
    %98 = vector.load %arg7[%c0_197, %c0_198] : memref<1x16xf32, #tpu.memory_space<vmem>>, vector<1x16xf32>
    %99 = vector.broadcast %98 : vector<1x16xf32> to vector<28x16xf32>
    %100 = arith.addf %97, %99 : vector<28x16xf32>
    %cst_199 = arith.constant 0.000000e+00 : f32
    %101 = vector.broadcast %cst_199 : f32 to vector<28x16xf32>
    %102 = arith.maximumf %100, %101 : vector<28x16xf32>
    %cst_200 = arith.constant 0.000000e+00 : f32
    %103 = vector.broadcast %cst_200 : f32 to vector<4x1x16xf32>
    %c0_201 = arith.constant 0 : index
    %c0_202 = arith.constant 0 : index
    %c0_203 = arith.constant 0 : index
    %104 = vector.load %arg16[%c0_201, %c0_202, %c0_203] : memref<4x8x16xf32, #tpu.memory_space<vmem>>, vector<4x1x16xf32>
    tpu.vector_store %arg16[%c0_201, %c0_202, %c0_203], %103 {strides = array<i32>} : memref<4x8x16xf32, #tpu.memory_space<vmem>>, vector<4x1x16xf32>,
    %105 = vector.shape_cast %102 : vector<28x16xf32> to vector<4x7x16xf32>
    %c0_204 = arith.constant 0 : index
    %c1_205 = arith.constant 1 : index
    %c0_206 = arith.constant 0 : index
    %106 = vector.load %arg16[%c0_204, %c1_205, %c0_206] : memref<4x8x16xf32, #tpu.memory_space<vmem>>, vector<4x7x16xf32>
    tpu.vector_store %arg16[%c0_204, %c1_205, %c0_206], %105 {strides = array<i32>} : memref<4x8x16xf32, #tpu.memory_space<vmem>>, vector<4x7x16xf32>,
    %c0_207 = arith.constant 0 : index
    %c0_208 = arith.constant 0 : index
    %c0_209 = arith.constant 0 : index
    %107 = tpu.strided_load %arg16[%c0_207, %c0_208, %c0_209] {strides = array<i32: 1, 2, 1>} : memref<4x8x16xf32, #tpu.memory_space<vmem>>, vector<4x4x16xf32>
    %c0_210 = arith.constant 0 : index
    %c1_211 = arith.constant 1 : index
    %c0_212 = arith.constant 0 : index
    %108 = tpu.strided_load %arg16[%c0_210, %c1_211, %c0_212] {strides = array<i32: 1, 2, 1>} : memref<4x8x16xf32, #tpu.memory_space<vmem>>, vector<4x4x16xf32>
    %109 = arith.maximumf %107, %108 : vector<4x4x16xf32>
    %110 = vector.extract_strided_slice %109 {offsets = [0, 0, 0], sizes = [4, 4, 4], strides = [1, 1, 1]} : vector<4x4x16xf32> to vector<4x4x4xf32>
    %111 = arith.truncf %110 : vector<4x4x4xf32> to vector<4x4x4xbf16>
    %c0_213 = arith.constant 0 : index
    %c0_214 = arith.constant 0 : index
    %c0_215 = arith.constant 0 : index
    %c0_216 = arith.constant 0 : index
    %112 = vector.load %arg8[%c0_213, %c0_214, %c0_215, %c0_216] : memref<4x4x4x4xbf16, #tpu.memory_space<vmem>>, vector<4x1x4x4xbf16>
    %113 = vector.shape_cast %112 : vector<4x1x4x4xbf16> to vector<4x4x4xbf16>
    %114 = vector.shape_cast %111 : vector<4x4x4xbf16> to vector<4x1x4x4xbf16>
    tpu.vector_store %arg8[%c0_213, %c0_214, %c0_215, %c0_216], %114 {strides = array<i32>} : memref<4x4x4x4xbf16, #tpu.memory_space<vmem>>, vector<4x1x4x4xbf16>,
    %115 = vector.extract_strided_slice %109 {offsets = [0, 0, 4], sizes = [4, 4, 4], strides = [1, 1, 1]} : vector<4x4x16xf32> to vector<4x4x4xf32>
    %116 = arith.truncf %115 : vector<4x4x4xf32> to vector<4x4x4xbf16>
    %c0_217 = arith.constant 0 : index
    %c1_218 = arith.constant 1 : index
    %c0_219 = arith.constant 0 : index
    %c0_220 = arith.constant 0 : index
    %117 = vector.load %arg8[%c0_217, %c1_218, %c0_219, %c0_220] : memref<4x4x4x4xbf16, #tpu.memory_space<vmem>>, vector<4x1x4x4xbf16>
    %118 = vector.shape_cast %117 : vector<4x1x4x4xbf16> to vector<4x4x4xbf16>
    %119 = vector.shape_cast %116 : vector<4x4x4xbf16> to vector<4x1x4x4xbf16>
    tpu.vector_store %arg8[%c0_217, %c1_218, %c0_219, %c0_220], %119 {strides = array<i32>} : memref<4x4x4x4xbf16, #tpu.memory_space<vmem>>, vector<4x1x4x4xbf16>,
    %120 = vector.extract_strided_slice %109 {offsets = [0, 0, 8], sizes = [4, 4, 4], strides = [1, 1, 1]} : vector<4x4x16xf32> to vector<4x4x4xf32>
    %121 = arith.truncf %120 : vector<4x4x4xf32> to vector<4x4x4xbf16>
    %c0_221 = arith.constant 0 : index
    %c2_222 = arith.constant 2 : index
    %c0_223 = arith.constant 0 : index
    %c0_224 = arith.constant 0 : index
    %122 = vector.load %arg8[%c0_221, %c2_222, %c0_223, %c0_224] : memref<4x4x4x4xbf16, #tpu.memory_space<vmem>>, vector<4x1x4x4xbf16>
    %123 = vector.shape_cast %122 : vector<4x1x4x4xbf16> to vector<4x4x4xbf16>
    %124 = vector.shape_cast %121 : vector<4x4x4xbf16> to vector<4x1x4x4xbf16>
    tpu.vector_store %arg8[%c0_221, %c2_222, %c0_223, %c0_224], %124 {strides = array<i32>} : memref<4x4x4x4xbf16, #tpu.memory_space<vmem>>, vector<4x1x4x4xbf16>,
    %125 = vector.extract_strided_slice %109 {offsets = [0, 0, 12], sizes = [4, 4, 4], strides = [1, 1, 1]} : vector<4x4x16xf32> to vector<4x4x4xf32>
    %126 = arith.truncf %125 : vector<4x4x4xf32> to vector<4x4x4xbf16>
    %c0_225 = arith.constant 0 : index
    %c3_226 = arith.constant 3 : index
    %c0_227 = arith.constant 0 : index
    %c0_228 = arith.constant 0 : index
    %127 = vector.load %arg8[%c0_225, %c3_226, %c0_227, %c0_228] : memref<4x4x4x4xbf16, #tpu.memory_space<vmem>>, vector<4x1x4x4xbf16>
    %128 = vector.shape_cast %127 : vector<4x1x4x4xbf16> to vector<4x4x4xbf16>
    %129 = vector.shape_cast %126 : vector<4x4x4xbf16> to vector<4x1x4x4xbf16>
    tpu.vector_store %arg8[%c0_225, %c3_226, %c0_227, %c0_228], %129 {strides = array<i32>} : memref<4x4x4x4xbf16, #tpu.memory_space<vmem>>, vector<4x1x4x4xbf16>,
    return
  }
  func.func @transform_0(%arg0: i32) -> (i32, i32, i32) {
    %c0_i32 = arith.constant 0 : i32
    %c0_i32_0 = arith.constant 0 : i32
    %c0_i32_1 = arith.constant 0 : i32
    return %arg0, %c0_i32, %c0_i32_0 : i32, i32, i32
  }
  func.func @transform_1(%arg0: i32) -> (i32, i32) {
    %c0_i32 = arith.constant 0 : i32
    %c0_i32_0 = arith.constant 0 : i32
    %c0_i32_1 = arith.constant 0 : i32
    return %c0_i32, %c0_i32_0 : i32, i32
  }
  func.func @transform_2(%arg0: i32) -> (i32, i32) {
    %c0_i32 = arith.constant 0 : i32
    %c0_i32_0 = arith.constant 0 : i32
    %c0_i32_1 = arith.constant 0 : i32
    return %c0_i32, %c0_i32_0 : i32, i32
  }
  func.func @transform_3(%arg0: i32) -> (i32, i32) {
    %c0_i32 = arith.constant 0 : i32
    %c0_i32_0 = arith.constant 0 : i32
    %c0_i32_1 = arith.constant 0 : i32
    return %c0_i32, %c0_i32_0 : i32, i32
  }
  func.func @transform_4(%arg0: i32) -> (i32, i32) {
    %c0_i32 = arith.constant 0 : i32
    %c0_i32_0 = arith.constant 0 : i32
    %c0_i32_1 = arith.constant 0 : i32
    return %c0_i32, %c0_i32_0 : i32, i32
  }
  func.func @transform_5(%arg0: i32) -> (i32, i32) {
    %c0_i32 = arith.constant 0 : i32
    %c0_i32_0 = arith.constant 0 : i32
    %c0_i32_1 = arith.constant 0 : i32
    return %c0_i32, %c0_i32_0 : i32, i32
  }
  func.func @transform_6(%arg0: i32) -> (i32, i32) {
    %c0_i32 = arith.constant 0 : i32
    %c0_i32_0 = arith.constant 0 : i32
    %c0_i32_1 = arith.constant 0 : i32
    return %c0_i32, %c0_i32_0 : i32, i32
  }
  func.func @transform_7(%arg0: i32) -> (i32, i32, i32, i32) {
    %c0_i32 = arith.constant 0 : i32
    %c0_i32_0 = arith.constant 0 : i32
    %c0_i32_1 = arith.constant 0 : i32
    %c0_i32_2 = arith.constant 0 : i32
    return %arg0, %c0_i32, %c0_i32_0, %c0_i32_1 : i32, i32, i32, i32
  }
}

module attributes {stable_mosaic.version = 11 : i64} {
  func.func @kernel(%arg0: i32, %arg1: memref<4x4xf32, #tpu.memory_space<vmem>>, %arg2: memref<4x4x16xbf16, #tpu.memory_space<vmem>>, %arg3: memref<16x3xbf16, #tpu.memory_space<vmem>>, %arg4: memref<1x3xf32, #tpu.memory_space<vmem>>, %arg5: memref<16x32xbf16, #tpu.memory_space<vmem>>, %arg6: memref<1x32xf32, #tpu.memory_space<vmem>>, %arg7: memref<32x2xbf16, #tpu.memory_space<vmem>>, %arg8: memref<1x2xf32, #tpu.memory_space<vmem>>, %arg9: memref<32x48xbf16, #tpu.memory_space<vmem>>, %arg10: memref<1x48xf32, #tpu.memory_space<vmem>>, %arg11: memref<2x48x12xbf16, #tpu.memory_space<vmem>>, %arg12: memref<1x12xf32, #tpu.memory_space<vmem>>, %arg13: memref<12x3xbf16, #tpu.memory_space<vmem>>, %arg14: memref<1x3xf32, #tpu.memory_space<vmem>>, %arg15: memref<4x1x3xf32, #tpu.memory_space<vmem>>) attributes {dimension_semantics = [#tpu.dimension_semantics<parallel>], iteration_bounds = array<i64: 2>, scalar_prefetch = 0 : i64, scratch_operands = 0 : i64, tpu.core_type = #tpu.core_type<tc>, window_params = [{pipeline_mode = #tpu.pipeline_mode<synchronous>, transform_indices = @transform_0, window_bounds = array<i64: 4, 4>}, {transform_indices = @transform_1, window_bounds = array<i64: 4, 4, 16>}, {pipeline_mode = #tpu.pipeline_mode<synchronous>, transform_indices = @transform_2, window_bounds = array<i64: 16, 3>}, {pipeline_mode = #tpu.pipeline_mode<synchronous>, transform_indices = @transform_3, window_bounds = array<i64: 1, 3>}, {pipeline_mode = #tpu.pipeline_mode<synchronous>, transform_indices = @transform_4, window_bounds = array<i64: 16, 32>}, {pipeline_mode = #tpu.pipeline_mode<synchronous>, transform_indices = @transform_5, window_bounds = array<i64: 1, 32>}, {pipeline_mode = #tpu.pipeline_mode<synchronous>, transform_indices = @transform_6, window_bounds = array<i64: 32, 2>}, {pipeline_mode = #tpu.pipeline_mode<synchronous>, transform_indices = @transform_7, window_bounds = array<i64: 1, 2>}, {pipeline_mode = #tpu.pipeline_mode<synchronous>, transform_indices = @transform_8, window_bounds = array<i64: 32, 48>}, {pipeline_mode = #tpu.pipeline_mode<synchronous>, transform_indices = @transform_9, window_bounds = array<i64: 1, 48>}, {pipeline_mode = #tpu.pipeline_mode<synchronous>, transform_indices = @transform_10, window_bounds = array<i64: 2, 48, 12>}, {pipeline_mode = #tpu.pipeline_mode<synchronous>, transform_indices = @transform_11, window_bounds = array<i64: 1, 12>}, {pipeline_mode = #tpu.pipeline_mode<synchronous>, transform_indices = @transform_12, window_bounds = array<i64: 12, 3>}, {pipeline_mode = #tpu.pipeline_mode<synchronous>, transform_indices = @transform_13, window_bounds = array<i64: 1, 3>}, {transform_indices = @transform_14, window_bounds = array<i64: 4, 1, 3>}]} {
    %c0 = arith.constant 0 : index
    %c0_0 = arith.constant 0 : index
    %0 = vector.load %arg1[%c0, %c0_0] : memref<4x4xf32, #tpu.memory_space<vmem>>, vector<4x4xf32>
    %c0_1 = arith.constant 0 : index
    %c0_2 = arith.constant 0 : index
    %c0_3 = arith.constant 0 : index
    %1 = vector.load %arg2[%c0_1, %c0_2, %c0_3] : memref<4x4x16xbf16, #tpu.memory_space<vmem>>, vector<4x4x16xbf16>
    "tpu.trace_start"() <{level = 10 : i32, message = "bnd,bmd->bnm"}> : () -> ()
    %cst = arith.constant dense<0.000000e+00> : vector<4x4x4xf32>
    %2 = tpu.matmul %1, %1, %cst {dimension_numbers = #tpu.dot_dimension_numbers<[2], [2], [1], [1], [0, 0, 0, 1, 1, 1], [0], [0]>} : vector<4x4x16xbf16>, vector<4x4x16xbf16>, vector<4x4x4xf32> -> vector<4x4x4xf32>
    "tpu.trace_stop"() : () -> ()
    %cst_4 = arith.constant 1.000000e+08 : f32
    %3 = vector.broadcast %cst_4 : f32 to vector<4x4xf32>
    %4 = arith.mulf %3, %0 : vector<4x4xf32>
    %5 = vector.shape_cast %4 : vector<4x4xf32> to vector<1x4x4xf32>
    %6 = vector.broadcast %5 : vector<1x4x4xf32> to vector<4x4x4xf32>
    %7 = arith.subf %2, %6 : vector<4x4x4xf32>
    %cst_5 = arith.constant 0.000000e+00 : f32
    %8 = vector.broadcast %cst_5 : f32 to vector<4x4x4xf32>
    %9 = arith.cmpf ogt, %7, %8 : vector<4x4x4xf32>
    %cst_6 = arith.constant 0.00999999977 : f32
    %10 = vector.broadcast %cst_6 : f32 to vector<4x4x4xf32>
    %11 = arith.mulf %10, %7 : vector<4x4x4xf32>
    %12 = arith.select %9, %7, %11 : vector<4x4x4xi1>, vector<4x4x4xf32>
    %cst_7 = arith.constant dense<0xFF800000> : vector<4x4xf32>
    %13 = vector.multi_reduction <maximumf>, %12, %cst_7 [2] : vector<4x4x4xf32> to vector<4x4xf32>
    %14 = vector.shape_cast %13 : vector<4x4xf32> to vector<4x4x1xf32>
    %15 = vector.broadcast %14 : vector<4x4x1xf32> to vector<4x4x4xf32>
    %16 = arith.subf %12, %15 : vector<4x4x4xf32>
    %17 = math.exp %16 : vector<4x4x4xf32>
    %cst_8 = arith.constant dense<0.000000e+00> : vector<4x4xf32>
    %18 = vector.multi_reduction <add>, %17, %cst_8 [2] : vector<4x4x4xf32> to vector<4x4xf32>
    %19 = vector.shape_cast %18 : vector<4x4xf32> to vector<4x4x1xf32>
    %20 = vector.broadcast %19 : vector<4x4x1xf32> to vector<4x4x4xf32>
    %21 = arith.divf %17, %20 : vector<4x4x4xf32>
    %22 = vector.shape_cast %0 : vector<4x4xf32> to vector<1x4x4xf32>
    %23 = vector.broadcast %22 : vector<1x4x4xf32> to vector<4x4x4xf32>
    %24 = arith.addf %21, %23 : vector<4x4x4xf32>
    %25 = arith.truncf %24 : vector<4x4x4xf32> to vector<4x4x4xbf16>
    "tpu.trace_start"() <{level = 10 : i32, message = "bnm,bmd->bnd"}> : () -> ()
    %cst_9 = arith.constant dense<0.000000e+00> : vector<4x4x16xf32>
    %26 = tpu.matmul %25, %1, %cst_9 {dimension_numbers = #tpu.dot_dimension_numbers<[2], [1], [1], [2], [0, 0, 0, 1, 1, 2], [0], [0]>} : vector<4x4x4xbf16>, vector<4x4x16xbf16>, vector<4x4x16xf32> -> vector<4x4x16xf32>
    "tpu.trace_stop"() : () -> ()
    %27 = arith.truncf %26 : vector<4x4x16xf32> to vector<4x4x16xbf16>
    %28 = vector.shape_cast %27 : vector<4x4x16xbf16> to vector<16x16xbf16>
    %c0_10 = arith.constant 0 : index
    %c0_11 = arith.constant 0 : index
    %29 = vector.load %arg3[%c0_10, %c0_11] : memref<16x3xbf16, #tpu.memory_space<vmem>>, vector<16x3xbf16>
    %cst_12 = arith.constant dense<0.000000e+00> : vector<16x3xf32>
    %30 = tpu.matmul %28, %29, %cst_12 {dimension_numbers = #tpu.dot_dimension_numbers<[1], [0], [0], [1], [0, 0, 1, 1], [], []>} : vector<16x16xbf16>, vector<16x3xbf16>, vector<16x3xf32> -> vector<16x3xf32>
    %c0_13 = arith.constant 0 : index
    %c0_14 = arith.constant 0 : index
    %31 = vector.load %arg4[%c0_13, %c0_14] : memref<1x3xf32, #tpu.memory_space<vmem>>, vector<1x3xf32>
    %32 = vector.broadcast %31 : vector<1x3xf32> to vector<16x3xf32>
    %33 = arith.addf %30, %32 : vector<16x3xf32>
    %cst_15 = arith.constant dense<0xFF800000> : vector<16xf32>
    %34 = vector.multi_reduction <maximumf>, %33, %cst_15 [1] : vector<16x3xf32> to vector<16xf32>
    %35 = vector.shape_cast %34 : vector<16xf32> to vector<16x1xf32>
    %36 = vector.broadcast %35 : vector<16x1xf32> to vector<16x3xf32>
    %37 = arith.subf %33, %36 : vector<16x3xf32>
    %38 = math.exp %37 : vector<16x3xf32>
    %cst_16 = arith.constant dense<0.000000e+00> : vector<16xf32>
    %39 = vector.multi_reduction <add>, %38, %cst_16 [1] : vector<16x3xf32> to vector<16xf32>
    %40 = vector.shape_cast %39 : vector<16xf32> to vector<16x1xf32>
    %41 = vector.broadcast %40 : vector<16x1xf32> to vector<16x3xf32>
    %42 = arith.divf %38, %41 : vector<16x3xf32>
    %c0_17 = arith.constant 0 : index
    %c0_18 = arith.constant 0 : index
    %43 = vector.load %arg5[%c0_17, %c0_18] : memref<16x32xbf16, #tpu.memory_space<vmem>>, vector<16x32xbf16>
    %cst_19 = arith.constant dense<0.000000e+00> : vector<16x32xf32>
    %44 = tpu.matmul %28, %43, %cst_19 {dimension_numbers = #tpu.dot_dimension_numbers<[1], [0], [0], [1], [0, 0, 1, 1], [], []>} : vector<16x16xbf16>, vector<16x32xbf16>, vector<16x32xf32> -> vector<16x32xf32>
    %c0_20 = arith.constant 0 : index
    %c0_21 = arith.constant 0 : index
    %45 = vector.load %arg6[%c0_20, %c0_21] : memref<1x32xf32, #tpu.memory_space<vmem>>, vector<1x32xf32>
    %46 = vector.broadcast %45 : vector<1x32xf32> to vector<16x32xf32>
    %47 = arith.addf %44, %46 : vector<16x32xf32>
    %cst_22 = arith.constant 0.000000e+00 : f32
    %48 = vector.broadcast %cst_22 : f32 to vector<16x32xf32>
    %49 = arith.cmpf ogt, %47, %48 : vector<16x32xf32>
    %cst_23 = arith.constant 0.00999999977 : f32
    %50 = vector.broadcast %cst_23 : f32 to vector<16x32xf32>
    %51 = arith.mulf %50, %47 : vector<16x32xf32>
    %52 = arith.select %49, %47, %51 : vector<16x32xi1>, vector<16x32xf32>
    %53 = vector.shape_cast %42 : vector<16x3xf32> to vector<4x4x3xf32>
    %54 = vector.shape_cast %52 : vector<16x32xf32> to vector<4x4x32xf32>
    %55 = arith.truncf %54 : vector<4x4x32xf32> to vector<4x4x32xbf16>
    %56 = tpu.transpose %53, [0, 2, 1] : vector<4x4x3xf32> -> vector<4x3x4xf32>
    %57 = arith.truncf %56 : vector<4x3x4xf32> to vector<4x3x4xbf16>
    %58 = arith.truncf %53 : vector<4x4x3xf32> to vector<4x4x3xbf16>
    "tpu.trace_start"() <{level = 10 : i32, message = "bkn,bne->bke"}> : () -> ()
    %cst_24 = arith.constant dense<0.000000e+00> : vector<4x3x32xf32>
    %59 = tpu.matmul %57, %55, %cst_24 {dimension_numbers = #tpu.dot_dimension_numbers<[2], [1], [1], [2], [0, 0, 0, 1, 1, 2], [0], [0]>} : vector<4x3x4xbf16>, vector<4x4x32xbf16>, vector<4x3x32xf32> -> vector<4x3x32xf32>
    "tpu.trace_stop"() : () -> ()
    "tpu.trace_start"() <{level = 10 : i32, message = "bnm,bmk->bnk"}> : () -> ()
    %cst_25 = arith.constant dense<0.000000e+00> : vector<4x4x3xf32>
    %60 = tpu.matmul %25, %58, %cst_25 {dimension_numbers = #tpu.dot_dimension_numbers<[2], [1], [1], [2], [0, 0, 0, 1, 1, 2], [0], [0]>} : vector<4x4x4xbf16>, vector<4x4x3xbf16>, vector<4x4x3xf32> -> vector<4x4x3xf32>
    "tpu.trace_stop"() : () -> ()
    %61 = arith.truncf %60 : vector<4x4x3xf32> to vector<4x4x3xbf16>
    "tpu.trace_start"() <{level = 10 : i32, message = "bkn,bnm->bkm"}> : () -> ()
    %cst_26 = arith.constant dense<0.000000e+00> : vector<4x3x3xf32>
    %62 = tpu.matmul %57, %61, %cst_26 {dimension_numbers = #tpu.dot_dimension_numbers<[2], [1], [1], [2], [0, 0, 0, 1, 1, 2], [0], [0]>} : vector<4x3x4xbf16>, vector<4x4x3xbf16>, vector<4x3x3xf32> -> vector<4x3x3xf32>
    "tpu.trace_stop"() : () -> ()
    %63 = arith.truncf %62 : vector<4x3x3xf32> to vector<4x3x3xbf16>
    %64 = arith.truncf %59 : vector<4x3x32xf32> to vector<4x3x32xbf16>
    "tpu.trace_start"() <{level = 10 : i32, message = "bnm,bmd->bnd"}> : () -> ()
    %cst_27 = arith.constant dense<0.000000e+00> : vector<4x3x32xf32>
    %65 = tpu.matmul %63, %64, %cst_27 {dimension_numbers = #tpu.dot_dimension_numbers<[2], [1], [1], [2], [0, 0, 0, 1, 1, 2], [0], [0]>} : vector<4x3x3xbf16>, vector<4x3x32xbf16>, vector<4x3x32xf32> -> vector<4x3x32xf32>
    "tpu.trace_stop"() : () -> ()
    %66 = arith.truncf %65 : vector<4x3x32xf32> to vector<4x3x32xbf16>
    %67 = vector.shape_cast %66 : vector<4x3x32xbf16> to vector<12x32xbf16>
    %c0_28 = arith.constant 0 : index
    %c0_29 = arith.constant 0 : index
    %68 = vector.load %arg7[%c0_28, %c0_29] : memref<32x2xbf16, #tpu.memory_space<vmem>>, vector<32x2xbf16>
    %cst_30 = arith.constant dense<0.000000e+00> : vector<12x2xf32>
    %69 = tpu.matmul %67, %68, %cst_30 {dimension_numbers = #tpu.dot_dimension_numbers<[1], [0], [0], [1], [0, 0, 1, 1], [], []>} : vector<12x32xbf16>, vector<32x2xbf16>, vector<12x2xf32> -> vector<12x2xf32>
    %c0_31 = arith.constant 0 : index
    %c0_32 = arith.constant 0 : index
    %70 = vector.load %arg8[%c0_31, %c0_32] : memref<1x2xf32, #tpu.memory_space<vmem>>, vector<1x2xf32>
    %71 = vector.broadcast %70 : vector<1x2xf32> to vector<12x2xf32>
    %72 = arith.addf %69, %71 : vector<12x2xf32>
    %cst_33 = arith.constant dense<0xFF800000> : vector<12xf32>
    %73 = vector.multi_reduction <maximumf>, %72, %cst_33 [1] : vector<12x2xf32> to vector<12xf32>
    %74 = vector.shape_cast %73 : vector<12xf32> to vector<12x1xf32>
    %75 = vector.broadcast %74 : vector<12x1xf32> to vector<12x2xf32>
    %76 = arith.subf %72, %75 : vector<12x2xf32>
    %77 = math.exp %76 : vector<12x2xf32>
    %cst_34 = arith.constant dense<0.000000e+00> : vector<12xf32>
    %78 = vector.multi_reduction <add>, %77, %cst_34 [1] : vector<12x2xf32> to vector<12xf32>
    %79 = vector.shape_cast %78 : vector<12xf32> to vector<12x1xf32>
    %80 = vector.broadcast %79 : vector<12x1xf32> to vector<12x2xf32>
    %81 = arith.divf %77, %80 : vector<12x2xf32>
    %c0_35 = arith.constant 0 : index
    %c0_36 = arith.constant 0 : index
    %82 = vector.load %arg9[%c0_35, %c0_36] : memref<32x48xbf16, #tpu.memory_space<vmem>>, vector<32x48xbf16>
    %cst_37 = arith.constant dense<0.000000e+00> : vector<12x48xf32>
    %83 = tpu.matmul %67, %82, %cst_37 {dimension_numbers = #tpu.dot_dimension_numbers<[1], [0], [0], [1], [0, 0, 1, 1], [], []>} : vector<12x32xbf16>, vector<32x48xbf16>, vector<12x48xf32> -> vector<12x48xf32>
    %c0_38 = arith.constant 0 : index
    %c0_39 = arith.constant 0 : index
    %84 = vector.load %arg10[%c0_38, %c0_39] : memref<1x48xf32, #tpu.memory_space<vmem>>, vector<1x48xf32>
    %85 = vector.broadcast %84 : vector<1x48xf32> to vector<12x48xf32>
    %86 = arith.addf %83, %85 : vector<12x48xf32>
    %cst_40 = arith.constant 0.000000e+00 : f32
    %87 = vector.broadcast %cst_40 : f32 to vector<12x48xf32>
    %88 = arith.cmpf ogt, %86, %87 : vector<12x48xf32>
    %cst_41 = arith.constant 0.00999999977 : f32
    %89 = vector.broadcast %cst_41 : f32 to vector<12x48xf32>
    %90 = arith.mulf %89, %86 : vector<12x48xf32>
    %91 = arith.select %88, %86, %90 : vector<12x48xi1>, vector<12x48xf32>
    %92 = vector.shape_cast %81 : vector<12x2xf32> to vector<4x3x2xf32>
    %93 = vector.shape_cast %91 : vector<12x48xf32> to vector<4x3x48xf32>
    %94 = arith.truncf %93 : vector<4x3x48xf32> to vector<4x3x48xbf16>
    %95 = tpu.transpose %92, [0, 2, 1] : vector<4x3x2xf32> -> vector<4x2x3xf32>
    %96 = arith.truncf %95 : vector<4x2x3xf32> to vector<4x2x3xbf16>
    "tpu.trace_start"() <{level = 10 : i32, message = "bkn,bne->bke"}> : () -> ()
    %cst_42 = arith.constant dense<0.000000e+00> : vector<4x2x48xf32>
    %97 = tpu.matmul %96, %94, %cst_42 {dimension_numbers = #tpu.dot_dimension_numbers<[2], [1], [1], [2], [0, 0, 0, 1, 1, 2], [0], [0]>} : vector<4x2x3xbf16>, vector<4x3x48xbf16>, vector<4x2x48xf32> -> vector<4x2x48xf32>
    "tpu.trace_stop"() : () -> ()
    %98 = arith.truncf %97 : vector<4x2x48xf32> to vector<4x2x48xbf16>
    %c0_43 = arith.constant 0 : index
    %c0_44 = arith.constant 0 : index
    %99 = vector.load %arg12[%c0_43, %c0_44] : memref<1x12xf32, #tpu.memory_space<vmem>>, vector<1x12xf32>
    %100 = vector.extract_strided_slice %98 {offsets = [0, 0, 0], sizes = [4, 1, 48], strides = [1, 1, 1]} : vector<4x2x48xbf16> to vector<4x1x48xbf16>
    %101 = vector.shape_cast %100 : vector<4x1x48xbf16> to vector<4x48xbf16>
    %c0_45 = arith.constant 0 : index
    %c0_46 = arith.constant 0 : index
    %c0_47 = arith.constant 0 : index
    %102 = vector.load %arg11[%c0_45, %c0_46, %c0_47] : memref<2x48x12xbf16, #tpu.memory_space<vmem>>, vector<1x48x12xbf16>
    %103 = vector.shape_cast %102 : vector<1x48x12xbf16> to vector<48x12xbf16>
    %cst_48 = arith.constant dense<0.000000e+00> : vector<4x12xf32>
    %104 = tpu.matmul %101, %103, %cst_48 {dimension_numbers = #tpu.dot_dimension_numbers<[1], [0], [0], [1], [0, 0, 1, 1], [], []>} : vector<4x48xbf16>, vector<48x12xbf16>, vector<4x12xf32> -> vector<4x12xf32>
    %105 = vector.broadcast %99 : vector<1x12xf32> to vector<4x12xf32>
    %106 = arith.addf %105, %104 : vector<4x12xf32>
    %107 = vector.extract_strided_slice %98 {offsets = [0, 1, 0], sizes = [4, 1, 48], strides = [1, 1, 1]} : vector<4x2x48xbf16> to vector<4x1x48xbf16>
    %108 = vector.shape_cast %107 : vector<4x1x48xbf16> to vector<4x48xbf16>
    %c1 = arith.constant 1 : index
    %c0_49 = arith.constant 0 : index
    %c0_50 = arith.constant 0 : index
    %109 = vector.load %arg11[%c1, %c0_49, %c0_50] : memref<2x48x12xbf16, #tpu.memory_space<vmem>>, vector<1x48x12xbf16>
    %110 = vector.shape_cast %109 : vector<1x48x12xbf16> to vector<48x12xbf16>
    %cst_51 = arith.constant dense<0.000000e+00> : vector<4x12xf32>
    %111 = tpu.matmul %108, %110, %cst_51 {dimension_numbers = #tpu.dot_dimension_numbers<[1], [0], [0], [1], [0, 0, 1, 1], [], []>} : vector<4x48xbf16>, vector<48x12xbf16>, vector<4x12xf32> -> vector<4x12xf32>
    %112 = arith.addf %106, %111 : vector<4x12xf32>
    %cst_52 = arith.constant 0.000000e+00 : f32
    %113 = vector.broadcast %cst_52 : f32 to vector<4x12xf32>
    %114 = arith.cmpf ogt, %112, %113 : vector<4x12xf32>
    %cst_53 = arith.constant 0.00999999977 : f32
    %115 = vector.broadcast %cst_53 : f32 to vector<4x12xf32>
    %116 = arith.mulf %115, %112 : vector<4x12xf32>
    %117 = arith.select %114, %112, %116 : vector<4x12xi1>, vector<4x12xf32>
    %118 = arith.truncf %117 : vector<4x12xf32> to vector<4x12xbf16>
    %c0_54 = arith.constant 0 : index
    %c0_55 = arith.constant 0 : index
    %119 = vector.load %arg13[%c0_54, %c0_55] : memref<12x3xbf16, #tpu.memory_space<vmem>>, vector<12x3xbf16>
    %cst_56 = arith.constant dense<0.000000e+00> : vector<4x3xf32>
    %120 = tpu.matmul %118, %119, %cst_56 {dimension_numbers = #tpu.dot_dimension_numbers<[1], [0], [0], [1], [0, 0, 1, 1], [], []>} : vector<4x12xbf16>, vector<12x3xbf16>, vector<4x3xf32> -> vector<4x3xf32>
    %c0_57 = arith.constant 0 : index
    %c0_58 = arith.constant 0 : index
    %121 = vector.load %arg14[%c0_57, %c0_58] : memref<1x3xf32, #tpu.memory_space<vmem>>, vector<1x3xf32>
    %122 = vector.broadcast %121 : vector<1x3xf32> to vector<4x3xf32>
    %123 = arith.addf %120, %122 : vector<4x3xf32>
    %cst_59 = arith.constant 0.000000e+00 : f32
    %124 = vector.broadcast %cst_59 : f32 to vector<4x3xf32>
    %125 = arith.cmpf ogt, %123, %124 : vector<4x3xf32>
    %cst_60 = arith.constant 0.00999999977 : f32
    %126 = vector.broadcast %cst_60 : f32 to vector<4x3xf32>
    %127 = arith.mulf %126, %123 : vector<4x3xf32>
    %128 = arith.select %125, %123, %127 : vector<4x3xi1>, vector<4x3xf32>
    %c0_61 = arith.constant 0 : index
    %c0_62 = arith.constant 0 : index
    %c0_63 = arith.constant 0 : index
    %129 = vector.load %arg15[%c0_61, %c0_62, %c0_63] : memref<4x1x3xf32, #tpu.memory_space<vmem>>, vector<4x1x3xf32>
    %130 = vector.shape_cast %129 : vector<4x1x3xf32> to vector<4x3xf32>
    %131 = vector.shape_cast %128 : vector<4x3xf32> to vector<4x1x3xf32>
    tpu.vector_store %arg15[%c0_61, %c0_62, %c0_63], %131 {strides = array<i32>} : memref<4x1x3xf32, #tpu.memory_space<vmem>>, vector<4x1x3xf32>,
    return
  }
  func.func @transform_0(%arg0: i32) -> (i32, i32) {
    %c0_i32 = arith.constant 0 : i32
    %c0_i32_0 = arith.constant 0 : i32
    %c0_i32_1 = arith.constant 0 : i32
    return %c0_i32, %c0_i32_0 : i32, i32
  }
  func.func @transform_1(%arg0: i32) -> (i32, i32, i32) {
    %c0_i32 = arith.constant 0 : i32
    %c0_i32_0 = arith.constant 0 : i32
    %c0_i32_1 = arith.constant 0 : i32
    return %arg0, %c0_i32, %c0_i32_0 : i32, i32, i32
  }
  func.func @transform_2(%arg0: i32) -> (i32, i32) {
    %c0_i32 = arith.constant 0 : i32
    %c0_i32_0 = arith.constant 0 : i32
    %c0_i32_1 = arith.constant 0 : i32
    return %c0_i32, %c0_i32_0 : i32, i32
  }
  func.func @transform_3(%arg0: i32) -> (i32, i32) {
    %c0_i32 = arith.constant 0 : i32
    %c0_i32_0 = arith.constant 0 : i32
    %c0_i32_1 = arith.constant 0 : i32
    return %c0_i32, %c0_i32_0 : i32, i32
  }
  func.func @transform_4(%arg0: i32) -> (i32, i32) {
    %c0_i32 = arith.constant 0 : i32
    %c0_i32_0 = arith.constant 0 : i32
    %c0_i32_1 = arith.constant 0 : i32
    return %c0_i32, %c0_i32_0 : i32, i32
  }
  func.func @transform_5(%arg0: i32) -> (i32, i32) {
    %c0_i32 = arith.constant 0 : i32
    %c0_i32_0 = arith.constant 0 : i32
    %c0_i32_1 = arith.constant 0 : i32
    return %c0_i32, %c0_i32_0 : i32, i32
  }
  func.func @transform_6(%arg0: i32) -> (i32, i32) {
    %c0_i32 = arith.constant 0 : i32
    %c0_i32_0 = arith.constant 0 : i32
    %c0_i32_1 = arith.constant 0 : i32
    return %c0_i32, %c0_i32_0 : i32, i32
  }
  func.func @transform_7(%arg0: i32) -> (i32, i32) {
    %c0_i32 = arith.constant 0 : i32
    %c0_i32_0 = arith.constant 0 : i32
    %c0_i32_1 = arith.constant 0 : i32
    return %c0_i32, %c0_i32_0 : i32, i32
  }
  func.func @transform_8(%arg0: i32) -> (i32, i32) {
    %c0_i32 = arith.constant 0 : i32
    %c0_i32_0 = arith.constant 0 : i32
    %c0_i32_1 = arith.constant 0 : i32
    return %c0_i32, %c0_i32_0 : i32, i32
  }
  func.func @transform_9(%arg0: i32) -> (i32, i32) {
    %c0_i32 = arith.constant 0 : i32
    %c0_i32_0 = arith.constant 0 : i32
    %c0_i32_1 = arith.constant 0 : i32
    return %c0_i32, %c0_i32_0 : i32, i32
  }
  func.func @transform_10(%arg0: i32) -> (i32, i32, i32) {
    %c0_i32 = arith.constant 0 : i32
    %c0_i32_0 = arith.constant 0 : i32
    %c0_i32_1 = arith.constant 0 : i32
    %c0_i32_2 = arith.constant 0 : i32
    return %c0_i32, %c0_i32_0, %c0_i32_1 : i32, i32, i32
  }
  func.func @transform_11(%arg0: i32) -> (i32, i32) {
    %c0_i32 = arith.constant 0 : i32
    %c0_i32_0 = arith.constant 0 : i32
    %c0_i32_1 = arith.constant 0 : i32
    return %c0_i32, %c0_i32_0 : i32, i32
  }
  func.func @transform_12(%arg0: i32) -> (i32, i32) {
    %c0_i32 = arith.constant 0 : i32
    %c0_i32_0 = arith.constant 0 : i32
    %c0_i32_1 = arith.constant 0 : i32
    return %c0_i32, %c0_i32_0 : i32, i32
  }
  func.func @transform_13(%arg0: i32) -> (i32, i32) {
    %c0_i32 = arith.constant 0 : i32
    %c0_i32_0 = arith.constant 0 : i32
    %c0_i32_1 = arith.constant 0 : i32
    return %c0_i32, %c0_i32_0 : i32, i32
  }
  func.func @transform_14(%arg0: i32) -> (i32, i32, i32) {
    %c0_i32 = arith.constant 0 : i32
    %c0_i32_0 = arith.constant 0 : i32
    %c0_i32_1 = arith.constant 0 : i32
    return %arg0, %c0_i32, %c0_i32_0 : i32, i32, i32
  }
}

</mosaic_0001>

<bundles_post_ra>
// kernel: _lambda_.3
= control target key start
LH: loop header
LB: loop body
LE: loop exit
PB: predicated region body
PF: predicated region fallthrough
CT: control target
= control target key end

     0   :  { %s3803_s29 = smov 0   ;;  %s4220_s0 = inlined_call_operand.vmem [shape: f32[4,4], index: 0, kind: input, shape index: {}]   ;;  %s4221_s1 = inlined_call_operand.vmem [shape: bf16[8,4,16], index: 1, kind: input, shape index: {}]   ;;  %s4222_s2 = inlined_call_operand.vmem [shape: bf16[16,3], index: 2, kind: input, shape index: {}]   ;;  %s4223_s3 = inlined_call_operand.vmem [shape: f32[1,3], index: 3, kind: input, shape index: {}, may-alias: {3,13}]   ;;  %s4224_s4 = inlined_call_operand.vmem [shape: bf16[16,32], index: 4, kind: input, shape index: {}]   ;;  %s4225_s5 = inlined_call_operand.vmem [shape: f32[1,32], index: 5, kind: input, shape index: {}]   ;;  %s4226_s6 = inlined_call_operand.vmem [shape: bf16[32,2], index: 6, kind: input, shape index: {}]   ;;  %s4227_s7 = inlined_call_operand.vmem [shape: f32[1,2], index: 7, kind: input, shape index: {}]   ;;  %s4228_s8 = inlined_call_operand.vmem [shape: bf16[32,48], index: 8, kind: input, shape index: {}]   ;;  %s4229_s9 = inlined_call_operand.vmem [shape: f32[1,48], index: 9, kind: input, shape index: {}]   ;;  %s4230_s10 = inlined_call_operand.vmem [shape: bf16[2,48,12], index: 10, kind: input, shape index: {}]   ;;  %s4231_s11 = inlined_call_operand.vmem [shape: f32[1,12], index: 11, kind: input, shape index: {}]   ;;  %s4232_s12 = inlined_call_operand.vmem [shape: bf16[12,3], index: 12, kind: input, shape index: {}]   ;;  %s4233_s13 = inlined_call_operand.vmem [shape: f32[1,3], index: 13, kind: input, shape index: {}, may-alias: {3,13}]   ;;  %s4234_s14 = inlined_call_operand.vmem [shape: f32[8,1,3], index: 14, kind: output, shape index: {}]  }
   0x1 LB: > { %s3253_s30 = sadd.s32 4294967295, %s3721_s29   ;;  %p3257_p0 = scmp.ge.s32.totalorder %s3721_s29, 1  ;;  %s3721_s29 = sphi %s3803_s29, %s24_s29  }
   0x2   : > { %p413_p1 = scmp.lt.s32.totalorder %s3721_s29, 3 }
   0x4   : > { %p414_p2 = pnand %p3257_p0, %p413_p1 }
   0x5   : > { %s3258_s15 = sshll.u32 (!%p414_p2), %s3253_s30, 2 }
   0x6   : > { %417 = sbr.rel (%p414_p2) target bundleno = 3291 (0xcdb), region = 76  ;;  %p459_p3 = scmp.lt.s32.totalorder (!%p414_p2), %s3258_s15, 7 }
   0xb   : > { %v3723_v0 = vmov 0.0   ;;  %vm3724_vm0 = vmmov 0   ;;  %s4236_s15 = smov (!%p459_p3, %s3258_s15), 7  ;;  %vm475_vm1 = vcmask 130048   ;;  %v3862_v9 = vld [vmem:[%s4220_s0] sm:$0xf] }
   0xc   : > { %3407 = vmatprep.subr.bf16.mxu0 %v3723_v0  ;;  %3413 = vmatprep.subr.bf16.mxu1 %v3723_v0  ;;  %s3259_s16 = sshll.u32 %s4236_s15, 1  ;;  %v648_v10 = vmul.f32 1e+08, %v3862_v9  ;;  %vm665_vm3 = vcmask 27648   ;;  %vm722_vm7 = vcmask 1041408   ;;  %vm718_vm8 = vcmask 31744   ;;  %s467_s20 = scalar_lea.vmem %s4234_s14, %s4236_s15 }
   0xd   : > { %3409 = vmatprep.mubr.msk.bf16.mxu0 %vm3724_vm0, %v3723_v0  ;;  %3415 = vmatprep.mubr.msk.bf16.mxu1 %vm3724_vm0, %v3723_v0  ;;  %s462_s19 = scalar_lea.vmem %s4221_s1, %s3259_s16  ;;  %vm984_vm9 = vcmask 23552   ;;  %vm1764_vm12 = vcmask 1040384   ;;  %vm2125_vm13 = vcmask 261120   ;;  %vm2170_vm14 = vcmask 15360  }
   0xe   : > { %v3823_v1 = vld [vmem:[%s462_s19] sm:$0x3]  ;;  %v3825_v2 = vld [vmem:[%s462_s19 + $0x2] sm:$0x3]  ;;  %v3831_v5 = vld [vmem:[%s462_s19 + $0x4] sm:$0x3] }
   0xf   : > { %v477_v3 = vsel %vm475_vm1, %v3823_v1, 0  ;;  %v520_v4 = vsel %vm475_vm1, %v3825_v2, 0  ;;  %v3833_v6 = vld [vmem:[%s462_s19 + $0x6] sm:$0x3]  ;;  %v563_v7 = vsel %vm475_vm1, %v3831_v5, 0  ;;  %v723_v63 = vsel %vm722_vm7, %v3823_v1, 0 }
  0x10   : > { %3408 = vmatpush3.bf16.xpose.msra.mxu0 %v477_v3  ;;  %3414 = vmatpush3.bf16.xpose.msra.mxu1 %v520_v4  ;;  %v606_v8 = vsel %vm475_vm1, %v3833_v6, 0  ;;  %v768_v3 = vsel %vm722_vm7, %v3825_v2, 0 }
  0x11   : > { %3419 = vmatprep.subr.bf16.mxu0 %v3723_v0  ;;  %3425 = vmatprep.subr.bf16.mxu1 %v3723_v0 }
  0x17   : > { %3410 = vmatmul.mubr.msk.bf16.vlgmr.msra.gmra.mxu0 %vm475_vm1, %v3823_v1  ;;  %3416 = vmatmul.mubr.msk.bf16.vlgmr.msra.gmra.mxu1 %vm475_vm1, %v3825_v2 }
  0x18   : > { %3420 = vmatpush3.bf16.xpose.msra.mxu0 %v563_v7  ;;  %3426 = vmatpush3.bf16.xpose.msra.mxu1 %v606_v8 }
  0x19   : > { %3421 = vmatprep.mubr.msk.bf16.mxu0 %vm3724_vm0, %v3723_v0  ;;  %3427 = vmatprep.mubr.msk.bf16.mxu1 %vm3724_vm0, %v3723_v0 }
  0x1a   : > { %3431 = vmatprep.subr.bf16.mxu0 %v3723_v0  ;;  %3437 = vmatprep.subr.bf16.mxu1 %v3723_v0 }
  0x1f   : > { %3422 = vmatmul.mubr.msk.bf16.vlgmr.msra.gmra.mxu0 %vm475_vm1, %v3831_v5  ;;  %3428 = vmatmul.mubr.msk.bf16.vlgmr.msra.gmra.mxu1 %vm475_vm1, %v3833_v6 }
  0x20   : > { %3433 = vmatprep.mubr.msk.bf16.mxu0 %vm3724_vm0, %v3723_v0  ;;  %3439 = vmatprep.mubr.msk.bf16.mxu1 %vm3724_vm0, %v3723_v0 }
  0x21   : > { %3432 = vmatpush3.bf16.msra.mxu0 %v723_v63  ;;  %3438 = vmatpush3.bf16.msra.mxu1 %v768_v3 }
  0x22   : > { %3443 = vmatprep.subr.bf16.mxu0 %v3723_v0  ;;  %3449 = vmatprep.subr.bf16.mxu1 %v3723_v0 }
  0xd7   : > { %v513_v11 = vpop.f32.mrf.mxu0  ;;  %v556_v12 = vpop.f32.mrf.mxu1 }
  0xd8   : > { %v649_v13 = vsub.f32 %v513_v11, %v648_v10  ;;  %v650_v14 = vsub.f32 %v556_v12, %v648_v10 }
  0xd9   : > { %v3411_v15 = vpop.f32.mrf.mxu0  ;;  %v3417_v16 = vpop.f32.mrf.mxu1 }
  0xda   : > { %v657_v17 = vmul.f32 0.01, %v649_v13  ;;  %v658_v18 = vmul.f32 0.01, %v650_v14  ;;  %vm653_vm2 = vcmp.gt.f32.partialorder %v649_v13, 0.0  ;;  %vm654_vm4 = vcmp.gt.f32.partialorder %v650_v14, 0.0 }
  0xdb   : > { %v516_v19 = vpop.f32.mrf.mxu0  ;;  %v559_v20 = vpop.f32.mrf.mxu1  ;;  %v813_v15 = vsel %vm722_vm7, %v3831_v5, 0 }
  0xdc   : > { %v661_v21 = vsel %vm653_vm2, %v649_v13, %v657_v17  ;;  %v662_v25 = vsel %vm654_vm4, %v650_v14, %v658_v18  ;;  %v858_v20 = vsel %vm722_vm7, %v3833_v6, 0  ;;  %vm2949_vm4 = vcmask 1042434  }
  0xdd   : > { %v3412_v22 = vpop.f32.mrf.mxu0  ;;  %v3418_v23 = vpop.f32.mrf.mxu1  ;;  %v666_v24 = vsel %vm665_vm3, %v661_v21, -inf  ;;  %v669_v32 = vsel %vm665_vm3, %v662_v25, -inf }
  0xde   : > { %667 = vmax.xlane.f32.xlu0 %v666_v24 }
  0xdf   : > { %v599_v26 = vpop.f32.mrf.mxu0  ;;  %v642_v27 = vpop.f32.mrf.mxu1 }
  0xe0   : > { %v651_v28 = vsub.f32 %v599_v26, %v648_v10  ;;  %v652_v29 = vsub.f32 %v642_v27, %v648_v10  ;;  %v3671_v26 = vld [vmem:[%s4224_s4] sm:$0xff]  }
  0xe1   : > { %v3423_v30 = vpop.f32.mrf.mxu0  ;;  %v3429_v31 = vpop.f32.mrf.mxu1 }
  0xe2   : > { %v659_v33 = vmul.f32 0.01, %v651_v28  ;;  %v660_v34 = vmul.f32 0.01, %v652_v29  ;;  %670 = vmax.xlane.f32.xlu0 %v669_v32  ;;  %vm655_vm5 = vcmp.gt.f32.partialorder %v651_v28, 0.0  ;;  %vm656_vm6 = vcmp.gt.f32.partialorder %v652_v29, 0.0 }
  0xe3   : > { %v602_v35 = vpop.f32.mrf.mxu0  ;;  %v645_v36 = vpop.f32.mrf.mxu1  ;;  %v922_v30 = vlaneseq }
  0xe4   : > { %v663_v37 = vsel %vm655_vm5, %v651_v28, %v659_v33  ;;  %v664_v41 = vsel %vm656_vm6, %v652_v29, %v660_v34  ;;  %v3725_v28 = vmov 1983009808   ;;  %vm2952_vm5 = vcmask 1043459  }
  0xe5   : > { %v3424_v38 = vpop.f32.mrf.mxu0  ;;  %v3430_v39 = vpop.f32.mrf.mxu1  ;;  %v672_v40 = vsel %vm665_vm3, %v663_v37, -inf  ;;  %v675_v42 = vsel %vm665_vm3, %v664_v41, -inf  ;;  %v920_v29 = vunpack.c.l.s4 %v3725_v28  ;;  %v3921_v36 = vshrl.u32 %v922_v30, 7 }
  0xe6   : > { %673 = vmax.xlane.f32.xlu1 %v672_v40  ;;  %vm2973_vm6 = vcmask 392192  }
  0xe7   : > { %v921_v35 = vunpack.c.0.s8 %v920_v29 }
  0xea   : > { %676 = vmax.xlane.f32.xlu1 %v675_v42  ;;  %v924_v42 = vsub.s32 %v921_v35, %v3921_v36 }
 0x167   : > { %v668_v43 = vpop.xlane.xlu0 %667 }
 0x168   : > { %v678_v44 = vsub.f32 %v661_v21, %v668_v43 }
 0x16a   : > { %v682_v45 = vmul.f32 1.442695, %v678_v44 }
 0x16b   : > { %v671_v46 = vpop.xlane.xlu0 %670 }
 0x16c   : > { %3683 = vpow2.f32 %v682_v45  ;;  %v679_v47 = vsub.f32 %v662_v25, %v671_v46  ;;  %v3670_v25 = vld [vmem:[%s4222_s2] sm:$0xff]  }
 0x16e   : > { %v684_v48 = vmul.f32 1.442695, %v679_v47 }
 0x16f   : > { %v674_v49 = vpop.xlane.xlu1 %673 }
 0x170   : > { %3685 = vpow2.f32 %v684_v48  ;;  %v680_v50 = vsub.f32 %v663_v37, %v674_v49 }
 0x172   : > { %v686_v51 = vmul.f32 1.442695, %v680_v50 }
 0x173   : > { %v677_v52 = vpop.xlane.xlu1 %676 }
 0x174   : > { %3687 = vpow2.f32 %v686_v51  ;;  %v681_v53 = vsub.f32 %v664_v41, %v677_v52 }
 0x176   : > { %v688_v54 = vmul.f32 1.442695, %v681_v53  ;;  %v3269_v53 = vld [vmem:[%s4223_s3] ss:$0 sm:$0xff] }
 0x178   : > { %3689 = vpow2.f32 %v688_v54  ;;  %v3274_v54 = vld [vmem:[%s4225_s5] ss:$0 sm:$0xff] }
 0x179   : > { %v3684_v55 = vpop.eup %3683 }
 0x17a   : > { %v690_v56 = vsel %vm665_vm3, %v3684_v55, 0.0 }
 0x17b   : > { %691 = vadd.xlane.f32.xlu0 %v690_v56 }
 0x17d   : > { %v3686_v57 = vpop.eup %3685 }
 0x17e   : > { %v693_v58 = vsel %vm665_vm3, %v3686_v57, 0.0 }
 0x17f   : > { %694 = vadd.xlane.f32.xlu1 %v693_v58 }
 0x181   : > { %v3688_v59 = vpop.eup %3687 }
 0x182   : > { %v696_v60 = vsel %vm665_vm3, %v3688_v59, 0.0 }
 0x183   : > { %697 = vadd.xlane.f32.xlu0 %v696_v60 }
 0x185   : > { %v3690_v61 = vpop.eup %3689 }
 0x186   : > { %v699_v62 = vsel %vm665_vm3, %v3690_v61, 0.0  ;;  %vm2946_vm3 = vcmask 1041409  }
 0x187   : > { %700 = vadd.xlane.f32.xlu1 %v699_v62 }
 0x204   : > { %v692_v4 = vpop.xlane.xlu0 %691 }
 0x205   : > { %3691 = vrcp.f32 %v692_v4 }
 0x208   : > { %v695_v7 = vpop.xlane.xlu1 %694 }
 0x209   : > { %3693 = vrcp.f32 %v695_v7 }
 0x20c   : > { %v698_v8 = vpop.xlane.xlu0 %697 }
 0x20d   : > { %3695 = vrcp.f32 %v698_v8 }
 0x210   : > { %v701_v10 = vpop.xlane.xlu1 %700 }
 0x211   : > { %3697 = vrcp.f32 %v701_v10 }
 0x212   : > { %v3692_v11 = vpop.eup %3691 }
 0x213   : > { %v703_v12 = vmul.f32 %v3692_v11, %v3684_v55 }
 0x215   : > { %v710_v1 = vadd.f32 %v703_v12, %v3862_v9 }
 0x216   : > { %v3694_v13 = vpop.eup %3693 }
 0x217   : > { %v3880_v14 = vpack.c.bf16 %v710_v1, %v710_v1  ;;  %v705_v2 = vmul.f32 %v3694_v13, %v3686_v57 }
 0x219   : > { %3434 = vmatmul.mubr.msk.bf16.vlgmr.msra.gmra.mxu0 %vm718_vm8, %v3880_v14  ;;  %v711_v16 = vadd.f32 %v705_v2, %v3862_v9 }
 0x21a   : > { %v3696_v17 = vpop.eup %3695  ;;  %3444 = vmatpush3.bf16.msra.mxu0 %v813_v15  ;;  %3445 = vmatprep.mubr.msk.bf16.mxu0 %vm3724_vm0, %v3723_v0 }
 0x21b   : > { %v3889_v18 = vpack.c.bf16 %v711_v16, %v711_v16  ;;  %v707_v19 = vmul.f32 %v3696_v17, %v3688_v59  ;;  %3455 = vmatprep.subr.bf16.mxu0 %v3723_v0 }
 0x21d   : > { %3440 = vmatmul.mubr.msk.bf16.vlgmr.msra.gmra.mxu1 %vm718_vm8, %v3889_v18  ;;  %v712_v5 = vadd.f32 %v707_v19, %v3862_v9 }
 0x21e   : > { %v3698_v21 = vpop.eup %3697  ;;  %3450 = vmatpush3.bf16.msra.mxu1 %v858_v20  ;;  %3451 = vmatprep.mubr.msk.bf16.mxu1 %vm3724_vm0, %v3723_v0 }
 0x21f   : > { %v3899_v22 = vpack.c.bf16 %v712_v5, %v712_v5  ;;  %v709_v23 = vmul.f32 %v3698_v21, %v3690_v61  ;;  %3461 = vmatprep.subr.bf16.mxu1 %v3723_v0 }
 0x221   : > { %3446 = vmatmul.mubr.msk.bf16.vlgmr.msra.gmra.mxu0 %vm718_vm8, %v3899_v22  ;;  %v713_v6 = vadd.f32 %v709_v23, %v3862_v9 }
 0x222   : > { %3457 = vmatprep.mubr.msk.bf16.mxu0 %vm3724_vm0, %v3723_v0  ;;  %3456 = vmatpush3.bf16.msra.mxu0 %v3670_v25 }
 0x223   : > { %v3907_v24 = vpack.c.bf16 %v713_v6, %v713_v6  ;;  %3467 = vmatprep.subr.bf16.mxu0 %v3723_v0 }
 0x225   : > { %3452 = vmatmul.mubr.msk.bf16.vlgmr.msra.gmra.mxu1 %vm718_vm8, %v3907_v24 }
 0x226   : > { %3463 = vmatprep.mubr.msk.bf16.mxu1 %vm3724_vm0, %v3723_v0  ;;  %3462 = vmatpush3.bf16.msra.mxu1 %v3671_v26 }
 0x227   : > { %3473 = vmatprep.subr.bf16.mxu1 %v3723_v0 }
 0x2d9   : > { %v759_v9 = vpop.f32.mrf.mxu0 }
 0x2db   : > { %v3435_v27 = vpop.f32.mrf.mxu0 }
 0x2dd   : > { %v762_v31 = vpop.f32.mrf.mxu0  ;;  %v804_v32 = vpop.f32.mrf.mxu1 }
 0x2de   : > { %v3270_v41 = vpack.c.bf16 %v804_v32, %v759_v9 }
 0x2df   : > { %v3436_v33 = vpop.f32.mrf.mxu0  ;;  %v3441_v34 = vpop.f32.mrf.mxu1 }
 0x2e0   : > { %v925_v48 = vrot.slane %v3270_v41, %v924_v42 }
 0x2e1   : > { %v807_v37 = vpop.f32.mrf.mxu1  ;;  %v849_v38 = vpop.f32.mrf.mxu0 }
 0x2e3   : > { %v3442_v39 = vpop.f32.mrf.mxu1  ;;  %v3447_v40 = vpop.f32.mrf.mxu0 }
 0x2e5   : > { %v852_v43 = vpop.f32.mrf.mxu0  ;;  %v894_v44 = vpop.f32.mrf.mxu1 }
 0x2e6   : > { %v3271_v45 = vpack.c.bf16 %v894_v44, %v849_v38 }
 0x2e7   : > { %v3448_v46 = vpop.f32.mrf.mxu0  ;;  %v3453_v47 = vpop.f32.mrf.mxu1 }
 0x2e8   : > { %v932_v49 = vrot.slane %v3271_v45, %v924_v42 }
 0x2e9   : > { %v897_v50 = vpop.f32.mrf.mxu1 }
 0x2ea   : > { %v933_v51 = vcombine.low %v925_v48, %v932_v49 }
 0x2eb   : > { %v3454_v52 = vpop.f32.mrf.mxu1 }
 0x2ec   : > { %3458 = vmatmul.mubr.msk.bf16.vlgmr.msra.gmra.mxu0 %vm475_vm1, %v933_v51  ;;  %3464 = vmatmul.mubr.msk.bf16.vlgmr.msra.gmra.mxu1 %vm475_vm1, %v933_v51  ;;  %vm2174_vm1 = vcmask 11264  }
 0x2ed   : > { %3469 = vmatprep.mubr.msk.bf16.mxu0 %vm3724_vm0, %v3723_v0  ;;  %3475 = vmatprep.mubr.msk.bf16.mxu1 %vm3724_vm0, %v3723_v0 }
 0x3ac   : > { %v977_v55 = vpop.f32.mrf.mxu0  ;;  %v1056_v56 = vpop.f32.mrf.mxu1 }
 0x3ad   : > { %v978_v57 = vadd.f32 %v3269_v53, %v977_v55  ;;  %v1057_v58 = vadd.f32 %v3274_v54, %v1056_v56 }
 0x3ae   : > { %v3459_v59 = vpop.f32.mrf.mxu0  ;;  %v3465_v60 = vpop.f32.mrf.mxu1 }
 0x3af   : > { %vm1063_vm10 = vcmp.gt.f32.partialorder %v1057_v58, 0.0  ;;  %v1065_v61 = vmul.f32 0.01, %v1057_v58  ;;  %v985_v62 = vsel %vm984_vm9, %v978_v57, -inf }
 0x3b0   : > { %v1059_v63 = vpop.f32.mrf.mxu1  ;;  %986 = vmax.xlane.f32.xlu0 %v985_v62  ;;  %v980_v3 = vpop.f32.mrf.mxu0 }
 0x3b1   : > { %v1067_v4 = vsel %vm1063_vm10, %v1057_v58, %v1065_v61  ;;  %v1060_v7 = vadd.f32 %v3274_v54, %v1059_v63  ;;  %v981_v8 = vadd.f32 %v3269_v53, %v980_v3  ;;  %vm3198_vm10 = vcmask 16384  }
 0x3b2   : > { %v3460_v10 = vpop.f32.mrf.mxu0  ;;  %v3466_v11 = vpop.f32.mrf.mxu1  ;;  %v1081_v12 = vpack.c.bf16 %v1067_v4, %v1067_v4  ;;  %v1077_v1 = vcombine.high %v1067_v4, %v1067_v4 }
 0x3b3   : > { %v988_v13 = vsel %vm984_vm9, %v981_v8, -inf  ;;  %v1066_v38 = vmul.f32 0.01, %v1060_v7  ;;  %vm1064_vm11 = vcmp.gt.f32.partialorder %v1060_v7, 0.0 }
 0x3b4   : > { %989 = vmax.xlane.f32.xlu1 %v988_v13  ;;  %v1225_v2 = vsel %vm722_vm7, %v1081_v12, 0  ;;  %v1082_v15 = vpack.c.bf16 %v1077_v1, %v1077_v1 }
 0x3b5   : > { %3468 = vmatpush3.bf16.msra.mxu0 %v1225_v2  ;;  %v1068_v39 = vsel %vm1064_vm11, %v1060_v7, %v1066_v38 }
 0x3b6   : > { %v1271_v16 = vsel %vm722_vm7, %v1082_v15, 0  ;;  %3479 = vmatprep.subr.bf16.mxu0 %v3723_v0  ;;  %v1078_v40 = vcombine.high %v1068_v39, %v1068_v39  ;;  %v1083_v42 = vpack.c.bf16 %v1068_v39, %v1068_v39 }
 0x3b7   : > { %3474 = vmatpush3.bf16.msra.mxu1 %v1271_v16 }
 0x3b8   : > { %3485 = vmatprep.subr.bf16.mxu1 %v3723_v0  ;;  %v1084_v43 = vpack.c.bf16 %v1078_v40, %v1078_v40  ;;  %v1317_v48 = vsel %vm722_vm7, %v1083_v42, 0 }
 0x3ba   : > { %v1363_v49 = vsel %vm722_vm7, %v1084_v43, 0 }
 0x439   : > { %v987_v17 = vpop.xlane.xlu0 %986 }
 0x43a   : > { %v991_v19 = vsub.f32 %v978_v57, %v987_v17 }
 0x43c   : > { %v993_v20 = vmul.f32 1.442695, %v991_v19 }
 0x43d   : > { %v990_v5 = vpop.xlane.xlu1 %989 }
 0x43e   : > { %3699 = vpow2.f32 %v993_v20  ;;  %v992_v21 = vsub.f32 %v981_v8, %v990_v5 }
 0x440   : > { %v995_v23 = vmul.f32 1.442695, %v992_v21 }
 0x442   : > { %3701 = vpow2.f32 %v995_v23 }
 0x44b   : > { %v3700_v6 = vpop.eup %3699 }
 0x44c   : > { %v997_v25 = vsel %vm984_vm9, %v3700_v6, 0.0 }
 0x44d   : > { %998 = vadd.xlane.f32.xlu0 %v997_v25 }
 0x44f   : > { %v3702_v26 = vpop.eup %3701 }
 0x450   : > { %v1000_v9 = vsel %vm984_vm9, %v3702_v26, 0.0 }
 0x451   : > { %1001 = vadd.xlane.f32.xlu1 %v1000_v9 }
 0x4d6   : > { %v999_v27 = vpop.xlane.xlu0 %998 }
 0x4d7   : > { %3703 = vrcp.f32 %v999_v27 }
 0x4da   : > { %v1002_v28 = vpop.xlane.xlu1 %1001 }
 0x4db   : > { %3705 = vrcp.f32 %v1002_v28  ;;  %v3726_v28 = vmov 65535  }
 0x4e4   : > { %v3704_v29 = vpop.eup %3703 }
 0x4e5   : > { %v1004_v30 = vmul.f32 %v3704_v29, %v3700_v6  ;;  %v1765_v29 = vsel %vm1764_vm12, 4294967295, %v3726_v28 }
 0x4e6   : > { %v4013_v39 = vsel %vm722_vm7, %v1765_v29, 0 }
 0x4e7   : > { %v1071_v31 = vcombine.high %v1004_v30, %v1004_v30  ;;  %v1217_v55 = vpack.c.bf16 %v1004_v30, %v1004_v30 }
 0x4e8   : > { %v3706_v32 = vpop.eup %3705 }
 0x4e9   : > { %v3642_v33 = vpack.i.bf16 %v1071_v31, %v1004_v30  ;;  %v1006_v34 = vmul.f32 %v3706_v32, %v3702_v26  ;;  %v1218_v56 = vpack.c.bf16 %v1071_v31, %v1071_v31  ;;  %v1406_v57 = vsel %vm722_vm7, %v1217_v55, 0 }
 0x4eb   : > { %3643 = vxpose.xlu0.b32.start.end [1/1] (short) (narrow) %v3642_v33, 8  ;;  %v1072_v35 = vcombine.high %v1006_v34, %v1006_v34  ;;  %v1449_v58 = vsel %vm722_vm7, %v1218_v56, 0  ;;  %v1219_v59 = vpack.c.bf16 %v1006_v34, %v1006_v34 }
 0x4ed   : > { %v3649_v37 = vpack.i.bf16 %v1072_v35, %v1006_v34  ;;  %v1220_v60 = vpack.c.bf16 %v1072_v35, %v1072_v35  ;;  %v1492_v61 = vsel %vm722_vm7, %v1219_v59, 0 }
 0x4ef   : > { %3650 = vxpose.xlu1.b32.start.end [1/1] (short) (narrow) %v3649_v37, 8  ;;  %v1535_v62 = vsel %vm722_vm7, %v1220_v60, 0 }
 0x567   : > { %v3644_v41 = vpop.trf.xlu0 }
 0x568   : > { %v3648_v44 = vunpack.i.h.bf16 %v3644_v41  ;;  %v3645_v45 = vunpack.i.l.bf16 %v3644_v41 }
 0x56a   : > { %v3944_v46 = vpack.c.bf16 %v3648_v44, %v3648_v44  ;;  %v3946_v47 = vpack.c.bf16 %v3645_v45, %v3645_v45 }
 0x56b   : > { %v3651_v50 = vpop.trf.xlu1 }
 0x56c   : > { %3470 = vmatmul.mubr.msk.bf16.vlgmr.msra.gmra.mxu0 %vm718_vm8, %v3946_v47  ;;  %3476 = vmatmul.mubr.msk.bf16.vlgmr.msra.gmra.mxu1 %vm718_vm8, %v3944_v46  ;;  %v3655_v51 = vunpack.i.h.bf16 %v3651_v50  ;;  %v3652_v52 = vunpack.i.l.bf16 %v3651_v50 }
 0x56d   : > { %3480 = vmatpush3.bf16.msra.mxu0 %v1317_v48  ;;  %3486 = vmatpush3.bf16.msra.mxu1 %v1363_v49 }
 0x56e   : > { %3481 = vmatprep.mubr.msk.bf16.mxu0 %vm3724_vm0, %v3723_v0  ;;  %3487 = vmatprep.mubr.msk.bf16.mxu1 %vm3724_vm0, %v3723_v0  ;;  %v3960_v53 = vpack.c.bf16 %v3655_v51, %v3655_v51  ;;  %v3962_v54 = vpack.c.bf16 %v3652_v52, %v3652_v52 }
 0x56f   : > { %3491 = vmatprep.subr.bf16.mxu0 %v3723_v0  ;;  %3497 = vmatprep.subr.bf16.mxu1 %v3723_v0 }
 0x574   : > { %3482 = vmatmul.mubr.msk.bf16.vlgmr.msra.gmra.mxu0 %vm718_vm8, %v3962_v54  ;;  %3488 = vmatmul.mubr.msk.bf16.vlgmr.msra.gmra.mxu1 %vm718_vm8, %v3960_v53 }
 0x575   : > { %3492 = vmatpush3.bf16.msra.mxu0 %v1406_v57  ;;  %3498 = vmatpush3.bf16.msra.mxu1 %v1449_v58 }
 0x576   : > { %3493 = vmatprep.mubr.msk.bf16.mxu0 %vm3724_vm0, %v3723_v0  ;;  %3499 = vmatprep.mubr.msk.bf16.mxu1 %vm3724_vm0, %v3723_v0 }
 0x577   : > { %3503 = vmatprep.subr.bf16.mxu0 %v3723_v0  ;;  %3509 = vmatprep.subr.bf16.mxu1 %v3723_v0 }
 0x57c   : > { %3494 = vmatmul.mubr.msk.bf16.vlgmr.msra.gmra.mxu0 %vm718_vm8, %v3880_v14  ;;  %3500 = vmatmul.mubr.msk.bf16.vlgmr.msra.gmra.mxu1 %vm718_vm8, %v3889_v18 }
 0x57d   : > { %3504 = vmatpush3.bf16.msra.mxu0 %v1492_v61  ;;  %3510 = vmatpush3.bf16.msra.mxu1 %v1535_v62 }
 0x57e   : > { %3505 = vmatprep.mubr.msk.bf16.mxu0 %vm3724_vm0, %v3723_v0  ;;  %3511 = vmatprep.mubr.msk.bf16.mxu1 %vm3724_vm0, %v3723_v0 }
 0x57f   : > { %3515 = vmatprep.subr.bf16.mxu0 %v3723_v0  ;;  %3521 = vmatprep.subr.bf16.mxu1 %v3723_v0 }
 0x584   : > { %3506 = vmatmul.mubr.msk.bf16.vlgmr.msra.gmra.mxu0 %vm718_vm8, %v3899_v22  ;;  %3512 = vmatmul.mubr.msk.bf16.vlgmr.msra.gmra.mxu1 %vm718_vm8, %v3907_v24 }
 0x585   : > { %3517 = vmatprep.mubr.msk.bf16.mxu0 %vm3724_vm0, %v3723_v0  ;;  %3523 = vmatprep.mubr.msk.bf16.mxu1 %vm3724_vm0, %v3723_v0 }
 0x62c   : > { %v1261_v14 = vpop.f32.mrf.mxu0  ;;  %v1307_v18 = vpop.f32.mrf.mxu1 }
 0x62d   : > { %v1757_v34 = vpack.c.bf16 %v1261_v14, %v1261_v14  ;;  %v1758_v35 = vpack.c.bf16 %v1307_v18, %v1307_v18 }
 0x62e   : > { %v3471_v63 = vpop.f32.mrf.mxu0  ;;  %v3477_v3 = vpop.f32.mrf.mxu1 }
 0x62f   : > { %v1768_v44 = vand.u32 %v4013_v39, %v1757_v34  ;;  %v1814_v45 = vand.u32 %v4013_v39, %v1758_v35 }
 0x630   : > { %v1264_v4 = vpop.f32.mrf.mxu0  ;;  %v1310_v7 = vpop.f32.mrf.mxu1 }
 0x632   : > { %v3472_v8 = vpop.f32.mrf.mxu0  ;;  %v3478_v10 = vpop.f32.mrf.mxu1 }
 0x634   : > { %v3996_v11 = vpop.f32.mrf.mxu0  ;;  %v3998_v22 = vpop.f32.mrf.mxu1 }
 0x635   : > { %v1759_v48 = vpack.c.bf16 %v3996_v11, %v3996_v11  ;;  %v1760_v49 = vpack.c.bf16 %v3998_v22, %v3998_v22  ;;  %v3672_v22 = vld [vmem:[%s4226_s6 + $0x8] sm:$0xff]  }
 0x636   : > { %v3483_v12 = vpop.f32.mrf.mxu0  ;;  %v3489_v24 = vpop.f32.mrf.mxu1 }
 0x637   : > { %v1906_v55 = vand.u32 %v4013_v39, %v1760_v49  ;;  %v3673_v12 = vld [vmem:[%s4228_s8 + $0x8] sm:$0xff]   ;;  %v3674_v24 = vld [vmem:[%s4226_s6] sm:$0xff]  }
 0x638   : > { %v1356_v1 = vpop.f32.mrf.mxu0  ;;  %v1402_v13 = vpop.f32.mrf.mxu1 }
 0x639   : > { %v3675_v1 = vld [vmem:[%s4228_s8] sm:$0xff]   ;;  %v3727_v13 = vmov 1966171168  }
 0x63a   : > { %v3484_v2 = vpop.f32.mrf.mxu0  ;;  %v3490_v15 = vpop.f32.mrf.mxu1 }
 0x63b   : > { %v1957_v2 = vunpack.c.l.s4 %v3727_v13 }
 0x63c   : > { %v1442_v16 = vpop.f32.mrf.mxu0  ;;  %v1485_v17 = vpop.f32.mrf.mxu1 }
 0x63d   : > { %v1577_v19 = vpack.c.bf16 %v1442_v16, %v1442_v16  ;;  %v1578_v20 = vpack.c.bf16 %v1485_v17, %v1485_v17  ;;  %v1958_v15 = vunpack.c.0.s8 %v1957_v2 }
 0x63e   : > { %v3495_v5 = vpop.f32.mrf.mxu0  ;;  %v3501_v21 = vpop.f32.mrf.mxu1 }
 0x63f   : > { %v1582_v23 = vsel %vm722_vm7, %v1577_v19, 0  ;;  %v1625_v6 = vsel %vm722_vm7, %v1578_v20, 0  ;;  %v4068_v16 = vsub.s32 %v1958_v15, %v3921_v36 }
 0x640   : > { %v1445_v25 = vpop.f32.mrf.mxu0  ;;  %v1488_v26 = vpop.f32.mrf.mxu1  ;;  %3516 = vmatpush3.bf16.msra.mxu0 %v1582_v23  ;;  %3522 = vmatpush3.bf16.msra.mxu1 %v1625_v6 }
 0x641   : > { %3527 = vmatprep.subr.bf16.mxu0 %v3723_v0  ;;  %3533 = vmatprep.subr.bf16.mxu1 %v3723_v0 }
 0x642   : > { %v3496_v9 = vpop.f32.mrf.mxu0  ;;  %v3502_v27 = vpop.f32.mrf.mxu1 }
 0x643   : > { %3518 = vmatmul.mubr.msk.bf16.vlgmr.msra.gmra.mxu0 %vm718_vm8, %v3946_v47  ;;  %3524 = vmatmul.mubr.msk.bf16.vlgmr.msra.gmra.mxu1 %vm718_vm8, %v3944_v46 }
 0x644   : > { %v1528_v30 = vpop.f32.mrf.mxu0  ;;  %v1571_v31 = vpop.f32.mrf.mxu1  ;;  %3529 = vmatprep.mubr.msk.bf16.mxu0 %vm3724_vm0, %v3723_v0  ;;  %3535 = vmatprep.mubr.msk.bf16.mxu1 %vm3724_vm0, %v3723_v0 }
 0x645   : > { %v1579_v32 = vpack.c.bf16 %v1528_v30, %v1528_v30  ;;  %v1580_v33 = vpack.c.bf16 %v1571_v31, %v1571_v31 }
 0x646   : > { %v3507_v37 = vpop.f32.mrf.mxu0  ;;  %v3513_v38 = vpop.f32.mrf.mxu1 }
 0x647   : > { %v1668_v40 = vsel %vm722_vm7, %v1579_v32, 0  ;;  %v1711_v41 = vsel %vm722_vm7, %v1580_v33, 0  ;;  %vm3122_vm7 = vcmask 1045504  }
 0x648   : > { %v1531_v42 = vpop.f32.mrf.mxu0  ;;  %v1574_v43 = vpop.f32.mrf.mxu1  ;;  %3528 = vmatpush3.bf16.msra.mxu0 %v1668_v40  ;;  %3534 = vmatpush3.bf16.msra.mxu1 %v1711_v41 }
 0x649   : > { %3539 = vmatprep.subr.bf16.mxu0 %v3723_v0  ;;  %3545 = vmatprep.subr.bf16.mxu1 %v3723_v0 }
 0x64a   : > { %v3508_v46 = vpop.f32.mrf.mxu0  ;;  %v3514_v47 = vpop.f32.mrf.mxu1 }
 0x64b   : > { %3530 = vmatmul.mubr.msk.bf16.vlgmr.msra.gmra.mxu0 %vm718_vm8, %v3962_v54  ;;  %3536 = vmatmul.mubr.msk.bf16.vlgmr.msra.gmra.mxu1 %vm718_vm8, %v3960_v53  ;;  %v1860_v54 = vand.u32 %v4013_v39, %v1759_v48  ;;  %vm3118_vm8 = vcmask 97280  }
 0x64c   : > { %3540 = vmatpush3.bf16.msra.mxu0 %v1768_v44  ;;  %3546 = vmatpush3.bf16.msra.mxu1 %v1814_v45 }
 0x64d   : > { %3541 = vmatprep.mubr.msk.bf16.mxu0 %vm3724_vm0, %v3723_v0  ;;  %3547 = vmatprep.mubr.msk.bf16.mxu1 %vm3724_vm0, %v3723_v0 }
 0x64e   : > { %3551 = vmatprep.subr.bf16.mxu0 %v3723_v0  ;;  %3557 = vmatprep.subr.bf16.mxu1 %v3723_v0 }
 0x703   : > { %v1618_v50 = vpop.f32.mrf.mxu0  ;;  %v1661_v51 = vpop.f32.mrf.mxu1 }
 0x704   : > { %v1753_v52 = vpack.c.bf16 %v1618_v50, %v1618_v50  ;;  %v1754_v53 = vpack.c.bf16 %v1661_v51, %v1661_v51 }
 0x705   : > { %v3519_v56 = vpop.f32.mrf.mxu0  ;;  %v3525_v57 = vpop.f32.mrf.mxu1 }
 0x706   : > { %3542 = vmatmul.mubr.msk.bf16.vlgmr.msra.gmra.mxu0 %vm984_vm9, %v1753_v52  ;;  %3548 = vmatmul.mubr.msk.bf16.vlgmr.msra.gmra.mxu1 %vm984_vm9, %v1754_v53 }
 0x707   : > { %3552 = vmatpush3.bf16.msra.mxu0 %v1860_v54  ;;  %3558 = vmatpush3.bf16.msra.mxu1 %v1906_v55  ;;  %v1621_v58 = vpop.f32.mrf.mxu0  ;;  %v1664_v59 = vpop.f32.mrf.mxu1 }
 0x708   : > { %3553 = vmatprep.mubr.msk.bf16.mxu0 %vm3724_vm0, %v3723_v0  ;;  %3559 = vmatprep.mubr.msk.bf16.mxu1 %vm3724_vm0, %v3723_v0 }
 0x709   : > { %v3520_v60 = vpop.f32.mrf.mxu0  ;;  %v3526_v61 = vpop.f32.mrf.mxu1  ;;  %3563 = vmatprep.subr.bf16.mxu0 %v3723_v0  ;;  %3571 = vmatprep.subr.bf16.mxu1 %v3723_v0 }
 0x70b   : > { %v1704_v62 = vpop.f32.mrf.mxu0  ;;  %v1747_v14 = vpop.f32.mrf.mxu1 }
 0x70c   : > { %v1755_v18 = vpack.c.bf16 %v1704_v62, %v1704_v62  ;;  %v1756_v63 = vpack.c.bf16 %v1747_v14, %v1747_v14 }
 0x70d   : > { %v3531_v3 = vpop.f32.mrf.mxu0  ;;  %v3537_v4 = vpop.f32.mrf.mxu1 }
 0x70e   : > { %3554 = vmatmul.mubr.msk.bf16.vlgmr.msra.gmra.mxu0 %vm984_vm9, %v1755_v18  ;;  %3560 = vmatmul.mubr.msk.bf16.vlgmr.msra.gmra.mxu1 %vm984_vm9, %v1756_v63 }
 0x70f   : > { %v1707_v7 = vpop.f32.mrf.mxu0  ;;  %v1750_v8 = vpop.f32.mrf.mxu1  ;;  %3567 = vmatprep.mubr.msk.bf16.mxu0 %vm3724_vm0, %v3723_v0  ;;  %3575 = vmatprep.mubr.msk.bf16.mxu1 %vm3724_vm0, %v3723_v0 }
 0x710   : > { %3564 = vmatpush3.bf16.msra.mxu0 %v3672_v22  ;;  %3572 = vmatpush3.bf16.msra.mxu1 %v3673_v12 }
 0x711   : > { %v3532_v10 = vpop.f32.mrf.mxu0  ;;  %v3538_v11 = vpop.f32.mrf.mxu1  ;;  %3565 = vmatprep.subr.bf16.mxu0 %v3723_v0  ;;  %3573 = vmatprep.subr.bf16.mxu1 %v3723_v0 }
 0x712   : > { %v3293_v10 = vld [vmem:[%s4227_s7] ss:$0 sm:$0xff] }
 0x713   : > { %v3301_v11 = vld [vmem:[%s4229_s9] ss:$0 sm:$0xff] }
 0x714   : > { %3566 = vmatpush3.bf16.msra.mxu0 %v3674_v24  ;;  %3574 = vmatpush3.bf16.msra.mxu1 %v3675_v1 }
 0x715   : > { %3579 = vmatprep.subr.bf16.mxu0 %v3723_v0  ;;  %3585 = vmatprep.subr.bf16.mxu1 %v3723_v0 }
 0x7c6   : > { %v1804_v17 = vpop.f32.mrf.mxu0  ;;  %v1850_v19 = vpop.f32.mrf.mxu1 }
 0x7c7   : > { %v1948_v20 = vpack.c.bf16 %v1804_v17, %v1804_v17  ;;  %v1949_v5 = vpack.c.bf16 %v1850_v19, %v1850_v19 }
 0x7c8   : > { %v3543_v21 = vpop.f32.mrf.mxu0  ;;  %v3549_v23 = vpop.f32.mrf.mxu1 }
 0x7c9   : > { %v1962_v6 = vrot.slane %v1948_v20, %v4068_v16  ;;  %v1984_v25 = vrot.slane %v1949_v5, %v4068_v16 }
 0x7ca   : > { %v1807_v26 = vpop.f32.mrf.mxu0  ;;  %v1853_v9 = vpop.f32.mrf.mxu1 }
 0x7cb   : > { %v1963_v27 = vcombine.high %v1962_v6, %v1962_v6  ;;  %v1985_v28 = vcombine.high %v1984_v25, %v1984_v25  ;;  %v1992_v29 = vrot.slane %v1984_v25, %v4068_v16  ;;  %v1970_v45 = vrot.slane %v1962_v6, %v4068_v16 }
 0x7cc   : > { %v3544_v30 = vpop.f32.mrf.mxu0  ;;  %v3550_v31 = vpop.f32.mrf.mxu1 }
 0x7cd   : > { %v1977_v36 = vrot.slane %v1963_v27, %v4068_v16  ;;  %v1999_v34 = vrot.slane %v1985_v28, %v4068_v16  ;;  %v2048_v35 = vunpack.i.h.s16 %v1992_v29 }
 0x7ce   : > { %v1896_v32 = vpop.f32.mrf.mxu0  ;;  %v1942_v33 = vpop.f32.mrf.mxu1 }
 0x7cf   : > { %v1950_v37 = vpack.c.bf16 %v1896_v32, %v1896_v32  ;;  %v1951_v38 = vpack.c.bf16 %v1942_v33, %v1942_v33  ;;  %v3294_v40 = vpack.i.b16 %v1992_v29, %v1977_v36  ;;  %v3295_v50 = vpack.i.b16 %v1999_v34, %v2048_v35 }
 0x7d0   : > { %v3555_v41 = vpop.f32.mrf.mxu0  ;;  %v3561_v42 = vpop.f32.mrf.mxu1 }
 0x7d1   : > { %v2006_v43 = vrot.slane %v1950_v37, %v4068_v16  ;;  %v2028_v44 = vrot.slane %v1951_v38, %v4068_v16  ;;  %v2073_v52 = vcombine.low %v1970_v45, %v3294_v40 }
 0x7d2   : > { %v1899_v46 = vpop.f32.mrf.mxu0  ;;  %v1945_v47 = vpop.f32.mrf.mxu1 }
 0x7d3   : > { %v2007_v48 = vcombine.high %v2006_v43, %v2006_v43  ;;  %v2014_v49 = vrot.slane %v2006_v43, %v4068_v16  ;;  %v2029_v51 = vcombine.high %v2028_v44, %v2028_v44  ;;  %v2036_v53 = vrot.slane %v2028_v44, %v4068_v16 }
 0x7d4   : > { %v3556_v54 = vpop.f32.mrf.mxu0  ;;  %v3562_v55 = vpop.f32.mrf.mxu1  ;;  %v2082_v62 = vrot.slane %v2073_v52, %v4068_v16 }
 0x7d5   : > { %v2021_v56 = vrot.slane %v2007_v48, %v4068_v16  ;;  %v2074_v57 = vcombine.low %v3295_v50, %v2014_v49  ;;  %v2043_v58 = vrot.slane %v2029_v51, %v4068_v16  ;;  %v2054_v59 = vunpack.i.h.s16 %v2036_v53 }
 0x7d7   : > { %v2089_v60 = vrot.slane %v2074_v57, %v4068_v16  ;;  %v3296_v61 = vpack.i.b16 %v2036_v53, %v2021_v56  ;;  %v3297_v14 = vpack.i.b16 %v2043_v58, %v2054_v59 }
 0x7d9   : > { %v2097_v18 = vcombine.low %v2082_v62, %v2089_v60  ;;  %v2075_v63 = vcombine.low %v3296_v61, %v3297_v14 }
 0x7db   : > { %v2096_v3 = vrot.slane %v2075_v63, %v4068_v16  ;;  %v2104_v4 = vrot.slane %v2097_v18, %v4068_v16 }
 0x7dd   : > { %v2111_v7 = vrot.slane %v2096_v3, %v4068_v16 }
 0x7df   : > { %v2112_v8 = vcombine.low %v2104_v4, %v2111_v7 }
 0x7e1   : > { %3568 = vmatmul.mubr.msk.bf16.vlgmr.msra.gmra.mxu0 %vm2125_vm13, %v2112_v8  ;;  %3576 = vmatmul.mubr.msk.bf16.vlgmr.msra.gmra.mxu1 %vm2125_vm13, %v2112_v8 }
 0x7e2   : > { %3581 = vmatprep.mubr.msk.bf16.mxu0 %vm3724_vm0, %v3723_v0  ;;  %3587 = vmatprep.mubr.msk.bf16.mxu1 %vm3724_vm0, %v3723_v0 }
 0x8a1   : > { %v2163_v22 = vpop.f32.mrf.mxu0  ;;  %v2251_v12 = vpop.f32.mrf.mxu1 }
 0x8a2   : > { %v2164_v24 = vadd.f32 %v3293_v10, %v2163_v22  ;;  %v2252_v1 = vadd.f32 %v3301_v11, %v2251_v12 }
 0x8a3   : > { %v3569_v13 = vpop.f32.mrf.mxu0  ;;  %v3577_v2 = vpop.f32.mrf.mxu1 }
 0x8a4   : > { %vm2258_vm15 = vcmp.gt.f32.partialorder %v2252_v1, 0.0  ;;  %v2260_v15 = vmul.f32 0.01, %v2252_v1  ;;  %v2171_v17 = vsel %vm2170_vm14, %v2164_v24, -inf }
 0x8a5   : > { %v2254_v19 = vpop.f32.mrf.mxu1  ;;  %2172 = vmax.xlane.f32.xlu0 %v2171_v17  ;;  %v2166_v20 = vpop.f32.mrf.mxu0 }
 0x8a6   : > { %v2262_v5 = vsel %vm2258_vm15, %v2252_v1, %v2260_v15  ;;  %v2255_v21 = vadd.f32 %v3301_v11, %v2254_v19  ;;  %v2167_v23 = vadd.f32 %v3293_v10, %v2166_v20 }
 0x8a7   : > { %v2341_v6 = vcombine.high %v2262_v5, %v2262_v5  ;;  %v2348_v25 = vrot.slane %v2262_v5, %v4068_v16  ;;  %v3570_v26 = vpop.f32.mrf.mxu0  ;;  %v3578_v9 = vpop.f32.mrf.mxu1 }
 0x8a8   : > { %vm2259_vm2 = vcmp.gt.f32.partialorder %v2255_v21, 0.0  ;;  %v2261_v27 = vmul.f32 0.01, %v2255_v21  ;;  %v2175_v28 = vsel %vm2174_vm1, %v2167_v23, -inf }
 0x8a9   : > { %v2355_v29 = vrot.slane %v2341_v6, %v4068_v16  ;;  %v2356_v30 = vcombine.high %v2348_v25, %v2348_v25  ;;  %v2364_v31 = vrot.slane %v2348_v25, %v4068_v16  ;;  %2176 = vmax.xlane.f32.xlu1 %v2175_v28 }
 0x8aa   : > { %v2263_v36 = vsel %vm2259_vm2, %v2255_v21, %v2261_v27 }
 0x8ab   : > { %v2357_v32 = vcombine.high %v2355_v29, %v2355_v29  ;;  %v2378_v33 = vrot.slane %v2356_v30, %v4068_v16  ;;  %v2386_v34 = vcombine.high %v2364_v31, %v2364_v31  ;;  %v4104_v35 = vrot.slane %v2263_v36, %v4068_v16 }
 0x8ac   : > { %v2371_v37 = vrot.slane %v2355_v29, %v4068_v16 }
 0x8ad   : > { %v2385_v38 = vrot.slane %v2357_v32, %v4068_v16  ;;  %v2388_v40 = vcombine.high %v2378_v33, %v2378_v33  ;;  %v2414_v41 = vcombine.low %v2364_v31, %v2378_v33  ;;  %v4110_v42 = vrot.slane %v4104_v35, %v4068_v16 }
 0x8ae   : > { %v2428_v44 = vrot.slane %v2386_v34, %v4068_v16 }
 0x8af   : > { %v2421_v43 = vrot.slane %v2414_v41, %v4068_v16  ;;  %v2437_v45 = vcombine.low %v2388_v40, %v2371_v37  ;;  %v3305_v46 = vcombine.high %v2371_v37, %v2385_v38  ;;  %v2451_v47 = vrot.slane %v2385_v38, %v4068_v16 }
 0x8b0   : > { %v2474_v48 = vrot.slane %v4110_v42, %v4068_v16 }
 0x8b1   : > { %v2429_v49 = vcombine.low %v2421_v43, %v2428_v44  ;;  %v2444_v50 = vrot.slane %v2437_v45, %v4068_v16  ;;  %v2467_v51 = vrot.slane %v3305_v46, %v4068_v16 }
 0x8b3   : > { %v2436_v52 = vrot.slane %v2429_v49, %v4068_v16  ;;  %v2452_v53 = vcombine.low %v2444_v50, %v2451_v47  ;;  %v4120_v54 = vcombine.low %v2467_v51, %v2474_v48 }
 0x8b5   : > { %v2510_v55 = vpack.c.bf16 %v2436_v52, %v2436_v52  ;;  %v2459_v56 = vrot.slane %v2452_v53, %v4068_v16 }
 0x8b7   : > { %v2746_v57 = vand.u32 %v2510_v55, %v4013_v39  ;;  %v2511_v58 = vpack.c.bf16 %v2459_v56, %v2459_v56 }
 0x8b9   : > { %3580 = vmatpush3.bf16.msra.mxu0 %v2746_v57  ;;  %v2792_v59 = vand.u32 %v2511_v58, %v4013_v39  ;;  %v2397_v57 = vcombine.high %v4104_v35, %v4104_v35 }
 0x8ba   : > { %3591 = vmatprep.subr.bf16.mxu0 %v3723_v0 }
 0x8bb   : > { %3586 = vmatpush3.bf16.msra.mxu1 %v2792_v59  ;;  %v2411_v58 = vrot.slane %v2397_v57, %v4068_v16  ;;  %v2412_v59 = vcombine.high %v4110_v42, %v4110_v42 }
 0x8bc   : > { %3597 = vmatprep.subr.bf16.mxu1 %v3723_v0 }
 0x92e   : > { %v2173_v60 = vpop.xlane.xlu0 %2172 }
 0x92f   : > { %v2178_v61 = vsub.f32 %v2164_v24, %v2173_v60  ;;  %v2413_v60 = vcombine.high %v2411_v58, %v2411_v58 }
 0x931   : > { %v2180_v62 = vmul.f32 1.442695, %v2178_v61  ;;  %v2483_v61 = vcombine.low %v2411_v58, %v2412_v59 }
 0x932   : > { %v2177_v14 = vpop.xlane.xlu1 %2176 }
 0x933   : > { %3707 = vpow2.f32 %v2180_v62  ;;  %v2179_v18 = vsub.f32 %v2167_v23, %v2177_v14  ;;  %v2490_v62 = vrot.slane %v2483_v61, %v4068_v16  ;;  %v2497_v14 = vrot.slane %v2413_v60, %v4068_v16 }
 0x935   : > { %v2182_v63 = vmul.f32 1.442695, %v2179_v18  ;;  %v2498_v18 = vcombine.low %v2490_v62, %v2497_v14  ;;  %v3682_v14 = vld [vmem:[%s4232_s12] sm:$0x3f]  }
 0x937   : > { %3709 = vpow2.f32 %v2182_v63  ;;  %v2482_v63 = vrot.slane %v4120_v54, %v4068_v16 }
 0x940   : > { %v3708_v3 = vpop.eup %3707 }
 0x941   : > { %v2184_v4 = vsel %vm2170_vm14, %v3708_v3, 0.0 }
 0x942   : > { %2185 = vadd.xlane.f32.xlu0 %v2184_v4 }
 0x944   : > { %v3710_v7 = vpop.eup %3709 }
 0x945   : > { %v2187_v8 = vsel %vm2174_vm1, %v3710_v7, 0.0 }
 0x946   : > { %2188 = vadd.xlane.f32.xlu1 %v2187_v8 }
 0x9cb   : > { %v2186_v10 = vpop.xlane.xlu0 %2185 }
 0x9cc   : > { %3711 = vrcp.f32 %v2186_v10 }
 0x9cf   : > { %v2189_v11 = vpop.xlane.xlu1 %2188 }
 0x9d0   : > { %3713 = vrcp.f32 %v2189_v11 }
 0x9d9   : > { %v3712_v22 = vpop.eup %3711 }
 0x9da   : > { %v2191_v12 = vmul.f32 %v3712_v22, %v3708_v3  ;;  %v2505_v3 = vrot.slane %v2498_v18, %v4068_v16  ;;  %v3124_v18 = vsel %vm3122_vm7, %v3682_v14, 0 }
 0x9dc   : > { %v2266_v24 = vcombine.high %v2191_v12, %v2191_v12  ;;  %v2273_v1 = vrot.slane %v2191_v12, %v4068_v16  ;;  %v2513_v35 = vpack.c.bf16 %v2505_v3, %v2505_v3 }
 0x9dd   : > { %v3714_v13 = vpop.eup %3713 }
 0x9de   : > { %v2193_v2 = vmul.f32 %v3714_v13, %v3710_v7  ;;  %v2280_v15 = vrot.slane %v2266_v24, %v4068_v16  ;;  %v2281_v17 = vcombine.high %v2273_v1, %v2273_v1  ;;  %v2289_v19 = vrot.slane %v2273_v1, %v4068_v16 }
 0x9df   : > { %v2512_v7 = vpack.c.bf16 %v2482_v63, %v2482_v63  ;;  %v2884_v24 = vand.u32 %v2513_v35, %v4013_v39  ;;  %v3315_v63 = vld [vmem:[%s4231_s11] ss:$0 sm:$0xff] }
 0x9e0   : > { %v2282_v20 = vcombine.high %v2280_v15, %v2280_v15  ;;  %v2303_v5 = vrot.slane %v2281_v17, %v4068_v16  ;;  %v2311_v21 = vcombine.high %v2289_v19, %v2289_v19  ;;  %v2321_v23 = vrot.slane %v2193_v2, %v4068_v16  ;;  %v3676_v2 = vld [vmem:[%s4230_s10 + $0x10] sm:$0xff]   ;;  %v3678_v17 = vld [vmem:[%s4230_s10 + $0x8] sm:$0xff]  }
 0x9e1   : > { %v2296_v6 = vrot.slane %v2280_v15, %v4068_v16  ;;  %v2838_v12 = vand.u32 %v2512_v7, %v4013_v39  ;;  %v3677_v15 = vld [vmem:[%s4230_s10 + $0x28] sm:$0xff]  }
 0x9e2   : > { %v2310_v25 = vrot.slane %v2282_v20, %v4068_v16  ;;  %v2313_v26 = vcombine.high %v2303_v5, %v2303_v5  ;;  %v2514_v9 = vcombine.low %v2289_v19, %v2303_v5  ;;  %v2322_v27 = vcombine.high %v2321_v23, %v2321_v23  ;;  %v3679_v19 = vld [vmem:[%s4230_s10 + $0x20] sm:$0xff]   ;;  %v3681_v5 = vld [vmem:[%s4230_s10 + $0x18] sm:$0xff]  }
 0x9e3   : > { %v2329_v28 = vrot.slane %v2321_v23, %v4068_v16  ;;  %v2528_v30 = vrot.slane %v2311_v21, %v4068_v16  ;;  %v3680_v20 = vld [vmem:[%s4230_s10] sm:$0xff]  }
 0x9e4   : > { %v2521_v29 = vrot.slane %v2514_v9, %v4068_v16  ;;  %v2537_v31 = vcombine.low %v2313_v26, %v2296_v6  ;;  %v3306_v36 = vcombine.high %v2296_v6, %v2310_v25  ;;  %v2336_v32 = vrot.slane %v2322_v27, %v4068_v16 }
 0x9e5   : > { %v2337_v33 = vcombine.high %v2329_v28, %v2329_v28  ;;  %v2551_v38 = vrot.slane %v2310_v25, %v4068_v16  ;;  %v2574_v43 = vrot.slane %v2329_v28, %v4068_v16 }
 0x9e6   : > { %v2529_v34 = vcombine.low %v2521_v29, %v2528_v30  ;;  %v2544_v37 = vrot.slane %v2537_v31, %v4068_v16  ;;  %v2567_v40 = vrot.slane %v3306_v36, %v4068_v16  ;;  %v2338_v41 = vcombine.high %v2336_v32, %v2336_v32 }
 0x9e7   : > { %v2583_v44 = vcombine.low %v2336_v32, %v2337_v33 }
 0x9e8   : > { %v2552_v45 = vcombine.low %v2544_v37, %v2551_v38  ;;  %v2575_v46 = vcombine.low %v2567_v40, %v2574_v43  ;;  %v2597_v48 = vrot.slane %v2338_v41, %v4068_v16  ;;  %v2536_v49 = vrot.slane %v2529_v34, %v4068_v16 }
 0x9e9   : > { %v2590_v47 = vrot.slane %v2583_v44, %v4068_v16 }
 0x9ea   : > { %v2559_v50 = vrot.slane %v2552_v45, %v4068_v16  ;;  %v2582_v53 = vrot.slane %v2575_v46, %v4068_v16 }
 0x9eb   : > { %v2598_v51 = vcombine.low %v2590_v47, %v2597_v48 }
 0x9ec   : > { %v3656_v52 = vpack.i.bf16 %v2559_v50, %v2536_v49 }
 0x9ed   : > { %v2605_v55 = vrot.slane %v2598_v51, %v4068_v16 }
 0x9ee   : > { %3657 = vxpose.xlu0.b32.start.end [1/1] (short) (narrow) %v3656_v52, 8 }
 0x9ef   : > { %v3663_v56 = vpack.i.bf16 %v2605_v55, %v2582_v53 }
 0x9f1   : > { %3664 = vxpose.xlu1.b32.start.end [1/1] (short) (narrow) %v3663_v56, 8 }
 0xa6a   : > { %v3658_v4 = vpop.trf.xlu0 }
 0xa6b   : > { %v3662_v8 = vunpack.i.h.bf16 %v3658_v4  ;;  %v3659_v10 = vunpack.i.l.bf16 %v3658_v4 }
 0xa6d   : > { %v2739_v11 = vpack.c.bf16 %v3662_v8, %v3662_v8  ;;  %v2738_v22 = vpack.c.bf16 %v3659_v10, %v3659_v10  ;;  %v3665_v42 = vpop.trf.xlu1 }
 0xa6e   : > { %v3669_v1 = vunpack.i.h.bf16 %v3665_v42  ;;  %v3666_v54 = vunpack.i.l.bf16 %v3665_v42 }
 0xa6f   : > { %3582 = vmatmul.mubr.msk.bf16.vlgmr.msra.gmra.mxu0 %vm984_vm9, %v2738_v22  ;;  %3588 = vmatmul.mubr.msk.bf16.vlgmr.msra.gmra.mxu1 %vm984_vm9, %v2739_v11 }
 0xa70   : > { %3592 = vmatpush3.bf16.msra.mxu0 %v2838_v12  ;;  %3598 = vmatpush3.bf16.msra.mxu1 %v2884_v24  ;;  %v2741_v13 = vpack.c.bf16 %v3669_v1, %v3669_v1  ;;  %v2740_v39 = vpack.c.bf16 %v3666_v54, %v3666_v54  ;;  %v3326_v54 = vld [vmem:[%s4233_s13] ss:$0 sm:$0xff] }
 0xa71   : > { %3593 = vmatprep.mubr.msk.bf16.mxu0 %vm3724_vm0, %v3723_v0  ;;  %3599 = vmatprep.mubr.msk.bf16.mxu1 %vm3724_vm0, %v3723_v0 }
 0xa72   : > { %3603 = vmatprep.subr.bf16.mxu0 %v3723_v0  ;;  %3613 = vmatprep.subr.bf16.mxu1 %v3723_v0 }
 0xa77   : > { %3594 = vmatmul.mubr.msk.bf16.vlgmr.msra.gmra.mxu0 %vm984_vm9, %v2740_v39  ;;  %3600 = vmatmul.mubr.msk.bf16.vlgmr.msra.gmra.mxu1 %vm984_vm9, %v2741_v13 }
 0xa78   : > { %3609 = vmatprep.mubr.msk.bf16.mxu0 %vm3724_vm0, %v3723_v0  ;;  %3619 = vmatprep.mubr.msk.bf16.mxu1 %vm3724_vm0, %v3723_v0 }
 0xa79   : > { %3604 = vmatpush3.bf16.msra.mxu0 %v3676_v2  ;;  %3614 = vmatpush3.bf16.msra.mxu1 %v3677_v15 }
 0xa7a   : > { %3605 = vmatprep.subr.bf16.mxu0 %v3723_v0  ;;  %3615 = vmatprep.subr.bf16.mxu1 %v3723_v0 }
 0xa7d   : > { %3606 = vmatpush3.bf16.msra.mxu0 %v3678_v17  ;;  %3616 = vmatpush3.bf16.msra.mxu1 %v3679_v19 }
 0xa7e   : > { %3607 = vmatprep.subr.bf16.mxu0 %v3723_v0  ;;  %3617 = vmatprep.subr.bf16.mxu1 %v3723_v0 }
 0xa81   : > { %3608 = vmatpush3.bf16.msra.mxu0 %v3680_v20  ;;  %3618 = vmatpush3.bf16.msra.mxu1 %v3681_v5 }
 0xa82   : > { %3623 = vmatprep.subr.bf16.mxu0 %v3723_v0 }
 0xb2f   : > { %v2782_v21 = vpop.f32.mrf.mxu0  ;;  %v2828_v23 = vpop.f32.mrf.mxu1 }
 0xb30   : > { %v2926_v6 = vpack.c.bf16 %v2782_v21, %v2782_v21  ;;  %v2927_v25 = vpack.c.bf16 %v2828_v23, %v2828_v23 }
 0xb31   : > { %v3583_v26 = vpop.f32.mrf.mxu0  ;;  %v3589_v9 = vpop.f32.mrf.mxu1 }
 0xb32   : > { %v2941_v29 = vunpack.c.l.b16 %v2926_v6  ;;  %v2942_v30 = vunpack.c.l.b16 %v2927_v25 }
 0xb33   : > { %v2785_v27 = vpop.f32.mrf.mxu0  ;;  %v2831_v28 = vpop.f32.mrf.mxu1 }
 0xb34   : > { %v3031_v38 = vrot.slane %v2941_v29, 1  ;;  %v2945_v40 = vrot.slane %v2942_v30, 7 }
 0xb35   : > { %v3584_v31 = vpop.f32.mrf.mxu0  ;;  %v3590_v36 = vpop.f32.mrf.mxu1 }
 0xb36   : > { %v2947_v52 = vsel %vm2946_vm3, %v2945_v40, %v2941_v29  ;;  %v3032_v53 = vsel %vm2946_vm3, %v2942_v30, %v3031_v38 }
 0xb37   : > { %v2874_v32 = vpop.f32.mrf.mxu0  ;;  %v2920_v33 = vpop.f32.mrf.mxu1 }
 0xb38   : > { %v2928_v34 = vpack.c.bf16 %v2874_v32, %v2874_v32  ;;  %v2929_v37 = vpack.c.bf16 %v2920_v33, %v2920_v33 }
 0xb39   : > { %v3595_v41 = vpop.f32.mrf.mxu0  ;;  %v3601_v43 = vpop.f32.mrf.mxu1 }
 0xb3a   : > { %v2943_v44 = vunpack.c.l.b16 %v2928_v34  ;;  %v2944_v45 = vunpack.c.l.b16 %v2929_v37 }
 0xb3b   : > { %v2877_v46 = vpop.f32.mrf.mxu0  ;;  %v2923_v47 = vpop.f32.mrf.mxu1 }
 0xb3c   : > { %v2948_v48 = vrot.slane %v2943_v44, 6  ;;  %v3033_v49 = vrot.slane %v2943_v44, 7  ;;  %v2951_v50 = vrot.slane %v2944_v45, 5  ;;  %v3035_v51 = vrot.slane %v2944_v45, 6 }
 0xb3d   : > { %v3596_v55 = vpop.f32.mrf.mxu0  ;;  %v3602_v56 = vpop.f32.mrf.mxu1 }
 0xb3e   : > { %v2950_v57 = vsel %vm2949_vm4, %v2948_v48, %v2947_v52  ;;  %v3034_v58 = vsel %vm2949_vm4, %v3033_v49, %v3032_v53 }
 0xb3f   : > { %v2953_v59 = vsel %vm2952_vm5, %v2951_v50, %v2950_v57  ;;  %v3036_v60 = vsel %vm2952_vm5, %v3035_v51, %v3034_v58 }
 0xb40   : > { %v2954_v61 = vpack.c.b16 %v2953_v59, %v2953_v59  ;;  %v3037_v62 = vpack.c.b16 %v3036_v60, %v3036_v60 }
 0xb42   : > { %3610 = vmatmul.mubr.msk.bf16.vlgmr.msra.gmra.mxu0 %vm2973_vm6, %v2954_v61  ;;  %3620 = vmatmul.mubr.msk.bf16.vlgmr.msra.gmra.mxu1 %vm2973_vm6, %v3037_v62 }
 0xb43   : > { %3625 = vmatprep.mubr.msk.bf16.mxu0 %vm3724_vm0, %v3723_v0  ;;  %3624 = vmatpush3.bf16.msra.mxu0 %v3124_v18 }
 0xc02   : > { %v3011_v3 = vpop.f32.mrf.mxu0  ;;  %v3093_v4 = vpop.f32.mrf.mxu1 }
 0xc03   : > { %v3023_v7 = vadd.f32 %v3315_v63, %v3011_v3 }
 0xc04   : > { %v3611_v35 = vpop.f32.mrf.mxu0  ;;  %v3621_v8 = vpop.f32.mrf.mxu1 }
 0xc05   : > { %v3099_v10 = vadd.f32 %v3093_v4, %v3023_v7 }
 0xc06   : > { %v3014_v11 = vpop.f32.mrf.mxu0  ;;  %v3096_v22 = vpop.f32.mrf.mxu1 }
 0xc07   : > { %vm3100_vm0 = vcmp.gt.f32.partialorder %v3099_v10, 0.0  ;;  %v3101_v0 = vmul.f32 0.01, %v3099_v10 }
 0xc08   : > { %v3612_v42 = vpop.f32.mrf.mxu0  ;;  %v3622_v12 = vpop.f32.mrf.mxu1 }
 0xc09   : > { %v3102_v24 = vsel %vm3100_vm0, %v3099_v10, %v3101_v0 }
 0xc0a   : > { %v3103_v1 = vpack.c.bf16 %v3102_v24, %v3102_v24 }
 0xc0c   : > { %3626 = vmatmul.mubr.msk.bf16.vlgmr.msra.gmra.mxu0 %vm3118_vm8, %v3103_v1 }
 0xccc   : > { %v3160_v13 = vpop.f32.mrf.mxu0 }
 0xccd   : > { %v3161_v39 = vadd.f32 %v3326_v54, %v3160_v13 }
 0xcce   : > { %v3627_v2 = vpop.f32.mrf.mxu0 }
 0xccf   : > { %vm3166_vm9 = vcmp.gt.f32.partialorder %v3161_v39, 0.0  ;;  %v3167_v15 = vmul.f32 0.01, %v3161_v39 }
 0xcd0   : > { %v3163_v17 = vpop.f32.mrf.mxu0 }
 0xcd1   : > { %v3168_v19 = vsel %vm3166_vm9, %v3161_v39, %v3167_v15 }
 0xcd2   : > { %v3176_v20 = vrot.slane %v3168_v19, %v4068_v16  ;;  %v3628_v5 = vpop.f32.mrf.mxu0 }
 0xcd4   : > { %v3177_v21 = vcombine.high %v3176_v20, %v3176_v20  ;;  %v3184_v23 = vrot.slane %v3176_v20, %v4068_v16 }
 0xcd6   : > { %v3191_v6 = vrot.slane %v3177_v21, %v4068_v16  ;;  %v3192_v25 = vcombine.high %v3184_v23, %v3184_v23  ;;  %3199 = vst.msk [vmem:[%s467_s20] sm:$0x1] %vm3198_vm10, %v3184_v23 }
 0xcd8   : > { %v3193_v26 = vcombine.high %v3191_v6, %v3191_v6  ;;  %3200 = vst.msk [vmem:[%s467_s20 + $0x1] sm:$0x1] %vm3198_vm10, %v3191_v6  ;;  %3201 = vst.msk [vmem:[%s467_s20 + $0x2] sm:$0x1] %vm3198_vm10, %v3192_v25 }
 0xcda   : > { %3202 = vst.msk [vmem:[%s467_s20 + $0x3] sm:$0x1] %vm3198_vm10, %v3193_v26 }
 0xcdb PF: > { %s24_s29 = sadd.s32 1, %s3721_s29  }
 0xcdc   : > { %p21_p4 = scmp.ge.s32.totalorder %s24_s29, 4  }
 0xcde   :  { %23 = sbr.rel (!%p21_p4) target bundleno = 1 (0x1), region = 107 }

// kernel: _lambda_.2
= control target key start
LH: loop header
LB: loop body
LE: loop exit
PB: predicated region body
PF: predicated region fallthrough
CT: control target
= control target key end

     0   :  { %s6456_s24 = smov 0   ;;  %s8326_s0 = inlined_call_operand.vmem [shape: bf16[8,24,8], index: 0, kind: input, shape index: {}]   ;;  %s8327_s1 = inlined_call_operand.vmem [shape: bf16[64,16], index: 1, kind: input, shape index: {}]   ;;  %s8328_s2 = inlined_call_operand.vmem [shape: f32[1,16], index: 2, kind: input, shape index: {}, may-alias: {2,4,6}]   ;;  %s8329_s3 = inlined_call_operand.vmem [shape: bf16[128,16], index: 3, kind: input, shape index: {}]   ;;  %s8330_s4 = inlined_call_operand.vmem [shape: f32[1,16], index: 4, kind: input, shape index: {}, may-alias: {2,4,6}]   ;;  %s8331_s5 = inlined_call_operand.vmem [shape: bf16[128,16], index: 5, kind: input, shape index: {}]   ;;  %s8332_s6 = inlined_call_operand.vmem [shape: f32[1,16], index: 6, kind: input, shape index: {}, may-alias: {2,4,6}]   ;;  %s8333_s7 = inlined_call_operand.vmem [shape: bf16[8,4,4,4], index: 7, kind: output, shape index: {}]  }
   0x1 LB: > { %s6041_s25 = sadd.s32 4294967295, %s6395_s24   ;;  %p6045_p0 = scmp.ge.s32.totalorder %s6395_s24, 1  ;;  %s6395_s24 = sphi %s6456_s24, %s17_s24  }
   0x2   : > { %p239_p1 = scmp.lt.s32.totalorder %s6395_s24, 3 }
   0x4   : > { %p240_p2 = pnand %p6045_p0, %p239_p1 }
   0x5   : > { %s6046_s26 = sshll.u32 (!%p240_p2), %s6041_s25, 2  ;;  %s6397_s8 = smov (!%p240_p2), 8  }
   0x6   : > { %243 = sbr.rel (%p240_p2) target bundleno = 1571 (0x623), region = 48  ;;  %p274_p3 = scmp.lt.s32.totalorder (!%p240_p2), %s6046_s26, 7 }
   0x7   : > { %s6398_s9 = smov (!%p240_p2), 16   ;;  %s6399_s10 = smov (!%p240_p2), 24  }
   0x8   : > { %s6400_s11 = smov (!%p240_p2), 32   ;;  %s6401_s12 = smov (!%p240_p2), 40  }
   0x9   : > { %s6402_s13 = smov (!%p240_p2), 48   ;;  %s6403_s14 = smov (!%p240_p2), 56  }
   0xa   : > { %s6409_s28 = smov (!%p240_p2), 96   ;;  %s6410_s29 = smov (!%p240_p2), 80  }
   0xb   : > { %s8505_s26 = smov (!%p274_p3, %s6046_s26), 7  ;;  %vm8334_vm0 = vsmask.f32 3328  ;;  %vm337_vm1 = vsmask.f32 7440  ;;  %vm534_vm3 = vcmask 1042432  }
   0xc   : > { %s6341_s27 = smul.u32 12, %s8505_s26  ;;  %vm6573_vm2 = vmor %vm8334_vm0, %vm337_vm1  ;;  %vm535_vm4 = vcmask 1046532   ;;  %vm8335_vm6 = vsmask.f32 2304  ;;  %vm641_vm7 = vsmask.f32 6416 }
   0xd   : > { %vm6587_vm5 = vmor %vm534_vm3, %vm535_vm4  ;;  %vm842_vm8 = vcmask 1041408   ;;  %vm843_vm10 = vcmask 1045508   ;;  %vm948_vm12 = vsmask.f32 1280  ;;  %vm949_vm13 = vsmask.f32 5392 }
   0xe   : > { %s6470_s30 = scalar_lea.vmem %s8326_s0, %s6341_s27  ;;  %vm6607_vm9 = vmor %vm8335_vm6, %vm641_vm7  ;;  %vm1150_vm15 = vcmask 1040384   ;;  %vm1151_vm1 = vcmask 1044484   ;;  %vm8344_vm3 = vsmask.f32 256  ;;  %vm303_vm4 = vcmask 57344   ;;  %s6408_s27 = smov 64  }
   0xf   : > { %v6473_v0 = vld [vmem:[%s6470_s30 + $0x20] sm:$0x1]  ;;  %v6476_v1 = vld [vmem:[%s6470_s30 + $0x8] sm:$0x1]  ;;  %v6484_v5 = vld [vmem:[%s6470_s30 + $0x14] sm:$0x1] }
  0x10   : > { %v6479_v2 = vld [vmem:[%s6470_s30 + $0x8] sm:$0x3]  ;;  %v419_v3 = vshrl.u32 %v6473_v0, 16  ;;  %v363_v4 = vshrl.u32 %v6476_v1, 16  ;;  %v391_v8 = vshrl.u32 %v6484_v5, 16  ;;  %v359_v48 = vshll.u32 %v6476_v1, 16  ;;  %vm6643_vm11 = vmor %vm842_vm8, %vm843_vm10 }
  0x11   : > { %v542_v6 = vrot.slane %v6479_v2, 5  ;;  %v6488_v7 = vld [vmem:[%s6470_s30 + $0x8] sm:$0x3]  ;;  %v6495_v10 = vld [vmem:[%s6470_s30 + $0x14] sm:$0x3]  ;;  %vm6684_vm14 = vmor %vm948_vm12, %vm949_vm13  ;;  %vm300_vm13 = vcmask 60416  }
  0x12   : > { %467 = vrot.lane.b32.xlu1 %v419_v3, %s6397_s8  ;;  %455 = vrot.lane.b32.xlu0 %v363_v4, %s6397_s8  ;;  %v663_v9 = vshrl.u32 %v6488_v7, 16  ;;  %v550_v12 = vrot.slane %v6495_v10, 5  ;;  %v6501_v13 = vld [vmem:[%s6470_s30 + $0x14] sm:$0x3]  ;;  %v6504_v14 = vld [vmem:[%s6470_s30 + $0x20] sm:$0x3]  ;;  %vm6727_vm7 = vmand %vm303_vm4, %vm8344_vm3 }
  0x13   : > { %v544_v11 = vrot.slane %v542_v6, 4  ;;  %v692_v16 = vshrl.u32 %v6501_v13, 16  ;;  %v558_v17 = vrot.slane %v6504_v14, 5  ;;  %v6511_v18 = vld [vmem:[%s6470_s30 + $0x8] sm:$0x7]  ;;  %v361_v61 = vrot.slane %v359_v48, 5  ;;  %vm6741_vm8 = vmor %vm1150_vm15, %vm1151_vm1 }
  0x14   : > { %v6506_v15 = vrot.slane %v663_v9, 5  ;;  %v552_v20 = vrot.slane %v550_v12, 4  ;;  %v6521_v22 = vld [vmem:[%s6470_s30 + $0x20] sm:$0x3]  ;;  %v6526_v24 = vld [vmem:[%s6470_s30 + $0x2c] sm:$0x1] }
  0x15   : > { %v6518_v21 = vrot.slane %v692_v16, 5  ;;  %v560_v23 = vrot.slane %v558_v17, 4  ;;  %v850_v25 = vrot.slane %v6511_v18, 6  ;;  %v6531_v27 = vld [vmem:[%s6470_s30 + $0x14] sm:$0x7]  ;;  %v721_v28 = vshrl.u32 %v6521_v22, 16 }
  0x16   : > { %573 = vrot.lane.b32.xlu1 %v544_v11, %s6398_s9  ;;  %461 = vrot.lane.b32.xlu0 %v391_v8, %s6397_s8  ;;  %v671_v19 = vrot.slane %v6506_v15, 4  ;;  %v325_v29 = vld [vmem:[%s6470_s30 + $0x4] sm:$0xf]  ;;  %v6538_v30 = vld [vmem:[%s6470_s30 + $0x8] sm:$0x7]  ;;  %v447_v36 = vshrl.u32 %v6526_v24, 16 }
  0x17   : > { %v700_v26 = vrot.slane %v6518_v21, 4  ;;  %v349_v31 = vshll.u32 %v325_v29, 16  ;;  %v353_v32 = vshrl.u32 %v325_v29, 16  ;;  %v324_v33 = vld [vmem:[%s6470_s30] sm:$0xf]  ;;  %v858_v37 = vrot.slane %v6531_v27, 6 }
  0x18   : > { %v340_v34 = vshrl.u32 %v324_v33, 16  ;;  %v343_v35 = vshll.u32 %v324_v33, 16  ;;  %v971_v38 = vshrl.u32 %v6538_v30, 16  ;;  %v852_v39 = vrot.slane %v850_v25, 4  ;;  %v6551_v41 = vld [vmem:[%s6470_s30 + $0x2c] sm:$0x3] }
  0x19   : > { %v6548_v40 = vrot.slane %v721_v28, 5  ;;  %v351_v42 = vrot.slane %v349_v31, 5  ;;  %v355_v43 = vrot.slane %v353_v32, 4  ;;  %v628_v46 = vld [vmem:[%s6470_s30] sm:$0xe]  ;;  %v566_v49 = vrot.slane %v6551_v41, 5 }
  0x1a   : > { %763 = vrot.lane.b32.xlu1 %v671_v19, %s6399_s10  ;;  %579 = vrot.lane.b32.xlu0 %v552_v20, %s6398_s9  ;;  %v342_v44 = vrot.slane %v340_v34, 4  ;;  %v345_v45 = vrot.slane %v343_v35, 5  ;;  %v327_v47 = vld [vmem:[%s6470_s30 + $0xc] sm:$0xf]  ;;  %v6557_v50 = vrot.slane %v971_v38, 6  ;;  %v860_v51 = vrot.slane %v858_v37, 4 }
  0x1b   : > { %v729_v52 = vrot.slane %v6548_v40, 4  ;;  %v356_v53 = vor.u32 %v355_v43, %v351_v42  ;;  %v511_v54 = vld [vmem:[%s6470_s30 + $0x4] sm:$0xf]  ;;  %v644_v55 = vshrl.u32 %v628_v46, 16  ;;  %v647_v58 = vshll.u32 %v628_v46, 16 }
  0x1c   : > { %v346_v56 = vor.u32 %v345_v45, %v342_v44  ;;  %v629_v57 = vld [vmem:[%s6470_s30 + $0x4] sm:$0xf]  ;;  %v368_v59 = vshrl.u32 %v327_v47, 16  ;;  %v371_v60 = vshll.u32 %v327_v47, 16  ;;  %v568_v62 = vrot.slane %v566_v49, 4 }
  0x1d   : > { %v979_v63 = vrot.slane %v6557_v50, 4  ;;  %v539_v1 = vrot.slane %v511_v54, 5  ;;  %v357_v3 = vrot.slane %v356_v53, 4  ;;  %v510_v4 = vld [vmem:[%s6470_s30] sm:$0xe]  ;;  %v646_v8 = vrot.slane %v644_v55, 5 }
  0x1e   : > { %769 = vrot.lane.b32.xlu1 %v700_v26, %s6399_s10  ;;  %585 = vrot.lane.b32.xlu0 %v560_v23, %s6398_s9  ;;  %v653_v9 = vshrl.u32 %v629_v57, 16  ;;  %v656_v11 = vshll.u32 %v629_v57, 16  ;;  %v347_v19 = vrot.slane %v346_v56, 4  ;;  %v649_v20 = vrot.slane %v647_v58, 6  ;;  %v6578_v28 = vld [vmem:[%s6470_s30 + $0x10] sm:$0xf] }
  0x1f   : > { %v370_v23 = vrot.slane %v368_v59, 4  ;;  %v373_v26 = vrot.slane %v371_v60, 5  ;;  %v666_v29 = vshll.u32 %v6488_v7, 16  ;;  %v6055_v31 = vrot.slane %v510_v4, 9  ;;  %v6593_v44 = vld [vmem:[%s6470_s30 + $0x20] sm:$0x7] }
  0x20   : > { %v362_v32 = vsel %vm6573_vm2, %v357_v3, %v361_v61  ;;  %v541_v33 = vrot.slane %v539_v1, 4  ;;  %v655_v34 = vrot.slane %v653_v9, 5  ;;  %v658_v35 = vrot.slane %v656_v11, 6  ;;  %v631_v53 = vld [vmem:[%s6470_s30 + $0xc] sm:$0xe] }
  0x21   : > { %v650_v7 = vor.u32 %v649_v20, %v646_v8  ;;  %v377_v43 = vshll.u32 %v6578_v28, 16  ;;  %v668_v45 = vrot.slane %v666_v29, 6  ;;  %v540_v46 = vsel %vm6587_vm5, %v6055_v31, %v539_v1  ;;  %v818_v54 = vld [vmem:[%s6470_s30] sm:$0xc]  ;;  %v819_v55 = vld [vmem:[%s6470_s30 + $0x4] sm:$0xf] }
  0x22   : > { %473 = vrot.lane.b32.xlu1 %v447_v36, %s6397_s8  ;;  %881 = vrot.lane.b32.xlu0 %v852_v39, %s6400_s11  ;;  %v352_v36 = vsel %vm6573_vm2, %v347_v19, %v351_v42  ;;  %v374_v39 = vor.u32 %v373_v26, %v370_v23  ;;  %v543_v42 = vsel %vm6587_vm5, %v541_v33, %v542_v6  ;;  %v866_v6 = vrot.slane %v6593_v44, 6  ;;  %v513_v59 = vld [vmem:[%s6470_s30 + $0xc] sm:$0xe]  ;;  %v6618_v60 = vld [vmem:[%s6470_s30 + $0x10] sm:$0xf] }
  0x23   : > { %v651_v47 = vrot.slane %v650_v7, 4  ;;  %v659_v48 = vor.u32 %v658_v35, %v655_v34  ;;  %v381_v56 = vshrl.u32 %v6578_v28, 16  ;;  %v669_v58 = vor.u32 %v668_v45, %v6506_v15  ;;  %v6623_v61 = vld [vmem:[%s6470_s30 + $0x14] sm:$0x7]  ;;  %v937_v19 = vld [vmem:[%s6470_s30 + $0x4] sm:$0xf] }
  0x24   : > { %v676_v1 = vshll.u32 %v631_v53, 16  ;;  %v6059_v4 = vrot.slane %v818_v54, 10  ;;  %v847_v8 = vrot.slane %v819_v55, 6  ;;  %v868_v9 = vrot.slane %v866_v6, 4  ;;  %v936_v20 = vld [vmem:[%s6470_s30] sm:$0xc] }
  0x25   : > { %v661_v57 = vrot.slane %v659_v48, 4  ;;  %v660_v3 = vsel %vm6607_vm9, %v651_v47, %v659_v48  ;;  %v6056_v11 = vrot.slane %v513_v59, 9  ;;  %v547_v26 = vrot.slane %v6618_v60, 5 }
  0x26   : > { %887 = vrot.lane.b32.xlu1 %v860_v51, %s6400_s11  ;;  %775 = vrot.lane.b32.xlu0 %v729_v52, %s6399_s10  ;;  %v375_v51 = vrot.slane %v374_v39, 4  ;;  %v6603_v52 = vrot.slane %v377_v43, 5  ;;  %v1000_v28 = vshrl.u32 %v6623_v61, 16  ;;  %v678_v33 = vrot.slane %v676_v1, 6 }
  0x27   : > { %v670_v23 = vsel %vm6607_vm9, %v661_v57, %v669_v58  ;;  %v383_v35 = vrot.slane %v381_v56, 4  ;;  %v964_v7 = vshll.u32 %v937_v19, 16  ;;  %v952_v39 = vshrl.u32 %v936_v20, 16 }
  0x28   : > { %v380_v15 = vsel %vm6573_vm2, %v375_v51, %v6603_v52  ;;  %v955_v43 = vshll.u32 %v936_v20, 16  ;;  %v387_v45 = vshll.u32 %v6484_v5, 16  ;;  %v548_v47 = vsel %vm6587_vm5, %v6056_v11, %v547_v26 }
  0x29   : > { %v6655_v48 = vrot.slane %v1000_v28, 6  ;;  %v849_v51 = vrot.slane %v847_v8, 4  ;;  %v966_v56 = vrot.slane %v964_v7, 7  ;;  %v954_v57 = vrot.slane %v952_v39, 6  ;;  %v939_v28 = vld [vmem:[%s6470_s30 + $0xc] sm:$0xc] }
  0x2a   : > { %591 = vrot.lane.b32.xlu1 %v568_v62, %s6398_s9  ;;  %1071 = vrot.lane.b32.xlu0 %v979_v63, %s6401_s12  ;;  %v632_v62 = vld [vmem:[%s6470_s30 + $0x10] sm:$0xf]  ;;  %v673_v63 = vshrl.u32 %v631_v53, 16  ;;  %v957_v58 = vrot.slane %v955_v43, 7  ;;  %v389_v59 = vrot.slane %v387_v45, 5  ;;  %v984_v7 = vshll.u32 %v939_v28, 16 }
  0x2b   : > { %v682_v29 = vshrl.u32 %v632_v62, 16  ;;  %v685_v34 = vshll.u32 %v632_v62, 16  ;;  %v1008_v62 = vrot.slane %v6655_v48, 4  ;;  %v724_v39 = vshll.u32 %v6521_v22, 16 }
  0x2c   : > { %vm1256_vm10 = vsmask.f32 4368  ;;  %vm8336_vm15 = vmmov 0   ;;  %vm490_vm1 = vcmask 122944   ;;  %vm8346_vm0 = vcmask 257216  }
  0x2d   : > { %v684_v54 = vrot.slane %v682_v29, 5  ;;  %v687_v5 = vrot.slane %v685_v34, 6  ;;  %v8374_v29 = vmov 0  ;;  %vm6786_vm12 = vmor %vm8344_vm3, %vm1256_vm10 }
  0x2e   : > { %453 = vrot.lane.b32.xlu1 %v362_v32, %s6397_s8  ;;  %451 = vrot.lane.b32.xlu0 %v352_v36, %s6397_s8  ;;  %v675_v32 = vrot.slane %v673_v63, 5  ;;  %v961_v36 = vshrl.u32 %v937_v19, 16  ;;  %v851_v63 = vsel %vm6643_vm11, %v849_v51, %v850_v25  ;;  %v6673_v25 = vld [vmem:[%s6470_s30 + $0x8] sm:$0xf]  ;;  %v8375_v29 = vsel %vm6684_vm14, 4294967295, %v8374_v29  ;;  %vm6958_vm4 = vmand %vm490_vm1, %vm8344_vm3 }
  0x2f   : > { %v6667_v1 = vor.u32 %v687_v5, %v684_v54  ;;  %v986_v5 = vrot.slane %v984_v7, 7 }
  0x30   : > { %v679_v53 = vor.u32 %v678_v33, %v675_v32  ;;  %v963_v55 = vrot.slane %v961_v36, 6  ;;  %v821_v32 = vld [vmem:[%s6470_s30 + $0xc] sm:$0xc]  ;;  %v6691_v33 = vld [vmem:[%s6470_s30 + $0x10] sm:$0xf]  ;;  %v981_v36 = vshrl.u32 %v939_v28, 16 }
  0x31   : > { %v6060_v22 = vrot.slane %v821_v32, 10  ;;  %v1244_v28 = vld [vmem:[%s6470_s30] sm:$0x8]  ;;  %v311_v32 = vld [vmem:[#allocation2 + $0x14] sm:$0x1] }
  0x32   : > { %571 = vrot.lane.b32.xlu1 %v543_v42, %s6398_s9  ;;  %569 = vrot.lane.b32.xlu0 %v540_v46, %s6398_s9  ;;  %v974_v42 = vshll.u32 %v6538_v30, 16  ;;  %v848_v46 = vsel %vm6643_vm11, %v6059_v4, %v847_v8  ;;  %v384_v30 = vor.u32 %v383_v35, %v6603_v52  ;;  %v967_v4 = vor.u32 %v966_v56, %v963_v55  ;;  %v1127_v35 = vld [vmem:[%s6470_s30 + $0x4] sm:$0xf] }
  0x33   : > { %v958_v8 = vor.u32 %v957_v58, %v954_v57  ;;  %v1155_v54 = vrot.slane %v1127_v35, 7  ;;  %v6718_v57 = vrot.slane %v724_v39, 6  ;;  %v316_v58 = vld [vmem:[#allocation2 + $0x20] sm:$0x1]  ;;  %v293_v39 = vld [vmem:[%s6470_s30 + $0x14] sm:$0x1] }
  0x34   : > { %v976_v52 = vrot.slane %v974_v42, 7  ;;  %v969_v19 = vrot.slane %v967_v4, 4  ;;  %v549_v42 = vrot.slane %v547_v26, 4  ;;  %v983_v26 = vrot.slane %v981_v36, 6 }
  0x35   : > { %v959_v20 = vrot.slane %v958_v8, 4  ;;  %v727_v8 = vor.u32 %v6718_v57, %v6548_v40  ;;  %v6948_v40 = vld [vmem:[%s6470_s30 + $0x1c] sm:$0xf] }
  0x36   : > { %759 = vrot.lane.b32.xlu1 %v660_v3, %s6399_s10  ;;  %457 = vrot.lane.b32.xlu0 %v380_v15, %s6397_s8  ;;  %v680_v3 = vrot.slane %v679_v53, 4  ;;  %v385_v15 = vrot.slane %v384_v30, 4  ;;  %v977_v18 = vor.u32 %v976_v52, %v6557_v50  ;;  %v1158_v50 = vrot.slane %v6673_v25, 7  ;;  %v296_v52 = vld [vmem:[%s6470_s30 + $0x20] sm:$0x1] }
  0x37   : > { %v968_v45 = vsel %vm6684_vm14, %v959_v20, %v967_v4  ;;  %v855_v53 = vrot.slane %v6691_v33, 6  ;;  %v551_v55 = vsel %vm6587_vm5, %v549_v42, %v550_v12  ;;  %v290_v12 = vld [vmem:[%s6470_s30 + $0x8] sm:$0x1]  ;;  %v317_v7 = vsel %vm6727_vm7, %v296_v52, %v316_v58  ;;  %v6772_v58 = vld [vmem:[%s6470_s30 + $0x14] sm:$0xf] }
  0x38   : > { %v390_v11 = vsel %vm6573_vm2, %v385_v15, %v389_v59  ;;  %v978_v43 = vsel %vm6684_vm14, %v969_v19, %v977_v18  ;;  %v1160_v51 = vrot.slane %v1158_v50, 4  ;;  %v306_v59 = vld [vmem:[#allocation2 + $0x8] sm:$0x1]  ;;  %v987_v19 = vor.u32 %v986_v5, %v983_v26  ;;  %318 = vst [vmem:[#allocation2 + $0x20] sm:$0x1] %v317_v7 }
  0x39   : > { %v856_v18 = vsel %vm6643_vm11, %v6060_v22, %v855_v53  ;;  %v1259_v22 = vshrl.u32 %v1244_v28, 16  ;;  %v1299_v10 = vshll.u32 %v6772_v58, 16 }
  0x3a   : > { %893 = vrot.lane.b32.xlu1 %v868_v9, %s6400_s11  ;;  %761 = vrot.lane.b32.xlu0 %v670_v23, %s6399_s10  ;;  %v689_v9 = vsel %vm6607_vm9, %v680_v3, %v6667_v1  ;;  %v6681_v23 = vld [vmem:[%s6470_s30 + $0x2c] sm:$0x3]  ;;  %v1157_v3 = vrot.slane %v1155_v54, 4 }
  0x3b   : > { %v750_v34 = vshrl.u32 %v6681_v23, 16 }
  0x3d   : > { %v6711_v60 = vrot.slane %v750_v34, 5 }
  0x3e   : > { %877 = vrot.lane.b32.xlu1 %v848_v46, %s6400_s11  ;;  %575 = vrot.lane.b32.xlu0 %v548_v47, %s6398_s9  ;;  %v940_v46 = vld [vmem:[%s6470_s30 + $0x10] sm:$0xf]  ;;  %v695_v47 = vshll.u32 %v6501_v13, 16  ;;  %v1126_v13 = vld [vmem:[%s6470_s30] sm:$0x8] }
  0x3f   : > { %v990_v30 = vshrl.u32 %v940_v46, 16  ;;  %v993_v56 = vshll.u32 %v940_v46, 16  ;;  %v6063_v15 = vrot.slane %v1126_v13, 11  ;;  %v690_v46 = vrot.slane %v6667_v1, 4 }
  0x40   : > { %v697_v4 = vrot.slane %v695_v47, 6 }
  0x41   : > { %v992_v20 = vrot.slane %v990_v30, 6  ;;  %v995_v34 = vrot.slane %v993_v56, 7  ;;  %v1156_v42 = vsel %vm6741_vm8, %v6063_v15, %v1155_v54  ;;  %v988_v54 = vrot.slane %v987_v19, 4  ;;  %v1247_v56 = vld [vmem:[%s6470_s30 + $0xc] sm:$0x8] }
  0x42   : > { %1077 = vrot.lane.b32.xlu1 %v1008_v62, %s6401_s12  ;;  %879 = vrot.lane.b32.xlu0 %v851_v63, %s6400_s11  ;;  %v1245_v62 = vld [vmem:[%s6470_s30 + $0x4] sm:$0xf]  ;;  %v1246_v63 = vld [vmem:[%s6470_s30 + $0x8] sm:$0xf]  ;;  %v698_v25 = vor.u32 %v697_v4, %v6518_v21  ;;  %v1003_v30 = vshll.u32 %v6623_v61, 16  ;;  %v1296_v19 = vshrl.u32 %v6772_v58, 16 }
  0x43   : > { %v1264_v35 = vshrl.u32 %v1245_v62, 16  ;;  %v1273_v36 = vshrl.u32 %v1246_v63, 16  ;;  %v1276_v47 = vshll.u32 %v1246_v63, 16  ;;  %v1267_v13 = vshll.u32 %v1245_v62, 16  ;;  %v321_v21 = vld [vmem:[#allocation2 + $0x2c] sm:$0x1] }
  0x44   : > { %v6764_v26 = vor.u32 %v995_v34, %v992_v20  ;;  %v6067_v62 = vrot.slane %v1259_v22, 11  ;;  %v1130_v4 = vld [vmem:[%s6470_s30 + $0x10] sm:$0xf]  ;;  %v753_v20 = vshll.u32 %v6681_v23, 16  ;;  %v289_v22 = vld [vmem:[%s6470_s30 + $0x4] sm:$0xf] }
  0x45   : > { %v1266_v1 = vrot.slane %v1264_v35, 7  ;;  %v6766_v5 = vrot.slane %v1273_v36, 7  ;;  %302 = vst.msk [vmem:[#allocation2 + $0x4] sm:$0xf] %vm300_vm13, %v289_v22 }
  0x46   : > { %765 = vrot.lane.b32.xlu1 %v689_v9, %s6399_s10  ;;  %459 = vrot.lane.b32.xlu0 %v390_v11, %s6397_s8  ;;  %v758_v9 = vrot.slane %v6711_v60, 4  ;;  %v997_v52 = vsel %vm6684_vm14, %v988_v54, %v6764_v26  ;;  %v6384_v11 = vld [vmem:[%s8331_s5 + $0x20] sm:$0xff]  }
  0x47   : > { %v1278_v61 = vor.u32 %v1276_v47, %v6766_v5  ;;  %v1269_v15 = vor.u32 %v1267_v13, %v1266_v1  ;;  %v6804_v47 = vrot.slane %v1296_v19, 7 }
  0x49   : > { %v1270_v23 = vsel %vm6786_vm12, %v6067_v62, %v1269_v15 }
  0x4a   : > { %1069 = vrot.lane.b32.xlu1 %v978_v43, %s6401_s12  ;;  %1067 = vrot.lane.b32.xlu0 %v968_v45, %s6401_s12  ;;  %v307_v43 = vsel %vm6727_vm7, %v290_v12, %v306_v59  ;;  %v1159_v45 = vsel %vm6741_vm8, %v1157_v3, %v1158_v50  ;;  %v312_v50 = vsel %vm6727_vm7, %v293_v39, %v311_v32  ;;  %v1271_v3 = vrot.slane %v1266_v1, 4  ;;  %v299_v12 = vld [vmem:[%s6470_s30 + $0x2c] sm:$0x1] }
  0x4b   : > { %308 = vst [vmem:[#allocation2 + $0x8] sm:$0x1] %v307_v43  ;;  %313 = vst [vmem:[#allocation2 + $0x14] sm:$0x1] %v312_v50  ;;  %v699_v59 = vsel %vm6607_vm9, %v690_v46, %v698_v25  ;;  %v1163_v32 = vrot.slane %v1130_v4, 7  ;;  %v322_v36 = vsel %vm6727_vm7, %v299_v12, %v321_v21  ;;  %v857_v39 = vrot.slane %v855_v53, 4 }
  0x4c   : > { %v1279_v7 = vsel %vm6786_vm12, %v1271_v3, %v1278_v61  ;;  %v1005_v43 = vrot.slane %v1003_v30, 7  ;;  %323 = vst [vmem:[#allocation2 + $0x2c] sm:$0x1] %v322_v36  ;;  %v998_v46 = vrot.slane %v6764_v26, 4  ;;  %v6809_v25 = vld [vmem:[%s6470_s30 + $0x20] sm:$0x7] }
  0x4d   : > { %v288_v50 = vld [vmem:[%s6470_s30] sm:$0xf]  ;;  %v859_v26 = vsel %vm6643_vm11, %v857_v39, %v858_v37  ;;  %v291_v30 = vld [vmem:[%s6470_s30 + $0xc] sm:$0xf]  ;;  %v1165_v58 = vrot.slane %v1163_v32, 4  ;;  %v1029_v37 = vshrl.u32 %v6809_v25, 16 }
  0x4e   : > { %577 = vrot.lane.b32.xlu1 %v551_v55, %s6398_s9  ;;  %1189 = vrot.lane.b32.xlu0 %v1160_v51, %s6402_s13  ;;  %v1248_v51 = vld [vmem:[%s6470_s30 + $0x10] sm:$0xf]  ;;  %v1129_v55 = vld [vmem:[%s6470_s30 + $0xc] sm:$0x8]  ;;  %v1006_v1 = vor.u32 %v1005_v43, %v6655_v48  ;;  %301 = vst.msk [vmem:[#allocation2] sm:$0xf] %vm300_vm13, %v288_v50 }
  0x4f   : > { %v1287_v63 = vshrl.u32 %v1248_v51, 16  ;;  %v6064_v28 = vrot.slane %v1129_v55, 11  ;;  %v1290_v35 = vshll.u32 %v1248_v51, 16  ;;  %v1131_v51 = vld [vmem:[%s6470_s30 + $0x14] sm:$0xf]  ;;  %v415_v50 = vshll.u32 %v6473_v0, 16 }
  0x50   : > { %v292_v55 = vld [vmem:[%s6470_s30 + $0x10] sm:$0xf]  ;;  %v1166_v21 = vrot.slane %v1131_v51, 7  ;;  %v634_v48 = vld [vmem:[%s6470_s30 + $0x18] sm:$0xe]  ;;  %vm608_vm7 = vcmask 188544  }
  0x51   : > { %v1289_v34 = vrot.slane %v1287_v63, 7  ;;  %v1164_v54 = vsel %vm6741_vm8, %v6064_v28, %v1163_v32  ;;  %309 = vst.msk [vmem:[#allocation2 + $0xc] sm:$0xf] %vm300_vm13, %v291_v30  ;;  %310 = vst.msk [vmem:[#allocation2 + $0x10] sm:$0xf] %vm300_vm13, %v292_v55  ;;  %v1007_v63 = vsel %vm6684_vm14, %v998_v46, %v1006_v1  ;;  %v705_v19 = vshll.u32 %v634_v48, 16 }
  0x52   : > { %883 = vrot.lane.b32.xlu1 %v856_v18, %s6400_s11  ;;  %781 = vrot.lane.b32.xlu0 %v758_v9, %s6399_s10  ;;  %v8380_v18 = vmov 0  ;;  %v1282_v9 = vshrl.u32 %v1247_v56, 16  ;;  %v6824_v56 = vrot.slane %v753_v20, 6  ;;  %v331_v3 = vld [vmem:[%s6470_s30 + $0x1c] sm:$0xf]  ;;  %v6846_v20 = vrot.slane %v1029_v37, 6  ;;  %vm7001_vm10 = vmand %vm608_vm7, %vm8344_vm3 }
  0x53   : > { %v8381_v18 = vsel %vm6786_vm12, 4294967295, %v8380_v18  ;;  %v1292_v33 = vor.u32 %v1290_v35, %v1289_v34  ;;  %v409_v4 = vshrl.u32 %v331_v3, 16  ;;  %v294_v12 = vld [vmem:[%s6470_s30 + $0x18] sm:$0xf]  ;;  %v405_v28 = vshll.u32 %v331_v3, 16 }
  0x54   : > { %v756_v62 = vor.u32 %v6824_v56, %v6711_v60  ;;  %314 = vst.msk [vmem:[#allocation2 + $0x18] sm:$0xf] %vm300_vm13, %v294_v12  ;;  %v6853_v36 = vld [vmem:[%s6470_s30 + $0x2c] sm:$0x7]  ;;  %v516_v39 = vld [vmem:[%s6470_s30 + $0x18] sm:$0xe] }
  0x55   : > { %v517_v43 = vld [vmem:[%s6470_s30 + $0x1c] sm:$0xf]  ;;  %v333_v46 = vld [vmem:[%s6470_s30 + $0x24] sm:$0xf]  ;;  %v1037_v51 = vrot.slane %v6846_v20, 4  ;;  %v407_v22 = vrot.slane %v405_v28, 5 }
  0x56   : > { %1187 = vrot.lane.b32.xlu1 %v1159_v45, %s6402_s13  ;;  %1185 = vrot.lane.b32.xlu0 %v1156_v42, %s6402_s13  ;;  %v330_v45 = vld [vmem:[%s6470_s30 + $0x18] sm:$0xf]  ;;  %v6068_v42 = vrot.slane %v1282_v9, 11  ;;  %v702_v9 = vshrl.u32 %v634_v48, 16  ;;  %v295_v1 = vld [vmem:[%s6470_s30 + $0x1c] sm:$0xf] }
  0x57   : > { %v396_v53 = vshrl.u32 %v330_v45, 16  ;;  %v399_v13 = vshll.u32 %v330_v45, 16  ;;  %v1280_v30 = vrot.slane %v6766_v5, 4  ;;  %315 = vst.msk [vmem:[#allocation2 + $0x1c] sm:$0xf] %vm300_vm13, %v295_v1  ;;  %v6057_v0 = vrot.slane %v516_v39, 9 }
  0x58   : > { %v1293_v27 = vsel %vm6786_vm12, %v6068_v42, %v1292_v33  ;;  %v704_v45 = vrot.slane %v702_v9, 5  ;;  %v707_v42 = vrot.slane %v705_v19, 6  ;;  %v942_v5 = vld [vmem:[%s6470_s30 + $0x18] sm:$0xc]  ;;  %v6404_v12 = vmov 0.0  }
  0x59   : > { %v398_v61 = vrot.slane %v396_v53, 4  ;;  %v401_v15 = vrot.slane %v399_v13, 5  ;;  %6265 = vmatprep.subr.bf16.mxu0 %v6404_v12  ;;  %6293 = vmatprep.subr.bf16.mxu1 %v6404_v12  ;;  %v6884_v19 = vld [vmem:[%s6470_s30 + $0x28] sm:$0xf]  ;;  %v943_v28 = vld [vmem:[%s6470_s30 + $0x1c] sm:$0xf] }
  0x5a   : > { %1073 = vrot.lane.b32.xlu1 %v997_v52, %s6401_s12  ;;  %767 = vrot.lane.b32.xlu0 %v699_v59, %s6399_s10  ;;  %v1294_v59 = vrot.slane %v1289_v34, 4  ;;  %v1301_v52 = vor.u32 %v1299_v10, %v6804_v47  ;;  %v1167_v34 = vsel %vm6741_vm8, %v1165_v58, %v1166_v21  ;;  %v1168_v10 = vrot.slane %v1166_v21, 4  ;;  %v6369_v58 = vld [vmem:[%s8327_s1 + $0x18] sm:$0xff]   ;;  %v1254_v60 = vld [vmem:[%s6470_s30 + $0x28] sm:$0xf] }
  0x5b   : > { %v402_v35 = vor.u32 %v401_v15, %v398_v61  ;;  %v708_v55 = vor.u32 %v707_v42, %v704_v45  ;;  %v555_v21 = vrot.slane %v517_v43, 5  ;;  %v824_v15 = vld [vmem:[%s6470_s30 + $0x18] sm:$0xc]  ;;  %6266 = vmatpush3.bf16.msra.mxu0 %v6369_v58  ;;  %6273 = vmatprep.mubr.msk.bf16.mxu0 %vm8336_vm15, %v6404_v12  ;;  %v1010_v39 = vshrl.u32 %v942_v5, 16  ;;  %v297_v45 = vld [vmem:[%s6470_s30 + $0x24] sm:$0xf] }
  0x5c   : > { %v1302_v32 = vsel %vm6786_vm12, %v1294_v59, %v1301_v52  ;;  %v427_v59 = vshll.u32 %v333_v46, 16  ;;  %v417_v52 = vrot.slane %v415_v50, 5  ;;  %v1013_v43 = vshll.u32 %v942_v5, 16  ;;  %6267 = vmatprep.subr.bf16.mxu0 %v6404_v12  ;;  %6309 = vmatprep.mubr.msk.bf16.mxu1 %vm8336_vm15, %v6404_v12  ;;  %319 = vst.msk [vmem:[#allocation2 + $0x24] sm:$0xf] %vm300_vm13, %v297_v45 }
  0x5d   : > { %v403_v53 = vrot.slane %v402_v35, 4  ;;  %v709_v9 = vrot.slane %v708_v55, 4  ;;  %v6061_v42 = vrot.slane %v824_v15, 10  ;;  %v1012_v1 = vrot.slane %v1010_v39, 6  ;;  %v637_v55 = vld [vmem:[%s6470_s30 + $0x24] sm:$0xe] }
  0x5e   : > { %1352 = vrot.lane.b32.xlu1 %v1279_v7, %s6403_s14  ;;  %1350 = vrot.lane.b32.xlu0 %v1270_v23, %s6403_s14  ;;  %v635_v7 = vld [vmem:[%s6470_s30 + $0x1c] sm:$0xf]  ;;  %v411_v23 = vrot.slane %v409_v4, 4  ;;  %v429_v35 = vrot.slane %v427_v59, 5  ;;  %v6372_v59 = vld [vmem:[%s8327_s1] sm:$0xff]   ;;  %v734_v15 = vshll.u32 %v637_v55, 16 }
  0x5f   : > { %v711_v33 = vshrl.u32 %v635_v7, 16  ;;  %v714_v13 = vshll.u32 %v635_v7, 16  ;;  %v408_v37 = vsel %vm6573_vm2, %v403_v53, %v407_v22  ;;  %v6879_v4 = vld [vmem:[%s6470_s30 + $0x1c] sm:$0xf]  ;;  %v556_v7 = vsel %vm6587_vm5, %v6057_v0, %v555_v21 }
  0x60   : > { %v1019_v53 = vshrl.u32 %v943_v28, 16  ;;  %v736_v39 = vrot.slane %v734_v15, 6  ;;  %v443_v45 = vshll.u32 %v6526_v24, 16  ;;  %v1250_v15 = vld [vmem:[%s6470_s30 + $0x18] sm:$0x8]  ;;  %vm1103_vm15 = vcmask 388416  }
  0x61   : > { %v713_v48 = vrot.slane %v711_v33, 5  ;;  %v433_v33 = vshll.u32 %v6884_v19, 16 }
  0x62   : > { %1191 = vrot.lane.b32.xlu1 %v1164_v54, %s6402_s13  ;;  %885 = vrot.lane.b32.xlu0 %v859_v26, %s6400_s11  ;;  %v874_v54 = vrot.slane %v6853_v36, 6  ;;  %v412_v26 = vor.u32 %v411_v23, %v407_v22 }
  0x64   : > { %v876_v3 = vrot.slane %v874_v54, 4  ;;  %v413_v61 = vrot.slane %v412_v26, 4 }
  0x66   : > { %1356 = vrot.lane.b32.xlu1 %v1293_v27, %s6403_s14  ;;  %1075 = vrot.lane.b32.xlu0 %v1007_v63, %s6401_s12  ;;  %v424_v27 = vshrl.u32 %v333_v46, 16  ;;  %v716_v63 = vrot.slane %v714_v13, 6  ;;  %v863_v46 = vrot.slane %v6879_v4, 6  ;;  %v1022_v13 = vshll.u32 %v943_v28, 16 }
  0x67   : > { %v418_v26 = vsel %vm6573_vm2, %v413_v61, %v417_v52  ;;  %v731_v61 = vshrl.u32 %v637_v55, 16 }
  0x68   : > { %v717_v23 = vor.u32 %v716_v63, %v713_v48  ;;  %v864_v58 = vsel %vm6643_vm11, %v6061_v42, %v863_v46  ;;  %v6929_v48 = vld [vmem:[%s6470_s30 + $0x28] sm:$0xf]  ;;  %v1021_v63 = vrot.slane %v1019_v53, 6  ;;  %v1024_v14 = vrot.slane %v1022_v13, 7  ;;  %v502_v53 = vld [vmem:[#allocation2 + $0x20] sm:$0x1] }
  0x69   : > { %v1032_v42 = vshll.u32 %v6809_v25, 16  ;;  %v492_v13 = vld [vmem:[#allocation2 + $0x8] sm:$0x1]  ;;  %v865_v25 = vrot.slane %v863_v46, 4  ;;  %v497_v46 = vld [vmem:[#allocation2 + $0x14] sm:$0x1] }
  0x6a   : > { %1358 = vrot.lane.b32.xlu1 %v1302_v32, %s6403_s14  ;;  %1193 = vrot.lane.b32.xlu0 %v1167_v34, %s6402_s13  ;;  %v6370_v32 = vld [vmem:[%s8327_s1 + $0x10] sm:$0xff]   ;;  %v426_v34 = vrot.slane %v424_v27, 4  ;;  %v718_v50 = vsel %vm6607_vm9, %v709_v9, %v717_v23  ;;  %v519_v27 = vld [vmem:[%s6470_s30 + $0x24] sm:$0xe] }
  0x6b   : > { %6268 = vmatpush3.bf16.msra.mxu0 %v6370_v32  ;;  %v6058_v28 = vrot.slane %v519_v27, 9  ;;  %v563_v32 = vrot.slane %v6929_v48, 5  ;;  %v7024_v48 = vld [vmem:[%s6470_s30 + $0x28] sm:$0xf] }
  0x6c   : > { %v430_v22 = vor.u32 %v429_v35, %v426_v34  ;;  %6269 = vmatprep.subr.bf16.mxu0 %v6404_v12  ;;  %v6944_v34 = vor.u32 %v1024_v14, %v1021_v63  ;;  %v1132_v35 = vld [vmem:[%s6470_s30 + $0x18] sm:$0x8]  ;;  %v6988_v63 = vld [vmem:[%s6470_s30 + $0x20] sm:$0xf] }
  0x6d   : > { %v564_v24 = vsel %vm6587_vm5, %v6058_v28, %v563_v32 }
  0x6e   : > { %1195 = vrot.lane.b32.xlu1 %v1168_v10, %s6402_s13  ;;  %1083 = vrot.lane.b32.xlu0 %v1037_v51, %s6401_s12  ;;  %v557_v10 = vrot.slane %v555_v21, 4  ;;  %v6371_v51 = vld [vmem:[%s8327_s1 + $0x8] sm:$0xff]   ;;  %v719_v21 = vrot.slane %v717_v23, 4  ;;  %v431_v5 = vrot.slane %v430_v22, 4  ;;  %v733_v23 = vrot.slane %v731_v61, 5 }
  0x6f   : > { %6270 = vmatpush3.bf16.msra.mxu0 %v6371_v51  ;;  %v1171_v51 = vrot.slane %v6948_v40, 7  ;;  %v298_v22 = vld [vmem:[%s6470_s30 + $0x28] sm:$0xf]  ;;  %v1034_v61 = vrot.slane %v1032_v42, 7 }
  0x70   : > { %v559_v0 = vsel %vm6587_vm5, %v557_v10, %v558_v17  ;;  %v437_v17 = vshrl.u32 %v6884_v19, 16  ;;  %6271 = vmatprep.subr.bf16.mxu0 %v6404_v12  ;;  %v728_v9 = vsel %vm6607_vm9, %v719_v21, %v727_v8  ;;  %v6065_v10 = vrot.slane %v1132_v35, 11  ;;  %320 = vst.msk [vmem:[#allocation2 + $0x28] sm:$0xf] %vm300_vm13, %v298_v22 }
  0x71   : > { %vm798_vm13 = vcmask 254144  }
  0x72   : > { %463 = vrot.lane.b32.xlu1 %v408_v37, %s6397_s8  ;;  %1354 = vrot.lane.b32.xlu0 %v1280_v30, %s6403_s14  ;;  %v1015_v30 = vrot.slane %v1013_v43, 7  ;;  %v435_v37 = vrot.slane %v433_v33, 5  ;;  %v439_v43 = vrot.slane %v437_v17, 4  ;;  %vm7045_vm1 = vmand %vm798_vm13, %vm8344_vm3  ;;  %vm8342_vm13 = vcmask 126016  }
  0x73   : > { %6272 = vmatpush3.bf16.msra.mxu0 %v6372_v59  ;;  %v1172_v59 = vsel %vm6741_vm8, %v6065_v10, %v1171_v51  ;;  %v945_v10 = vld [vmem:[%s6470_s30 + $0x24] sm:$0xc] }
  0x74   : > { %v1016_v52 = vor.u32 %v1015_v30, %v1012_v1  ;;  %v436_v19 = vsel %vm6573_vm2, %v431_v5, %v435_v37  ;;  %v737_v1 = vor.u32 %v736_v39, %v733_v23  ;;  %v440_v55 = vor.u32 %v439_v43, %v435_v37 }
  0x75   : > { %v867_v5 = vsel %vm6643_vm11, %v865_v25, %v866_v6  ;;  %v445_v37 = vrot.slane %v443_v45, 5  ;;  %v1174_v6 = vrot.slane %v6988_v63, 7  ;;  %v1027_v39 = vrot.slane %v6944_v34, 4 }
  0x76   : > { %581 = vrot.lane.b32.xlu1 %v556_v7, %s6398_s9  ;;  %899 = vrot.lane.b32.xlu0 %v876_v3, %s6400_s11  ;;  %v638_v3 = vld [vmem:[%s6470_s30 + $0x28] sm:$0xf]  ;;  %v1017_v7 = vrot.slane %v1016_v52, 4  ;;  %v738_v17 = vrot.slane %v737_v1, 4  ;;  %v1035_v43 = vor.u32 %v1034_v61, %v6846_v20  ;;  %v1039_v1 = vshrl.u32 %v945_v10, 16 }
  0x77   : > { %v740_v57 = vshrl.u32 %v638_v3, 16  ;;  %v743_v8 = vshll.u32 %v638_v3, 16  ;;  %v441_v3 = vrot.slane %v440_v55, 4  ;;  %v871_v63 = vrot.slane %v7024_v48, 6 }
  0x78   : > { %v1041_v40 = vrot.slane %v1039_v1, 6 }
  0x79   : > { %v745_v30 = vrot.slane %v743_v8, 6  ;;  %v446_v23 = vsel %vm6573_vm2, %v441_v3, %v445_v37  ;;  %v507_v37 = vld [vmem:[#allocation2 + $0x2c] sm:$0x1]  ;;  %v1136_v8 = vld [vmem:[%s6470_s30 + $0x28] sm:$0xf] }
  0x7a   : > { %771 = vrot.lane.b32.xlu1 %v718_v50, %s6399_s10  ;;  %465 = vrot.lane.b32.xlu0 %v418_v26, %s6397_s8  ;;  %v742_v50 = vrot.slane %v740_v57, 5  ;;  %v1026_v26 = vsel %vm6684_vm14, %v1017_v7, %v6944_v34 }
  0x7c   : > { %v6990_v52 = vor.u32 %v745_v30, %v742_v50  ;;  %v827_v50 = vld [vmem:[%s6470_s30 + $0x24] sm:$0xc]  ;;  %v1042_v30 = vshll.u32 %v945_v10, 16 }
  0x7e   : > { %889 = vrot.lane.b32.xlu1 %v864_v58, %s6400_s11  ;;  %583 = vrot.lane.b32.xlu0 %v559_v0, %s6398_s9  ;;  %v1251_v58 = vld [vmem:[%s6470_s30 + $0x1c] sm:$0xf]  ;;  %v747_v7 = vsel %vm6607_vm9, %v738_v17, %v6990_v52 }
  0x7f   : > { %v1310_v14 = vshrl.u32 %v1251_v58, 16  ;;  %v1313_v57 = vshll.u32 %v1251_v58, 16 }
  0x81   : > { %v6998_v35 = vrot.slane %v1310_v14, 7 }
  0x82   : > { %773 = vrot.lane.b32.xlu1 %v728_v9, %s6399_s10  ;;  %469 = vrot.lane.b32.xlu0 %v436_v19, %s6397_s8  ;;  %v1305_v19 = vshrl.u32 %v1250_v15, 16 }
  0x83   : > { %v1315_v25 = vor.u32 %v1313_v57, %v6998_v35 }
  0x84   : > { %v468_v0 = vpop.permute.xlu1 %467  ;;  %v456_v21 = vpop.permute.xlu0 %455  ;;  %v6069_v20 = vrot.slane %v1305_v19, 11 }
  0x85   : > { %v503_v27 = vsel %vm6958_vm4, %v468_v0, %v502_v53  ;;  %v493_v4 = vsel %vm6958_vm4, %v456_v21, %v492_v13  ;;  %v565_v53 = vrot.slane %v563_v32, 4  ;;  %v1252_v32 = vld [vmem:[%s6470_s30 + $0x20] sm:$0xf]  ;;  %v946_v0 = vld [vmem:[%s6470_s30 + $0x28] sm:$0xf] }
  0x86   : > { %504 = vst [vmem:[#allocation2 + $0x20] sm:$0x1] %v503_v27  ;;  %494 = vst [vmem:[#allocation2 + $0x8] sm:$0x1] %v493_v4  ;;  %587 = vrot.lane.b32.xlu1 %v564_v24, %s6398_s9  ;;  %1079 = vrot.lane.b32.xlu0 %v1026_v26, %s6401_s12  ;;  %v1176_v24 = vrot.slane %v1174_v6, 4  ;;  %v1036_v26 = vsel %vm6684_vm14, %v1027_v39, %v1035_v43  ;;  %v1316_v41 = vsel %vm6786_vm12, %v6069_v20, %v1315_v25 }
  0x87   : > { %v567_v4 = vsel %vm6587_vm5, %v565_v53, %v566_v49  ;;  %v1319_v49 = vshrl.u32 %v1252_v32, 16  ;;  %v1048_v14 = vshrl.u32 %v946_v0, 16  ;;  %v1051_v17 = vshll.u32 %v946_v0, 16  ;;  %v1135_v0 = vld [vmem:[%s6470_s30 + $0x24] sm:$0x8] }
  0x88   : > { %v574_v9 = vpop.permute.xlu1 %573  ;;  %v462_v28 = vpop.permute.xlu0 %461  ;;  %v1322_v39 = vshll.u32 %v1252_v32, 16  ;;  %v1317_v20 = vrot.slane %v6998_v35, 4 }
  0x89   : > { %v498_v44 = vsel %vm6958_vm4, %v462_v28, %v497_v46  ;;  %v1173_v46 = vrot.slane %v1171_v51, 4  ;;  %v1044_v51 = vrot.slane %v1042_v30, 7 }
  0x8a   : > { %499 = vst [vmem:[#allocation2 + $0x14] sm:$0x1] %v498_v44  ;;  %1197 = vrot.lane.b32.xlu1 %v1172_v59, %s6402_s13  ;;  %891 = vrot.lane.b32.xlu0 %v867_v5, %s6400_s11  ;;  %v6062_v59 = vrot.slane %v827_v50, 10  ;;  %v947_v44 = vld [vmem:[%s6470_s30 + $0x2c] sm:$0x7] }
  0x8b   : > { %v1175_v28 = vsel %vm6741_vm8, %v1173_v46, %v1174_v6  ;;  %v1045_v43 = vor.u32 %v1044_v51, %v1041_v40  ;;  %v1050_v6 = vrot.slane %v1048_v14, 6  ;;  %v1061_v25 = vshll.u32 %v947_v44, 16 }
  0x8c   : > { %v764_v45 = vpop.permute.xlu1 %763  ;;  %v580_v42 = vpop.permute.xlu0 %579  ;;  %v872_v57 = vsel %vm6643_vm11, %v6062_v59, %v871_v63  ;;  %v1333_v46 = vshrl.u32 %v1254_v60, 16  ;;  %v6066_v40 = vrot.slane %v1135_v0, 11 }
  0x8d   : > { %v610_v22 = vld [vmem:[#allocation2 + $0x8] sm:$0x1]  ;;  %v620_v34 = vld [vmem:[#allocation2 + $0x20] sm:$0x1] }
  0x8e   : > { %v611_v13 = vsel %vm7001_vm10, %v574_v9, %v610_v22  ;;  %777 = vrot.lane.b32.xlu1 %v747_v7, %s6399_s10  ;;  %471 = vrot.lane.b32.xlu0 %v446_v23, %s6397_s8  ;;  %v748_v7 = vrot.slane %v6990_v52, 4  ;;  %v7059_v23 = vrot.slane %v1319_v49, 7 }
  0x8f   : > { %612 = vst [vmem:[#allocation2 + $0x8] sm:$0x1] %v611_v13  ;;  %v1303_v13 = vrot.slane %v6804_v47, 4 }
  0x90   : > { %v770_v55 = vpop.permute.xlu1 %769  ;;  %v586_v58 = vpop.permute.xlu0 %585  ;;  %v1324_v50 = vor.u32 %v1322_v39, %v7059_v23 }
  0x91   : > { %v615_v21 = vld [vmem:[#allocation2 + $0x14] sm:$0x1]  ;;  %v621_v27 = vsel %vm7001_vm10, %v586_v58, %v620_v34  ;;  %v1058_v34 = vshrl.u32 %v947_v44, 16  ;;  %v1063_v58 = vrot.slane %v1061_v25, 7  ;;  %v1335_v44 = vrot.slane %v1333_v46, 7 }
  0x92   : > { %v616_v5 = vsel %vm7001_vm10, %v580_v42, %v615_v21  ;;  %622 = vst [vmem:[#allocation2 + $0x20] sm:$0x1] %v621_v27  ;;  %1201 = vrot.lane.b32.xlu1 %v1176_v24, %s6402_s13  ;;  %1081 = vrot.lane.b32.xlu0 %v1036_v26, %s6401_s12  ;;  %v1053_v42 = vrot.slane %v1051_v17, 7  ;;  %v1046_v26 = vrot.slane %v1045_v43, 4  ;;  %v1325_v27 = vsel %vm6786_vm12, %v1317_v20, %v1324_v50 }
  0x93   : > { %617 = vst [vmem:[#allocation2 + $0x14] sm:$0x1] %v616_v5  ;;  %v1060_v35 = vrot.slane %v1058_v34, 6 }
  0x94   : > { %v474_v61 = vpop.permute.xlu1 %473  ;;  %v882_v15 = vpop.permute.xlu0 %881  ;;  %v1054_v48 = vor.u32 %v1053_v42, %v1050_v6 }
  0x95   : > { %v508_v9 = vsel %vm6958_vm4, %v474_v61, %v507_v37  ;;  %vm916_vm4 = vcmask 319744   ;;  %v1066_v49 = vrot.slane %v1060_v35, 4  ;;  %v1064_v17 = vor.u32 %v1063_v58, %v1060_v35 }
  0x96   : > { %v800_v19 = vld [vmem:[#allocation2 + $0x8] sm:$0x1]  ;;  %509 = vst [vmem:[#allocation2 + $0x2c] sm:$0x1] %v508_v9  ;;  %589 = vrot.lane.b32.xlu1 %v567_v4, %s6398_s9  ;;  %1362 = vrot.lane.b32.xlu0 %v1316_v41, %s6403_s14  ;;  %vm7084_vm7 = vmand %vm916_vm4, %vm8344_vm3  ;;  %v1055_v4 = vsel %vm6684_vm14, %v1046_v26, %v1054_v48  ;;  %v1253_v41 = vld [vmem:[%s6470_s30 + $0x24] sm:$0x8] }
  0x97   : > { %v801_v33 = vsel %vm7045_vm1, %v764_v45, %v800_v19  ;;  %v757_v45 = vsel %vm6607_vm9, %v748_v7, %v756_v62  ;;  %vm8338_vm4 = vcmask 191616   ;;  %v1056_v14 = vrot.slane %v1054_v48, 4 }
  0x98   : > { %802 = vst [vmem:[#allocation2 + $0x8] sm:$0x1] %v801_v33  ;;  %v7063_v10 = vpop.permute.xlu1 %887  ;;  %v776_v22 = vpop.permute.xlu0 %775  ;;  %v1179_v61 = vrot.slane %v1136_v8, 7  ;;  %v1336_v19 = vshll.u32 %v1254_v60, 16  ;;  %v1326_v60 = vrot.slane %v7059_v23, 4 }
  0x99   : > { %v810_v53 = vld [vmem:[#allocation2 + $0x20] sm:$0x1] }
  0x9a   : > { %v805_v52 = vld [vmem:[#allocation2 + $0x14] sm:$0x1]  ;;  %v811_v24 = vsel %vm7045_vm1, %v776_v22, %v810_v53  ;;  %1199 = vrot.lane.b32.xlu1 %v1175_v28, %s6402_s13  ;;  %895 = vrot.lane.b32.xlu0 %v872_v57, %s6400_s11  ;;  %v1328_v28 = vshrl.u32 %v1253_v41, 16  ;;  %v1180_v43 = vsel %vm6741_vm8, %v6066_v40, %v1179_v61  ;;  %v1181_v6 = vrot.slane %v1179_v61, 4 }
  0x9b   : > { %v806_v47 = vsel %vm7045_vm1, %v770_v55, %v805_v52  ;;  %812 = vst [vmem:[#allocation2 + $0x20] sm:$0x1] %v811_v24  ;;  %v873_v55 = vrot.slane %v871_v63, 4  ;;  %v1255_v63 = vld [vmem:[%s6470_s30 + $0x2c] sm:$0xf]  ;;  %v1338_v22 = vor.u32 %v1336_v19, %v1335_v44 }
  0x9c   : > { %807 = vst [vmem:[#allocation2 + $0x14] sm:$0x1] %v806_v47  ;;  %v592_v32 = vpop.permute.xlu1 %591  ;;  %v7079_v1 = vpop.permute.xlu0 %1071  ;;  %v1342_v57 = vshrl.u32 %v1255_v63, 16  ;;  %v1340_v47 = vrot.slane %v1335_v44, 4  ;;  %v6406_v44 = vmov 1966171168  }
  0x9d   : > { %v625_v62 = vld [vmem:[#allocation2 + $0x2c] sm:$0x1]  ;;  %v875_v51 = vsel %vm6643_vm11, %v873_v55, %v874_v54  ;;  %v1065_v54 = vsel %vm6684_vm14, %v1056_v14, %v1064_v17  ;;  %v1442_v19 = vunpack.c.l.s4 %v6406_v44  ;;  %vm8408_vm14 = vcmask 126016  }
  0x9e   : > { %v626_v30 = vsel %vm7001_vm10, %v592_v32, %v625_v62  ;;  %779 = vrot.lane.b32.xlu1 %v757_v45, %s6399_s10  ;;  %1360 = vrot.lane.b32.xlu0 %v1303_v13, %s6403_s14  ;;  %vm1106_vm10 = vcmask 385344   ;;  %v1344_v53 = vrot.slane %v1342_v57, 7  ;;  %v1345_v13 = vshll.u32 %v1255_v63, 16  ;;  %s6222_s10 = sshll.u32 %s8505_s26, 3  ;;  %s6413_s26 = smov 120  }
  0x9f   : > { %v918_v21 = vld [vmem:[#allocation2 + $0x8] sm:$0x1]  ;;  %627 = vst [vmem:[#allocation2 + $0x2c] sm:$0x1] %v626_v30  ;;  %vm7118_vm6 = vmand %vm1106_vm10, %vm8344_vm3  ;;  %vm8339_vm10 = vcmask 322816   ;;  %v1444_v57 = vlaneseq }
  0xa0   : > { %v919_v59 = vsel %vm7084_vm7, %v882_v15, %v918_v21  ;;  %v454_v5 = vpop.permute.xlu1 %453  ;;  %v452_v37 = vpop.permute.xlu0 %451  ;;  %v1137_v15 = vld [vmem:[%s6470_s30 + $0x2c] sm:$0xf]  ;;  %v1347_v50 = vor.u32 %v1345_v13, %v1344_v53  ;;  %v1349_v58 = vrot.slane %v1344_v53, 4  ;;  %s6411_s30 = smov 112  }
  0xa1   : > { %920 = vst [vmem:[#allocation2 + $0x8] sm:$0x1] %v919_v59  ;;  %489 = vst.msk [vmem:[#allocation2 + $0x4] sm:$0xf] %vm8342_vm13, %v454_v5  ;;  %v1182_v42 = vrot.slane %v1137_v15, 7 }
  0xa2   : > { %488 = vst.msk [vmem:[#allocation2] sm:$0xf] %vm8342_vm13, %v452_v37  ;;  %1364 = vrot.lane.b32.xlu1 %v1325_v27, %s6403_s14  ;;  %1085 = vrot.lane.b32.xlu0 %v1055_v4, %s6401_s12  ;;  %v928_v48 = vld [vmem:[#allocation2 + $0x20] sm:$0x1]  ;;  %v1348_v62 = vsel %vm6786_vm12, %v1340_v47, %v1347_v50 }
  0xa3   : > { %v923_v9 = vld [vmem:[#allocation2 + $0x14] sm:$0x1]  ;;  %v1183_v20 = vsel %vm6741_vm8, %v1181_v6, %v1182_v42  ;;  %v1184_v55 = vrot.slane %v1182_v42, 4 }
  0xa4   : > { %v924_v7 = vsel %vm7084_vm7, %v7063_v10, %v923_v9  ;;  %v572_v39 = vpop.permute.xlu1 %571  ;;  %v570_v33 = vpop.permute.xlu0 %569  ;;  %v6070_v10 = vrot.slane %v1328_v28, 11 }
  0xa5   : > { %925 = vst [vmem:[#allocation2 + $0x14] sm:$0x1] %v924_v7  ;;  %607 = vst.msk [vmem:[#allocation2 + $0x4] sm:$0xf] %vm8338_vm4, %v572_v39  ;;  %v1443_v39 = vunpack.c.0.s8 %v1442_v19 }
  0xa6   : > { %606 = vst.msk [vmem:[#allocation2] sm:$0xf] %vm8338_vm4, %v570_v33  ;;  %1089 = vrot.lane.b32.xlu1 %v1066_v49, %s6401_s12  ;;  %897 = vrot.lane.b32.xlu0 %v875_v51, %s6400_s11  ;;  %v1339_v25 = vsel %vm6786_vm12, %v6070_v10, %v1338_v22  ;;  %vm8394_vm12 = vcmask 191616   ;;  %v815_v14 = vld [vmem:[#allocation2 + $0x2c] sm:$0x1]  ;;  %v7177_v33 = vshrl.u32 %v1444_v57, 7 }
  0xa8   : > { %v1108_v34 = vld [vmem:[#allocation2 + $0x8] sm:$0x1]  ;;  %v760_v52 = vpop.permute.xlu1 %759  ;;  %v458_v24 = vpop.permute.xlu0 %457  ;;  %v7182_v6 = vsub.s32 %v1443_v39, %v7177_v33 }
  0xa9   : > { %v1109_v45 = vsel %vm7118_vm6, %v7079_v1, %v1108_v34  ;;  %796 = vst.msk [vmem:[#allocation2] sm:$0xf] %vm8346_vm0, %v760_v52 }
  0xaa   : > { %495 = vst.msk [vmem:[#allocation2 + $0xc] sm:$0xf] %vm8342_vm13, %v458_v24  ;;  %1110 = vst [vmem:[#allocation2 + $0x8] sm:$0x1] %v1109_v45  ;;  %1087 = vrot.lane.b32.xlu1 %v1065_v54, %s6401_s12  ;;  %1203 = vrot.lane.b32.xlu0 %v1180_v43, %s6402_s13 }
  0xac   : > { %v894_v26 = vpop.permute.xlu1 %893  ;;  %v762_v32 = vpop.permute.xlu0 %761  ;;  %v1113_v21 = vld [vmem:[#allocation2 + $0x14] sm:$0x1] }
  0xad   : > { %v929_v1 = vsel %vm7084_vm7, %v894_v26, %v928_v48  ;;  %797 = vst.msk [vmem:[#allocation2 + $0x4] sm:$0xf] %vm8346_vm0, %v762_v32 }
  0xae   : > { %930 = vst [vmem:[#allocation2 + $0x20] sm:$0x1] %v929_v1  ;;  %1205 = vrot.lane.b32.xlu1 %v1183_v20, %s6402_s13  ;;  %1368 = vrot.lane.b32.xlu0 %v1339_v25, %s6403_s14 }
  0xb0   : > { %v878_v35 = vpop.permute.xlu1 %877  ;;  %v576_v30 = vpop.permute.xlu0 %575 }
  0xb1   : > { %914 = vst.msk [vmem:[#allocation2] sm:$0xf] %vm8339_vm10, %v878_v35  ;;  %v1226_v63 = vld [vmem:[#allocation2 + $0x8] sm:$0x1] }
  0xb2   : > { %613 = vst.msk [vmem:[#allocation2 + $0xc] sm:$0xf] %vm8338_vm4, %v576_v30  ;;  %1366 = vrot.lane.b32.xlu1 %v1326_v60, %s6403_s14  ;;  %1370 = vrot.lane.b32.xlu0 %v1348_v62, %s6403_s14  ;;  %vm1224_vm4 = vcmask 450944  }
  0xb4   : > { %v1078_v0 = vpop.permute.xlu1 %1077  ;;  %v880_v27 = vpop.permute.xlu0 %879 }
  0xb5   : > { %v1114_v23 = vsel %vm7118_vm6, %v1078_v0, %v1113_v21  ;;  %915 = vst.msk [vmem:[#allocation2 + $0x4] sm:$0xf] %vm8339_vm10, %v880_v27  ;;  %vm7161_vm10 = vmand %vm1224_vm4, %vm8344_vm3  ;;  %vm8345_vm4 = vcmask 454016   ;;  %v1118_v1 = vld [vmem:[#allocation2 + $0x20] sm:$0x1] }
  0xb6   : > { %1115 = vst [vmem:[#allocation2 + $0x14] sm:$0x1] %v1114_v23  ;;  %1207 = vrot.lane.b32.xlu0 %v1184_v55, %s6402_s13  ;;  %1372 = vrot.lane.b32.xlu1 %v1349_v58, %s6403_s14 }
  0xb8   : > { %v766_v4 = vpop.permute.xlu1 %765  ;;  %v460_v8 = vpop.permute.xlu0 %459 }
  0xb9   : > { %803 = vst.msk [vmem:[#allocation2 + $0xc] sm:$0xf] %vm8346_vm0, %v766_v4 }
  0xba   : > { %496 = vst.msk [vmem:[#allocation2 + $0x10] sm:$0xf] %vm8342_vm13, %v460_v8  ;;  %vm8395_vm13 = vcmask 322816  }
  0xbc   : > { %v1070_v46 = vpop.permute.xlu1 %1069  ;;  %v1068_v59 = vpop.permute.xlu0 %1067 }
  0xbd   : > { %1105 = vst.msk [vmem:[#allocation2 + $0x4] sm:$0xf] %vm1103_vm15, %v1070_v46  ;;  %1104 = vst.msk [vmem:[#allocation2] sm:$0xf] %vm1103_vm15, %v1068_v59  ;;  %v1231_v30 = vld [vmem:[#allocation2 + $0x14] sm:$0x1] }
  0xc0   : > { %v578_v37 = vpop.permute.xlu1 %577  ;;  %v1190_v41 = vpop.permute.xlu0 %1189 }
  0xc1   : > { %614 = vst.msk [vmem:[#allocation2 + $0x10] sm:$0xf] %vm8394_vm12, %v578_v37  ;;  %v1227_v49 = vsel %vm7161_vm10, %v1190_v41, %v1226_v63  ;;  %vm8343_vm12 = vcmask 519616  }
  0xc2   : > { %1228 = vst [vmem:[#allocation2 + $0x8] sm:$0x1] %v1227_v49 }
  0xc4   : > { %v884_v40 = vpop.permute.xlu1 %883  ;;  %v782_v51 = vpop.permute.xlu0 %781 }
  0xc5   : > { %921 = vst.msk [vmem:[#allocation2 + $0xc] sm:$0xf] %vm8395_vm13, %v884_v40  ;;  %v816_v17 = vsel %vm7045_vm1, %v782_v51, %v815_v14  ;;  %vm8396_vm1 = vmmov %vm8395_vm13  ;;  %vm1389_vm13 = vcmask 516544  }
  0xc6   : > { %817 = vst [vmem:[#allocation2 + $0x2c] sm:$0x1] %v816_v17 }
  0xc8   : > { %v1188_v61 = vpop.permute.xlu1 %1187  ;;  %v1186_v15 = vpop.permute.xlu0 %1185 }
  0xc9   : > { %1223 = vst.msk [vmem:[#allocation2 + $0x4] sm:$0xf] %vm8345_vm4, %v1188_v61  ;;  %1222 = vst.msk [vmem:[#allocation2] sm:$0xf] %vm8345_vm4, %v1186_v15  ;;  %v1391_v51 = vld [vmem:[#allocation2 + $0x8] sm:$0x1] }
  0xcc   : > { %v1074_v9 = vpop.permute.xlu1 %1073  ;;  %v768_v28 = vpop.permute.xlu0 %767 }
  0xcd   : > { %1111 = vst.msk [vmem:[#allocation2 + $0xc] sm:$0xf] %vm1103_vm15, %v1074_v9 }
  0xce   : > { %804 = vst.msk [vmem:[#allocation2 + $0x10] sm:$0xf] %vm8346_vm0, %v768_v28 }
  0xd0   : > { %v1353_v3 = vpop.permute.xlu1 %1352  ;;  %v1351_v7 = vpop.permute.xlu0 %1350 }
  0xd1   : > { %1388 = vst.msk [vmem:[#allocation2 + $0x4] sm:$0xf] %vm8343_vm12, %v1353_v3  ;;  %1387 = vst.msk [vmem:[#allocation2] sm:$0xf] %vm8343_vm12, %v1351_v7 }
  0xd4   : > { %v1192_v54 = vpop.permute.xlu1 %1191  ;;  %v886_v43 = vpop.permute.xlu0 %885 }
  0xd5   : > { %1229 = vst.msk [vmem:[#allocation2 + $0xc] sm:$0xf] %vm8345_vm4, %v1192_v54  ;;  %v933_v54 = vld [vmem:[#allocation2 + $0x2c] sm:$0x1] }
  0xd6   : > { %922 = vst.msk [vmem:[#allocation2 + $0x10] sm:$0xf] %vm8396_vm1, %v886_v43  ;;  %vm7202_vm1 = vmand %vm1389_vm13, %vm8344_vm3  ;;  %vm2033_vm13 = vcmask 523264   ;;  %vm8401_vm3 = vmmov 0  }
  0xd8   : > { %v1357_v42 = vpop.permute.xlu1 %1356  ;;  %v1076_v10 = vpop.permute.xlu0 %1075  ;;  %v6071_v22 = vld.sshfl [vmem:[#allocation2] sm:$0x33 pattern:$0x75316420] }
  0xd9   : > { %1394 = vst.msk [vmem:[#allocation2 + $0xc] sm:$0xf] %vm8343_vm12, %v1357_v42  ;;  %v6072_v53 = vld.sshfl [vmem:[#allocation2 + $0x4] sm:$0x33 pattern:$0x75316420]  ;;  %v1440_v13 = vcombine.high %v6071_v22, %v6071_v22  ;;  %v1447_v24 = vrot.slane %v6071_v22, %v7182_v6 }
  0xda   : > { %1112 = vst.msk [vmem:[#allocation2 + $0x10] sm:$0xf] %vm1103_vm15, %v1076_v10  ;;  %v1464_v34 = vcombine.high %v6072_v53, %v6072_v53  ;;  %v1471_v52 = vrot.slane %v6072_v53, %v7182_v6 }
  0xdb   : > { %v1454_v45 = vrot.slane %v1440_v13, %v7182_v6 }
  0xdc   : > { %v1359_v20 = vpop.permute.xlu1 %1358  ;;  %v1194_v25 = vpop.permute.xlu0 %1193  ;;  %v1478_v47 = vrot.slane %v1464_v34, %v7182_v6 }
  0xdd   : > { %1230 = vst.msk [vmem:[#allocation2 + $0x10] sm:$0xf] %vm8345_vm4, %v1194_v25  ;;  %v1798_v50 = vcombine.low %v1447_v24, %v1454_v45  ;;  %v6102_v26 = vcombine.high %v1447_v24, %v1454_v45  ;;  %vm8404_vm4 = vcmask 191616  }
  0xde   : > { %1395 = vst.msk [vmem:[#allocation2 + $0x10] sm:$0xf] %vm8343_vm12, %v1359_v20  ;;  %v1800_v48 = vcombine.low %v1471_v52, %v1478_v47  ;;  %v6103_v32 = vcombine.high %v1471_v52, %v1478_v47  ;;  %vm8399_vm12 = vcmask 126016  }
  0xdf   : > { %v1808_v60 = vrot.slane %v1798_v50, %v7182_v6  ;;  %v1815_v62 = vrot.slane %v6102_v26, %v7182_v6 }
  0xe0   : > { %v1196_v35 = vpop.permute.xlu1 %1195  ;;  %v1084_v55 = vpop.permute.xlu0 %1083  ;;  %v1822_v58 = vrot.slane %v1800_v48, %v7182_v6  ;;  %v1829_v0 = vrot.slane %v6103_v32, %v7182_v6  ;;  %v6074_v21 = vld.sshfl [vmem:[#allocation2 + $0xc] sm:$0x33 pattern:$0x75316420] }
  0xe1   : > { %v1232_v27 = vsel %vm7161_vm10, %v1196_v35, %v1231_v30  ;;  %v1119_v23 = vsel %vm7118_vm6, %v1084_v55, %v1118_v1  ;;  %v1830_v4 = vcombine.low %v1808_v60, %v1815_v62  ;;  %v1502_v8 = vcombine.high %v6074_v21, %v6074_v21 }
  0xe2   : > { %1233 = vst [vmem:[#allocation2 + $0x14] sm:$0x1] %v1232_v27  ;;  %1120 = vst [vmem:[#allocation2 + $0x20] sm:$0x1] %v1119_v23  ;;  %v1831_v59 = vcombine.low %v1822_v58, %v1829_v0  ;;  %v1509_v37 = vrot.slane %v6074_v21, %v7182_v6 }
  0xe3   : > { %v1838_v41 = vrot.slane %v1830_v4, %v7182_v6  ;;  %v1516_v63 = vrot.slane %v1502_v8, %v7182_v6 }
  0xe4   : > { %v464_v49 = vpop.permute.xlu1 %463  ;;  %v1355_v40 = vpop.permute.xlu0 %1354  ;;  %v1845_v14 = vrot.slane %v1831_v59, %v7182_v6  ;;  %v1517_v17 = vcombine.high %v1509_v37, %v1509_v37  ;;  %v1699_v20 = vunpack.i.h.s16 %v1509_v37 }
  0xe5   : > { %500 = vst.msk [vmem:[#allocation2 + $0x18] sm:$0xf] %vm8399_vm12, %v464_v49  ;;  %v1392_v61 = vsel %vm7202_vm1, %v1355_v40, %v1391_v51  ;;  %v6075_v15 = vld.sshfl [vmem:[#allocation2 + $0x10] sm:$0x33 pattern:$0x75316420]  ;;  %v1518_v9 = vcombine.high %v1516_v63, %v1516_v63  ;;  %v1701_v57 = vunpack.i.h.s16 %v1516_v63 }
  0xe6   : > { %1393 = vst [vmem:[#allocation2 + $0x8] sm:$0x1] %v1392_v61  ;;  %v1846_v28 = vcombine.low %v1838_v41, %v1845_v14  ;;  %v1526_v44 = vcombine.high %v6075_v15, %v6075_v15  ;;  %v1533_v19 = vrot.slane %v6075_v15, %v7182_v6  ;;  %v1703_v10 = vunpack.i.h.s16 %v1517_v17 }
  0xe7   : > { %v1705_v3 = vunpack.i.h.s16 %v1518_v9  ;;  %vm8400_vm12 = vcmask 191616   ;;  %v6086_v50 = vpack.i.b16 %v1517_v17, %v1701_v57  ;;  %v6085_v58 = vpack.i.b16 %v1516_v63, %v1699_v20 }
  0xe8   : > { %6274 = vmatmul.mubr.msk.bf16.vlgmr.msra.gmra.mxu0 %vm2033_vm13, %v1846_v28  ;;  %v582_v7 = vpop.permute.xlu1 %581  ;;  %v900_v39 = vpop.permute.xlu0 %899  ;;  %v1540_v43 = vrot.slane %v1526_v44, %v7182_v6  ;;  %v1541_v42 = vcombine.high %v1533_v19, %v1533_v19  ;;  %v1707_v22 = vunpack.i.h.s16 %v1533_v19  ;;  %v6087_v26 = vpack.i.b16 %v1518_v9, %v1703_v10 }
  0xe9   : > { %618 = vst.msk [vmem:[#allocation2 + $0x18] sm:$0xf] %vm8400_vm12, %v582_v7  ;;  %v934_v53 = vsel %vm7084_vm7, %v900_v39, %v933_v54  ;;  %6277 = vmatprep.mubr.msk.bf16.mxu0 %vm8401_vm3, %v6404_v12  ;;  %v6088_v13 = vpack.i.b16 %v1533_v19, %v1705_v3  ;;  %vm8402_vm7 = vcmask 126016   ;;  %vm8403_vm12 = vcmask 322816   ;;  %v1236_v19 = vld [vmem:[#allocation2 + $0x20] sm:$0x1] }
  0xea   : > { %935 = vst [vmem:[#allocation2 + $0x2c] sm:$0x1] %v934_v53  ;;  %v7221_v34 = vcombine.high %v1540_v43, %v1540_v43  ;;  %v1709_v52 = vunpack.i.h.s16 %v1540_v43  ;;  %v1711_v24 = vunpack.i.h.s16 %v1541_v42  ;;  %v6089_v45 = vpack.i.b16 %v1540_v43, %v1707_v22  ;;  %v1396_v22 = vld [vmem:[#allocation2 + $0x14] sm:$0x1] }
  0xeb   : > { %v1848_v0 = vcombine.low %v6086_v50, %v6087_v26 }
  0xec   : > { %v772_v25 = vpop.permute.xlu1 %771  ;;  %v466_v47 = vpop.permute.xlu0 %465  ;;  %v6090_v48 = vpack.i.b16 %v1541_v42, %v1709_v52  ;;  %v6091_v32 = vpack.i.b16 %v7221_v34, %v1711_v24  ;;  %v1849_v60 = vcombine.low %v6088_v13, %v6089_v45 }
  0xed   : > { %808 = vst.msk [vmem:[#allocation2 + $0x18] sm:$0xf] %vm8346_vm0, %v772_v25  ;;  %v6073_v56 = vld.sshfl [vmem:[#allocation2 + $0x8] sm:$0x1 pattern:$0x75316420]  ;;  %v1864_v41 = vrot.slane %v1848_v0, %v7182_v6 }
  0xee   : > { %501 = vst.msk [vmem:[#allocation2 + $0x1c] sm:$0xf] %vm8402_vm7, %v466_v47  ;;  %v1494_v1 = vrot.slane %v6073_v56, %v7182_v6  ;;  %v1850_v62 = vcombine.low %v6090_v48, %v6091_v32  ;;  %v1871_v23 = vrot.slane %v1849_v60, %v7182_v6  ;;  %v1713_v60 = vunpack.i.h.s16 %v7221_v34 }
  0xf0   : > { %v890_v35 = vpop.permute.xlu1 %889  ;;  %v584_v30 = vpop.permute.xlu0 %583  ;;  %v6084_v55 = vpack.i.b16 %v1509_v37, %v1494_v1  ;;  %v1878_v21 = vrot.slane %v1850_v62, %v7182_v6 }
  0xf1   : > { %926 = vst.msk [vmem:[#allocation2 + $0x18] sm:$0xf] %vm8403_vm12, %v890_v35  ;;  %vm8405_vm12 = vcmask 454016   ;;  %v1123_v47 = vld [vmem:[#allocation2 + $0x2c] sm:$0x1] }
  0xf2   : > { %619 = vst.msk [vmem:[#allocation2 + $0x1c] sm:$0xf] %vm8404_vm4, %v584_v30  ;;  %v1847_v27 = vcombine.low %v6084_v55, %v6085_v58  ;;  %v1880_v49 = vcombine.low %v1871_v23, %v1878_v21 }
  0xf4   : > { %v774_v4 = vpop.permute.xlu1 %773  ;;  %v470_v8 = vpop.permute.xlu0 %469  ;;  %v1857_v59 = vrot.slane %v1847_v27, %v7182_v6  ;;  %v1894_v14 = vrot.slane %v1880_v49, %v7182_v6 }
  0xf5   : > { %809 = vst.msk [vmem:[#allocation2 + $0x1c] sm:$0xf] %vm8346_vm0, %v774_v4  ;;  %vm8406_vm0 = vcmask 322816  }
  0xf6   : > { %505 = vst.msk [vmem:[#allocation2 + $0x24] sm:$0xf] %vm8402_vm7, %v470_v8  ;;  %v1879_v37 = vcombine.low %v1857_v59, %v1864_v41  ;;  %vm8407_vm7 = vcmask 257216  }
  0xf8   : > { %v588_v63 = vpop.permute.xlu1 %587  ;;  %v1080_v40 = vpop.permute.xlu0 %1079  ;;  %v1887_v51 = vrot.slane %v1879_v37, %v7182_v6 }
  0xf9   : > { %623 = vst.msk [vmem:[#allocation2 + $0x24] sm:$0xf] %vm8404_vm4, %v588_v63 }
  0xfa   : > { %1116 = vst.msk [vmem:[#allocation2 + $0x18] sm:$0xf] %vm1103_vm15, %v1080_v40  ;;  %v1895_v17 = vcombine.low %v1887_v51, %v1894_v14 }
  0xfc   : > { %v1198_v61 = vpop.permute.xlu1 %1197  ;;  %v892_v15 = vpop.permute.xlu0 %891  ;;  %6278 = vmatmul.mubr.msk.bf16.gmra.mxu0 %vm2033_vm13, %v1895_v17 }
  0xfd   : > { %1234 = vst.msk [vmem:[#allocation2 + $0x18] sm:$0xf] %vm8405_vm12, %v1198_v61  ;;  %6281 = vmatprep.mubr.msk.bf16.mxu0 %vm8401_vm3, %v6404_v12 }
  0xfe   : > { %927 = vst.msk [vmem:[#allocation2 + $0x1c] sm:$0xf] %vm8406_vm0, %v892_v15  ;;  %vm8409_vm0 = vmmov %vm8404_vm4  ;;  %vm8410_vm4 = vcmask 519616  }
 0x100   : > { %v778_v9 = vpop.permute.xlu1 %777  ;;  %v472_v28 = vpop.permute.xlu0 %471 }
 0x101   : > { %813 = vst.msk [vmem:[#allocation2 + $0x24] sm:$0xf] %vm8407_vm7, %v778_v9 }
 0x102   : > { %506 = vst.msk [vmem:[#allocation2 + $0x28] sm:$0xf] %vm8408_vm14, %v472_v28  ;;  %vm8411_vm14 = vcmask 322816  }
 0x104   : > { %v1202_v44 = vpop.permute.xlu1 %1201  ;;  %v1082_v57 = vpop.permute.xlu0 %1081 }
 0x105   : > { %v1237_v3 = vsel %vm7161_vm10, %v1202_v44, %v1236_v19  ;;  %1117 = vst.msk [vmem:[#allocation2 + $0x1c] sm:$0xf] %vm1103_vm15, %v1082_v57 }
 0x106   : > { %1238 = vst [vmem:[#allocation2 + $0x20] sm:$0x1] %v1237_v3 }
 0x108   : > { %v590_v7 = vpop.permute.xlu1 %589  ;;  %v1363_v39 = vpop.permute.xlu0 %1362 }
 0x109   : > { %624 = vst.msk [vmem:[#allocation2 + $0x28] sm:$0xf] %vm8409_vm0, %v590_v7  ;;  %vm8412_vm0 = vmmov %vm8410_vm4 }
 0x10a   : > { %1399 = vst.msk [vmem:[#allocation2 + $0x18] sm:$0xf] %vm8410_vm4, %v1363_v39  ;;  %vm8413_vm4 = vmmov %vm8411_vm14 }
 0x10c   : > { %v1200_v54 = vpop.permute.xlu1 %1199  ;;  %v896_v43 = vpop.permute.xlu0 %895 }
 0x10d   : > { %1235 = vst.msk [vmem:[#allocation2 + $0x1c] sm:$0xf] %vm8405_vm12, %v1200_v54  ;;  %v1401_v17 = vld [vmem:[#allocation2 + $0x20] sm:$0x1] }
 0x10e   : > { %931 = vst.msk [vmem:[#allocation2 + $0x24] sm:$0xf] %vm8411_vm14, %v896_v43  ;;  %vm8415_vm14 = vmmov %vm8412_vm0 }
 0x110   : > { %v780_v42 = vpop.permute.xlu1 %779  ;;  %v1361_v10 = vpop.permute.xlu0 %1360 }
 0x111   : > { %814 = vst.msk [vmem:[#allocation2 + $0x28] sm:$0xf] %vm8407_vm7, %v780_v42  ;;  %v1397_v53 = vsel %vm7202_vm1, %v1361_v10, %v1396_v22  ;;  %v6077_v13 = vld.sshfl [vmem:[#allocation2 + $0x18] sm:$0x33 pattern:$0x75316420] }
 0x112   : > { %1398 = vst [vmem:[#allocation2 + $0x14] sm:$0x1] %v1397_v53  ;;  %v1564_v45 = vcombine.high %v6077_v13, %v6077_v13  ;;  %v1571_v20 = vrot.slane %v6077_v13, %v7182_v6  ;;  %vm3078_vm7 = vsmask.f32 7946 }
 0x114   : > { %v1365_v52 = vpop.permute.xlu1 %1364  ;;  %v1086_v24 = vpop.permute.xlu0 %1085  ;;  %v1578_v32 = vrot.slane %v1564_v45, %v7182_v6  ;;  %v1579_v56 = vcombine.high %v1571_v20, %v1571_v20 }
 0x115   : > { %1400 = vst.msk [vmem:[#allocation2 + $0x1c] sm:$0xf] %vm8412_vm0, %v1365_v52 }
 0x116   : > { %1121 = vst.msk [vmem:[#allocation2 + $0x24] sm:$0xf] %vm1103_vm15, %v1086_v24  ;;  %v1580_v36 = vcombine.high %v1578_v32, %v1578_v32  ;;  %v1897_v21 = vcombine.low %v1578_v32, %v1579_v56 }
 0x118   : > { %v1090_v25 = vpop.permute.xlu1 %1089  ;;  %v898_v50 = vpop.permute.xlu0 %897  ;;  %v1913_v37 = vrot.slane %v1897_v21, %v7182_v6 }
 0x119   : > { %v1124_v26 = vsel %vm7118_vm6, %v1090_v25, %v1123_v47  ;;  %932 = vst.msk [vmem:[#allocation2 + $0x28] sm:$0xf] %vm8413_vm4, %v898_v50  ;;  %v6076_v48 = vld.sshfl [vmem:[#allocation2 + $0x14] sm:$0x1 pattern:$0x75316420]  ;;  %vm8414_vm6 = vmmov %vm8405_vm12 }
 0x11a   : > { %1125 = vst [vmem:[#allocation2 + $0x2c] sm:$0x1] %v1124_v26  ;;  %v1556_v1 = vrot.slane %v6076_v48, %v7182_v6  ;;  %vm8353_vm4 = vcmask 123904  }
 0x11c   : > { %v1088_v62 = vpop.permute.xlu1 %1087  ;;  %v1204_v35 = vpop.permute.xlu0 %1203  ;;  %v6078_v30 = vld.sshfl [vmem:[#allocation2 + $0x1c] sm:$0x33 pattern:$0x75316420]  ;;  %v6092_v55 = vpack.i.b16 %v1556_v1, %v1713_v60 }
 0x11d   : > { %1122 = vst.msk [vmem:[#allocation2 + $0x28] sm:$0xf] %vm1103_vm15, %v1088_v62  ;;  %v1588_v58 = vcombine.high %v6078_v30, %v6078_v30  ;;  %v1595_v0 = vrot.slane %v6078_v30, %v7182_v6  ;;  %vm8416_vm15 = vmmov %vm8412_vm0 }
 0x11e   : > { %1239 = vst.msk [vmem:[#allocation2 + $0x24] sm:$0xf] %vm8405_vm12, %v1204_v35  ;;  %v1896_v27 = vcombine.low %v6092_v55, %v1571_v20 }
 0x11f   : > { %v1602_v23 = vrot.slane %v1588_v58, %v7182_v6  ;;  %v1603_v4 = vcombine.high %v1595_v0, %v1595_v0  ;;  %v1898_v8 = vcombine.low %v1580_v36, %v1595_v0 }
 0x120   : > { %v1206_v59 = vpop.permute.xlu1 %1205  ;;  %v1369_v34 = vpop.permute.xlu0 %1368  ;;  %v1906_v41 = vrot.slane %v1896_v27, %v7182_v6 }
 0x121   : > { %1240 = vst.msk [vmem:[#allocation2 + $0x28] sm:$0xf] %vm8414_vm6, %v1206_v59  ;;  %v1899_v49 = vcombine.low %v1602_v23, %v1603_v4  ;;  %v1920_v63 = vrot.slane %v1898_v8, %v7182_v6  ;;  %v1241_v57 = vld [vmem:[#allocation2 + $0x2c] sm:$0x1]  ;;  %v1604_v32 = vcombine.high %v1602_v23, %v1602_v23  ;;  %vm8352_vm6 = vcmask 130048  }
 0x122   : > { %1404 = vst.msk [vmem:[#allocation2 + $0x24] sm:$0xf] %vm8415_vm14, %v1369_v34  ;;  %v1928_v51 = vcombine.low %v1906_v41, %v1913_v37  ;;  %vm3156_vm14 = vcmask 124928  }
 0x123   : > { %v1927_v40 = vrot.slane %v1899_v49, %v7182_v6 }
 0x124   : > { %v1367_v14 = vpop.permute.xlu1 %1366  ;;  %v1371_v61 = vpop.permute.xlu0 %1370  ;;  %v1936_v28 = vrot.slane %v1928_v51, %v7182_v6 }
 0x125   : > { %v1402_v15 = vsel %vm7202_vm1, %v1367_v14, %v1401_v17  ;;  %1405 = vst.msk [vmem:[#allocation2 + $0x28] sm:$0xf] %vm8416_vm15, %v1371_v61  ;;  %v1929_v9 = vcombine.low %v1920_v63, %v1927_v40  ;;  %vm8422_vm15 = vsmask.f32 2304 }
 0x126   : > { %1403 = vst [vmem:[#allocation2 + $0x20] sm:$0x1] %v1402_v15 }
 0x127   : > { %v1943_v44 = vrot.slane %v1929_v9, %v7182_v6 }
 0x128   : > { %v1208_v19 = vpop.permute.xlu0 %1207  ;;  %v1373_v47 = vpop.permute.xlu1 %1372 }
 0x129   : > { %v6080_v3 = vld.sshfl [vmem:[#allocation2 + $0x24] sm:$0x33 pattern:$0x75316420]  ;;  %v1242_v7 = vsel %vm7161_vm10, %v1208_v19, %v1241_v57  ;;  %v1944_v39 = vcombine.low %v1936_v28, %v1943_v44  ;;  %vm8350_vm10 = vcmask 122880  }
 0x12a   : > { %v1626_v54 = vcombine.high %v6080_v3, %v6080_v3  ;;  %v1633_v43 = vrot.slane %v6080_v3, %v7182_v6  ;;  %1243 = vst [vmem:[#allocation2 + $0x2c] sm:$0x1] %v1242_v7  ;;  %2131 = vst.msk [vmem:[#allocation3] sm:$0x1] %vm8350_vm10, %v6404_v12 }
 0x12b   : > { %6282 = vmatmul.mubr.msk.bf16.gmra.mxu0 %vm2033_vm13, %v1944_v39  ;;  %2132 = vst.msk [vmem:[#allocation3 + $0x18] sm:$0x1] %vm8350_vm10, %v6404_v12  ;;  %2133 = vst.msk [vmem:[#allocation3 + $0x30] sm:$0x1] %vm8350_vm10, %v6404_v12  ;;  %v3080_v39 = vld [vmem:[#allocation4 + $0x4] sm:$0xc] }
 0x12c   : > { %v1640_v42 = vrot.slane %v1626_v54, %v7182_v6  ;;  %v1641_v10 = vcombine.high %v1633_v43, %v1633_v43  ;;  %6285 = vmatprep.mubr.msk.bf16.mxu0 %vm8401_vm3, %v6404_v12  ;;  %v6081_v22 = vld.sshfl [vmem:[#allocation2 + $0x28] sm:$0x33 pattern:$0x75316420]  ;;  %v1733_v53 = vunpack.i.h.s16 %v1633_v43  ;;  %2134 = vst.msk [vmem:[#allocation3 + $0x48] sm:$0x1] %vm8350_vm10, %v6404_v12 }
 0x12d   : > { %v6079_v13 = vld.sshfl [vmem:[#allocation2 + $0x20] sm:$0x1 pattern:$0x75316420]  ;;  %v1650_v24 = vcombine.high %v6081_v22, %v6081_v22  ;;  %v1657_v5 = vrot.slane %v6081_v22, %v7182_v6  ;;  %4297 = vst.msk [vmem:[#allocation6] sm:$0x1] %vm8350_vm10, %v6404_v12 }
 0x12e   : > { %v1642_v52 = vcombine.high %v1640_v42, %v1640_v42  ;;  %v1735_v45 = vunpack.i.h.s16 %v1640_v42  ;;  %v1618_v20 = vrot.slane %v6079_v13, %v7182_v6  ;;  %v1737_v25 = vunpack.i.h.s16 %v1641_v10  ;;  %4298 = vst.msk [vmem:[#allocation6 + $0x10] sm:$0x1] %vm8350_vm10, %v6404_v12  ;;  %4299 = vst.msk [vmem:[#allocation6 + $0x20] sm:$0x1] %vm8350_vm10, %v6404_v12 }
 0x12f   : > { %v1664_v50 = vrot.slane %v1650_v24, %v7182_v6  ;;  %v1741_v48 = vunpack.i.h.s16 %v1657_v5  ;;  %v6094_v1 = vpack.i.b16 %v1640_v42, %v1733_v53  ;;  %v1665_v35 = vcombine.high %v1657_v5, %v1657_v5  ;;  %4300 = vst.msk [vmem:[#allocation6 + $0x30] sm:$0x1] %vm8350_vm10, %v6404_v12  ;;  %4301 = vst.msk [vmem:[#allocation6 + $0xb] sm:$0x1] %vm8350_vm10, %v6404_v12  ;;  %v3088_v53 = vld [vmem:[#allocation4 + $0x10] sm:$0xc] }
 0x130   : > { %v1739_v26 = vunpack.i.h.s16 %v1642_v52  ;;  %v6093_v56 = vpack.i.b16 %v1633_v43, %v1618_v20  ;;  %v6095_v60 = vpack.i.b16 %v1641_v10, %v1735_v45  ;;  %v6096_v55 = vpack.i.b16 %v1642_v52, %v1737_v25  ;;  %4302 = vst.msk [vmem:[#allocation6 + $0x1b] sm:$0x1] %vm8350_vm10, %v6404_v12  ;;  %4303 = vst.msk [vmem:[#allocation6 + $0x2b] sm:$0x1] %vm8350_vm10, %v6404_v12  ;;  %v3085_v10 = vld [vmem:[#allocation4 + $0x8] sm:$0x1] }
 0x131   : > { %v1406_v62 = vld [vmem:[#allocation2 + $0x2c] sm:$0x1]  ;;  %v1743_v30 = vunpack.i.h.s16 %v1664_v50  ;;  %v6098_v27 = vpack.i.b16 %v1664_v50, %v1741_v48  ;;  %v1666_v63 = vcombine.high %v1664_v50, %v1664_v50  ;;  %v1745_v46 = vunpack.i.h.s16 %v1665_v35  ;;  %4304 = vst.msk [vmem:[#allocation6 + $0x3b] sm:$0x1] %vm8350_vm10, %v6404_v12  ;;  %5492 = vst.msk [vmem:[#allocation9] sm:$0x1] %vm8350_vm10, %v6404_v12 }
 0x132   : > { %v6097_v36 = vpack.i.b16 %v1657_v5, %v1739_v26  ;;  %v1407_v58 = vsel %vm7202_vm1, %v1373_v47, %v1406_v62  ;;  %v1945_v0 = vcombine.low %v1604_v32, %v6093_v56  ;;  %v1946_v21 = vcombine.low %v6094_v1, %v6095_v60  ;;  %5493 = vst.msk [vmem:[#allocation9 + $0x8] sm:$0x1] %vm8350_vm10, %v6404_v12  ;;  %v3091_v52 = vld [vmem:[#allocation4 + $0x14] sm:$0x1]  ;;  %v7373_v24 = vld [vmem:[%s8328_s2] ss:$0 sm:$0xff] }
 0x133   : > { %1408 = vst [vmem:[#allocation2 + $0x2c] sm:$0x1] %v1407_v58  ;;  %v6099_v4 = vpack.i.b16 %v1665_v35, %v1743_v30  ;;  %v1747_v15 = vunpack.i.h.s16 %v1666_v63  ;;  %v6100_v28 = vpack.i.b16 %v1666_v63, %v1745_v46  ;;  %5494 = vst.msk [vmem:[#allocation9 + $0x10] sm:$0x1] %vm8350_vm10, %v6404_v12  ;;  %vm8351_vm1 = vcmask 125954   ;;  %v6375_v42 = vld [vmem:[%s8329_s3 + $0x28] sm:$0xff]  }
 0x134   : > { %v1947_v8 = vcombine.low %v6096_v55, %v6097_v36  ;;  %v1955_v59 = vrot.slane %v1945_v0, %v7182_v6  ;;  %v1962_v23 = vrot.slane %v1946_v21, %v7182_v6  ;;  %5495 = vst.msk [vmem:[#allocation9 + $0x18] sm:$0x1] %vm8350_vm10, %v6404_v12  ;;  %vm7338_vm0 = vmand %vm8351_vm1, %vm3078_vm7  ;;  %v6407_v43 = vmov 0   ;;  %v3094_v1 = vld [vmem:[#allocation4 + $0x1c] sm:$0xc] }
 0x135   : > { %v1948_v34 = vcombine.low %v6098_v27, %v6099_v4  ;;  %v3081_v54 = vsel %vm7338_vm0, 0, %v3080_v39  ;;  %3073 = vst.msk [vmem:[#allocation4] sm:$0x3] %vm8353_vm4, %v6407_v43  ;;  %3074 = vst.msk [vmem:[#allocation4 + $0xc] sm:$0x3] %vm8353_vm4, %v6407_v43  ;;  %v3089_v13 = vsel %vm7338_vm0, 0, %v3088_v53 }
 0x136   : > { %v1969_v41 = vrot.slane %v1947_v8, %v7182_v6  ;;  %v1977_v37 = vcombine.low %v1955_v59, %v1962_v23  ;;  %3082 = vst [vmem:[#allocation4 + $0x4] sm:$0xc] %v3081_v54  ;;  %3075 = vst.msk [vmem:[#allocation4 + $0x18] sm:$0x3] %vm8353_vm4, %v6407_v43  ;;  %v3095_v30 = vsel %vm7338_vm0, 0, %v3094_v1 }
 0x137   : > { %v1976_v49 = vrot.slane %v1948_v34, %v7182_v6  ;;  %3076 = vst.msk [vmem:[#allocation4 + $0x24] sm:$0x3] %vm8353_vm4, %v6407_v43  ;;  %4526 = vst.msk [vmem:[#allocation7] sm:$0x3] %vm8353_vm4, %v6407_v43  ;;  %v3100_v53 = vld [vmem:[#allocation4 + $0x28] sm:$0xc] }
 0x138   : > { %v1985_v14 = vrot.slane %v1977_v37, %v7182_v6  ;;  %4527 = vst.msk [vmem:[#allocation7 + $0x8] sm:$0x3] %vm8353_vm4, %v6407_v43  ;;  %4528 = vst.msk [vmem:[#allocation7 + $0x10] sm:$0x3] %vm8353_vm4, %v6407_v43 }
 0x139   : > { %v1978_v40 = vcombine.low %v1969_v41, %v1976_v49  ;;  %4529 = vst.msk [vmem:[#allocation7 + $0x18] sm:$0x3] %vm8353_vm4, %v6407_v43  ;;  %3090 = vst [vmem:[#allocation4 + $0x10] sm:$0xc] %v3089_v13  ;;  %vm8363_vm4 = vcmask 516480  }
 0x13a   : > { %v6082_v51 = vld.sshfl [vmem:[#allocation2 + $0x2c] sm:$0x1 pattern:$0x75316420]  ;;  %3096 = vst [vmem:[#allocation4 + $0x1c] sm:$0xc] %v3095_v30  ;;  %vm7438_vm7 = vmand %vm3156_vm14, %vm8422_vm15 }
 0x13b   : > { %v1992_v17 = vrot.slane %v1978_v40, %v7182_v6  ;;  %v1680_v61 = vrot.slane %v6082_v51, %v7182_v6  ;;  %vm8364_vm14 = vcmask 388352   ;;  %vm8355_vm15 = vcmask 519552  }
 0x13d   : > { %v1993_v9 = vcombine.low %v1985_v14, %v1992_v17  ;;  %v6101_v44 = vpack.i.b16 %v1680_v61, %v1747_v15 }
 0x13f   : > { %6286 = vmatmul.mubr.msk.bf16.gmra.mxu0 %vm2033_vm13, %v1993_v9  ;;  %v1994_v19 = vcombine.low %v6100_v28, %v6101_v44 }
 0x140   : > { %6289 = vmatprep.mubr.msk.bf16.mxu0 %vm8401_vm3, %v6404_v12 }
 0x141   : > { %v2001_v57 = vrot.slane %v1994_v19, %v7182_v6 }
 0x143   : > { %v2008_v3 = vrot.slane %v2001_v57, %v7182_v6 }
 0x147   : > { %6290 = vmatmul.mubr.msk.bf16.gmra.mxu0 %vm2033_vm13, %v2008_v3  ;;  %vm8419_vm13 = vsmask.f32 256 }
 0x148   : > { %vm7362_vm12 = vmand %vm8350_vm10, %vm8419_vm13  ;;  %vm8425_vm13 = vnez %v8375_v29 }
 0x149   : > { %v3086_v22 = vsel %vm7362_vm12, 0, %v3085_v10  ;;  %v3092_v5 = vsel %vm7362_vm12, 0, %v3091_v52 }
 0x14a   : > { %3087 = vst [vmem:[#allocation4 + $0x8] sm:$0x1] %v3086_v22  ;;  %3093 = vst [vmem:[#allocation4 + $0x14] sm:$0x1] %v3092_v5 }
 0x1a8   : > { %v2083_v45 = vpop.f32.mrf.mxu0 }
 0x1a9   : > { %v2084_v20 = vadd.f32 %v7373_v24, %v2083_v45 }
 0x1aa   : > { %v6275_v25 = vpop.f32.mrf.mxu0 }
 0x1ab   : > { %v2121_v47 = vmax.f32 %v2084_v20, 0.0  ;;  %v3101_v20 = vsel %vm7338_vm0, 0, %v3100_v53  ;;  %v3103_v53 = vld [vmem:[#allocation4 + $0x2c] sm:$0x1]  ;;  %vm8349_vm0 = vcmask 125952  }
 0x1ac   : > { %v2086_v50 = vpop.f32.mrf.mxu0  ;;  %3102 = vst [vmem:[#allocation4 + $0x28] sm:$0xc] %v3101_v20 }
 0x1ad   : > { %v2144_v26 = vcombine.high %v2121_v47, %v2121_v47  ;;  %v2151_v48 = vrot.slane %v2121_v47, %v7182_v6  ;;  %v2087_v32 = vadd.f32 %v7373_v24, %v2086_v50 }
 0x1ae   : > { %v6276_v56 = vpop.f32.mrf.mxu0 }
 0x1af   : > { %v2158_v60 = vrot.slane %v2144_v26, %v7182_v6  ;;  %v2159_v62 = vcombine.high %v2151_v48, %v2151_v48  ;;  %v2122_v35 = vmax.f32 %v2087_v32, 0.0  ;;  %v2167_v36 = vrot.slane %v2151_v48, %v7182_v6 }
 0x1b1   : > { %v2160_v55 = vcombine.high %v2158_v60, %v2158_v60  ;;  %v2181_v58 = vrot.slane %v2159_v62, %v7182_v6  ;;  %v2193_v0 = vcombine.high %v2122_v35, %v2122_v35  ;;  %v2174_v21 = vrot.slane %v2158_v60, %v7182_v6  ;;  %v3097_v60 = vld [vmem:[#allocation4 + $0x20] sm:$0x1] }
 0x1b2   : > { %v2200_v27 = vrot.slane %v2122_v35, %v7182_v6  ;;  %v3098_v30 = vsel %vm7362_vm12, 0, %v3097_v60 }
 0x1b3   : > { %v2188_v4 = vrot.slane %v2160_v55, %v7182_v6  ;;  %v2560_v8 = vcombine.low %v2167_v36, %v2181_v58  ;;  %v6113_v59 = vcombine.high %v2167_v36, %v2181_v58  ;;  %v2207_v23 = vrot.slane %v2193_v0, %v7182_v6  ;;  %3099 = vst [vmem:[#allocation4 + $0x20] sm:$0x1] %v3098_v30 }
 0x1b4   : > { %v2208_v34 = vcombine.high %v2200_v27, %v2200_v27  ;;  %v2216_v46 = vrot.slane %v2200_v27, %v7182_v6 }
 0x1b5   : > { %v2562_v41 = vcombine.low %v2174_v21, %v2188_v4  ;;  %v6114_v49 = vcombine.high %v2174_v21, %v2188_v4  ;;  %v2570_v37 = vrot.slane %v2560_v8, %v7182_v6  ;;  %v2577_v63 = vrot.slane %v6113_v59, %v7182_v6 }
 0x1b6   : > { %v2209_v40 = vcombine.high %v2207_v23, %v2207_v23  ;;  %v2230_v51 = vrot.slane %v2208_v34, %v7182_v6  ;;  %v2223_v15 = vrot.slane %v2207_v23, %v7182_v6 }
 0x1b7   : > { %v2584_v14 = vrot.slane %v2562_v41, %v7182_v6  ;;  %v2591_v17 = vrot.slane %v6114_v49, %v7182_v6  ;;  %v2592_v61 = vcombine.low %v2570_v37, %v2577_v63 }
 0x1b8   : > { %v2237_v9 = vrot.slane %v2209_v40, %v7182_v6  ;;  %v2609_v28 = vcombine.low %v2216_v46, %v2230_v51  ;;  %v6115_v44 = vcombine.high %v2216_v46, %v2230_v51 }
 0x1b9   : > { %v2593_v19 = vcombine.low %v2584_v14, %v2591_v17  ;;  %v2600_v10 = vrot.slane %v2592_v61, %v7182_v6 }
 0x1ba   : > { %v2611_v57 = vcombine.low %v2223_v15, %v2237_v9  ;;  %v6116_v3 = vcombine.high %v2223_v15, %v2237_v9  ;;  %v2619_v39 = vrot.slane %v2609_v28, %v7182_v6  ;;  %v2626_v54 = vrot.slane %v6115_v44, %v7182_v6 }
 0x1bb   : > { %v2607_v22 = vrot.slane %v2593_v19, %v7182_v6 }
 0x1bc   : > { %v2633_v13 = vrot.slane %v2611_v57, %v7182_v6  ;;  %v2640_v52 = vrot.slane %v6116_v3, %v7182_v6  ;;  %v2641_v5 = vcombine.low %v2619_v39, %v2626_v54  ;;  %v2091_v45 = vpop.f32.mrf.mxu0 }
 0x1bd   : > { %v2608_v25 = vcombine.low %v2600_v10, %v2607_v22  ;;  %v2092_v47 = vadd.f32 %v7373_v24, %v2091_v45 }
 0x1be   : > { %v2642_v50 = vcombine.low %v2633_v13, %v2640_v52  ;;  %v6279_v26 = vpop.f32.mrf.mxu0  ;;  %v2649_v32 = vrot.slane %v2641_v5, %v7182_v6  ;;  %v3104_v52 = vsel %vm7362_vm12, 0, %v3103_v53  ;;  %vm8426_vm12 = vnez %v8381_v18  ;;  %v6388_v18 = vld [vmem:[%s8331_s5] sm:$0xff]  }
 0x1bf   : > { %3021 = vst.msk [vmem:[#allocation3 + $0x1] sm:$0xff] %vm8352_vm6, %v2608_v25  ;;  %v2123_v48 = vmax.f32 %v2092_v47, 0.0  ;;  %3105 = vst [vmem:[#allocation4 + $0x2c] sm:$0x1] %v3104_v52 }
 0x1c0   : > { %v2656_v56 = vrot.slane %v2642_v50, %v7182_v6  ;;  %v2094_v1 = vpop.f32.mrf.mxu0 }
 0x1c1   : > { %v2242_v62 = vcombine.high %v2123_v48, %v2123_v48  ;;  %v2249_v35 = vrot.slane %v2123_v48, %v7182_v6  ;;  %v2095_v7 = vadd.f32 %v7373_v24, %v2094_v1 }
 0x1c2   : > { %v2657_v55 = vcombine.low %v2649_v32, %v2656_v56  ;;  %v6280_v36 = vpop.f32.mrf.mxu0  ;;  %v3158_v56 = vld [vmem:[#allocation4 + $0x4] sm:$0x7] }
 0x1c3   : > { %v2256_v58 = vrot.slane %v2242_v62, %v7182_v6  ;;  %v2257_v0 = vcombine.high %v2249_v35, %v2249_v35  ;;  %v2265_v21 = vrot.slane %v2249_v35, %v7182_v6  ;;  %v2124_v27 = vmax.f32 %v2095_v7, 0.0  ;;  %v7448_v36 = vld [vmem:[#allocation4 + $0x8] sm:$0x1] }
 0x1c4   : > { %3022 = vst.msk [vmem:[#allocation3 + $0x9] sm:$0xff] %vm8352_vm6, %v2657_v55 }
 0x1c5   : > { %v2258_v4 = vcombine.high %v2256_v58, %v2256_v58  ;;  %v2272_v8 = vrot.slane %v2256_v58, %v7182_v6  ;;  %v2279_v59 = vrot.slane %v2257_v0, %v7182_v6  ;;  %v2287_v23 = vcombine.high %v2265_v21, %v2265_v21 }
 0x1c6   : > { %v2664_v34 = vrot.slane %v2265_v21, %v7182_v6  ;;  %v2298_v41 = vrot.slane %v2124_v27, %v7182_v6  ;;  %v2291_v1 = vcombine.high %v2124_v27, %v2124_v27 }
 0x1c7   : > { %v2286_v49 = vrot.slane %v2258_v4, %v7182_v6  ;;  %v2288_v37 = vcombine.high %v2272_v8, %v2272_v8  ;;  %v2289_v63 = vcombine.high %v2279_v59, %v2279_v59  ;;  %v2672_v40 = vcombine.low %v2279_v59, %v2287_v23 }
 0x1c8   : > { %v2671_v46 = vrot.slane %v2664_v34, %v7182_v6  ;;  %v7423_v61 = vrot.slane %v2298_v41, %v7182_v6  ;;  %v2306_v62 = vcombine.high %v2298_v41, %v2298_v41  ;;  %v2305_v7 = vrot.slane %v2291_v1, %v7182_v6 }
 0x1c9   : > { %v2673_v51 = vcombine.low %v2289_v63, %v2272_v8  ;;  %v2674_v14 = vcombine.low %v2286_v49, %v2288_v37  ;;  %v2290_v17 = vcombine.high %v2286_v49, %v2286_v49  ;;  %v2682_v15 = vrot.slane %v2672_v40, %v7182_v6 }
 0x1ca   : > { %3023 = vst.msk [vmem:[#allocation3 + $0x11] sm:$0x1] %vm8350_vm10, %v2671_v46  ;;  %v2328_v55 = vrot.slane %v2306_v62, %v7182_v6  ;;  %v2307_v0 = vcombine.high %v2305_v7, %v2305_v7  ;;  %v2321_v59 = vrot.slane %v2305_v7, %v7182_v6  ;;  %v2336_v23 = vcombine.high %v7423_v61, %v7423_v61 }
 0x1cb   : > { %v2689_v9 = vrot.slane %v2673_v51, %v7182_v6  ;;  %v2675_v28 = vcombine.low %v2290_v17, %v7423_v61  ;;  %v3033_v44 = vld [vmem:[#allocation3] ss:$2 sm:$0xff]  ;;  %v3049_v19 = vld [vmem:[#allocation3 + $0x1] ss:$2 sm:$0xff]  ;;  %v2696_v3 = vrot.slane %v2674_v14, %v7182_v6  ;;  %v3781_v37 = vshll.u32 %v7448_v36, 16 }
 0x1cc   : > { %v3064_v54 = vmax.f32 %v3033_v44, %v3049_v19  ;;  %v3035_v13 = vld [vmem:[#allocation3 + $0x10] ss:$2 sm:$0x1]  ;;  %v2338_v34 = vcombine.high %v2328_v55, %v2328_v55  ;;  %v7456_v14 = vrot.slane %v2307_v0, %v7182_v6 }
 0x1cd   : > { %v2704_v57 = vcombine.low %v2682_v15, %v2689_v9  ;;  %v2703_v39 = vrot.slane %v2675_v28, %v7182_v6 }
 0x1ce   : > { %v6223_v22 = vpack.c.bf16 %v3064_v54, %v3064_v54  ;;  %v7460_v54 = vcombine.low %v2328_v55, %v2336_v23 }
 0x1cf   : > { %v2705_v10 = vcombine.low %v2696_v3, %v2703_v39  ;;  %v2712_v5 = vrot.slane %v2704_v57, %v7182_v6  ;;  %v2337_v39 = vcombine.high %v2321_v59, %v2321_v59 }
 0x1d0   : > { %v3130_v25 = vrot.slane %v6223_v22, 6 }
 0x1d1   : > { %v3051_v45 = vld [vmem:[#allocation3 + $0x11] ss:$2 sm:$0x1]  ;;  %v2719_v20 = vrot.slane %v2705_v10, %v7182_v6  ;;  %v7462_v10 = vcombine.low %v2338_v34, %v2321_v59  ;;  %v7471_v0 = vcombine.low %v7456_v14, %v2337_v39 }
 0x1d2   : > { %v3065_v47 = vmax.f32 %v3035_v13, %v3051_v45  ;;  %3155 = vst.msk [vmem:[#allocation4] sm:$0xc] %vm8351_vm1, %v3130_v25  ;;  %v3131_v32 = vrot.slane %v3130_v25, 4 }
 0x1d3   : > { %v2720_v50 = vcombine.low %v2712_v5, %v2719_v20 }
 0x1d4   : > { %v6224_v26 = vpack.c.bf16 %v3065_v47, %v3065_v47 }
 0x1d5   : > { %3024 = vst.msk [vmem:[#allocation3 + $0x19] sm:$0xff] %vm8352_vm6, %v2720_v50 }
 0x1d6   : > { %v3132_v48 = vrot.slane %v6224_v26, 6 }
 0x1d8   : > { %v3133_v60 = vsel %vm6643_vm11, %v3131_v32, %v3132_v48 }
 0x1d9   : > { %v3159_v35 = vsel %vm7438_vm7, %v3133_v60, %v3158_v56  ;;  %v3190_v30 = vld [vmem:[#allocation4] sm:$0xf] }
 0x1da   : > { %3160 = vst [vmem:[#allocation4 + $0x4] sm:$0x7] %v3159_v35  ;;  %v3173_v58 = vld [vmem:[#allocation4] sm:$0xf]  ;;  %v3199_v27 = vshrl.u32 %v3190_v30, 16  ;;  %v3202_v4 = vshll.u32 %v3190_v30, 16 }
 0x1db   : > { %v3308_v21 = vld [vmem:[#allocation4] sm:$0xe]  ;;  %3182 = vst.msk [vmem:[#allocation5] sm:$0xf] %vm8349_vm0, %v3173_v58 }
 0x1dc   : > { %v3378_v8 = vld [vmem:[#allocation4] sm:$0xe]  ;;  %v6129_v63 = vrot.slane %v3308_v21, 9  ;;  %v3201_v17 = vrot.slane %v3199_v27, 4  ;;  %v3204_v3 = vrot.slane %v3202_v4, 5  ;;  %v2731_v21 = vrot.slane %v7460_v54, %v7182_v6 }
 0x1dd   : > { %v3496_v46 = vld [vmem:[#allocation4] sm:$0xc]  ;;  %v3387_v9 = vshrl.u32 %v3378_v8, 16  ;;  %v3390_v28 = vshll.u32 %v3378_v8, 16 }
 0x1de   : > { %v3566_v51 = vld [vmem:[#allocation4] sm:$0xc]  ;;  %v6133_v52 = vrot.slane %v3496_v46, 10  ;;  %v3205_v62 = vor.u32 %v3204_v3, %v3201_v17 }
 0x1df   : > { %v3575_v20 = vshrl.u32 %v3566_v51, 16  ;;  %v3578_v25 = vshll.u32 %v3566_v51, 16  ;;  %v3684_v47 = vld [vmem:[#allocation4] sm:$0x8]  ;;  %v3389_v26 = vrot.slane %v3387_v9, 5  ;;  %v3392_v48 = vrot.slane %v3390_v28, 6 }
 0x1e0   : > { %v6137_v27 = vrot.slane %v3684_v47, 11 }
 0x1e1   : > { %v3309_v41 = vld [vmem:[#allocation4 + $0x4] sm:$0x3]  ;;  %v3577_v4 = vrot.slane %v3575_v20, 6  ;;  %v3393_v23 = vor.u32 %v3392_v48, %v3389_v26  ;;  %v2745_v20 = vrot.slane %v7471_v0, %v7182_v6 }
 0x1e2   : > { %v3497_v49 = vld [vmem:[#allocation4 + $0x4] sm:$0x7]  ;;  %v3326_v40 = vrot.slane %v3309_v41, 5  ;;  %v3580_v41 = vrot.slane %v3578_v25, 7 }
 0x1e3   : > { %v3379_v15 = vld [vmem:[#allocation4 + $0x4] sm:$0x7]  ;;  %v3514_v19 = vrot.slane %v3497_v49, 6  ;;  %v3754_v49 = vld [vmem:[#allocation4] sm:$0x8] }
 0x1e4   : > { %v3327_v44 = vsel %vm6587_vm5, %v6129_v63, %v3326_v40  ;;  %v3328_v61 = vrot.slane %v3326_v40, 4  ;;  %v3191_v57 = vld [vmem:[#allocation4 + $0x4] sm:$0x3]  ;;  %v3396_v53 = vshrl.u32 %v3379_v15, 16  ;;  %v3399_v5 = vshll.u32 %v3379_v15, 16 }
 0x1e5   : > { %3344 = vrot.lane.b32.xlu0 %v3327_v44, %s6400_s11  ;;  %v3685_v22 = vld [vmem:[#allocation4 + $0x4] sm:$0xf]  ;;  %v3208_v50 = vshll.u32 %v3191_v57, 16  ;;  %v3212_v32 = vshrl.u32 %v3191_v57, 16  ;;  %v3515_v56 = vsel %vm6643_vm11, %v6133_v52, %v3514_v19  ;;  %v3516_v1 = vrot.slane %v3514_v19, 4 }
 0x1e6   : > { %v3174_v13 = vld [vmem:[#allocation4 + $0x4] sm:$0x1]  ;;  %3346 = vrot.lane.b32.xlu1 %v3328_v61, %s6400_s11  ;;  %v3702_v60 = vrot.slane %v3685_v22, 7  ;;  %v3398_v35 = vrot.slane %v3396_v53, 5  ;;  %v3401_v7 = vrot.slane %v3399_v5, 6  ;;  %v3206_v15 = vrot.slane %v3205_v62, 4 }
 0x1e7   : > { %v3567_v45 = vld [vmem:[#allocation4 + $0x4] sm:$0xf]  ;;  %3183 = vst.msk [vmem:[#allocation5 + $0x4] sm:$0x1] %vm8350_vm10, %v3174_v13  ;;  %v3210_v59 = vrot.slane %v3208_v50, 5  ;;  %v3214_v34 = vrot.slane %v3212_v32, 4  ;;  %v2738_v61 = vrot.slane %v7462_v10, %v7182_v6  ;;  %v2339_v57 = vcombine.high %v7456_v14, %v7456_v14 }
 0x1e8   : > { %v3584_v30 = vshrl.u32 %v3567_v45, 16  ;;  %v3587_v55 = vshll.u32 %v3567_v45, 16  ;;  %v3755_v58 = vld [vmem:[#allocation4 + $0x4] sm:$0xf]  ;;  %v3703_v40 = vsel %vm6741_vm8, %v6137_v27, %v3702_v60  ;;  %v3704_v46 = vrot.slane %v3702_v60, 4 }
 0x1e9   : > { %3532 = vrot.lane.b32.xlu0 %v3515_v56, %s6408_s27  ;;  %v3772_v51 = vshrl.u32 %v3755_v58, 16  ;;  %v3402_v9 = vor.u32 %v3401_v7, %v3398_v35  ;;  %v3767_v3 = vshrl.u32 %v3754_v49, 16  ;;  %v3211_v54 = vsel %vm6573_vm2, %v3206_v15, %v3210_v59 }
 0x1ea   : > { %3534 = vrot.lane.b32.xlu1 %v3516_v1, %s6408_s27  ;;  %v3586_v28 = vrot.slane %v3584_v30, 6  ;;  %v3589_v44 = vrot.slane %v3587_v55, 7  ;;  %v3394_v22 = vrot.slane %v3393_v23, 4  ;;  %v3215_v53 = vor.u32 %v3214_v34, %v3210_v59 }
 0x1eb   : > { %v2099_v8 = vpop.f32.mrf.mxu0  ;;  %v3581_v13 = vor.u32 %v3580_v41, %v3577_v4  ;;  %v3774_v10 = vrot.slane %v3772_v51, 7  ;;  %v3775_v50 = vshll.u32 %v3755_v58, 16  ;;  %v2753_v1 = vcombine.low %v2731_v21, %v2738_v61 }
 0x1ec   : > { %v2100_v63 = vadd.f32 %v7373_v24, %v2099_v8  ;;  %v3403_v14 = vsel %vm6607_vm9, %v3394_v22, %v3402_v9  ;;  %v3590_v47 = vor.u32 %v3589_v44, %v3586_v28  ;;  %v3216_v60 = vrot.slane %v3215_v53, 4 }
 0x1ed   : > { %3720 = vrot.lane.b32.xlu0 %v3703_v40, %s6409_s28  ;;  %v6283_v17 = vpop.f32.mrf.mxu0  ;;  %v3582_v62 = vrot.slane %v3581_v13, 4  ;;  %v6141_v35 = vrot.slane %v3767_v3, 11  ;;  %v3777_v0 = vor.u32 %v3775_v50, %v3774_v10  ;;  %v3779_v8 = vrot.slane %v3774_v10, 4 }
 0x1ee   : > { %v2125_v19 = vmax.f32 %v2100_v63, 0.0  ;;  %3722 = vrot.lane.b32.xlu1 %v3704_v46, %s6409_s28  ;;  %v3404_v40 = vrot.slane %v3402_v9, 4  ;;  %v3592_v53 = vrot.slane %v3590_v47, 4 }
 0x1ef   : > { %v2102_v39 = vpop.f32.mrf.mxu0  ;;  %v3591_v4 = vsel %vm8425_vm13, %v3582_v62, %v3590_v47  ;;  %v3778_v15 = vsel %vm8426_vm12, %v6141_v35, %v3777_v0 }
 0x1f0   : > { %v2340_v52 = vcombine.high %v2125_v19, %v2125_v19  ;;  %v2347_v5 = vrot.slane %v2125_v19, %v7182_v6  ;;  %v2103_v45 = vadd.f32 %v7373_v24, %v2102_v39 }
 0x1f1   : > { %3274 = vrot.lane.b32.xlu0 %v3211_v54, %s6398_s9  ;;  %v6284_v25 = vpop.f32.mrf.mxu0 }
 0x1f2   : > { %v2354_v26 = vrot.slane %v2340_v52, %v7182_v6  ;;  %v2355_v48 = vcombine.high %v2347_v5, %v2347_v5  ;;  %v2363_v32 = vrot.slane %v2347_v5, %v7182_v6  ;;  %v2126_v56 = vmax.f32 %v2103_v45, 0.0  ;;  %3462 = vrot.lane.b32.xlu1 %v3403_v14, %s6402_s13 }
 0x1f3   : > { %v3783_v52 = vsel %vm8426_vm12, %v3779_v8, %v3781_v37 }
 0x1f4   : > { %v2356_v7 = vcombine.high %v2354_v26, %v2354_v26  ;;  %v2377_v30 = vrot.slane %v2355_v48, %v7182_v6  ;;  %v2724_v55 = vcombine.low %v2339_v57, %v2363_v32  ;;  %v2389_v27 = vcombine.high %v2126_v56, %v2126_v56 }
 0x1f5   : > { %v2396_v58 = vrot.slane %v2126_v56, %v7182_v6  ;;  %3276 = vrot.lane.b32.xlu0 %v3216_v60, %s6398_s9  ;;  %v2370_v59 = vrot.slane %v2354_v26, %v7182_v6  ;;  %v2761_v57 = vrot.slane %v2753_v1, %v7182_v6 }
 0x1f6   : > { %v2384_v21 = vrot.slane %v2356_v7, %v7182_v6  ;;  %v2752_v23 = vrot.slane %v2724_v55, %v7182_v6  ;;  %v2776_v34 = vrot.slane %v2377_v30, %v7182_v6  ;;  %3650 = vrot.lane.b32.xlu1 %v3591_v4, %s6410_s29  ;;  %v6117_v41 = vcombine.high %v2363_v32, %v2377_v30 }
 0x1f7   : > { %v2403_v49 = vrot.slane %v2389_v27, %v7182_v6  ;;  %v2404_v63 = vcombine.high %v2396_v58, %v2396_v58  ;;  %v2412_v61 = vrot.slane %v2396_v58, %v7182_v6 }
 0x1f8   : > { %v2754_v46 = vcombine.low %v2745_v20, %v2752_v23  ;;  %v2783_v51 = vrot.slane %v2776_v34, %v7182_v6  ;;  %v2785_v17 = vcombine.low %v2370_v59, %v2384_v21  ;;  %v6118_v28 = vcombine.high %v2370_v59, %v2384_v21 }
 0x1f9   : > { %v2405_v44 = vcombine.high %v2403_v49, %v2403_v49  ;;  %v2426_v19 = vrot.slane %v2404_v63, %v7182_v6  ;;  %3464 = vrot.lane.b32.xlu0 %v3404_v40, %s6402_s13  ;;  %v2794_v39 = vrot.slane %v6117_v41, %v7182_v6  ;;  %v2419_v10 = vrot.slane %v2403_v49, %v7182_v6 }
 0x1fa   : > { %v2768_v3 = vrot.slane %v2754_v46, %v7182_v6  ;;  %v2801_v9 = vrot.slane %v2785_v17, %v7182_v6  ;;  %3026 = vst.msk [vmem:[#allocation3 + $0x29] sm:$0x1] %vm8350_vm10, %v2783_v51  ;;  %3838 = vrot.lane.b32.xlu1 %v3778_v15, %s6411_s30  ;;  %v2808_v5 = vrot.slane %v6118_v28, %v7182_v6 }
 0x1fb   : > { %v2433_v54 = vrot.slane %v2405_v44, %v7182_v6  ;;  %v2787_v22 = vcombine.low %v2412_v61, %v2426_v19  ;;  %v6119_v26 = vcombine.high %v2412_v61, %v2426_v19 }
 0x1fc   : > { %v2769_v13 = vcombine.low %v2761_v57, %v2768_v3  ;;  %v2816_v45 = vcombine.low %v2794_v39, %v2801_v9 }
 0x1fd   : > { %v2815_v20 = vrot.slane %v2787_v22, %v7182_v6  ;;  %3652 = vrot.lane.b32.xlu0 %v3592_v53, %s6410_s29  ;;  %v2834_v25 = vcombine.low %v2419_v10, %v2433_v54  ;;  %v6120_v1 = vcombine.high %v2419_v10, %v2433_v54  ;;  %v2843_v0 = vrot.slane %v6119_v26, %v7182_v6 }
 0x1fe   : > { %3025 = vst.msk [vmem:[#allocation3 + $0x21] sm:$0xff] %vm8352_vm6, %v2769_v13  ;;  %3840 = vrot.lane.b32.xlu1 %v3783_v52, %s6411_s30  ;;  %v2824_v37 = vrot.slane %v2816_v45, %v7182_v6 }
 0x1ff   : > { %v2817_v14 = vcombine.low %v2808_v5, %v2815_v20  ;;  %v2107_v47 = vpop.f32.mrf.mxu0  ;;  %v2850_v60 = vrot.slane %v2834_v25, %v7182_v6  ;;  %v2857_v34 = vrot.slane %v6120_v1, %v7182_v6 }
 0x200   : > { %v2108_v36 = vadd.f32 %v7373_v24, %v2107_v47 }
 0x201   : > { %v2831_v50 = vrot.slane %v2817_v14, %v7182_v6  ;;  %v6287_v48 = vpop.f32.mrf.mxu0  ;;  %v3055_v23 = vld [vmem:[#allocation3 + $0x29] ss:$2 sm:$0x1]  ;;  %v2865_v41 = vcombine.low %v2843_v0, %v2850_v60 }
 0x202   : > { %v2127_v32 = vmax.f32 %v2108_v36, 0.0 }
 0x203   : > { %v2832_v56 = vcombine.low %v2824_v37, %v2831_v50  ;;  %v2110_v62 = vpop.f32.mrf.mxu0 }
 0x204   : > { %v2438_v35 = vcombine.high %v2127_v32, %v2127_v32  ;;  %v2445_v7 = vrot.slane %v2127_v32, %v7182_v6  ;;  %v2111_v30 = vadd.f32 %v7373_v24, %v2110_v62  ;;  %v2873_v62 = vrot.slane %v2865_v41, %v7182_v6 }
 0x205   : > { %v3039_v55 = vld [vmem:[#allocation3 + $0x28] ss:$2 sm:$0x1]  ;;  %3027 = vst.msk [vmem:[#allocation3 + $0x31] sm:$0xff] %vm8352_vm6, %v2832_v56  ;;  %v6288_v27 = vpop.f32.mrf.mxu0  ;;  %v3037_v59 = vld [vmem:[#allocation3 + $0x18] ss:$2 sm:$0xff] }
 0x206   : > { %v2452_v58 = vrot.slane %v2438_v35, %v7182_v6  ;;  %v2453_v4 = vcombine.high %v2445_v7, %v2445_v7  ;;  %v2461_v8 = vrot.slane %v2445_v7, %v7182_v6  ;;  %v3053_v21 = vld [vmem:[#allocation3 + $0x19] ss:$2 sm:$0xff]  ;;  %v2128_v49 = vmax.f32 %v2111_v30, 0.0 }
 0x207   : > { %v2115_v63 = vpop.f32.mrf.mxu0  ;;  %v3067_v40 = vmax.f32 %v3039_v55, %v3055_v23  ;;  %v3066_v19 = vmax.f32 %v3037_v59, %v3053_v21 }
 0x208   : > { %v2454_v46 = vcombine.high %v2452_v58, %v2452_v58  ;;  %v2468_v51 = vrot.slane %v2452_v58, %v7182_v6  ;;  %v2475_v17 = vrot.slane %v2453_v4, %v7182_v6  ;;  %v2483_v15 = vcombine.high %v2461_v8, %v2461_v8 }
 0x209   : > { %v2487_v28 = vcombine.high %v2128_v49, %v2128_v49  ;;  %v2494_v44 = vrot.slane %v2128_v49, %v7182_v6  ;;  %v6291_v61 = vpop.f32.mrf.mxu0  ;;  %v2116_v39 = vadd.f32 %v7373_v24, %v2115_v63  ;;  %v6226_v21 = vpack.c.bf16 %v3067_v40, %v3067_v40 }
 0x20a   : > { %v2482_v57 = vrot.slane %v2454_v46, %v7182_v6  ;;  %v2484_v3 = vcombine.high %v2468_v51, %v2468_v51  ;;  %v2485_v9 = vcombine.high %v2475_v17, %v2475_v17  ;;  %v2836_v54 = vcombine.low %v2461_v8, %v2475_v17 }
 0x20b   : > { %v2888_v22 = vrot.slane %v2483_v15, %v7182_v6  ;;  %v2501_v53 = vrot.slane %v2487_v28, %v7182_v6  ;;  %v2502_v13 = vcombine.high %v2494_v44, %v2494_v44  ;;  %v2118_v52 = vpop.f32.mrf.mxu0  ;;  %v2510_v20 = vrot.slane %v2494_v44, %v7182_v6 }
 0x20c   : > { %v2896_v5 = vcombine.low %v2485_v9, %v2468_v51  ;;  %v2897_v45 = vcombine.low %v2482_v57, %v2484_v3  ;;  %v2486_v10 = vcombine.high %v2482_v57, %v2482_v57  ;;  %v2864_v14 = vrot.slane %v2836_v54, %v7182_v6  ;;  %v3162_v9 = vld [vmem:[#allocation4 + $0x10] sm:$0x7] }
 0x20d   : > { %v2895_v25 = vrot.slane %v2888_v22, %v7182_v6  ;;  %v2503_v47 = vcombine.high %v2501_v53, %v2501_v53  ;;  %v2517_v36 = vrot.slane %v2501_v53, %v7182_v6  ;;  %v6292_v24 = vpop.f32.mrf.mxu0  ;;  %v2524_v26 = vrot.slane %v2502_v13, %v7182_v6 }
 0x20e   : > { %v2906_v37 = vrot.slane %v2896_v5, %v7182_v6  ;;  %v2913_v50 = vrot.slane %v2897_v45, %v7182_v6  ;;  %v2532_v48 = vcombine.high %v2510_v20, %v2510_v20  ;;  %v2866_v32 = vcombine.low %v2857_v34, %v2864_v14 }
 0x20f   : > { %3029 = vst.msk [vmem:[#allocation3 + $0x41] sm:$0x1] %vm8350_vm10, %v2895_v25  ;;  %v2531_v56 = vrot.slane %v2503_v47, %v7182_v6  ;;  %v2533_v1 = vcombine.high %v2517_v36, %v2517_v36  ;;  %v2898_v60 = vcombine.low %v2486_v10, %v2510_v20  ;;  %v2534_v35 = vcombine.high %v2524_v26, %v2524_v26 }
 0x210   : > { %v2899_v7 = vcombine.low %v2524_v26, %v2532_v48  ;;  %v2129_v30 = vmax.f32 %v2116_v39, 0.0  ;;  %v2880_v55 = vrot.slane %v2866_v32, %v7182_v6  ;;  %v2928_v0 = vcombine.low %v2906_v37, %v2913_v50 }
 0x211   : > { %v2920_v27 = vrot.slane %v2898_v60, %v7182_v6  ;;  %v2946_v58 = vcombine.low %v2531_v56, %v2533_v1  ;;  %v2945_v8 = vcombine.low %v2534_v35, %v2517_v36  ;;  %v2535_v34 = vcombine.high %v2531_v56, %v2531_v56 }
 0x212   : > { %v2927_v4 = vrot.slane %v2899_v7, %v7182_v6  ;;  %v2542_v59 = vrot.slane %v2129_v30, %v7182_v6  ;;  %v2881_v23 = vcombine.low %v2873_v62, %v2880_v55  ;;  %v6225_v49 = vpack.c.bf16 %v3066_v19, %v3066_v19 }
 0x213   : > { %v2936_v51 = vrot.slane %v2928_v0, %v7182_v6  ;;  %v2962_v17 = vrot.slane %v2946_v58, %v7182_v6  ;;  %v2955_v44 = vrot.slane %v2945_v8, %v7182_v6  ;;  %v3136_v57 = vrot.slane %v6226_v21, 6 }
 0x214   : > { %v2929_v63 = vcombine.low %v2920_v27, %v2927_v4  ;;  %v2543_v41 = vcombine.high %v2542_v59, %v2542_v59  ;;  %v2550_v46 = vrot.slane %v2542_v59, %v7182_v6  ;;  %3028 = vst.msk [vmem:[#allocation3 + $0x39] sm:$0xff] %vm8352_vm6, %v2881_v23  ;;  %v3134_v15 = vrot.slane %v6225_v49, 6 }
 0x215   : > { %v2977_v52 = vcombine.low %v2955_v44, %v2962_v17 }
 0x216   : > { %v2943_v28 = vrot.slane %v2929_v63, %v7182_v6  ;;  %v2557_v40 = vrot.slane %v2543_v41, %v7182_v6  ;;  %v2558_v61 = vcombine.high %v2550_v46, %v2550_v46  ;;  %v2947_v19 = vcombine.low %v2535_v34, %v2550_v46  ;;  %3161 = vst.msk [vmem:[#allocation4 + $0xc] sm:$0xc] %vm8351_vm1, %v3134_v15  ;;  %v3059_v1 = vld [vmem:[#allocation3 + $0x41] ss:$2 sm:$0x1] }
 0x217   : > { %v3135_v3 = vrot.slane %v3134_v15, 4  ;;  %v2985_v47 = vrot.slane %v2977_v52, %v7182_v6 }
 0x218   : > { %v2944_v39 = vcombine.low %v2936_v51, %v2943_v28  ;;  %v2559_v54 = vcombine.high %v2557_v40, %v2557_v40  ;;  %v2948_v22 = vcombine.low %v2557_v40, %v2558_v61  ;;  %v2969_v53 = vrot.slane %v2947_v19, %v7182_v6 }
 0x219   : > { %v3137_v13 = vsel %vm6643_vm11, %v3135_v3, %v3136_v57 }
 0x21a   : > { %3030 = vst.msk [vmem:[#allocation3 + $0x49] sm:$0xff] %vm8352_vm6, %v2944_v39  ;;  %v2976_v5 = vrot.slane %v2948_v22, %v7182_v6  ;;  %v3000_v45 = vrot.slane %v2559_v54, %v7182_v6  ;;  %v3163_v10 = vsel %vm7438_vm7, %v3137_v13, %v3162_v9 }
 0x21b   : > { %3164 = vst [vmem:[#allocation4 + $0x10] sm:$0x7] %v3163_v10  ;;  %v3043_v25 = vld [vmem:[#allocation3 + $0x40] ss:$2 sm:$0x1] }
 0x21c   : > { %v2978_v20 = vcombine.low %v2969_v53, %v2976_v5  ;;  %v3007_v14 = vrot.slane %v3000_v45, %v7182_v6  ;;  %v3041_v50 = vld [vmem:[#allocation3 + $0x30] ss:$2 sm:$0xff]  ;;  %v3057_v56 = vld [vmem:[#allocation3 + $0x31] ss:$2 sm:$0xff]  ;;  %v3069_v27 = vmax.f32 %v3043_v25, %v3059_v1 }
 0x21d   : > { %v3310_v24 = vld [vmem:[#allocation4 + $0xc] sm:$0xe]  ;;  %v3068_v59 = vmax.f32 %v3041_v50, %v3057_v56 }
 0x21e   : > { %v2992_v36 = vrot.slane %v2978_v20, %v7182_v6  ;;  %3032 = vst.msk [vmem:[#allocation3 + $0x59] sm:$0x1] %vm8350_vm10, %v3007_v14  ;;  %v3380_v37 = vld [vmem:[#allocation4 + $0xc] sm:$0xe]  ;;  %v6130_v7 = vrot.slane %v3310_v24, 9  ;;  %v6228_v52 = vpack.c.bf16 %v3069_v27, %v3069_v27 }
 0x21f   : > { %v3406_v26 = vshrl.u32 %v3380_v37, 16  ;;  %v3409_v48 = vshll.u32 %v3380_v37, 16  ;;  %v3568_v32 = vld [vmem:[#allocation4 + $0xc] sm:$0xc]  ;;  %v6227_v39 = vpack.c.bf16 %v3068_v59, %v3068_v59 }
 0x220   : > { %v2993_v60 = vcombine.low %v2985_v47, %v2992_v36  ;;  %v3594_v62 = vshrl.u32 %v3568_v32, 16  ;;  %v3597_v35 = vshll.u32 %v3568_v32, 16  ;;  %v3498_v0 = vld [vmem:[#allocation4 + $0xc] sm:$0xc] }
 0x221   : > { %v3408_v30 = vrot.slane %v3406_v26, 5  ;;  %v3411_v55 = vrot.slane %v3409_v48, 6  ;;  %v6134_v41 = vrot.slane %v3498_v0, 10  ;;  %v3686_v3 = vld [vmem:[#allocation4 + $0xc] sm:$0x8] }
 0x222   : > { %3031 = vst.msk [vmem:[#allocation3 + $0x51] sm:$0xff] %vm8352_vm6, %v2993_v60  ;;  %v7584_v58 = vld [vmem:[#allocation4 + $0x10] sm:$0x3]  ;;  %v3596_v46 = vrot.slane %v3594_v62, 6  ;;  %v3599_v51 = vrot.slane %v3597_v35, 7  ;;  %v6138_v36 = vrot.slane %v3686_v3, 11 }
 0x223   : > { %v3381_v4 = vld [vmem:[#allocation4 + $0x10] sm:$0x7]  ;;  %v3331_v21 = vrot.slane %v7584_v58, 5  ;;  %v3412_v23 = vor.u32 %v3411_v55, %v3408_v30  ;;  %v3757_v10 = vld [vmem:[#allocation4 + $0xc] sm:$0x8]  ;;  %v3138_v60 = vrot.slane %v6227_v39, 6 }
 0x224   : > { %v7586_v8 = vld [vmem:[#allocation4 + $0x10] sm:$0x7]  ;;  %v3415_v34 = vshrl.u32 %v3381_v4, 16  ;;  %v3418_v49 = vshll.u32 %v3381_v4, 16  ;;  %v3600_v53 = vor.u32 %v3599_v51, %v3596_v46  ;;  %v3175_v20 = vld [vmem:[#allocation4 + $0xc] sm:$0xf] }
 0x225   : > { %v3569_v63 = vld [vmem:[#allocation4 + $0x10] sm:$0xf]  ;;  %v3332_v15 = vsel %vm6587_vm5, %v6130_v7, %v3331_v21  ;;  %v3519_v40 = vrot.slane %v7586_v8, 6  ;;  %v3413_v54 = vrot.slane %v3412_v23, 4  ;;  %3184 = vst.msk [vmem:[#allocation5 + $0x8] sm:$0xf] %vm8349_vm0, %v3175_v20 }
 0x226   : > { %v3603_v17 = vshrl.u32 %v3569_v63, 16  ;;  %v3417_v28 = vrot.slane %v3415_v34, 5  ;;  %v3420_v44 = vrot.slane %v3418_v49, 6  ;;  %v7594_v61 = vld [vmem:[#allocation4 + $0x10] sm:$0xf]  ;;  %3348 = vrot.lane.b32.xlu1 %v3332_v15, %s6400_s11  ;;  %v3606_v19 = vshll.u32 %v3569_v63, 16 }
 0x227   : > { %v3758_v9 = vld [vmem:[#allocation4 + $0x10] sm:$0xf]  ;;  %v3707_v45 = vrot.slane %v7594_v61, 7  ;;  %v3520_v47 = vsel %vm6643_vm11, %v6134_v41, %v3519_v40  ;;  %v3063_v37 = vld [vmem:[#allocation3 + $0x59] ss:$2 sm:$0x1] }
 0x228   : > { %v3605_v57 = vrot.slane %v3603_v17, 6  ;;  %v7597_v22 = vor.u32 %v3420_v44, %v3417_v28  ;;  %v3790_v13 = vshrl.u32 %v3758_v9, 16  ;;  %v3608_v5 = vrot.slane %v3606_v19, 7  ;;  %v3759_v48 = vld [vmem:[#allocation4 + $0x14] sm:$0x1]  ;;  %v6373_v4 = vld [vmem:[%s8329_s3 + $0x38] sm:$0xff]  }
 0x229   : > { %v3047_v14 = vld [vmem:[#allocation3 + $0x58] ss:$2 sm:$0x1]  ;;  %v3793_v26 = vshll.u32 %v3758_v9, 16  ;;  %v3192_v32 = vld [vmem:[#allocation4 + $0xc] sm:$0xf]  ;;  %v3708_v30 = vsel %vm6741_vm8, %v6138_v36, %v3707_v45  ;;  %6294 = vmatpush3.bf16.msra.mxu1 %v6373_v4 }
 0x22a   : > { %v3422_v25 = vsel %vm6607_vm9, %v3413_v54, %v7597_v22  ;;  %v3792_v24 = vrot.slane %v3790_v13, 7  ;;  %3536 = vrot.lane.b32.xlu1 %v3520_v47, %s6408_s27  ;;  %v7610_v50 = vor.u32 %v3608_v5, %v3605_v57  ;;  %v3601_v56 = vrot.slane %v3600_v53, 4  ;;  %v3176_v62 = vld [vmem:[#allocation4 + $0x10] sm:$0x1]  ;;  %v3061_v27 = vld [vmem:[#allocation3 + $0x49] ss:$2 sm:$0xff]  ;;  %6295 = vmatprep.subr.bf16.mxu1 %v6404_v12 }
 0x22b   : > { %3466 = vrot.lane.b32.xlu0 %v3422_v25, %s6402_s13  ;;  %v3785_v1 = vshrl.u32 %v3757_v10, 16  ;;  %v3140_v35 = vrot.slane %v6228_v52, 6  ;;  %v3071_v7 = vmax.f32 %v3047_v14, %v3063_v37  ;;  %v3045_v0 = vld [vmem:[#allocation3 + $0x48] ss:$2 sm:$0xff]  ;;  %3185 = vst.msk [vmem:[#allocation5 + $0xc] sm:$0x1] %vm8350_vm10, %v3176_v62 }
 0x22c   : > { %v3795_v55 = vor.u32 %v3793_v26, %v3792_v24  ;;  %v3610_v59 = vsel %vm8425_vm13, %v3601_v56, %v7610_v50  ;;  %v3139_v23 = vrot.slane %v3138_v60, 4  ;;  %3165 = vst.msk [vmem:[#allocation4 + $0x18] sm:$0xc] %vm8351_vm1, %v3138_v60  ;;  %v3166_v34 = vld [vmem:[#allocation4 + $0x1c] sm:$0x7]  ;;  %v3218_v49 = vshrl.u32 %v3192_v32, 16 }
 0x22d   : > { %v3221_v63 = vshll.u32 %v3192_v32, 16  ;;  %v6142_v41 = vrot.slane %v3785_v1, 11  ;;  %v3799_v46 = vshll.u32 %v3759_v48, 16  ;;  %v3070_v17 = vmax.f32 %v3045_v0, %v3061_v27  ;;  %v3193_v3 = vld [vmem:[#allocation4 + $0x10] sm:$0x3]  ;;  %v6374_v47 = vld [vmem:[%s8329_s3 + $0x30] sm:$0xff]  }
 0x22e   : > { %3724 = vrot.lane.b32.xlu1 %v3708_v30, %s6409_s28  ;;  %v3141_v51 = vsel %vm6643_vm11, %v3139_v23, %v3140_v35  ;;  %v6230_v15 = vpack.c.bf16 %v3071_v7, %v3071_v7  ;;  %v3333_v28 = vrot.slane %v3331_v21, 4  ;;  %v3797_v44 = vrot.slane %v3792_v24, 4  ;;  %v3170_v14 = vld [vmem:[#allocation4 + $0x28] sm:$0x7]  ;;  %6296 = vmatpush3.bf16.msra.mxu1 %v6374_v47  ;;  %v6376_v0 = vld [vmem:[%s8329_s3 + $0x20] sm:$0xff]  }
 0x22f   : > { %3654 = vrot.lane.b32.xlu0 %v3610_v59, %s6410_s29  ;;  %v3167_v57 = vsel %vm7438_vm7, %v3141_v51, %v3166_v34  ;;  %v3796_v19 = vsel %vm8426_vm12, %v6142_v41, %v3795_v55  ;;  %v3220_v9 = vrot.slane %v3218_v49, 4  ;;  %v3223_v39 = vrot.slane %v3221_v63, 5  ;;  %6297 = vmatprep.subr.bf16.mxu1 %v6404_v12  ;;  %v3762_v41 = vld [vmem:[#allocation4 + $0x20] sm:$0x1] }
 0x230   : > { %3168 = vst [vmem:[#allocation4 + $0x1c] sm:$0x7] %v3167_v57  ;;  %v6229_v54 = vpack.c.bf16 %v3070_v17, %v3070_v17  ;;  %v3521_v21 = vrot.slane %v3519_v40, 4  ;;  %v3227_v53 = vshll.u32 %v3193_v3, 16  ;;  %v3231_v13 = vshrl.u32 %v3193_v3, 16 }
 0x231   : > { %v3144_v52 = vrot.slane %v6230_v15, 6  ;;  %v3801_v5 = vsel %vm8426_vm12, %v3797_v44, %v3799_v46  ;;  %v3224_v10 = vor.u32 %v3223_v39, %v3220_v9  ;;  %v3709_v8 = vrot.slane %v3707_v45, 4 }
 0x232   : > { %3350 = vrot.lane.b32.xlu1 %v3333_v28, %s6400_s11  ;;  %v3142_v58 = vrot.slane %v6229_v54, 6  ;;  %v3229_v24 = vrot.slane %v3227_v53, 5  ;;  %v3233_v26 = vrot.slane %v3231_v13, 4  ;;  %6298 = vmatpush3.bf16.msra.mxu1 %v6375_v42  ;;  %v3423_v28 = vrot.slane %v7597_v22, 4  ;;  %v6377_v54 = vld [vmem:[%s8329_s3 + $0x18] sm:$0xff]   ;;  %v6379_v42 = vld [vmem:[%s8329_s3 + $0x8] sm:$0xff]  }
 0x233   : > { %3842 = vrot.lane.b32.xlu0 %v3796_v19, %s6411_s30  ;;  %v3312_v25 = vld [vmem:[#allocation4 + $0x18] sm:$0xe]  ;;  %v3225_v1 = vrot.slane %v3224_v10, 4  ;;  %6299 = vmatprep.subr.bf16.mxu1 %v6404_v12  ;;  %v3817_v57 = vshll.u32 %v3762_v41, 16  ;;  %v3611_v22 = vrot.slane %v7610_v50, 4  ;;  %v6378_v10 = vld [vmem:[%s8329_s3 + $0x10] sm:$0xff]  }
 0x234   : > { %v3143_v20 = vrot.slane %v3142_v58, 4  ;;  %3169 = vst.msk [vmem:[#allocation4 + $0x24] sm:$0xc] %vm8351_vm1, %v3142_v58  ;;  %v6131_v32 = vrot.slane %v3312_v25, 9  ;;  %v3500_v61 = vld [vmem:[#allocation4 + $0x18] sm:$0xc]  ;;  %v3234_v62 = vor.u32 %v3233_v26, %v3229_v24 }
 0x235   : > { %v3230_v7 = vsel %vm6573_vm2, %v3225_v1, %v3229_v24  ;;  %v6135_v30 = vrot.slane %v3500_v61, 10  ;;  %v3688_v27 = vld [vmem:[#allocation4 + $0x18] sm:$0x8]  ;;  %vm8356_vm1 = vcmask 385280   ;;  %vm8357_vm6 = vcmask 913152  }
 0x236   : > { %3538 = vrot.lane.b32.xlu1 %v3521_v21, %s6408_s27  ;;  %v3145_v40 = vsel %vm6643_vm11, %v3143_v20, %v3144_v52  ;;  %v3235_v23 = vrot.slane %v3234_v62, 4  ;;  %v3194_v49 = vld [vmem:[#allocation4 + $0x18] sm:$0xf]  ;;  %v6139_v63 = vrot.slane %v3688_v27, 11  ;;  %6300 = vmatpush3.bf16.msra.mxu1 %v6376_v0 }
 0x237   : > { %3844 = vrot.lane.b32.xlu0 %v3801_v5, %s6411_s30  ;;  %v3313_v36 = vld [vmem:[#allocation4 + $0x1c] sm:$0x3]  ;;  %v3171_v48 = vsel %vm7438_vm7, %v3145_v40, %v3170_v14  ;;  %v3382_v46 = vld [vmem:[#allocation4 + $0x18] sm:$0xe]  ;;  %6301 = vmatprep.subr.bf16.mxu1 %v6404_v12  ;;  %v3237_v17 = vshrl.u32 %v3194_v49, 16  ;;  %v3240_v15 = vshll.u32 %v3194_v49, 16 }
 0x238   : > { %v7651_v37 = vld [vmem:[#allocation4 + $0x1c] sm:$0x7]  ;;  %v3336_v56 = vrot.slane %v3313_v36, 5  ;;  %3172 = vst [vmem:[#allocation4 + $0x28] sm:$0x7] %v3171_v48  ;;  %v3425_v19 = vshrl.u32 %v3382_v46, 16 }
 0x239   : > { %v3524_v60 = vrot.slane %v7651_v37, 6  ;;  %v7664_v35 = vld [vmem:[#allocation4 + $0x1c] sm:$0xf]  ;;  %v3570_v39 = vld [vmem:[#allocation4 + $0x18] sm:$0xc]  ;;  %v3239_v58 = vrot.slane %v3237_v17, 4 }
 0x23a   : > { %3726 = vrot.lane.b32.xlu1 %v3709_v8, %s6409_s28  ;;  %v3337_v45 = vsel %vm6587_vm5, %v6131_v32, %v3336_v56  ;;  %v7668_v55 = vld [vmem:[#allocation4 + $0x1c] sm:$0xf]  ;;  %v3712_v59 = vrot.slane %v7664_v35, 7  ;;  %v3338_v3 = vrot.slane %v3336_v56, 4  ;;  %v3242_v21 = vrot.slane %v3240_v15, 5  ;;  %6302 = vmatpush3.bf16.msra.mxu1 %v6377_v54 }
 0x23b   : > { %3352 = vrot.lane.b32.xlu0 %v3337_v45, %s6400_s11  ;;  %v3525_v4 = vsel %vm6643_vm11, %v6135_v30, %v3524_v60  ;;  %v3808_v34 = vshrl.u32 %v7668_v55, 16  ;;  %v7691_v9 = vld [vmem:[#allocation4 + $0x1c] sm:$0x3]  ;;  %v3177_v13 = vld [vmem:[#allocation4 + $0x18] sm:$0xf]  ;;  %v3428_v5 = vshll.u32 %v3382_v46, 16  ;;  %6303 = vmatprep.subr.bf16.mxu1 %v6404_v12 }
 0x23c   : > { %v3713_v51 = vsel %vm6741_vm8, %v6139_v63, %v3712_v59  ;;  %v3383_v53 = vld [vmem:[#allocation4 + $0x1c] sm:$0x7]  ;;  %3186 = vst.msk [vmem:[#allocation5 + $0x10] sm:$0xf] %vm8349_vm0, %v3177_v13  ;;  %v3179_v20 = vld [vmem:[#allocation4 + $0x24] sm:$0xf]  ;;  %v3243_v26 = vor.u32 %v3242_v21, %v3239_v58 }
 0x23d   : > { %v7688_v44 = vrot.slane %v3808_v34, 7  ;;  %v3571_v14 = vld [vmem:[#allocation4 + $0x1c] sm:$0xf]  ;;  %v3196_v25 = vld [vmem:[#allocation4 + $0x24] sm:$0xf]  ;;  %v3526_v50 = vrot.slane %v3524_v60, 4 }
 0x23e   : > { %3278 = vrot.lane.b32.xlu1 %v3230_v7, %s6398_s9  ;;  %3188 = vst.msk [vmem:[#allocation5 + $0x18] sm:$0xf] %vm8349_vm0, %v3179_v20  ;;  %v3178_v8 = vld [vmem:[#allocation4 + $0x1c] sm:$0x1]  ;;  %v3434_v36 = vshrl.u32 %v3383_v53, 16  ;;  %v3437_v24 = vshll.u32 %v3383_v53, 16  ;;  %6304 = vmatpush3.bf16.msra.mxu1 %v6378_v10 }
 0x23f   : > { %3540 = vrot.lane.b32.xlu0 %v3525_v4, %s6408_s27  ;;  %v3815_v52 = vrot.slane %v7688_v44, 4  ;;  %v3180_v40 = vld [vmem:[#allocation4 + $0x28] sm:$0x1]  ;;  %3187 = vst.msk [vmem:[#allocation5 + $0x14] sm:$0x1] %vm8350_vm10, %v3178_v8  ;;  %v3246_v48 = vshll.u32 %v7691_v9, 16  ;;  %6305 = vmatprep.subr.bf16.mxu1 %v6404_v12 }
 0x240   : > { %v7706_v47 = vld [vmem:[#allocation4 + $0x28] sm:$0x3]  ;;  %3189 = vst.msk [vmem:[#allocation5 + $0x1c] sm:$0x1] %vm8350_vm10, %v3180_v40  ;;  %v3314_v37 = vld [vmem:[#allocation4 + $0x24] sm:$0xe] }
 0x241   : > { %v3427_v32 = vrot.slane %v3425_v19, 5  ;;  %v3613_v56 = vshrl.u32 %v3570_v39, 16  ;;  %v3430_v1 = vrot.slane %v3428_v5, 6  ;;  %v3616_v61 = vshll.u32 %v3570_v39, 16  ;;  %v3502_v0 = vld [vmem:[#allocation4 + $0x24] sm:$0xc] }
 0x242   : > { %3280 = vrot.lane.b32.xlu1 %v3235_v23, %s6398_s9  ;;  %v3256_v45 = vshrl.u32 %v3196_v25, 16  ;;  %v3259_v60 = vshll.u32 %v3196_v25, 16  ;;  %v3819_v62 = vsel %vm8426_vm12, %v3815_v52, %v3817_v57  ;;  %v3714_v7 = vrot.slane %v3712_v59, 4  ;;  %v7720_v27 = vld [vmem:[#allocation4 + $0x28] sm:$0x7]  ;;  %6306 = vmatpush3.bf16.msra.mxu1 %v6379_v42 }
 0x243   : > { %3728 = vrot.lane.b32.xlu0 %v3713_v51, %s6409_s28  ;;  %v3341_v30 = vrot.slane %v7706_v47, 5  ;;  %v3436_v4 = vrot.slane %v3434_v36, 5  ;;  %v3439_v23 = vrot.slane %v3437_v24, 6  ;;  %v7724_v34 = vld [vmem:[#allocation4 + $0x28] sm:$0xf]  ;;  %v3622_v49 = vshrl.u32 %v3571_v14, 16  ;;  %6307 = vmatprep.subr.bf16.mxu1 %v6404_v12 }
 0x244   : > { %v3625_v63 = vshll.u32 %v3571_v14, 16  ;;  %v6132_v41 = vrot.slane %v3314_v37, 9  ;;  %v3244_v46 = vrot.slane %v3243_v26, 4  ;;  %v7726_v51 = vrot.slane %v3246_v48, 5  ;;  %v3690_v35 = vld [vmem:[#allocation4 + $0x24] sm:$0x8] }
 0x245   : > { %v3615_v59 = vrot.slane %v3613_v56, 6  ;;  %v3431_v17 = vor.u32 %v3430_v1, %v3427_v32  ;;  %v3618_v15 = vrot.slane %v3616_v61, 7  ;;  %v3261_v57 = vrot.slane %v3259_v60, 5  ;;  %v3384_v19 = vld [vmem:[#allocation4 + $0x24] sm:$0xe] }
 0x246   : > { %3468 = vrot.lane.b32.xlu1 %v3423_v28, %s6402_s13  ;;  %v3258_v28 = vrot.slane %v3256_v45, 4  ;;  %v3342_v39 = vsel %vm6587_vm5, %v6132_v41, %v3341_v30  ;;  %v3529_v54 = vrot.slane %v7720_v27, 6  ;;  %v3717_v58 = vrot.slane %v7724_v34, 7  ;;  %v7738_v21 = vld [vmem:[#allocation4 + $0x28] sm:$0x3] }
 0x247   : > { %3354 = vrot.lane.b32.xlu0 %v3338_v3, %s6400_s11  ;;  %v6380_v3 = vld [vmem:[%s8329_s3] sm:$0xff]   ;;  %v6136_v53 = vrot.slane %v3502_v0, 10  ;;  %v7742_v13 = vor.u32 %v3439_v23, %v3436_v4  ;;  %v3627_v52 = vrot.slane %v3625_v63, 7  ;;  %v3385_v5 = vld [vmem:[#allocation4 + $0x28] sm:$0x7]  ;;  %v3249_v10 = vsel %vm6573_vm2, %v3244_v46, %v7726_v51 }
 0x248   : > { %v6140_v20 = vrot.slane %v3690_v35, 11  ;;  %v3760_v14 = vld [vmem:[#allocation4 + $0x18] sm:$0x8]  ;;  %v3444_v25 = vshrl.u32 %v3384_v19, 16  ;;  %v3447_v8 = vshll.u32 %v3384_v19, 16  ;;  %v3432_v40 = vrot.slane %v3431_v17, 4  ;;  %6308 = vmatpush3.bf16.msra.mxu1 %v6380_v3 }
 0x249   : > { %v3262_v36 = vor.u32 %v3261_v57, %v3258_v28  ;;  %v3265_v24 = vshll.u32 %v7738_v21, 16  ;;  %v3572_v37 = vld [vmem:[#allocation4 + $0x24] sm:$0xc]  ;;  %v3530_v26 = vsel %vm6643_vm11, %v6136_v53, %v3529_v54  ;;  %v3453_v32 = vshrl.u32 %v3385_v5, 16  ;;  %v3573_v42 = vld [vmem:[#allocation4 + $0x28] sm:$0xf] }
 0x24a   : > { %3656 = vrot.lane.b32.xlu1 %v3611_v22, %s6410_s29  ;;  %v3624_v22 = vrot.slane %v3622_v49, 6  ;;  %v3718_v48 = vsel %vm6741_vm8, %v6140_v20, %v3717_v58  ;;  %v3456_v56 = vshll.u32 %v3385_v5, 16  ;;  %v3441_v1 = vsel %vm6607_vm9, %v3432_v40, %v7742_v13 }
 0x24b   : > { %3542 = vrot.lane.b32.xlu0 %v3526_v50, %s6408_s27  ;;  %v3619_v50 = vor.u32 %v3618_v15, %v3615_v59  ;;  %v3803_v45 = vshrl.u32 %v3760_v14, 16  ;;  %v3250_v60 = vshrl.u32 %v7691_v9, 16  ;;  %v3449_v0 = vrot.slane %v3447_v8, 6 }
 0x24c   : > { %v7761_v61 = vor.u32 %v3627_v52, %v3624_v22  ;;  %v3632_v4 = vshrl.u32 %v3572_v37, 16  ;;  %v3635_v23 = vshll.u32 %v3572_v37, 16  ;;  %v3263_v63 = vrot.slane %v3262_v36, 4 }
 0x24d   : > { %v3620_v49 = vrot.slane %v3619_v50, 4  ;;  %v3267_v41 = vrot.slane %v3265_v24, 5  ;;  %v3811_v46 = vshll.u32 %v7668_v55, 16  ;;  %v3455_v59 = vrot.slane %v3453_v32, 5  ;;  %v3764_v24 = vld [vmem:[#allocation4 + $0x28] sm:$0xf] }
 0x24e   : > { %3848 = vrot.lane.b32.xlu1 %v3819_v62, %s6411_s30  ;;  %v3458_v17 = vrot.slane %v3456_v56, 6  ;;  %v3641_v15 = vshrl.u32 %v3573_v42, 16  ;;  %v3644_v28 = vshll.u32 %v3573_v42, 16  ;;  %v3252_v57 = vrot.slane %v3250_v60, 4 }
 0x24f   : > { %3730 = vrot.lane.b32.xlu0 %v3714_v7, %s6409_s28  ;;  %v3446_v7 = vrot.slane %v3444_v25, 5  ;;  %v3813_v9 = vor.u32 %v3811_v46, %v7688_v44  ;;  %v3629_v19 = vsel %vm8425_vm13, %v3620_v49, %v7761_v61  ;;  %v3634_v53 = vrot.slane %v3632_v4, 6 }
 0x250   : > { %v3637_v22 = vrot.slane %v3635_v23, 7  ;;  %v6143_v55 = vrot.slane %v3803_v45, 11  ;;  %v3269_v5 = vshrl.u32 %v7738_v21, 16  ;;  %v7779_v44 = vor.u32 %v3458_v17, %v3455_v59 }
 0x251   : > { %v3450_v3 = vor.u32 %v3449_v0, %v3446_v7  ;;  %v3643_v20 = vrot.slane %v3641_v15, 6  ;;  %v3646_v14 = vrot.slane %v3644_v28, 7  ;;  %v3253_v25 = vor.u32 %v3252_v57, %v7726_v51  ;;  %v3763_v7 = vld [vmem:[#allocation4 + $0x24] sm:$0x8] }
 0x252   : > { %3356 = vrot.lane.b32.xlu1 %v3342_v39, %s6400_s11  ;;  %v3814_v8 = vsel %vm8426_vm12, %v6143_v55, %v3813_v9  ;;  %v3638_v50 = vor.u32 %v3637_v22, %v3634_v53  ;;  %v3271_v16 = vrot.slane %v3269_v5, 4  ;;  %v3826_v56 = vshrl.u32 %v3764_v24, 16 }
 0x253   : > { %3282 = vrot.lane.b32.xlu0 %v3249_v10, %s6398_s9  ;;  %v3268_v10 = vsel %vm6573_vm2, %v3263_v63, %v3267_v41  ;;  %v3451_v40 = vrot.slane %v3450_v3, 4  ;;  %vm8365_vm2 = vcmask 257152   ;;  %v3254_v51 = vrot.slane %v3253_v25, 4 }
 0x254   : > { %vm8354_vm7 = vcmask 650752   ;;  %vm8358_vm0 = vcmask 254080   ;;  %v3442_v42 = vrot.slane %v7742_v13, 4  ;;  %vm3674_vm10 = vcmask 781952  }
 0x255   : > { %v3460_v37 = vsel %vm6607_vm9, %v3451_v40, %v7779_v44  ;;  %v3828_v0 = vrot.slane %v3826_v56, 7  ;;  %v3821_v49 = vshrl.u32 %v3763_v7, 16  ;;  %v3829_v63 = vshll.u32 %v3764_v24, 16 }
 0x256   : > { %3544 = vrot.lane.b32.xlu1 %v3530_v26, %s6408_s27  ;;  %v7791_v26 = vor.u32 %v3646_v14, %v3643_v20  ;;  %v3630_v13 = vrot.slane %v7761_v61, 4  ;;  %v3461_v59 = vrot.slane %v7779_v44, 4  ;;  %v3765_v61 = vld [vmem:[#allocation4 + $0x2c] sm:$0x1]  ;;  %v3531_v22 = vrot.slane %v3529_v54, 4 }
 0x257   : > { %v3345_v62 = vpop.permute.xlu0 %3344  ;;  %3470 = vrot.lane.b32.xlu0 %v3441_v1, %s6402_s13  ;;  %v3272_v1 = vor.u32 %v3271_v16, %v3267_v41  ;;  %v3831_v41 = vor.u32 %v3829_v63, %v3828_v0  ;;  %v6144_v15 = vrot.slane %v3821_v49, 11  ;;  %v3835_v3 = vshll.u32 %v3765_v61, 16 }
 0x258   : > { %v7766_v35 = vpop.permute.xlu1 %3346  ;;  %v3649_v9 = vrot.slane %v7791_v26, 4  ;;  %v3719_v55 = vrot.slane %v3717_v58, 4 }
 0x259   : > { %v3273_v23 = vrot.slane %v3272_v1, 4 }
 0x25a   : > { %3732 = vrot.lane.b32.xlu1 %v3718_v48, %s6409_s28  ;;  %v3639_v48 = vrot.slane %v3638_v50, 4 }
 0x25b   : > { %v3533_v39 = vpop.permute.xlu0 %3532  ;;  %3658 = vrot.lane.b32.xlu0 %v3629_v19, %s6410_s29  ;;  %v3833_v19 = vrot.slane %v3828_v0, 4 }
 0x25c   : > { %v7774_v52 = vpop.permute.xlu1 %3534  ;;  %v3648_v60 = vsel %vm8425_vm13, %v3639_v48, %v7791_v26 }
 0x25d   : > { %v3837_v53 = vsel %vm8426_vm12, %v3833_v19, %v3835_v3 }
 0x25e   : > { %3286 = vrot.lane.b32.xlu1 %v3268_v10, %s6398_s9 }
 0x25f   : > { %v3721_v36 = vpop.permute.xlu0 %3720  ;;  %3846 = vrot.lane.b32.xlu0 %v3814_v8, %s6411_s30 }
 0x260   : > { %v7786_v21 = vpop.permute.xlu1 %3722 }
 0x262   : > { %3474 = vrot.lane.b32.xlu1 %v3460_v37, %s6402_s13 }
 0x263   : > { %v3275_v32 = vpop.permute.xlu0 %3274  ;;  %3284 = vrot.lane.b32.xlu0 %v3254_v51, %s6398_s9 }
 0x264   : > { %3299 = vst.msk [vmem:[#allocation5] sm:$0xf] %vm8365_vm2, %v3275_v32  ;;  %v3463_v45 = vpop.permute.xlu1 %3462 }
 0x265   : > { %3369 = vst.msk [vmem:[#allocation5] sm:$0xf] %vm8364_vm14, %v3345_v62 }
 0x266   : > { %3662 = vrot.lane.b32.xlu1 %v3648_v60, %s6410_s29  ;;  %3487 = vst.msk [vmem:[#allocation5] sm:$0xf] %vm8355_vm15, %v3463_v45  ;;  %vm8362_vm15 = vcmask 647680  }
 0x267   : > { %v3277_v4 = vpop.permute.xlu0 %3276  ;;  %3557 = vst.msk [vmem:[#allocation5] sm:$0xf] %vm8354_vm7, %v3533_v39  ;;  %3472 = vrot.lane.b32.xlu0 %v3442_v42, %s6402_s13  ;;  %vm3862_vm7 = vcmask 1044352   ;;  %v3343_v39 = vrot.slane %v3341_v30, 4 }
 0x268   : > { %3301 = vst.msk [vmem:[#allocation5 + $0x4] sm:$0x1] %vm8358_vm0, %v3277_v4  ;;  %v3651_v62 = vpop.permute.xlu1 %3650  ;;  %vm8359_vm0 = vcmask 1041280  }
 0x269   : > { %3675 = vst.msk [vmem:[#allocation5] sm:$0xf] %vm3674_vm10, %v3651_v62 }
 0x26a   : > { %3371 = vst.msk [vmem:[#allocation5 + $0x4] sm:$0x1] %vm8356_vm1, %v7766_v35  ;;  %3288 = vrot.lane.b32.xlu1 %v3273_v23, %s6398_s9  ;;  %vm8361_vm1 = vcmask 778880   ;;  %v3832_v35 = vsel %vm8426_vm12, %v6144_v15, %v3831_v41 }
 0x26b   : > { %3745 = vst.msk [vmem:[#allocation5] sm:$0xf] %vm8357_vm6, %v3721_v36  ;;  %v3465_v46 = vpop.permute.xlu0 %3464  ;;  %3660 = vrot.lane.b32.xlu0 %v3630_v13, %s6410_s29  ;;  %vm8360_vm6 = vcmask 910080  }
 0x26c   : > { %3489 = vst.msk [vmem:[#allocation5 + $0x4] sm:$0x1] %vm8363_vm4, %v3465_v46  ;;  %v3839_v17 = vpop.permute.xlu1 %3838  ;;  %vm8431_vm4 = vcmask 385280  }
 0x26d   : > { %3863 = vst.msk [vmem:[#allocation5] sm:$0xf] %vm3862_vm7, %v3839_v17 }
 0x26e   : > { %3559 = vst.msk [vmem:[#allocation5 + $0x4] sm:$0x1] %vm8362_vm15, %v7774_v52  ;;  %3476 = vrot.lane.b32.xlu1 %v3461_v59, %s6402_s13  ;;  %vm8430_vm15 = vcmask 913152  }
 0x26f   : > { %v3653_v28 = vpop.permute.xlu0 %3652  ;;  %3850 = vrot.lane.b32.xlu0 %v3832_v35, %s6411_s30 }
 0x270   : > { %3677 = vst.msk [vmem:[#allocation5 + $0x4] sm:$0x1] %vm8361_vm1, %v3653_v28  ;;  %v3841_v57 = vpop.permute.xlu1 %3840  ;;  %vm8429_vm1 = vcmask 254080  }
 0x271   : > { %3747 = vst.msk [vmem:[#allocation5 + $0x4] sm:$0x1] %vm8360_vm6, %v7786_v21  ;;  %vm8428_vm6 = vcmask 650752  }
 0x272   : > { %3664 = vrot.lane.b32.xlu1 %v3649_v9, %s6410_s29  ;;  %3865 = vst.msk [vmem:[#allocation5 + $0x4] sm:$0x1] %vm8359_vm0, %v3841_v57  ;;  %vm8427_vm0 = vcmask 519552  }
 0x273   : > { %3358 = vrot.lane.b32.xlu0 %v3343_v39, %s6400_s11 }
 0x274   : > { %v6145_v54 = vld.sshfl [vmem:[#allocation5] sm:$0x33 pattern:$0x75316420] }
 0x275   : > { %v3895_v50 = vcombine.high %v6145_v54, %v6145_v54  ;;  %v3902_v37 = vrot.slane %v6145_v54, %v7182_v6 }
 0x276   : > { %3852 = vrot.lane.b32.xlu1 %v3837_v53, %s6411_s30 }
 0x277   : > { %3546 = vrot.lane.b32.xlu0 %v3531_v22, %s6408_s27  ;;  %v3909_v16 = vrot.slane %v3895_v50, %v7182_v6 }
 0x279   : > { %v6146_v51 = vld.sshfl [vmem:[#allocation5 + $0x4] sm:$0x1 pattern:$0x75316420]  ;;  %v4063_v48 = vcombine.low %v3902_v37, %v3909_v16  ;;  %v6154_v32 = vcombine.high %v3902_v37, %v3909_v16 }
 0x27a   : > { %v3925_v45 = vrot.slane %v6146_v51, %v7182_v6 }
 0x27b   : > { %3734 = vrot.lane.b32.xlu0 %v3719_v55, %s6409_s28  ;;  %v4073_v0 = vrot.slane %v4063_v48, %v7182_v6  ;;  %v4080_v49 = vrot.slane %v6154_v32, %v7182_v6 }
 0x27d   : > { %v4095_v17 = vcombine.low %v4073_v0, %v4080_v49 }
 0x27f   : > { %v4103_v28 = vrot.slane %v4095_v17, %v7182_v6 }
 0x298   : > { %v3349_v47 = vpop.permute.xlu1 %3348 }
 0x29c   : > { %v3537_v52 = vpop.permute.xlu1 %3536 }
 0x29d   : > { %v3467_v30 = vpop.permute.xlu0 %3466 }
 0x2a0   : > { %v3725_v10 = vpop.permute.xlu1 %3724 }
 0x2a1   : > { %v3655_v5 = vpop.permute.xlu0 %3654 }
 0x2a4   : > { %v3351_v20 = vpop.permute.xlu1 %3350 }
 0x2a5   : > { %v3843_v44 = vpop.permute.xlu0 %3842 }
 0x2a8   : > { %v3539_v14 = vpop.permute.xlu1 %3538 }
 0x2a9   : > { %v3845_v25 = vpop.permute.xlu0 %3844 }
 0x2ac   : > { %v3727_v8 = vpop.permute.xlu1 %3726 }
 0x2ad   : > { %v3353_v40 = vpop.permute.xlu0 %3352 }
 0x2b0   : > { %v3279_v27 = vpop.permute.xlu1 %3278 }
 0x2b1   : > { %3302 = vst.msk [vmem:[#allocation5 + $0x8] sm:$0xf] %vm8365_vm2, %v3279_v27  ;;  %v3541_v34 = vpop.permute.xlu0 %3540 }
 0x2b2   : > { %3372 = vst.msk [vmem:[#allocation5 + $0x8] sm:$0xf] %vm8364_vm14, %v3349_v47  ;;  %vm8432_vm14 = vcmask 516480  }
 0x2b3   : > { %3490 = vst.msk [vmem:[#allocation5 + $0x8] sm:$0xf] %vm8427_vm0, %v3467_v30  ;;  %vm8433_vm0 = vcmask 647680  }
 0x2b4   : > { %3560 = vst.msk [vmem:[#allocation5 + $0x8] sm:$0xf] %vm8428_vm6, %v3537_v52  ;;  %v3281_v58 = vpop.permute.xlu1 %3280  ;;  %vm8436_vm6 = vcmask 1041280  }
 0x2b5   : > { %3678 = vst.msk [vmem:[#allocation5 + $0x8] sm:$0xf] %vm3674_vm10, %v3655_v5  ;;  %v3729_v36 = vpop.permute.xlu0 %3728 }
 0x2b6   : > { %3303 = vst.msk [vmem:[#allocation5 + $0xc] sm:$0x1] %vm8429_vm1, %v3281_v58  ;;  %vm8434_vm1 = vcmask 778880  }
 0x2b7   : > { %3748 = vst.msk [vmem:[#allocation5 + $0x8] sm:$0xf] %vm8430_vm15, %v3725_v10  ;;  %vm8438_vm15 = vcmask 519552  }
 0x2b8   : > { %3373 = vst.msk [vmem:[#allocation5 + $0xc] sm:$0x1] %vm8431_vm4, %v3351_v20  ;;  %v3469_v21 = vpop.permute.xlu1 %3468  ;;  %vm8435_vm4 = vcmask 910080  }
 0x2b9   : > { %3866 = vst.msk [vmem:[#allocation5 + $0x8] sm:$0xf] %vm3862_vm7, %v3843_v44  ;;  %v3355_v24 = vpop.permute.xlu0 %3354 }
 0x2ba   : > { %3491 = vst.msk [vmem:[#allocation5 + $0xc] sm:$0x1] %vm8432_vm14, %v3469_v21  ;;  %vm8437_vm14 = vcmask 388352  }
 0x2bb   : > { %3561 = vst.msk [vmem:[#allocation5 + $0xc] sm:$0x1] %vm8433_vm0, %v3539_v14  ;;  %vm8439_vm0 = vcmask 650752  }
 0x2bc   : > { %v3657_v26 = vpop.permute.xlu1 %3656 }
 0x2bd   : > { %3679 = vst.msk [vmem:[#allocation5 + $0xc] sm:$0x1] %vm8434_vm1, %v3657_v26  ;;  %v3543_v56 = vpop.permute.xlu0 %3542  ;;  %vm8440_vm1 = vcmask 913152  }
 0x2be   : > { %3749 = vst.msk [vmem:[#allocation5 + $0xc] sm:$0x1] %vm8435_vm4, %v3727_v8  ;;  %vm8441_vm4 = vmmov %vm8437_vm14 }
 0x2bf   : > { %3867 = vst.msk [vmem:[#allocation5 + $0xc] sm:$0x1] %vm8436_vm6, %v3845_v25  ;;  %vm8442_vm6 = vmmov %vm8438_vm15 }
 0x2c0   : > { %v6147_v1 = vld.sshfl [vmem:[#allocation5 + $0x8] sm:$0x33 pattern:$0x75316420]  ;;  %v3849_v7 = vpop.permute.xlu1 %3848 }
 0x2c1   : > { %v3933_v60 = vcombine.high %v6147_v1, %v6147_v1  ;;  %v3940_v42 = vrot.slane %v6147_v1, %v7182_v6  ;;  %v3731_v63 = vpop.permute.xlu0 %3730 }
 0x2c3   : > { %v7860_v4 = vrot.slane %v3933_v60, %v7182_v6  ;;  %v3948_v23 = vcombine.high %v3940_v42, %v3940_v42  ;;  %v4065_v62 = vcombine.low %v3925_v45, %v3940_v42 }
 0x2c4   : > { %v3357_v41 = vpop.permute.xlu1 %3356 }
 0x2c5   : > { %v4066_v13 = vcombine.low %v7860_v4, %v3948_v23  ;;  %v4087_v46 = vrot.slane %v4065_v62, %v7182_v6  ;;  %v3283_v15 = vpop.permute.xlu0 %3282  ;;  %v3949_v58 = vcombine.high %v7860_v4, %v7860_v4 }
 0x2c6   : > { %3304 = vst.msk [vmem:[#allocation5 + $0x10] sm:$0xf] %vm8365_vm2, %v3283_v15  ;;  %v6148_v25 = vld.sshfl [vmem:[#allocation5 + $0xc] sm:$0x1 pattern:$0x75316420] }
 0x2c7   : > { %v4094_v59 = vrot.slane %v4066_v13, %v7182_v6  ;;  %3374 = vst.msk [vmem:[#allocation5 + $0x10] sm:$0xf] %vm8437_vm14, %v3353_v40  ;;  %vm8443_vm14 = vmmov %vm8439_vm0  ;;  %v3963_v27 = vrot.slane %v6148_v25, %v7182_v6 }
 0x2c8   : > { %v3545_v35 = vpop.permute.xlu1 %3544 }
 0x2c9   : > { %v4096_v61 = vcombine.low %v4087_v46, %v4094_v59  ;;  %v3471_v57 = vpop.permute.xlu0 %3470  ;;  %v4112_v16 = vcombine.low %v3949_v58, %v3963_v27 }
 0x2ca   : > { %3492 = vst.msk [vmem:[#allocation5 + $0x10] sm:$0xf] %vm8438_vm15, %v3471_v57  ;;  %vm8444_vm15 = vcmask 254080  }
 0x2cb   : > { %v4110_v9 = vrot.slane %v4096_v61, %v7182_v6  ;;  %3562 = vst.msk [vmem:[#allocation5 + $0x10] sm:$0xf] %vm8439_vm0, %v3541_v34  ;;  %vm8445_vm0 = vcmask 385280   ;;  %v4122_v1 = vrot.slane %v4112_v16, %v7182_v6 }
 0x2cc   : > { %v3733_v3 = vpop.permute.xlu1 %3732 }
 0x2cd   : > { %v4111_v19 = vcombine.low %v4103_v28, %v4110_v9  ;;  %v3659_v39 = vpop.permute.xlu0 %3658 }
 0x2ce   : > { %3680 = vst.msk [vmem:[#allocation5 + $0x10] sm:$0xf] %vm3674_vm10, %v3659_v39  ;;  %v7925_v39 = vld [vmem:[%s8330_s4] ss:$0 sm:$0xff] }
 0x2cf   : > { %6310 = vmatmul.mubr.bf16.vlgmr.msra.gmra.mxu1 %v4111_v19  ;;  %3750 = vst.msk [vmem:[#allocation5 + $0x10] sm:$0xf] %vm8440_vm1, %v3729_v36 }
 0x2d0   : > { %6313 = vmatprep.mubr.msk.bf16.mxu1 %vm8401_vm3, %v6404_v12  ;;  %v3287_v53 = vpop.permute.xlu1 %3286 }
 0x2d1   : > { %3306 = vst.msk [vmem:[#allocation5 + $0x18] sm:$0xf] %vm8365_vm2, %v3287_v53  ;;  %v3847_v22 = vpop.permute.xlu0 %3846  ;;  %vm8447_vm2 = vcmask 647680  }
 0x2d2   : > { %3376 = vst.msk [vmem:[#allocation5 + $0x18] sm:$0xf] %vm8441_vm4, %v3357_v41  ;;  %vm8446_vm4 = vcmask 516480  }
 0x2d3   : > { %3868 = vst.msk [vmem:[#allocation5 + $0x10] sm:$0xf] %vm3862_vm7, %v3847_v22 }
 0x2d4   : > { %v3475_v55 = vpop.permute.xlu1 %3474 }
 0x2d5   : > { %3494 = vst.msk [vmem:[#allocation5 + $0x18] sm:$0xf] %vm8442_vm6, %v3475_v55  ;;  %v3285_v47 = vpop.permute.xlu0 %3284  ;;  %vm8448_vm6 = vmmov %vm8444_vm15 }
 0x2d6   : > { %3564 = vst.msk [vmem:[#allocation5 + $0x18] sm:$0xf] %vm8443_vm14, %v3545_v35  ;;  %vm8449_vm14 = vcmask 778880  }
 0x2d7   : > { %3305 = vst.msk [vmem:[#allocation5 + $0x14] sm:$0x1] %vm8444_vm15, %v3285_v47  ;;  %vm8450_vm15 = vcmask 910080  }
 0x2d8   : > { %3375 = vst.msk [vmem:[#allocation5 + $0x14] sm:$0x1] %vm8445_vm0, %v3355_v24  ;;  %v3663_v30 = vpop.permute.xlu1 %3662  ;;  %vm8451_vm0 = vcmask 1041280  }
 0x2d9   : > { %3682 = vst.msk [vmem:[#allocation5 + $0x18] sm:$0xf] %vm3674_vm10, %v3663_v30  ;;  %v3473_v52 = vpop.permute.xlu0 %3472 }
 0x2da   : > { %3752 = vst.msk [vmem:[#allocation5 + $0x18] sm:$0xf] %vm8440_vm1, %v3733_v3  ;;  %v6149_v10 = vld.sshfl [vmem:[#allocation5 + $0x10] sm:$0x33 pattern:$0x75316420]  ;;  %vm8453_vm1 = vmmov %vm8446_vm4 }
 0x2db   : > { %3493 = vst.msk [vmem:[#allocation5 + $0x14] sm:$0x1] %vm8446_vm4, %v3473_v52  ;;  %v3971_v20 = vcombine.high %v6149_v10, %v6149_v10  ;;  %v3978_v54 = vrot.slane %v6149_v10, %v7182_v6  ;;  %vm8454_vm4 = vcmask 647680  }
 0x2dc   : > { %3563 = vst.msk [vmem:[#allocation5 + $0x14] sm:$0x1] %vm8447_vm2, %v3543_v56  ;;  %v3289_v5 = vpop.permute.xlu1 %3288  ;;  %vm8452_vm2 = vcmask 385280  }
 0x2dd   : > { %3307 = vst.msk [vmem:[#allocation5 + $0x1c] sm:$0x1] %vm8448_vm6, %v3289_v5  ;;  %v3661_v44 = vpop.permute.xlu0 %3660  ;;  %v3985_v40 = vrot.slane %v3971_v20, %v7182_v6  ;;  %vm8455_vm6 = vmmov %vm8449_vm14 }
 0x2de   : > { %3681 = vst.msk [vmem:[#allocation5 + $0x14] sm:$0x1] %vm8449_vm14, %v3661_v44  ;;  %vm8456_vm14 = vmmov %vm8450_vm15 }
 0x2df   : > { %3751 = vst.msk [vmem:[#allocation5 + $0x14] sm:$0x1] %vm8450_vm15, %v3731_v63  ;;  %v4113_v50 = vcombine.low %v3978_v54, %v3985_v40  ;;  %v6155_v48 = vcombine.high %v3978_v54, %v3985_v40  ;;  %vm8457_vm15 = vmmov %vm8451_vm0 }
 0x2e0   : > { %3869 = vst.msk [vmem:[#allocation5 + $0x14] sm:$0x1] %vm8451_vm0, %v3849_v7  ;;  %v3477_v8 = vpop.permute.xlu1 %3476  ;;  %vm4530_vm0 = vcmask 124929  }
 0x2e1   : > { %v3851_v14 = vpop.permute.xlu0 %3850  ;;  %v4129_v32 = vrot.slane %v4113_v50, %v7182_v6  ;;  %v4136_v42 = vrot.slane %v6155_v48, %v7182_v6  ;;  %4531 = vst.msk [vmem:[#allocation7 + $0x4] sm:$0x6] %vm4530_vm0, %v6407_v43  ;;  %4532 = vst.msk [vmem:[#allocation7 + $0xc] sm:$0x6] %vm4530_vm0, %v6407_v43 }
 0x2e2   : > { %3870 = vst.msk [vmem:[#allocation5 + $0x18] sm:$0xf] %vm3862_vm7, %v3851_v14 }
 0x2e3   : > { %v4144_v0 = vcombine.low %v4122_v1, %v4129_v32  ;;  %4533 = vst.msk [vmem:[#allocation7 + $0x14] sm:$0x6] %vm4530_vm0, %v6407_v43  ;;  %4534 = vst.msk [vmem:[#allocation7 + $0x1c] sm:$0x6] %vm4530_vm0, %v6407_v43 }
 0x2e4   : > { %v3665_v21 = vpop.permute.xlu1 %3664 }
 0x2e5   : > { %v3359_v34 = vpop.permute.xlu0 %3358  ;;  %v4152_v62 = vrot.slane %v4144_v0, %v7182_v6 }
 0x2e6   : > { %3377 = vst.msk [vmem:[#allocation5 + $0x1c] sm:$0x1] %vm8452_vm2, %v3359_v34  ;;  %vm8459_vm2 = vcmask 130048  }
 0x2e7   : > { %3495 = vst.msk [vmem:[#allocation5 + $0x1c] sm:$0x1] %vm8453_vm1, %v3477_v8  ;;  %v6150_v36 = vld.sshfl [vmem:[#allocation5 + $0x14] sm:$0x1 pattern:$0x75316420] }
 0x2e8   : > { %v4001_v26 = vrot.slane %v6150_v36, %v7182_v6  ;;  %v3853_v60 = vpop.permute.xlu1 %3852  ;;  %vm8460_vm1 = vcmask 125954  }
 0x2e9   : > { %v3547_v24 = vpop.permute.xlu0 %3546  ;;  %v6151_v37 = vld.sshfl [vmem:[#allocation5 + $0x18] sm:$0x33 pattern:$0x75316420] }
 0x2ea   : > { %3565 = vst.msk [vmem:[#allocation5 + $0x1c] sm:$0x1] %vm8454_vm4, %v3547_v24  ;;  %v4016_v51 = vrot.slane %v6151_v37, %v7182_v6  ;;  %v4009_v4 = vcombine.high %v6151_v37, %v6151_v37  ;;  %vm8461_vm4 = vcmask 122880  }
 0x2eb   : > { %3683 = vst.msk [vmem:[#allocation5 + $0x1c] sm:$0x1] %vm8455_vm6, %v3665_v21 }
 0x2ec   : > { %v4115_v56 = vcombine.low %v4001_v26, %v4016_v51  ;;  %v4023_v63 = vrot.slane %v4009_v4, %v7182_v6  ;;  %v4024_v13 = vcombine.high %v4016_v51, %v4016_v51 }
 0x2ed   : > { %v3735_v45 = vpop.permute.xlu0 %3734 }
 0x2ee   : > { %3753 = vst.msk [vmem:[#allocation5 + $0x1c] sm:$0x1] %vm8456_vm14, %v3735_v45  ;;  %v4143_v7 = vrot.slane %v4115_v56, %v7182_v6  ;;  %v4025_v59 = vcombine.high %v4023_v63, %v4023_v63  ;;  %v4161_v15 = vcombine.low %v4023_v63, %v4024_v13  ;;  %vm8463_vm14 = vsmask.f32 3328 }
 0x2ef   : > { %3871 = vst.msk [vmem:[#allocation5 + $0x1c] sm:$0x1] %vm8457_vm15, %v3853_v60  ;;  %vm8464_vm15 = vcmask 125952  }
 0x2f0   : > { %v4145_v23 = vcombine.low %v4136_v42, %v4143_v7  ;;  %v4169_v35 = vrot.slane %v4161_v15, %v7182_v6  ;;  %vm7956_vm0 = vmand %vm8464_vm15, %vm8463_vm14  ;;  %vm8472_vm14 = vcmask 125954   ;;  %vm8473_vm15 = vcmask 122880  }
 0x2f2   : > { %v4159_v49 = vrot.slane %v4145_v23, %v7182_v6 }
 0x2f4   : > { %v4160_v41 = vcombine.low %v4152_v62, %v4159_v49 }
 0x2f6   : > { %6314 = vmatmul.mubr.bf16.gmra.mxu1 %v4160_v41  ;;  %v6152_v46 = vld.sshfl [vmem:[#allocation5 + $0x1c] sm:$0x1 pattern:$0x75316420] }
 0x2f7   : > { %6317 = vmatprep.mubr.msk.bf16.mxu1 %vm8401_vm3, %v6404_v12  ;;  %v4039_v17 = vrot.slane %v6152_v46, %v7182_v6  ;;  %v6412_v12 = vmov 1983009808   ;;  %vm8458_vm3 = vcmask 123904  }
 0x2f8   : > { %v4312_v19 = vunpack.c.l.s4 %v6412_v12  ;;  %vm8462_vm6 = vmmov %vm8458_vm3 }
 0x2f9   : > { %v4162_v61 = vcombine.low %v4025_v59, %v4039_v17 }
 0x2fa   : > { %v4313_v3 = vunpack.c.0.s8 %v4312_v19 }
 0x2fb   : > { %v4176_v28 = vrot.slane %v4162_v61, %v7182_v6 }
 0x2fc   : > { %v7929_v55 = vsub.s32 %v4313_v3, %v7177_v33 }
 0x2fd   : > { %v4177_v9 = vcombine.low %v4169_v35, %v4176_v28 }
 0x2ff   : > { %v4184_v57 = vrot.slane %v4177_v9, %v7182_v6 }
 0x301   : > { %6318 = vmatmul.mubr.bf16.gmra.mxu1 %v4184_v57 }
 0x38f   : > { %v4270_v53 = vpop.f32.mrf.mxu1 }
 0x390   : > { %v4271_v22 = vadd.f32 %v7925_v39, %v4270_v53 }
 0x391   : > { %v6311_v47 = vpop.f32.mrf.mxu1 }
 0x392   : > { %v4292_v30 = vmax.f32 %v4271_v22, 0.0 }
 0x393   : > { %v4273_v52 = vpop.f32.mrf.mxu1 }
 0x394   : > { %v4310_v5 = vcombine.high %v4292_v30, %v4292_v30  ;;  %v4317_v43 = vrot.slane %v4292_v30, %v7929_v55  ;;  %v4274_v10 = vadd.f32 %v7925_v39, %v4273_v52 }
 0x395   : > { %v6312_v44 = vpop.f32.mrf.mxu1 }
 0x396   : > { %v4324_v20 = vrot.slane %v4310_v5, %v7929_v55  ;;  %v4325_v14 = vcombine.high %v4317_v43, %v4317_v43  ;;  %v4293_v25 = vmax.f32 %v4274_v10, 0.0  ;;  %v4581_v44 = vld [vmem:[#allocation8] sm:$0xf] }
 0x398   : > { %v4326_v8 = vcombine.high %v4324_v20, %v4324_v20  ;;  %v4395_v40 = vcombine.low %v4317_v43, %v4325_v14  ;;  %v4334_v27 = vrot.slane %v4293_v25, %v7929_v55  ;;  %v4327_v51 = vcombine.high %v4293_v25, %v4293_v25 }
 0x39a   : > { %v4396_v54 = vcombine.low %v4324_v20, %v4326_v8  ;;  %v4418_v33 = vrot.slane %v4334_v27, %v7929_v55  ;;  %v4403_v34 = vrot.slane %v4395_v40, %v7929_v55  ;;  %v4341_v60 = vrot.slane %v4327_v51, %v7929_v55 }
 0x39b   : > { %v4342_v42 = vcombine.high %v4334_v27, %v4334_v27 }
 0x39c   : > { %v4410_v58 = vrot.slane %v4396_v54, %v7929_v55  ;;  %4500 = vst.msk [vmem:[#allocation6 + $0x9] sm:$0x3] %vm8458_vm3, %v4418_v33  ;;  %v4343_v41 = vcombine.high %v4341_v60, %v4341_v60  ;;  %vm8467_vm3 = vmmov %vm8459_vm2 }
 0x39d   : > { %v4419_v63 = vcombine.low %v4342_v42, %v4341_v60 }
 0x39e   : > { %v4411_v50 = vcombine.low %v4403_v34, %v4410_v58 }
 0x39f   : > { %v4427_v57 = vrot.slane %v4419_v63, %v7929_v55 }
 0x3a0   : > { %4499 = vst.msk [vmem:[#allocation6 + $0x1] sm:$0xff] %vm8459_vm2, %v4411_v50  ;;  %vm8468_vm2 = vmmov %vm8462_vm6 }
 0x3a7   : > { %v4507_v36 = vld [vmem:[#allocation6] ss:$2 sm:$0x3f]  ;;  %v4515_v21 = vld [vmem:[#allocation6 + $0x1] ss:$2 sm:$0x3f] }
 0x3a8   : > { %v4522_v16 = vmax.f32 %v4507_v36, %v4515_v21 }
 0x3aa   : > { %v6231_v24 = vpack.c.bf16 %v4522_v16, %v4522_v16 }
 0x3ac   : > { %v4551_v37 = vrot.slane %v6231_v24, 6 }
 0x3ae   : > { %4567 = vst.msk [vmem:[#allocation7] sm:$0xc] %vm8460_vm1, %v4551_v37  ;;  %v4552_v26 = vrot.slane %v4551_v37, 4  ;;  %vm8469_vm1 = vmmov %vm8467_vm3 }
 0x3b0   : > { %4568 = vst.msk [vmem:[#allocation7 + $0x4] sm:$0x1] %vm8461_vm4, %v4552_v26  ;;  %vm8470_vm4 = vmmov %vm8468_vm2 }
 0x3b5   : > { %v4593_v48 = vld [vmem:[#allocation7] sm:$0xf] }
 0x3b6   : > { %v4598_v32 = vshrl.u32 %v4593_v48, 16  ;;  %v4601_v56 = vshll.u32 %v4593_v48, 16  ;;  %v4278_v7 = vpop.f32.mrf.mxu1  ;;  %v4575_v43 = vld [vmem:[#allocation7] sm:$0xf] }
 0x3b7   : > { %v4279_v0 = vadd.f32 %v7925_v39, %v4278_v7  ;;  %v4582_v54 = vsel %vm7956_vm0, %v4575_v43, %v4581_v44 }
 0x3b8   : > { %v4600_v1 = vrot.slane %v4598_v32, 4  ;;  %v4603_v45 = vrot.slane %v4601_v56, 5  ;;  %v6315_v23 = vpop.f32.mrf.mxu1  ;;  %4583 = vst [vmem:[#allocation8] sm:$0xf] %v4582_v54 }
 0x3b9   : > { %v4294_v62 = vmax.f32 %v4279_v0, 0.0 }
 0x3ba   : > { %v4604_v4 = vor.u32 %v4603_v45, %v4600_v1  ;;  %v4281_v13 = vpop.f32.mrf.mxu1 }
 0x3bb   : > { %v4344_v46 = vcombine.high %v4294_v62, %v4294_v62  ;;  %v4351_v59 = vrot.slane %v4294_v62, %v7929_v55  ;;  %v4282_v17 = vadd.f32 %v7925_v39, %v4281_v13 }
 0x3bc   : > { %v4605_v49 = vrot.slane %v4604_v4, 4  ;;  %v6316_v15 = vpop.f32.mrf.mxu1 }
 0x3bd   : > { %v4358_v61 = vrot.slane %v4344_v46, %v7929_v55  ;;  %v4359_v35 = vcombine.high %v4351_v59, %v4351_v59  ;;  %v4420_v28 = vcombine.low %v4343_v41, %v4351_v59  ;;  %v4295_v9 = vmax.f32 %v4282_v17, 0.0 }
 0x3be   : > { %4633 = vrot.lane.b32.xlu0 %v4605_v49, %s6398_s9 }
 0x3bf   : > { %v4360_v12 = vcombine.high %v4358_v61, %v4358_v61  ;;  %v4434_v19 = vrot.slane %v4420_v28, %v7929_v55  ;;  %v4442_v3 = vrot.slane %v4359_v35, %v7929_v55  ;;  %v4361_v53 = vcombine.high %v4295_v9, %v4295_v9 }
 0x3c0   : > { %v4368_v22 = vrot.slane %v4295_v9, %v7929_v55 }
 0x3c1   : > { %v4435_v47 = vcombine.low %v4427_v57, %v4434_v19  ;;  %v4443_v30 = vcombine.low %v4358_v61, %v4360_v12  ;;  %4502 = vst.msk [vmem:[#allocation6 + $0x19] sm:$0x3] %vm8462_vm6, %v4442_v3  ;;  %v4375_v52 = vrot.slane %v4361_v53, %v7929_v55  ;;  %v4286_v5 = vpop.f32.mrf.mxu1  ;;  %vm8471_vm6 = vmmov %vm8469_vm1  ;;  %v4717_v3 = vld [vmem:[#allocation7] sm:$0xe] }
 0x3c2   : > { %v4376_v20 = vcombine.high %v4368_v22, %v4368_v22  ;;  %v4287_v14 = vadd.f32 %v7925_v39, %v4286_v5  ;;  %v4729_v5 = vshll.u32 %v4717_v3, 16 }
 0x3c3   : > { %4501 = vst.msk [vmem:[#allocation6 + $0x11] sm:$0xff] %vm8467_vm3, %v4435_v47  ;;  %v4466_v25 = vrot.slane %v4375_v52, %v7929_v55  ;;  %v6319_v8 = vpop.f32.mrf.mxu1  ;;  %v4451_v33 = vrot.slane %v4443_v30, %v7929_v55  ;;  %v4377_v50 = vcombine.high %v4375_v52, %v4375_v52  ;;  %vm8474_vm3 = vmmov %vm8472_vm14  ;;  %v4726_v52 = vshrl.u32 %v4717_v3, 16 }
 0x3c4   : > { %v4444_v40 = vcombine.low %v4368_v22, %v4376_v20  ;;  %v4296_v27 = vmax.f32 %v4287_v14, 0.0  ;;  %v4718_v20 = vld [vmem:[#allocation7 + $0x4] sm:$0x1]  ;;  %v4659_v14 = vld [vmem:[#allocation7] sm:$0xe] }
 0x3c5   : > { %4504 = vst.msk [vmem:[#allocation6 + $0x29] sm:$0x3] %vm8468_vm2, %v4466_v25  ;;  %v4289_v34 = vpop.f32.mrf.mxu1  ;;  %vm8475_vm2 = vmmov %vm8473_vm15  ;;  %v7983_v25 = vld [vmem:[#allocation7] sm:$0xc] }
 0x3c6   : > { %v4458_v58 = vrot.slane %v4444_v40, %v7929_v55  ;;  %v4378_v39 = vcombine.high %v4296_v27, %v4296_v27  ;;  %v4385_v36 = vrot.slane %v4296_v27, %v7929_v55  ;;  %v4660_v27 = vld [vmem:[#allocation7 + $0x4] sm:$0x1]  ;;  %v4731_v34 = vrot.slane %v4729_v5, 6 }
 0x3c7   : > { %v6320_v21 = vpop.f32.mrf.mxu1 }
 0x3c8   : > { %v4459_v16 = vcombine.low %v4451_v33, %v4458_v58  ;;  %v4392_v24 = vrot.slane %v4378_v39, %v7929_v55  ;;  %v4393_v37 = vcombine.high %v4385_v36, %v4385_v36  ;;  %v4467_v26 = vcombine.low %v4377_v50, %v4385_v36 }
 0x3c9   : > { %v4728_v33 = vrot.slane %v4726_v52, 5  ;;  %v4735_v58 = vshrl.u32 %v4718_v20, 16  ;;  %v4738_v50 = vshll.u32 %v4718_v20, 16  ;;  %v6168_v36 = vrot.slane %v4659_v14, 9 }
 0x3ca   : > { %v4509_v51 = vld [vmem:[#allocation6 + $0x10] ss:$2 sm:$0x3f]  ;;  %v4517_v48 = vld [vmem:[#allocation6 + $0x11] ss:$2 sm:$0x3f]  ;;  %v4394_v32 = vcombine.high %v4392_v24, %v4392_v24  ;;  %v4468_v56 = vcombine.low %v4393_v37, %v4392_v24  ;;  %v4475_v45 = vrot.slane %v4467_v26, %v7929_v55 }
 0x3cb   : > { %4503 = vst.msk [vmem:[#allocation6 + $0x21] sm:$0xff] %vm8469_vm1, %v4459_v16  ;;  %v4523_v1 = vmax.f32 %v4509_v51, %v4517_v48  ;;  %vm8476_vm1 = vmmov %vm8474_vm3  ;;  %v7985_v16 = vld [vmem:[#allocation7 + $0x4] sm:$0x3]  ;;  %v6172_v24 = vrot.slane %v7983_v25, 10  ;;  %v4677_v37 = vrot.slane %v4660_v27, 5 }
 0x3cc   : > { %v4482_v60 = vrot.slane %v4468_v56, %v7929_v55  ;;  %v4490_v42 = vrot.slane %v4394_v32, %v7929_v55  ;;  %v4882_v27 = vld [vmem:[#allocation7 + $0x4] sm:$0x3] }
 0x3cd   : > { %v6232_v7 = vpack.c.bf16 %v4523_v1, %v4523_v1 }
 0x3ce   : > { %v4483_v0 = vcombine.low %v4475_v45, %v4482_v60  ;;  %4506 = vst.msk [vmem:[#allocation6 + $0x39] sm:$0x3] %vm8470_vm4, %v4490_v42  ;;  %vm8477_vm4 = vmmov %vm8475_vm2 }
 0x3cf   : > { %v4553_v4 = vrot.slane %v6232_v7, 6  ;;  %v4732_v7 = vor.u32 %v4731_v34, %v4728_v33 }
 0x3d0   : > { %4505 = vst.msk [vmem:[#allocation6 + $0x31] sm:$0xff] %vm8471_vm6, %v4483_v0  ;;  %v4737_v0 = vrot.slane %v4735_v58, 5  ;;  %vm8487_vm6 = vcmask 519552  }
 0x3d1   : > { %4569 = vst.msk [vmem:[#allocation7 + $0x8] sm:$0xc] %vm8472_vm14, %v4553_v4  ;;  %v4554_v63 = vrot.slane %v4553_v4, 4  ;;  %v4740_v4 = vrot.slane %v4738_v50, 6 }
 0x3d2   : > { %v4511_v23 = vld [vmem:[#allocation6 + $0x20] ss:$2 sm:$0x3f]  ;;  %v4519_v62 = vld [vmem:[#allocation6 + $0x21] ss:$2 sm:$0x3f] }
 0x3d3   : > { %v4524_v49 = vmax.f32 %v4511_v23, %v4519_v62  ;;  %4570 = vst.msk [vmem:[#allocation7 + $0xc] sm:$0x1] %vm8473_vm15, %v4554_v63  ;;  %v4841_v23 = vrot.slane %v7985_v16, 6  ;;  %v4741_v3 = vor.u32 %v4740_v4, %v4737_v0 }
 0x3d5   : > { %v6233_v13 = vpack.c.bf16 %v4524_v49, %v4524_v49 }
 0x3d7   : > { %v4555_v41 = vrot.slane %v6233_v13, 6  ;;  %v4513_v46 = vld [vmem:[#allocation6 + $0x30] ss:$2 sm:$0x3f] }
 0x3d8   : > { %v4521_v59 = vld [vmem:[#allocation6 + $0x31] ss:$2 sm:$0x3f]  ;;  %v4594_v15 = vld [vmem:[#allocation7 + $0x8] sm:$0xf] }
 0x3d9   : > { %4571 = vst.msk [vmem:[#allocation7 + $0x10] sm:$0xc] %vm8474_vm3, %v4555_v41  ;;  %v4525_v17 = vmax.f32 %v4513_v46, %v4521_v59  ;;  %v4556_v61 = vrot.slane %v4555_v41, 4  ;;  %v4607_v35 = vshrl.u32 %v4594_v15, 16  ;;  %v4610_v28 = vshll.u32 %v4594_v15, 16 }
 0x3da   : > { %v4719_v21 = vld [vmem:[#allocation7 + $0x8] sm:$0xe]  ;;  %v4678_v46 = vsel %vm6587_vm5, %v6168_v36, %v4677_v37  ;;  %v4662_v15 = vld [vmem:[#allocation7 + $0xc] sm:$0x1]  ;;  %vm8491_vm3 = vcmask 650752  }
 0x3db   : > { %v6234_v9 = vpack.c.bf16 %v4525_v17, %v4525_v17  ;;  %4572 = vst.msk [vmem:[#allocation7 + $0x14] sm:$0x1] %vm8475_vm2, %v4556_v61  ;;  %v4609_v57 = vrot.slane %v4607_v35, 4  ;;  %v4612_v12 = vrot.slane %v4610_v28, 5  ;;  %v4661_v42 = vld [vmem:[#allocation7 + $0x8] sm:$0xe] }
 0x3dc   : > { %v4744_v63 = vshrl.u32 %v4719_v21, 16  ;;  %v4747_v13 = vshll.u32 %v4719_v21, 16  ;;  %v6169_v5 = vrot.slane %v4661_v42, 9 }
 0x3dd   : > { %v4557_v19 = vrot.slane %v6234_v9, 6  ;;  %v4613_v53 = vor.u32 %v4612_v12, %v4609_v57  ;;  %v4720_v12 = vld [vmem:[#allocation7 + $0xc] sm:$0x1] }
 0x3de   : > { %v4746_v20 = vrot.slane %v4744_v63, 5  ;;  %v4749_v14 = vrot.slane %v4747_v13, 6 }
 0x3df   : > { %4573 = vst.msk [vmem:[#allocation7 + $0x18] sm:$0xc] %vm8476_vm1, %v4557_v19  ;;  %v4558_v22 = vrot.slane %v4557_v19, 4  ;;  %v4614_v47 = vrot.slane %v4613_v53, 4  ;;  %v4733_v19 = vrot.slane %v4732_v7, 4 }
 0x3e0   : > { %v4595_v30 = vld [vmem:[#allocation7 + $0x10] sm:$0xf] }
 0x3e1   : > { %v4616_v43 = vshrl.u32 %v4595_v30, 16  ;;  %v4619_v44 = vshll.u32 %v4595_v30, 16  ;;  %4574 = vst.msk [vmem:[#allocation7 + $0x1c] sm:$0x1] %vm8477_vm4, %v4558_v22  ;;  %4635 = vrot.lane.b32.xlu1 %v4614_v47, %s6398_s9  ;;  %v4721_v54 = vld [vmem:[#allocation7 + $0x10] sm:$0xe]  ;;  %v4742_v7 = vsel %vm6607_vm9, %v4733_v19, %v4741_v3 }
 0x3e2   : > { %v4664_v51 = vld [vmem:[#allocation7 + $0x14] sm:$0x1]  ;;  %v4762_v48 = vshrl.u32 %v4721_v54, 16  ;;  %v4765_v60 = vshll.u32 %v4721_v54, 16  ;;  %v4663_v59 = vld [vmem:[#allocation7 + $0x10] sm:$0xe] }
 0x3e3   : > { %v4618_v8 = vrot.slane %v4616_v43, 4  ;;  %v4621_v40 = vrot.slane %v4619_v44, 5  ;;  %v4722_v45 = vld [vmem:[#allocation7 + $0x14] sm:$0x1]  ;;  %v4685_v17 = vrot.slane %v4664_v51, 5  ;;  %v6170_v52 = vrot.slane %v4663_v59, 9 }
 0x3e4   : > { %v4771_v61 = vshrl.u32 %v4722_v45, 16  ;;  %v4764_v28 = vrot.slane %v4762_v48, 5  ;;  %v4767_v9 = vrot.slane %v4765_v60, 6  ;;  %v4774_v57 = vshll.u32 %v4722_v45, 16  ;;  %v4881_v47 = vld [vmem:[#allocation7] sm:$0xc] }
 0x3e5   : > { %v4622_v39 = vor.u32 %v4621_v40, %v4618_v8  ;;  %v4681_v43 = vrot.slane %v4662_v15, 5  ;;  %v4753_v8 = vshrl.u32 %v4720_v12, 16  ;;  %v4756_v40 = vshll.u32 %v4720_v12, 16  ;;  %v4885_v59 = vld [vmem:[#allocation7 + $0x10] sm:$0xc] }
 0x3e6   : > { %v4596_v26 = vld [vmem:[#allocation7 + $0x18] sm:$0xf]  ;;  %v4686_v54 = vsel %vm6587_vm5, %v6170_v52, %v4685_v17  ;;  %v4768_v34 = vor.u32 %v4767_v9, %v4764_v28  ;;  %v4773_v58 = vrot.slane %v4771_v61, 5  ;;  %v4776_v50 = vrot.slane %v4774_v57, 6  ;;  %v4883_v17 = vld [vmem:[#allocation7 + $0x8] sm:$0xc] }
 0x3e7   : > { %v4623_v32 = vrot.slane %v4622_v39, 4  ;;  %v4625_v56 = vshrl.u32 %v4596_v26, 16  ;;  %v4628_v1 = vshll.u32 %v4596_v26, 16  ;;  %v4723_v41 = vld [vmem:[#allocation7 + $0x18] sm:$0xe]  ;;  %v4682_v26 = vsel %vm6587_vm5, %v6169_v5, %v4681_v43 }
 0x3e8   : > { %v4780_v53 = vshrl.u32 %v4723_v41, 16  ;;  %v4783_v22 = vshll.u32 %v4723_v41, 16  ;;  %v4724_v44 = vld [vmem:[#allocation7 + $0x1c] sm:$0x1]  ;;  %v4665_v51 = vld [vmem:[#allocation7 + $0x18] sm:$0xe]  ;;  %v4750_v45 = vor.u32 %v4749_v14, %v4746_v20  ;;  %v4777_v4 = vor.u32 %v4776_v50, %v4773_v58 }
 0x3e9   : > { %4637 = vrot.lane.b32.xlu0 %v4623_v32, %s6398_s9  ;;  %v4627_v62 = vrot.slane %v4625_v56, 4  ;;  %v4630_v49 = vrot.slane %v4628_v1, 5  ;;  %v4666_v33 = vld [vmem:[#allocation7 + $0x1c] sm:$0x1]  ;;  %v4789_v21 = vshrl.u32 %v4724_v44, 16  ;;  %v4792_v37 = vshll.u32 %v4724_v44, 16 }
 0x3ea   : > { %v4782_v39 = vrot.slane %v4780_v53, 5  ;;  %v4785_v36 = vrot.slane %v4783_v22, 6  ;;  %v4890_v48 = vshrl.u32 %v4881_v47, 16  ;;  %v4893_v32 = vshll.u32 %v4881_v47, 16  ;;  %v4827_v28 = vld [vmem:[#allocation7 + $0x10] sm:$0xc] }
 0x3eb   : > { %v4631_v35 = vor.u32 %v4630_v49, %v4627_v62  ;;  %v4899_v56 = vshrl.u32 %v4882_v27, 16  ;;  %v4689_v1 = vrot.slane %v4666_v33, 5  ;;  %v4755_v60 = vrot.slane %v4753_v8, 5  ;;  %v4826_v9 = vld [vmem:[#allocation7 + $0xc] sm:$0x3] }
 0x3ec   : > { %v4758_v42 = vrot.slane %v4756_v40, 6  ;;  %v4769_v0 = vrot.slane %v4768_v34, 4  ;;  %v4902_v62 = vshll.u32 %v4882_v27, 16  ;;  %v6171_v49 = vrot.slane %v4665_v51, 9  ;;  %v4828_v19 = vld [vmem:[#allocation7 + $0x14] sm:$0x3] }
 0x3ed   : > { %4691 = vrot.lane.b32.xlu0 %v4678_v46, %s6400_s11  ;;  %v4632_v30 = vrot.slane %v4631_v35, 4  ;;  %v4786_v63 = vor.u32 %v4785_v36, %v4782_v39  ;;  %v4791_v13 = vrot.slane %v4789_v21, 5  ;;  %v4794_v41 = vrot.slane %v4792_v37, 6  ;;  %v4825_v46 = vld [vmem:[#allocation7 + $0x8] sm:$0xc] }
 0x3ee   : > { %v4690_v15 = vsel %vm6587_vm5, %v6171_v49, %v4689_v1  ;;  %v4751_v61 = vrot.slane %v4750_v45, 4  ;;  %v4759_v35 = vor.u32 %v4758_v42, %v4755_v60  ;;  %v4892_v57 = vrot.slane %v4890_v48, 6  ;;  %v4886_v38 = vld [vmem:[#allocation7 + $0x14] sm:$0x3]  ;;  %v4584_v43 = vld [vmem:[#allocation8 + $0x4] sm:$0xf] }
 0x3ef   : > { %4639 = vrot.lane.b32.xlu1 %v4632_v30, %s6398_s9  ;;  %v4778_v12 = vsel %vm6607_vm9, %v4769_v0, %v4777_v4  ;;  %v4895_v3 = vrot.slane %v4893_v32, 7  ;;  %v8008_v53 = vrot.slane %v4899_v56, 6  ;;  %v8010_v22 = vrot.slane %v4902_v62, 7  ;;  %v4587_v44 = vld [vmem:[#allocation8 + $0x8] sm:$0xf]  ;;  %s8283_s9 = scalar_lea.vmem %s8333_s7, %s6222_s10 }
 0x3f0   : > { %v4787_v47 = vrot.slane %v4786_v63, 4  ;;  %v4795_v30 = vor.u32 %v4794_v41, %v4791_v13  ;;  %v4926_v52 = vshrl.u32 %v4885_v59, 16  ;;  %v4929_v5 = vshll.u32 %v4885_v59, 16  ;;  %v4884_v40 = vld [vmem:[#allocation7 + $0xc] sm:$0x3] }
 0x3f1   : > { %4695 = vrot.lane.b32.xlu0 %v4686_v54, %s6400_s11  ;;  %v6174_v20 = vrot.slane %v4827_v28, 10  ;;  %v6173_v14 = vrot.slane %v4825_v46, 10  ;;  %v4845_v8 = vrot.slane %v4826_v9, 6  ;;  %v4908_v27 = vshrl.u32 %v4883_v17, 16  ;;  %v4590_v54 = vld [vmem:[#allocation8 + $0xc] sm:$0xf] }
 0x3f2   : > { %v4760_v33 = vsel %vm6607_vm9, %v4751_v61, %v4759_v35  ;;  %v4849_v34 = vrot.slane %v4828_v19, 6  ;;  %v4911_v58 = vshll.u32 %v4883_v17, 16  ;;  %v4576_v50 = vld [vmem:[#allocation7 + $0x8] sm:$0xf]  ;;  %v4577_v39 = vld [vmem:[#allocation7 + $0x10] sm:$0xf]  ;;  %v4842_v36 = vsel %vm6643_vm11, %v6172_v24, %v4841_v23 }
 0x3f3   : > { %4693 = vrot.lane.b32.xlu1 %v4682_v26, %s6400_s11  ;;  %v4896_v21 = vor.u32 %v4895_v3, %v4892_v57  ;;  %v4935_v37 = vshrl.u32 %v4886_v38, 16  ;;  %v4938_v26 = vshll.u32 %v4886_v38, 16  ;;  %v4887_v51 = vld [vmem:[#allocation7 + $0x18] sm:$0xc]  ;;  %v4796_v32 = vsel %vm6607_vm9, %v4787_v47, %v4795_v30  ;;  %v4830_v60 = vld [vmem:[#allocation7 + $0x1c] sm:$0x3] }
 0x3f4   : > { %v4578_v48 = vld [vmem:[#allocation7 + $0x18] sm:$0xf]  ;;  %v4928_v56 = vrot.slane %v4926_v52, 6  ;;  %v4931_v1 = vrot.slane %v4929_v5, 7  ;;  %v4917_v45 = vshrl.u32 %v4884_v40, 16  ;;  %v4910_v16 = vrot.slane %v4908_v27, 6 }
 0x3f5   : > { %4797 = vrot.lane.b32.xlu0 %v4742_v7, %s6402_s13  ;;  %v4920_v42 = vshll.u32 %v4884_v40, 16  ;;  %v4585_v25 = vsel %vm7956_vm0, %v4576_v50, %v4584_v43  ;;  %v4588_v24 = vsel %vm7956_vm0, %v4577_v39, %v4587_v44  ;;  %v4913_v23 = vrot.slane %v4911_v58, 7  ;;  %v4888_v7 = vld [vmem:[#allocation7 + $0x1c] sm:$0x3]  ;;  %v4829_v41 = vld [vmem:[#allocation7 + $0x18] sm:$0xc] }
 0x3f6   : > { %v4944_v0 = vshrl.u32 %v4887_v51, 16  ;;  %v4947_v4 = vshll.u32 %v4887_v51, 16  ;;  %4586 = vst [vmem:[#allocation8 + $0x4] sm:$0xf] %v4585_v25  ;;  %4589 = vst [vmem:[#allocation8 + $0x8] sm:$0xf] %v4588_v24  ;;  %v4591_v2 = vsel %vm7956_vm0, %v4578_v48, %v4590_v54  ;;  %v4846_v62 = vsel %vm6643_vm11, %v6173_v14, %v4845_v8 }
 0x3f7   : > { %4697 = vrot.lane.b32.xlu1 %v4690_v15, %s6400_s11  ;;  %v4897_v49 = vrot.slane %v4896_v21, 4  ;;  %v4905_v63 = vor.u32 %v8010_v22, %v8008_v53  ;;  %4592 = vst [vmem:[#allocation8 + $0xc] sm:$0xf] %v4591_v2  ;;  %v4850_v13 = vsel %vm6643_vm11, %v6174_v20, %v4849_v34  ;;  %v4932_v46 = vor.u32 %v4931_v1, %v4928_v56  ;;  %v5046_v19 = vld [vmem:[#allocation7 + $0x4] sm:$0x7]  ;;  %s6414_s11 = smov 124  }
 0x3f8   : > { %v4937_v59 = vrot.slane %v4935_v37, 6  ;;  %v4940_v17 = vrot.slane %v4938_v26, 7  ;;  %v4853_v10 = vrot.slane %v4830_v60, 6  ;;  %v4919_v15 = vrot.slane %v4917_v45, 6  ;;  %v4988_v52 = vld [vmem:[#allocation7 + $0x4] sm:$0x7] }
 0x3f9   : > { %4801 = vrot.lane.b32.xlu0 %v4778_v12, %s6402_s13  ;;  %v4922_v61 = vrot.slane %v4920_v42, 7  ;;  %v4953_v35 = vshrl.u32 %v4888_v7, 16  ;;  %v4914_v28 = vor.u32 %v4913_v23, %v4910_v16  ;;  %v4946_v9 = vrot.slane %v4944_v0, 6  ;;  %v4987_v44 = vld [vmem:[#allocation7] sm:$0x8] }
 0x3fa   : > { %v4949_v57 = vrot.slane %v4947_v4, 7  ;;  %v4956_v12 = vshll.u32 %v4888_v7, 16  ;;  %v6175_v3 = vrot.slane %v4829_v41, 10  ;;  %v4906_v53 = vsel %vm8425_vm13, %v4897_v49, %v4905_v63  ;;  %v5045_v54 = vld [vmem:[#allocation7] sm:$0x8]  ;;  %v6381_v7 = vld [vmem:[%s8331_s5 + $0x38] sm:$0xff]  }
 0x3fb   : > { %4799 = vrot.lane.b32.xlu1 %v4760_v33, %s6402_s13  ;;  %v4933_v22 = vrot.slane %v4932_v46, 4  ;;  %v4941_v47 = vor.u32 %v4940_v17, %v4937_v59  ;;  %v4923_v38 = vor.u32 %v4922_v61, %v4919_v15  ;;  %v5059_v5 = vshrl.u32 %v5046_v19, 16  ;;  %v4992_v31 = vld [vmem:[#allocation7 + $0x14] sm:$0x7]  ;;  %v4991_v21 = vld [vmem:[#allocation7 + $0x10] sm:$0x8]  ;;  %6321 = vmatprep.subr.bf16.mxu0 %v6381_v7 }
 0x3fc   : > { %v4854_v30 = vsel %vm6643_vm11, %v6175_v3, %v4853_v10  ;;  %v4915_v43 = vrot.slane %v4914_v28, 4  ;;  %v4950_v20 = vor.u32 %v4949_v57, %v4946_v9  ;;  %v4955_v14 = vrot.slane %v4953_v35, 6  ;;  %v5050_v34 = vld [vmem:[#allocation7 + $0x14] sm:$0x7]  ;;  %v4990_v37 = vld [vmem:[#allocation7 + $0xc] sm:$0x7]  ;;  %6322 = vmatpush3.bf16.msra.mxu0 %v6381_v7 }
 0x3fd   : > { %4855 = vrot.lane.b32.xlu0 %v4842_v36, %s6408_s27  ;;  %v4958_v8 = vrot.slane %v4956_v12, 7  ;;  %v4942_v40 = vsel %vm8425_vm13, %v4933_v22, %v4941_v47  ;;  %v5005_v27 = vrot.slane %v4988_v52, 7  ;;  %v6176_v33 = vrot.slane %v4987_v44, 11  ;;  %v5048_v26 = vld [vmem:[#allocation7 + $0xc] sm:$0x7]  ;;  %v6382_v35 = vld [vmem:[%s8331_s5 + $0x30] sm:$0xff]  }
 0x3fe   : > { %v4924_v58 = vsel %vm8425_vm13, %v4915_v43, %v4923_v38  ;;  %v4951_v50 = vrot.slane %v4950_v20, 4  ;;  %v5061_v36 = vrot.slane %v5059_v5, 7  ;;  %v5013_v48 = vrot.slane %v4992_v31, 7  ;;  %v4989_v1 = vld [vmem:[#allocation7 + $0x8] sm:$0x8]  ;;  %6323 = vmatprep.subr.bf16.mxu0 %v6382_v35 }
 0x3ff   : > { %4803 = vrot.lane.b32.xlu1 %v4796_v32, %s6402_s13  ;;  %v4959_v39 = vor.u32 %v4958_v8, %v4955_v14  ;;  %v5006_v51 = vsel %vm6741_vm8, %v6176_v33, %v5005_v27  ;;  %v5054_v32 = vshrl.u32 %v5045_v54, 16  ;;  %v5085_v56 = vshrl.u32 %v5050_v34, 16  ;;  %v4994_v60 = vld [vmem:[#allocation7 + $0x1c] sm:$0x7]  ;;  %v5049_v24 = vld [vmem:[#allocation7 + $0x10] sm:$0x8] }
 0x400   : > { %v5062_v45 = vshll.u32 %v5046_v19, 16  ;;  %v6178_v42 = vrot.slane %v4991_v21, 11  ;;  %v5009_v25 = vrot.slane %v4990_v37, 7  ;;  %v5072_v23 = vshrl.u32 %v5048_v26, 16  ;;  %v5052_v4 = vld [vmem:[#allocation7 + $0x1c] sm:$0x7]  ;;  %6324 = vmatpush3.bf16.msra.mxu0 %v6382_v35 }
 0x401   : > { %4859 = vrot.lane.b32.xlu0 %v4850_v13, %s6408_s27  ;;  %v4960_v16 = vsel %vm8425_vm13, %v4951_v50, %v4959_v39  ;;  %v6180_v49 = vrot.slane %v5054_v32, 11  ;;  %v5087_v63 = vrot.slane %v5085_v56, 7  ;;  %v4993_v29 = vld [vmem:[#allocation7 + $0x18] sm:$0x8]  ;;  %v5017_v13 = vrot.slane %v4994_v60, 7  ;;  %v6383_v43 = vld [vmem:[%s8331_s5 + $0x28] sm:$0xff]  }
 0x402   : > { %v5064_v0 = vor.u32 %v5062_v45, %v5061_v36  ;;  %v5014_v2 = vsel %vm6741_vm8, %v6178_v42, %v5013_v48  ;;  %v5080_v41 = vshrl.u32 %v5049_v24, 16  ;;  %v5047_v46 = vld [vmem:[#allocation7 + $0x8] sm:$0x8]  ;;  %v5088_v17 = vshll.u32 %v5050_v34, 16  ;;  %v5051_v19 = vld [vmem:[#allocation7 + $0x18] sm:$0x8]  ;;  %6325 = vmatprep.subr.bf16.mxu0 %v6383_v43 }
 0x403   : > { %4857 = vrot.lane.b32.xlu1 %v4846_v62, %s6408_s27  ;;  %v6177_v62 = vrot.slane %v4989_v1, 11  ;;  %v5074_v10 = vrot.slane %v5072_v23, 7  ;;  %v5098_v15 = vshrl.u32 %v5052_v4, 16  ;;  %v6179_v28 = vrot.slane %v4993_v29, 11  ;;  %v6385_v8 = vld [vmem:[%s8331_s5 + $0x18] sm:$0xff]   ;;  %v6386_v27 = vld [vmem:[%s8331_s5 + $0x10] sm:$0xff]  }
 0x404   : > { %v5065_v61 = vsel %vm8426_vm12, %v6180_v49, %v5064_v0  ;;  %v5090_v9 = vor.u32 %v5088_v17, %v5087_v63  ;;  %v5067_v57 = vshrl.u32 %v5047_v46, 16  ;;  %v5075_v12 = vshll.u32 %v5048_v26, 16  ;;  %6326 = vmatpush3.bf16.msra.mxu0 %v6383_v43  ;;  %v6387_v54 = vld [vmem:[%s8331_s5 + $0x8] sm:$0xff]   ;;  %v4647_v31 = vld [vmem:[#allocation8] sm:$0xf]  ;;  %s6415_s13 = smov 116  }
 0x405   : > { %4961 = vrot.lane.b32.xlu0 %v4906_v53, %s6410_s29  ;;  %v5010_v59 = vsel %vm6741_vm8, %v6177_v62, %v5009_v25  ;;  %v5018_v3 = vsel %vm6741_vm8, %v6179_v28, %v5017_v13  ;;  %v6182_v53 = vrot.slane %v5080_v41, 11  ;;  %v5100_v47 = vrot.slane %v5098_v15, 7  ;;  %6327 = vmatprep.subr.bf16.mxu0 %v6384_v11  ;;  %v4650_v50 = vld [vmem:[#allocation8 + $0x4] sm:$0xf]  ;;  %v4653_v37 = vld [vmem:[#allocation8 + $0x8] sm:$0xf] }
 0x406   : > { %v5077_v22 = vor.u32 %v5075_v12, %v5074_v10  ;;  %v6181_v38 = vrot.slane %v5067_v57, 11  ;;  %v5093_v52 = vshrl.u32 %v5051_v19, 16  ;;  %v5101_v5 = vshll.u32 %v5052_v4, 16  ;;  %v4656_v45 = vld [vmem:[#allocation8 + $0xc] sm:$0xf] }
 0x407   : > { %4861 = vrot.lane.b32.xlu1 %v4854_v30, %s6408_s27  ;;  %v5091_v30 = vsel %vm8426_vm12, %v6182_v53, %v5090_v9  ;;  %vm8478_vm5 = vsmask.f32 3328  ;;  %vm8479_vm9 = vcmask 257152   ;;  %vm8483_vm13 = vcmask 388352  }
 0x408   : > { %v5078_v44 = vsel %vm8426_vm12, %v6181_v38, %v5077_v22  ;;  %v5103_v20 = vor.u32 %v5101_v5, %v5100_v47  ;;  %v6183_v14 = vrot.slane %v5093_v52, 11  ;;  %6328 = vmatpush3.bf16.msra.mxu0 %v6384_v11  ;;  %vm8105_vm11 = vmand %vm8479_vm9, %vm8478_vm5 }
 0x409   : > { %4965 = vrot.lane.b32.xlu0 %v4942_v40, %s6410_s29  ;;  %6329 = vmatprep.subr.bf16.mxu0 %v6385_v8  ;;  %vm8482_vm8 = vmmov %vm8478_vm5 }
 0x40a   : > { %v5104_v40 = vsel %vm8426_vm12, %v6183_v14, %v5103_v20  ;;  %vm8117_vm12 = vmand %vm8483_vm13, %vm8482_vm8  ;;  %vm5895_vm13 = vcmask 25600  }
 0x40b   : > { %4963 = vrot.lane.b32.xlu1 %v4924_v58, %s6410_s29  ;;  %vm8486_vm0 = vmmov %vm8478_vm5  ;;  %vm8498_vm5 = vcmask 913152  }
 0x40c   : > { %6330 = vmatpush3.bf16.msra.mxu0 %v6385_v8  ;;  %vm8131_vm14 = vmand %vm8487_vm6, %vm8486_vm0 }
 0x40d   : > { %5019 = vrot.lane.b32.xlu0 %v5006_v51, %s6409_s28  ;;  %6331 = vmatprep.subr.bf16.mxu0 %v6386_v27  ;;  %vm8490_vm15 = vmmov %vm8486_vm0 }
 0x40e   : > { %vm8145_vm2 = vmand %vm8491_vm3, %vm8490_vm15 }
 0x40f   : > { %4967 = vrot.lane.b32.xlu1 %v4960_v16, %s6410_s29  ;;  %vm8494_vm1 = vmmov %vm8486_vm0 }
 0x410   : > { %6332 = vmatpush3.bf16.msra.mxu0 %v6386_v27  ;;  %vm8159_vm4 = vmand %vm3674_vm10, %vm8494_vm1 }
 0x411   : > { %5023 = vrot.lane.b32.xlu0 %v5014_v2, %s6409_s28  ;;  %6333 = vmatprep.subr.bf16.mxu0 %v6387_v54  ;;  %vm8497_vm10 = vmmov %vm8486_vm0 }
 0x412   : > { %vm8173_vm9 = vmand %vm8498_vm5, %vm8497_vm10 }
 0x413   : > { %5021 = vrot.lane.b32.xlu1 %v5010_v59, %s6409_s28 }
 0x414   : > { %6334 = vmatpush3.bf16.msra.mxu0 %v6387_v54 }
 0x415   : > { %5105 = vrot.lane.b32.xlu0 %v5065_v61, %s6411_s30  ;;  %6335 = vmatprep.subr.bf16.mxu0 %v6388_v18 }
 0x417   : > { %5025 = vrot.lane.b32.xlu1 %v5018_v3, %s6409_s28 }
 0x418   : > { %6336 = vmatpush3.bf16.msra.mxu0 %v6388_v18 }
 0x419   : > { %5109 = vrot.lane.b32.xlu0 %v5091_v30, %s6411_s30 }
 0x41b   : > { %5107 = vrot.lane.b32.xlu1 %v5078_v44, %s6411_s30 }
 0x41f   : > { %5111 = vrot.lane.b32.xlu1 %v5104_v40, %s6411_s30 }
 0x430   : > { %v4634_v34 = vpop.permute.xlu0 %4633 }
 0x431   : > { %v4648_v58 = vsel %vm8105_vm11, %v4634_v34, %v4647_v31 }
 0x432   : > { %4649 = vst [vmem:[#allocation8] sm:$0xf] %v4648_v58 }
 0x439   : > { %v4705_v48 = vld [vmem:[#allocation8] sm:$0xf] }
 0x453   : > { %v4636_v39 = vpop.permute.xlu1 %4635 }
 0x454   : > { %v4651_v36 = vsel %vm8105_vm11, %v4636_v39, %v4650_v50 }
 0x455   : > { %4652 = vst [vmem:[#allocation8 + $0x4] sm:$0xf] %v4651_v36 }
 0x45b   : > { %v4638_v21 = vpop.permute.xlu0 %4637 }
 0x45c   : > { %v4654_v26 = vsel %vm8105_vm11, %v4638_v21, %v4653_v37  ;;  %v4708_v24 = vld [vmem:[#allocation8 + $0x4] sm:$0xf] }
 0x45d   : > { %4655 = vst [vmem:[#allocation8 + $0x8] sm:$0xf] %v4654_v26 }
 0x45f   : > { %v4692_v32 = vpop.permute.xlu0 %4691 }
 0x460   : > { %v4706_v56 = vsel %vm8117_vm12, %v4692_v32, %v4705_v48 }
 0x461   : > { %4707 = vst [vmem:[#allocation8] sm:$0xf] %v4706_v56  ;;  %v4640_v1 = vpop.permute.xlu1 %4639 }
 0x462   : > { %v4657_v60 = vsel %vm8105_vm11, %v4640_v1, %v4656_v45  ;;  %vm8501_vm11 = vmmov %vm8486_vm0 }
 0x463   : > { %4658 = vst [vmem:[#allocation8 + $0xc] sm:$0xf] %v4657_v60  ;;  %v4696_v16 = vpop.permute.xlu0 %4695  ;;  %vm8187_vm8 = vmand %vm3862_vm7, %vm8501_vm11  ;;  %vm5867_vm7 = vcmask 129024  }
 0x464   : > { %v4711_v42 = vld [vmem:[#allocation8 + $0x8] sm:$0xf] }
 0x465   : > { %v4712_v25 = vsel %vm8117_vm12, %v4696_v16, %v4711_v42  ;;  %v4694_v23 = vpop.permute.xlu1 %4693 }
 0x466   : > { %4713 = vst [vmem:[#allocation8 + $0x8] sm:$0xf] %v4712_v25  ;;  %v4709_v7 = vsel %vm8117_vm12, %v4694_v23, %v4708_v24 }
 0x467   : > { %4710 = vst [vmem:[#allocation8 + $0x4] sm:$0xf] %v4709_v7  ;;  %v4798_v4 = vpop.permute.xlu0 %4797 }
 0x468   : > { %v4811_v2 = vld [vmem:[#allocation8] sm:$0xf] }
 0x469   : > { %v4812_v62 = vsel %vm8131_vm14, %v4798_v4, %v4811_v2  ;;  %v4698_v49 = vpop.permute.xlu1 %4697 }
 0x46a   : > { %4813 = vst [vmem:[#allocation8] sm:$0xf] %v4812_v62  ;;  %v4714_v63 = vld [vmem:[#allocation8 + $0xc] sm:$0xf] }
 0x46b   : > { %v4715_v29 = vsel %vm8117_vm12, %v4698_v49, %v4714_v63  ;;  %v4802_v13 = vpop.permute.xlu0 %4801 }
 0x46c   : > { %4716 = vst [vmem:[#allocation8 + $0xc] sm:$0xf] %v4715_v29 }
 0x46d   : > { %v4817_v41 = vld [vmem:[#allocation8 + $0x8] sm:$0xf]  ;;  %v4800_v46 = vpop.permute.xlu1 %4799 }
 0x46e   : > { %v4818_v59 = vsel %vm8131_vm14, %v4802_v13, %v4817_v41  ;;  %v4814_v17 = vld [vmem:[#allocation8 + $0x4] sm:$0xf] }
 0x46f   : > { %4819 = vst [vmem:[#allocation8 + $0x8] sm:$0xf] %v4818_v59  ;;  %v4815_v10 = vsel %vm8131_vm14, %v4800_v46, %v4814_v17  ;;  %v4856_v61 = vpop.permute.xlu0 %4855 }
 0x470   : > { %4816 = vst [vmem:[#allocation8 + $0x4] sm:$0xf] %v4815_v10 }
 0x471   : > { %v4869_v35 = vld [vmem:[#allocation8] sm:$0xf]  ;;  %v4804_v28 = vpop.permute.xlu1 %4803 }
 0x472   : > { %v4870_v9 = vsel %vm8145_vm2, %v4856_v61, %v4869_v35 }
 0x473   : > { %4871 = vst [vmem:[#allocation8] sm:$0xf] %v4870_v9  ;;  %v4820_v57 = vld [vmem:[#allocation8 + $0xc] sm:$0xf]  ;;  %v4860_v12 = vpop.permute.xlu0 %4859 }
 0x474   : > { %v4821_v19 = vsel %vm8131_vm14, %v4804_v28, %v4820_v57 }
 0x475   : > { %4822 = vst [vmem:[#allocation8 + $0xc] sm:$0xf] %v4821_v19  ;;  %v4858_v3 = vpop.permute.xlu1 %4857 }
 0x476   : > { %v4875_v53 = vld [vmem:[#allocation8 + $0x8] sm:$0xf] }
 0x477   : > { %v4876_v22 = vsel %vm8145_vm2, %v4860_v12, %v4875_v53  ;;  %v4872_v47 = vld [vmem:[#allocation8 + $0x4] sm:$0xf]  ;;  %v4962_v30 = vpop.permute.xlu0 %4961 }
 0x478   : > { %4877 = vst [vmem:[#allocation8 + $0x8] sm:$0xf] %v4876_v22  ;;  %v4873_v38 = vsel %vm8145_vm2, %v4858_v3, %v4872_v47 }
 0x479   : > { %4874 = vst [vmem:[#allocation8 + $0x4] sm:$0xf] %v4873_v38  ;;  %v4862_v5 = vpop.permute.xlu1 %4861 }
 0x47a   : > { %v4975_v43 = vld [vmem:[#allocation8] sm:$0xf] }
 0x47b   : > { %v4976_v11 = vsel %vm8159_vm4, %v4962_v30, %v4975_v43  ;;  %v4966_v44 = vpop.permute.xlu0 %4965 }
 0x47c   : > { %4977 = vst [vmem:[#allocation8] sm:$0xf] %v4976_v11  ;;  %v4878_v20 = vld [vmem:[#allocation8 + $0xc] sm:$0xf] }
 0x47d   : > { %v4879_v14 = vsel %vm8145_vm2, %v4862_v5, %v4878_v20  ;;  %v4964_v8 = vpop.permute.xlu1 %4963 }
 0x47e   : > { %4880 = vst [vmem:[#allocation8 + $0xc] sm:$0xf] %v4879_v14 }
 0x47f   : > { %v4981_v40 = vld [vmem:[#allocation8 + $0x8] sm:$0xf]  ;;  %v5020_v27 = vpop.permute.xlu0 %5019 }
 0x480   : > { %v4982_v54 = vsel %vm8159_vm4, %v4966_v44, %v4981_v40  ;;  %v4978_v18 = vld [vmem:[#allocation8 + $0x4] sm:$0xf] }
 0x481   : > { %4983 = vst [vmem:[#allocation8 + $0x8] sm:$0xf] %v4982_v54  ;;  %v4979_v33 = vsel %vm8159_vm4, %v4964_v8, %v4978_v18  ;;  %v4968_v34 = vpop.permute.xlu1 %4967 }
 0x482   : > { %4980 = vst [vmem:[#allocation8 + $0x4] sm:$0xf] %v4979_v33 }
 0x483   : > { %v5033_v58 = vld [vmem:[#allocation8] sm:$0xf]  ;;  %v5024_v36 = vpop.permute.xlu0 %5023 }
 0x484   : > { %v5034_v50 = vsel %vm8173_vm9, %v5020_v27, %v5033_v58 }
 0x485   : > { %5035 = vst [vmem:[#allocation8] sm:$0xf] %v5034_v50  ;;  %v4984_v39 = vld [vmem:[#allocation8 + $0xc] sm:$0xf]  ;;  %v5022_v21 = vpop.permute.xlu1 %5021 }
 0x486   : > { %v4985_v37 = vsel %vm8159_vm4, %v4968_v34, %v4984_v39 }
 0x487   : > { %4986 = vst [vmem:[#allocation8 + $0xc] sm:$0xf] %v4985_v37  ;;  %v5106_v1 = vpop.permute.xlu0 %5105 }
 0x488   : > { %v5039_v26 = vld [vmem:[#allocation8 + $0x8] sm:$0xf] }
 0x489   : > { %v5040_v51 = vsel %vm8173_vm9, %v5024_v36, %v5039_v26  ;;  %v5036_v48 = vld [vmem:[#allocation8 + $0x4] sm:$0xf]  ;;  %v5026_v45 = vpop.permute.xlu1 %5025 }
 0x48a   : > { %5041 = vst [vmem:[#allocation8 + $0x8] sm:$0xf] %v5040_v51  ;;  %v5037_v32 = vsel %vm8173_vm9, %v5022_v21, %v5036_v48 }
 0x48b   : > { %5038 = vst [vmem:[#allocation8 + $0x4] sm:$0xf] %v5037_v32  ;;  %v5110_v23 = vpop.permute.xlu0 %5109 }
 0x48c   : > { %v5119_v60 = vld [vmem:[#allocation8] sm:$0xf] }
 0x48d   : > { %v5120_v16 = vsel %vm8187_vm8, %v5106_v1, %v5119_v60  ;;  %v5108_v7 = vpop.permute.xlu1 %5107 }
 0x48e   : > { %5121 = vst [vmem:[#allocation8] sm:$0xf] %v5120_v16  ;;  %v5042_v42 = vld [vmem:[#allocation8 + $0xc] sm:$0xf] }
 0x48f   : > { %v5043_v25 = vsel %vm8173_vm9, %v5026_v45, %v5042_v42 }
 0x490   : > { %5044 = vst [vmem:[#allocation8 + $0xc] sm:$0xf] %v5043_v25 }
 0x491   : > { %v5125_v24 = vld [vmem:[#allocation8 + $0x8] sm:$0xf]  ;;  %v5112_v29 = vpop.permute.xlu1 %5111 }
 0x492   : > { %v5126_v0 = vsel %vm8187_vm8, %v5110_v23, %v5125_v24  ;;  %v5122_v4 = vld [vmem:[#allocation8 + $0x4] sm:$0xf] }
 0x493   : > { %5127 = vst [vmem:[#allocation8 + $0x8] sm:$0xf] %v5126_v0  ;;  %v5123_v2 = vsel %vm8187_vm8, %v5108_v7, %v5122_v4 }
 0x494   : > { %5124 = vst [vmem:[#allocation8 + $0x4] sm:$0xf] %v5123_v2 }
 0x495   : > { %v6184_v62 = vld.sshfl [vmem:[#allocation8] sm:$0x33 pattern:$0x75316420] }
 0x496   : > { %v5146_v49 = vcombine.high %v6184_v62, %v6184_v62  ;;  %v5153_v17 = vrot.slane %v6184_v62, %v7182_v6 }
 0x497   : > { %v5128_v63 = vld [vmem:[#allocation8 + $0xc] sm:$0xf] }
 0x498   : > { %v5129_v13 = vsel %vm8187_vm8, %v5112_v29, %v5128_v63  ;;  %v5160_v41 = vrot.slane %v5146_v49, %v7182_v6  ;;  %v5161_v53 = vcombine.high %v5153_v17, %v5153_v17  ;;  %v6188_v63 = vld [vmem:[%s8332_s6] ss:$0 sm:$0xff] }
 0x499   : > { %5130 = vst [vmem:[#allocation8 + $0xc] sm:$0xf] %v5129_v13 }
 0x49a   : > { %v6186_v46 = vld.sshfl [vmem:[#allocation8 + $0x8] sm:$0x33 pattern:$0x75316420]  ;;  %v5162_v15 = vcombine.high %v5160_v41, %v5160_v41  ;;  %v5300_v22 = vcombine.low %v5153_v17, %v5160_v41 }
 0x49b   : > { %v6185_v59 = vld.sshfl [vmem:[#allocation8 + $0x4] sm:$0x33 pattern:$0x75316420]  ;;  %v5194_v10 = vcombine.high %v6186_v46, %v6186_v46  ;;  %v5201_v28 = vrot.slane %v6186_v46, %v7182_v6 }
 0x49c   : > { %v5170_v61 = vcombine.high %v6185_v59, %v6185_v59  ;;  %v5177_v35 = vrot.slane %v6185_v59, %v7182_v6  ;;  %v5310_v58 = vrot.slane %v5300_v22, %v7182_v6 }
 0x49d   : > { %v5208_v9 = vrot.slane %v5194_v10, %v7182_v6  ;;  %v5209_v30 = vcombine.high %v5201_v28, %v5201_v28 }
 0x49e   : > { %v5184_v57 = vrot.slane %v5170_v61, %v7182_v6  ;;  %v5185_v12 = vcombine.high %v5177_v35, %v5177_v35  ;;  %v5243_v19 = vunpack.i.h.s16 %v5177_v35  ;;  %v6189_v3 = vpack.i.b16 %v5177_v35, %v5162_v15 }
 0x49f   : > { %v5210_v20 = vcombine.high %v5208_v9, %v5208_v9  ;;  %v5349_v50 = vcombine.low %v5208_v9, %v5209_v30 }
 0x4a0   : > { %v5186_v47 = vcombine.high %v5184_v57, %v5184_v57  ;;  %v5245_v38 = vunpack.i.h.s16 %v5184_v57  ;;  %v5247_v52 = vunpack.i.h.s16 %v5185_v12  ;;  %v6187_v5 = vld.sshfl [vmem:[#allocation8 + $0xc] sm:$0x33 pattern:$0x75316420]  ;;  %v5301_v43 = vcombine.low %v5161_v53, %v6189_v3 }
 0x4a1   : > { %v5218_v11 = vcombine.high %v6187_v5, %v6187_v5  ;;  %v5225_v44 = vrot.slane %v6187_v5, %v7182_v6  ;;  %v6190_v14 = vpack.i.b16 %v5184_v57, %v5243_v19  ;;  %v5358_v24 = vrot.slane %v5349_v50, %v7182_v6 }
 0x4a2   : > { %v6191_v8 = vpack.i.b16 %v5185_v12, %v5245_v38  ;;  %v6192_v40 = vpack.i.b16 %v5186_v47, %v5247_v52  ;;  %v5317_v27 = vrot.slane %v5301_v43, %v7182_v6 }
 0x4a3   : > { %v5232_v54 = vrot.slane %v5218_v11, %v7182_v6  ;;  %v5233_v18 = vcombine.high %v5225_v44, %v5225_v44  ;;  %v5257_v33 = vunpack.i.h.s16 %v5225_v44  ;;  %v6193_v37 = vpack.i.b16 %v5225_v44, %v5210_v20 }
 0x4a4   : > { %v5302_v31 = vcombine.low %v6190_v14, %v6191_v8  ;;  %v5303_v34 = vcombine.low %v6192_v40, %v5201_v28  ;;  %v5332_v48 = vcombine.low %v5310_v58, %v5317_v27 }
 0x4a5   : > { %v5234_v39 = vcombine.high %v5232_v54, %v5232_v54  ;;  %v5259_v36 = vunpack.i.h.s16 %v5232_v54  ;;  %v5261_v21 = vunpack.i.h.s16 %v5233_v18  ;;  %v6194_v32 = vpack.i.b16 %v5232_v54, %v5257_v33 }
 0x4a6   : > { %v5324_v26 = vrot.slane %v5302_v31, %v7182_v6  ;;  %v5331_v51 = vrot.slane %v5303_v34, %v7182_v6  ;;  %v5340_v42 = vrot.slane %v5332_v48, %v7182_v6 }
 0x4a7   : > { %v6195_v56 = vpack.i.b16 %v5233_v18, %v5259_v36  ;;  %v6196_v1 = vpack.i.b16 %v5234_v39, %v5261_v21  ;;  %v5350_v60 = vcombine.low %v6193_v37, %v6194_v32 }
 0x4a8   : > { %v5333_v45 = vcombine.low %v5324_v26, %v5331_v51 }
 0x4a9   : > { %v5351_v16 = vcombine.low %v6195_v56, %v6196_v1  ;;  %v5365_v23 = vrot.slane %v5350_v60, %v7182_v6 }
 0x4aa   : > { %v5347_v25 = vrot.slane %v5333_v45, %v7182_v6 }
 0x4ab   : > { %v5372_v7 = vrot.slane %v5351_v16, %v7182_v6  ;;  %v5373_v4 = vcombine.low %v5358_v24, %v5365_v23 }
 0x4ac   : > { %v5348_v0 = vcombine.low %v5340_v42, %v5347_v25 }
 0x4ad   : > { %v5387_v2 = vrot.slane %v5372_v7, %v7182_v6  ;;  %v5380_v62 = vrot.slane %v5373_v4, %v7182_v6 }
 0x4ae   : > { %6337 = vmatprep.mubr.bf16.mxu0 %v5348_v0 }
 0x4af   : > { %v5388_v49 = vcombine.low %v5380_v62, %v5387_v2 }
 0x4b1   : > { %6338 = vmatmul.mubr.bf16.vlgmr.msra.gmra.mxu0 %v5388_v49 }
 0x571   : > { %v6339_v29 = vpop.f32.mrf.mxu0 }
 0x572   : > { %v5482_v13 = vadd.f32 %v6339_v29, %v6188_v63 }
 0x573   : > { %v5473_v41 = vpop.f32.mrf.mxu0 }
 0x574   : > { %v5490_v46 = vmax.f32 %v5482_v13, 0.0  ;;  %v5474_v59 = vadd.f32 %v6188_v63, %v5473_v41 }
 0x575   : > { %v6340_v17 = vpop.f32.mrf.mxu0 }
 0x576   : > { %v5598_v10 = vcombine.high %v5490_v46, %v5490_v46  ;;  %v5605_v15 = vrot.slane %v5490_v46, %v7182_v6  ;;  %v5488_v61 = vmax.f32 %v5474_v59, 0.0  ;;  %v5485_v35 = vadd.f32 %v6340_v17, %v6188_v63 }
 0x577   : > { %v5476_v28 = vpop.f32.mrf.mxu0 }
 0x578   : > { %v5612_v9 = vrot.slane %v5598_v10, %v7182_v6  ;;  %v5613_v57 = vcombine.high %v5605_v15, %v5605_v15  ;;  %v5500_v12 = vcombine.high %v5488_v61, %v5488_v61  ;;  %v5507_v19 = vrot.slane %v5488_v61, %v7182_v6 }
 0x579   : > { %v5491_v3 = vmax.f32 %v5485_v35, 0.0  ;;  %v5477_v30 = vadd.f32 %v6188_v63, %v5476_v28  ;;  %v5621_v40 = vrot.slane %v5605_v15, %v7182_v6 }
 0x57a   : > { %v5614_v53 = vcombine.high %v5612_v9, %v5612_v9  ;;  %v8227_v22 = vrot.slane %v5612_v9, %v7182_v6  ;;  %v5514_v47 = vrot.slane %v5500_v12, %v7182_v6  ;;  %v5515_v38 = vcombine.high %v5507_v19, %v5507_v19 }
 0x57b   : > { %v8231_v52 = vrot.slane %v5613_v57, %v7182_v6  ;;  %v5653_v11 = vrot.slane %v5491_v3, %v7182_v6  ;;  %v5523_v20 = vrot.slane %v5507_v19, %v7182_v6  ;;  %v5489_v18 = vmax.f32 %v5477_v30, 0.0 }
 0x57c   : > { %v5642_v5 = vrot.slane %v5614_v53, %v7182_v6  ;;  %v5644_v43 = vcombine.high %v8227_v22, %v8227_v22  ;;  %v5516_v44 = vcombine.high %v5514_v47, %v5514_v47  ;;  %v5530_v14 = vrot.slane %v5514_v47, %v7182_v6 }
 0x57d   : > { %v5537_v8 = vrot.slane %v5515_v38, %v7182_v6  ;;  %v5768_v50 = vcombine.low %v5621_v40, %v8231_v52  ;;  %v5654_v39 = vcombine.high %v5653_v11, %v5653_v11  ;;  %v5661_v36 = vrot.slane %v5653_v11, %v7182_v6 }
 0x57e   : > { %v5815_v27 = vcombine.low %v5642_v5, %v5644_v43  ;;  %v5646_v54 = vcombine.high %v5642_v5, %v5642_v5  ;;  %v5544_v33 = vrot.slane %v5516_v44, %v7182_v6  ;;  %v5546_v31 = vcombine.high %v5530_v14, %v5530_v14 }
 0x57f   : > { %v5671_v34 = vcombine.low %v5523_v20, %v5537_v8  ;;  %v6205_v58 = vcombine.high %v5523_v20, %v5537_v8  ;;  %v6207_v21 = vcombine.high %v5621_v40, %v8231_v52  ;;  %v5668_v48 = vrot.slane %v5654_v39, %v7182_v6 }
 0x580   : > { %v5673_v37 = vcombine.low %v5530_v14, %v5544_v33  ;;  %v5669_v32 = vcombine.high %v5661_v36, %v5661_v36  ;;  %v5816_v56 = vcombine.low %v5646_v54, %v5661_v36  ;;  %v5824_v1 = vrot.slane %v5815_v27, %v7182_v6 }
 0x581   : > { %v5680_v26 = vrot.slane %v5671_v34, %v7182_v6  ;;  %v5687_v51 = vrot.slane %v6205_v58, %v7182_v6  ;;  %v5701_v60 = vrot.slane %v5546_v31, %v7182_v6  ;;  %v5549_v42 = vcombine.high %v5489_v18, %v5489_v18 }
 0x582   : > { %v5694_v45 = vrot.slane %v5673_v37, %v7182_v6  ;;  %v5670_v25 = vcombine.high %v5668_v48, %v5668_v48  ;;  %v5817_v24 = vcombine.low %v5668_v48, %v5669_v32  ;;  %v5831_v23 = vrot.slane %v5816_v56, %v7182_v6 }
 0x583   : > { %v5702_v16 = vcombine.low %v5680_v26, %v5687_v51  ;;  %v5556_v7 = vrot.slane %v5489_v18, %v7182_v6  ;;  %v5790_v0 = vrot.slane %v6207_v21, %v7182_v6  ;;  %v5548_v2 = vcombine.high %v5544_v33, %v5544_v33 }
 0x584   : > { %v5703_v4 = vcombine.low %v5694_v45, %v5701_v60  ;;  %v5563_v62 = vrot.slane %v5549_v42, %v7182_v6  ;;  %v5838_v49 = vrot.slane %v5817_v24, %v7182_v6  ;;  %v5845_v63 = vrot.slane %v5670_v25, %v7182_v6 }
 0x585   : > { %v5846_v29 = vcombine.low %v5824_v1, %v5831_v23  ;;  %v5564_v13 = vcombine.high %v5556_v7, %v5556_v7  ;;  %v5710_v41 = vrot.slane %v5702_v16, %v7182_v6  ;;  %v5572_v17 = vrot.slane %v5556_v7, %v7182_v6 }
 0x586   : > { %v5717_v46 = vrot.slane %v5703_v4, %v7182_v6  ;;  %v5565_v59 = vcombine.high %v5563_v62, %v5563_v62  ;;  %v5847_v10 = vcombine.low %v5838_v49, %v5845_v63  ;;  %v5579_v61 = vrot.slane %v5563_v62, %v7182_v6 }
 0x587   : > { %v5854_v15 = vrot.slane %v5846_v29, %v7182_v6  ;;  %v5586_v35 = vrot.slane %v5564_v13, %v7182_v6  ;;  %v5594_v57 = vcombine.high %v5572_v17, %v5572_v17  ;;  %v5719_v12 = vcombine.low %v5548_v2, %v5572_v17 }
 0x588   : > { %v5718_v28 = vcombine.low %v5710_v41, %v5717_v46  ;;  %v5593_v9 = vrot.slane %v5565_v59, %v7182_v6  ;;  %v5861_v19 = vrot.slane %v5847_v10, %v7182_v6  ;;  %v5797_v53 = vrot.slane %v8227_v22, %v7182_v6 }
 0x589   : > { %v5596_v3 = vcombine.high %v5586_v35, %v5586_v35  ;;  %v5720_v47 = vcombine.low %v5586_v35, %v5594_v57  ;;  %v5728_v30 = vrot.slane %v5719_v12, %v7182_v6  ;;  %v5783_v43 = vrot.slane %v5768_v50, %v7182_v6 }
 0x58a   : > { %5868 = vst.msk [vmem:[#allocation9 + $0x1] sm:$0x7f] %vm5867_vm7, %v5718_v28  ;;  %v6206_v38 = vcombine.high %v5579_v61, %v5593_v9  ;;  %v5862_v52 = vcombine.low %v5854_v15, %v5861_v19  ;;  %v5799_v11 = vcombine.low %v5790_v0, %v5797_v53  ;;  %v5749_v14 = vrot.slane %v5593_v9, %v7182_v6 }
 0x58b   : > { %v5721_v5 = vcombine.low %v5596_v3, %v5579_v61  ;;  %v5735_v44 = vrot.slane %v5720_v47, %v7182_v6 }
 0x58c   : > { %v5776_v20 = vrot.slane %v6206_v38, %v7182_v6  ;;  %5871 = vst.msk [vmem:[#allocation9 + $0x19] sm:$0x7f] %vm5867_vm7, %v5862_v52  ;;  %v5813_v54 = vrot.slane %v5799_v11, %v7182_v6 }
 0x58d   : > { %v5742_v22 = vrot.slane %v5721_v5, %v7182_v6  ;;  %v5750_v8 = vcombine.low %v5728_v30, %v5735_v44 }
 0x58e   : > { %v5798_v40 = vcombine.low %v5776_v20, %v5783_v43 }
 0x58f   : > { %v5751_v27 = vcombine.low %v5742_v22, %v5749_v14  ;;  %v5758_v33 = vrot.slane %v5750_v8, %v7182_v6 }
 0x590   : > { %v5806_v18 = vrot.slane %v5798_v40, %v7182_v6 }
 0x591   : > { %v5765_v31 = vrot.slane %v5751_v27, %v7182_v6  ;;  %v5872_v34 = vld [vmem:[#allocation9] ss:$2 sm:$0xf]  ;;  %v5880_v58 = vld [vmem:[#allocation9 + $0x1] ss:$2 sm:$0xf] }
 0x592   : > { %v5814_v50 = vcombine.low %v5806_v18, %v5813_v54  ;;  %v5887_v39 = vmax.f32 %v5872_v34, %v5880_v58 }
 0x593   : > { %v5766_v36 = vcombine.low %v5758_v33, %v5765_v31  ;;  %v5878_v37 = vld [vmem:[#allocation9 + $0x18] ss:$2 sm:$0xf]  ;;  %v5886_v26 = vld [vmem:[#allocation9 + $0x19] ss:$2 sm:$0xf] }
 0x594   : > { %5870 = vst.msk [vmem:[#allocation9 + $0x11] sm:$0x7f] %vm5867_vm7, %v5814_v50  ;;  %v5891_v21 = vpack.c.bf16 %v5887_v39, %v5887_v39  ;;  %v5890_v6 = vmax.f32 %v5878_v37, %v5886_v26 }
 0x595   : > { %5869 = vst.msk [vmem:[#allocation9 + $0x9] sm:$0x7f] %vm5867_vm7, %v5766_v36 }
 0x596   : > { %v5910_v51 = vrot.slane %v5891_v21, %v7929_v55  ;;  %5896 = vst.msk [vmem:[%s8283_s9] sm:$0x3] %vm5895_vm13, %v5891_v21  ;;  %v5894_v48 = vpack.c.bf16 %v5890_v6, %v5890_v6 }
 0x598   : > { %5949 = vrot.lane.b32.xlu1 %v5910_v51, %s6413_s26  ;;  %5932 = vrot.lane.b32.xlu0 %v5910_v51, %s6414_s11  ;;  %v5931_v32 = vrot.slane %v5894_v48, %v7929_v55  ;;  %5899 = vst.msk [vmem:[%s8283_s9 + $0x18] sm:$0x3] %vm5895_vm13, %v5894_v48 }
 0x59b   : > { %v5876_v56 = vld [vmem:[#allocation9 + $0x10] ss:$2 sm:$0xf]  ;;  %v5884_v1 = vld [vmem:[#allocation9 + $0x11] ss:$2 sm:$0xf] }
 0x59c   : > { %5938 = vrot.lane.b32.xlu1 %v5931_v32, %s6414_s11  ;;  %5966 = vrot.lane.b32.xlu0 %v5910_v51, %s6415_s13  ;;  %v5874_v45 = vld [vmem:[#allocation9 + $0x8] ss:$2 sm:$0xf]  ;;  %v5882_v60 = vld [vmem:[#allocation9 + $0x9] ss:$2 sm:$0xf]  ;;  %v5889_v16 = vmax.f32 %v5876_v56, %v5884_v1 }
 0x59d   : > { %v5888_v42 = vmax.f32 %v5874_v45, %v5882_v60 }
 0x59e   : > { %v5893_v25 = vpack.c.bf16 %v5889_v16, %v5889_v16 }
 0x59f   : > { %v5892_v24 = vpack.c.bf16 %v5888_v42, %v5888_v42 }
 0x5a0   : > { %5898 = vst.msk [vmem:[%s8283_s9 + $0x10] sm:$0x3] %vm5895_vm13, %v5893_v25  ;;  %v5924_v7 = vrot.slane %v5893_v25, %v7929_v55 }
 0x5a1   : > { %v5917_v23 = vrot.slane %v5892_v24, %v7929_v55  ;;  %5897 = vst.msk [vmem:[%s8283_s9 + $0x8] sm:$0x3] %vm5895_vm13, %v5892_v24 }
 0x5a3   : > { %5951 = vrot.lane.b32.xlu0 %v5917_v23, %s6413_s26  ;;  %5934 = vrot.lane.b32.xlu1 %v5917_v23, %s6414_s11 }
 0x5a7   : > { %5936 = vrot.lane.b32.xlu0 %v5924_v7, %s6414_s11  ;;  %5968 = vrot.lane.b32.xlu1 %v5917_v23, %s6415_s13 }
 0x5ab   : > { %5970 = vrot.lane.b32.xlu0 %v5924_v7, %s6415_s13  ;;  %5953 = vrot.lane.b32.xlu1 %v5924_v7, %s6413_s26 }
 0x5af   : > { %5955 = vrot.lane.b32.xlu0 %v5931_v32, %s6413_s26  ;;  %5972 = vrot.lane.b32.xlu1 %v5931_v32, %s6415_s13 }
 0x60a   : > { %v5950_v0 = vpop.permute.xlu1 %5949  ;;  %v5933_v4 = vpop.permute.xlu0 %5932 }
 0x60b   : > { %6212 = vst.msk [vmem:[%s8283_s9 + $0x4] sm:$0x3] %vm5895_vm13, %v5950_v0  ;;  %6208 = vst.msk [vmem:[%s8283_s9 + $0x2] sm:$0x3] %vm5895_vm13, %v5933_v4 }
 0x60e   : > { %v5967_v55 = vpop.permute.xlu0 %5966  ;;  %v5939_v2 = vpop.permute.xlu1 %5938 }
 0x60f   : > { %6216 = vst.msk [vmem:[%s8283_s9 + $0x6] sm:$0x3] %vm5895_vm13, %v5967_v55  ;;  %6211 = vst.msk [vmem:[%s8283_s9 + $0x1a] sm:$0x3] %vm5895_vm13, %v5939_v2 }
 0x615   : > { %v5952_v62 = vpop.permute.xlu0 %5951  ;;  %v5935_v49 = vpop.permute.xlu1 %5934 }
 0x616   : > { %6213 = vst.msk [vmem:[%s8283_s9 + $0xc] sm:$0x3] %vm5895_vm13, %v5952_v62  ;;  %6209 = vst.msk [vmem:[%s8283_s9 + $0xa] sm:$0x3] %vm5895_vm13, %v5935_v49 }
 0x619   : > { %v5937_v63 = vpop.permute.xlu0 %5936  ;;  %v5969_v29 = vpop.permute.xlu1 %5968 }
 0x61a   : > { %6210 = vst.msk [vmem:[%s8283_s9 + $0x12] sm:$0x3] %vm5895_vm13, %v5937_v63  ;;  %6217 = vst.msk [vmem:[%s8283_s9 + $0xe] sm:$0x3] %vm5895_vm13, %v5969_v29 }
 0x61d   : > { %v5971_v13 = vpop.permute.xlu0 %5970  ;;  %v5954_v41 = vpop.permute.xlu1 %5953 }
 0x61e   : > { %6218 = vst.msk [vmem:[%s8283_s9 + $0x16] sm:$0x3] %vm5895_vm13, %v5971_v13  ;;  %6214 = vst.msk [vmem:[%s8283_s9 + $0x14] sm:$0x3] %vm5895_vm13, %v5954_v41 }
 0x621   : > { %v5956_v46 = vpop.permute.xlu0 %5955  ;;  %v5973_v59 = vpop.permute.xlu1 %5972 }
 0x622   : > { %6215 = vst.msk [vmem:[%s8283_s9 + $0x1c] sm:$0x3] %vm5895_vm13, %v5956_v46  ;;  %6219 = vst.msk [vmem:[%s8283_s9 + $0x1e] sm:$0x3] %vm5895_vm13, %v5973_v59 }
 0x623 PF: > { %s17_s24 = sadd.s32 1, %s6395_s24  }
 0x624   : > { %p14_p4 = scmp.ge.s32.totalorder %s17_s24, 4  }
 0x626   :  { %16 = sbr.rel (!%p14_p4) target bundleno = 1 (0x1), region = 110 }

</bundles_post_ra>
